<compile_context>
chip_gen: v5e
topology: v5e:2x2
jax: 0.10.0
libtpu: 0.0.40
codegen_flags: <defaults>
</compile_context>

<pallas_src>
import functools

import jax
import jax.numpy as jnp
from jax import lax
from jax.experimental import pallas as pl
from jax.experimental.pallas import tpu as pltpu

GRU_BIAS_INIT = 0.0

# 3x3 neighbourhood offsets, k = ky*3 + kx ordering (matches weight layout).
_OFFS = tuple((dy, dx) for dy in (-1, 0, 1) for dx in (-1, 0, 1))


# ----------------------------------------------------------------------------
# Shared in-kernel helpers (channel-major im2col via lane rolls + border masks)
# ----------------------------------------------------------------------------
def _border_masks(H, W, HW):
    """9 multiplicative (1, HW) f32 masks zeroing out-of-image 3x3 taps."""
    pos = lax.broadcasted_iota(jnp.int32, (1, HW), 1)
    # row/col without vector integer division (float trick is always supported;
    # exact because the 0.5/W margin dwarfs f32 rounding error).
    row = jnp.floor((pos.astype(jnp.float32) + 0.5) * (1.0 / W)).astype(jnp.int32)
    col = pos - row * W
    masks = []
    for dy, dx in _OFFS:
        ok = ((row + dy >= 0) & (row + dy < H) &
              (col + dx >= 0) & (col + dx < W))
        masks.append(ok.astype(jnp.float32))
    return masks


def _fill_taps(cols_ref, base, a, masks, W, HW):
    """Write the 9 shifted 3x3-SAME taps of `a` ((Cin, HW) f32, channel-major)
    into the shared bf16 cols scratch at sublane offsets base + k*Cin.
    Cin and base are multiples of 16, so every store is tile-aligned."""
    cin = a.shape[0]
    for k, (dy, dx) in enumerate(_OFFS):
        delta = dy * W + dx
        if delta == 0:
            tap = a
        else:
            # out[p] = a[p + delta] (wrap positions are masked to zero).
            tap = pltpu.roll(a, shift=(-delta) % HW, axis=1) * masks[k]
        cols_ref[base + k * cin:base + (k + 1) * cin, :] = tap.astype(jnp.bfloat16)


# ----------------------------------------------------------------------------
# Recurrent GRU kernel: full (B, T) recurrence in one pallas_call.
# ----------------------------------------------------------------------------
@functools.lru_cache(maxsize=None)
def _make_gru_call(B, T, H, W, Cxp, Ch):
    HW = H * W
    C2, C3 = 2 * Ch, 3 * Ch
    K1 = 9 * (Cxp + Ch)   # fused gate conv1:   [x taps ; s taps]
    K2 = 9 * C2           # fused gate conv2:   block-diagonal over [h_upd ; h_rst]
    KS = 9 * Ch           # single-hidden-input convs
    KMAX = max(K1, K2)

    def kernel(x_ref,      # (1, 1, Cxp, HW) bf16  input at (b, t), channel-padded
               s0_ref,     # (1, Ch, HW)     f32   initial state for batch b
               w1_ref,     # (3Ch, K1)       bf16  fused gate conv1 [upd|rst|tilde-x]
               w2_ref,     # (2Ch, K2)       bf16  gate conv2 upd+rst (block-diag)
               ws2_ref,    # (Ch, KS)        bf16  tilde conv1 s-part
               w22_ref,    # (Ch, KS)        bf16  tilde conv2
               b1_ref,     # (3Ch, 1)        f32
               b2_ref,     # (2Ch, 1)        f32
               b22_ref,    # (Ch, 1)         f32
               s_out_ref,  # (1, 1, Ch, HW)  bf16  output: hidden state at (b, t)
               state_ref,  # (Ch, HW)        f32   VMEM scratch: carried state
               cols_ref,   # (KMAX, HW)      bf16  VMEM scratch: shared im2col buffer
               ):
        t = pl.program_id(1)

        @pl.when(t == 0)
        def _init():
            state_ref[...] = s0_ref[0]

        masks = _border_masks(H, W, HW)

        def fill(base, a):
            _fill_taps(cols_ref, base, a, masks, W, HW)

        def mm(w_ref, k):
            return jnp.dot(w_ref[...], cols_ref[0:k, :],
                           preferred_element_type=jnp.float32)

        x = x_ref[0, 0].astype(jnp.float32)   # (Cxp, HW)
        s = state_ref[...]                    # (Ch, HW)

        # ---- fused gate conv1: rows [upd | rst | tilde-x-only]
        fill(0, x)
        fill(9 * Cxp, s)
        g1 = mm(w1_ref, K1) + b1_ref[...]          # (3Ch, HW)
        h01 = jnp.maximum(g1[0:C2], 0.0)           # relu (act = nn.ReLU)
        px_tilde = g1[C2:C3]                       # tilde conv1 x-part + bias

        # ---- gate conv2 (update + reset fused, block-diagonal weight)
        fill(0, h01)
        gates = jax.nn.sigmoid(mm(w2_ref, K2) + b2_ref[...] + GRU_BIAS_INIT)
        ug = gates[0:Ch]
        rg = gates[Ch:C2]

        # ---- state tilde branch
        fill(0, (1.0 - rg) * s)
        h2 = jnp.maximum(px_tilde + mm(ws2_ref, KS), 0.0)
        fill(0, h2)
        tilde = mm(w22_ref, KS) + b22_ref[...]

        new_s = (1.0 - ug) * s + ug * tilde
        state_ref[...] = new_s
        s_out_ref[0, 0] = new_s.astype(jnp.bfloat16)

    def _const(shape):
        z = (0,) * len(shape)
        return pl.BlockSpec(shape, lambda b, t, _z=z: _z)

    in_specs = [
        pl.BlockSpec((1, 1, Cxp, HW), lambda b, t: (b, t, 0, 0)),   # x
        pl.BlockSpec((1, Ch, HW), lambda b, t: (b, 0, 0)),          # initial state
        _const((C3, K1)),
        _const((C2, K2)),
        _const((Ch, KS)),
        _const((Ch, KS)),
        _const((C3, 1)),
        _const((C2, 1)),
        _const((Ch, 1)),
    ]
    out_specs = pl.BlockSpec((1, 1, Ch, HW), lambda b, t: (b, t, 0, 0))

    return pl.pallas_call(
        kernel,
        grid=(B, T),
        in_specs=in_specs,
        out_specs=out_specs,
        out_shape=jax.ShapeDtypeStruct((B, T, Ch, HW), jnp.bfloat16),
        scratch_shapes=[pltpu.VMEM((Ch, HW), jnp.float32),
                        pltpu.VMEM((KMAX, HW), jnp.bfloat16)],
        compiler_params=pltpu.CompilerParams(
            dimension_semantics=("parallel", "arbitrary")),
    )


# ----------------------------------------------------------------------------
# Decoder kernel: conv_decoder(state_t) for every (b, t), fully parallel.
# ----------------------------------------------------------------------------
@functools.lru_cache(maxsize=None)
def _make_decoder_call(B, T, H, W, Ch):
    HW = H * W
    KS = 9 * Ch

    def kernel(s_ref, wd1_ref, wd2_ref, bd1_ref, bd2_ref, o_ref, cols_ref):
        masks = _border_masks(H, W, HW)

        def mm(w_ref):
            return jnp.dot(w_ref[...], cols_ref[...],
                           preferred_element_type=jnp.float32)

        s = s_ref[0, 0].astype(jnp.float32)                 # (Ch, HW)
        _fill_taps(cols_ref, 0, s, masks, W, HW)
        d1 = jnp.maximum(mm(wd1_ref) + bd1_ref[...], 0.0)
        _fill_taps(cols_ref, 0, d1, masks, W, HW)
        o_ref[0, 0] = mm(wd2_ref) + bd2_ref[...]

    def _const(shape):
        z = (0,) * len(shape)
        return pl.BlockSpec(shape, lambda b, t, _z=z: _z)

    return pl.pallas_call(
        kernel,
        grid=(B, T),
        in_specs=[pl.BlockSpec((1, 1, Ch, HW), lambda b, t: (b, t, 0, 0)),
                  _const((Ch, KS)), _const((Ch, KS)),
                  _const((Ch, 1)), _const((Ch, 1))],
        out_specs=pl.BlockSpec((1, 1, Ch, HW), lambda b, t: (b, t, 0, 0)),
        out_shape=jax.ShapeDtypeStruct((B, T, Ch, HW), jnp.float32),
        scratch_shapes=[pltpu.VMEM((KS, HW), jnp.bfloat16)],
        compiler_params=pltpu.CompilerParams(
            dimension_semantics=("parallel", "parallel")),
    )


# ----------------------------------------------------------------------------
# Wrapper-side weight preparation (channel-major im2col layout, gate fusion).
# ----------------------------------------------------------------------------
def _oihw_to_mat(w):
    # (O, I, 3, 3) -> (O, 9*I) with column index = (ky*3+kx)*I + i,
    # matching the row layout written by _fill_taps.
    o, i = w.shape[0], w.shape[1]
    return jnp.transpose(w, (0, 2, 3, 1)).reshape(o, 9 * i)


def prepare_params(params, C, Cxp):
    w1g, b1g, w2g, b2g, wd1, bd1, wd2, bd2 = params
    Ch = w1g.shape[1]

    # Fused gate conv1: rows = [update | reset | tilde], K = [x taps | s taps];
    # the tilde s-columns are zero (its s-part uses (1-r)*s and runs separately).
    w1x = jnp.pad(w1g[:, :, :C], ((0, 0), (0, 0), (0, Cxp - C), (0, 0), (0, 0)))
    w1s = w1g[:, :, C:]
    zero_s = jnp.zeros((Ch, 9 * Ch), jnp.float32)
    rows = []
    for g in range(3):
        s_part = _oihw_to_mat(w1s[g]) if g < 2 else zero_s
        rows.append(jnp.concatenate([_oihw_to_mat(w1x[g]), s_part], axis=1))
    w1 = jnp.concatenate(rows, axis=0)                      # (3Ch, 9*(Cxp+Ch))
    ws2 = _oihw_to_mat(w1s[2])                              # (Ch, 9Ch)

    # Gate conv2 for update/reset fused with a block-diagonal weight
    # (input rows 0:Ch are the update hidden, Ch:2Ch the reset hidden).
    w2u = _oihw_to_mat(w2g[0]).reshape(Ch, 9, Ch)
    w2r = _oihw_to_mat(w2g[1]).reshape(Ch, 9, Ch)
    z = jnp.zeros_like(w2u)
    w2 = jnp.concatenate([jnp.concatenate([w2u, z], axis=2),
                          jnp.concatenate([z, w2r], axis=2)],
                         axis=0).reshape(2 * Ch, 9 * 2 * Ch)
    w22 = _oihw_to_mat(w2g[2])

    bf = lambda w: w.astype(jnp.bfloat16)
    col = lambda b: jnp.reshape(b, (-1, 1)).astype(jnp.float32)
    return (bf(w1), bf(w2), bf(ws2), bf(w22),
            col(b1g), col(b2g[:2]), col(b2g[2]),
            bf(_oihw_to_mat(wd1)), bf(_oihw_to_mat(wd2)), col(bd1), col(bd2))


def spatial_gru_forward(x, params, state=None):
    """x: (B, T, C, H, W) like the PyTorch module.  Returns (B, T, Ch, H, W)."""
    B, T, C, H, W = x.shape
    Ch = params[0].shape[1]
    HW = H * W
    # TODO(synk): larger / non-aligned H*W needs spatial row-tiling with a halo
    # (especially on v7x's 64 MiB VMEM); this kernel assumes HW % 128 == 0 and
    # Ch % 16 == 0, which holds for the module's configurations used here.
    assert HW % 128 == 0 and Ch % 16 == 0
    Cxp = -(-C // 16) * 16   # pad x channels to the bf16 sublane tile

    x_cm = jnp.pad(x.reshape(B, T, C, HW),
                   ((0, 0), (0, 0), (0, Cxp - C), (0, 0))).astype(jnp.bfloat16)
    if state is None:
        s0 = jnp.zeros((B, Ch, HW), jnp.float32)
    else:
        s0 = state.reshape(B, Ch, HW).astype(jnp.float32)

    (w1, w2, ws2, w22, b1, b2, b22, wd1, wd2, bd1, bd2) = prepare_params(params, C, Cxp)

    s_seq = _make_gru_call(B, T, H, W, Cxp, Ch)(
        x_cm, s0, w1, w2, ws2, w22, b1, b2, b22)
    out = _make_decoder_call(B, T, H, W, Ch)(s_seq, wd1, wd2, bd1, bd2)
    return out.reshape(B, T, Ch, H, W)


# ----------------------------------------------------------------------------
# Pure-JAX reference (lax.conv, f32 HIGHEST) for correctness checking.
# ----------------------------------------------------------------------------
def _conv_ref(a, w, b):
    out = lax.conv_general_dilated(
        a, w, window_strides=(1, 1), padding="SAME",
        dimension_numbers=("NCHW", "OIHW", "NCHW"),
        precision=lax.Precision.HIGHEST)
    return out + b.reshape(1, -1, 1, 1)


def _conv_seq_ref(a, w1, b1, w2, b2):
    return _conv_ref(jnp.maximum(_conv_ref(a, w1, b1), 0.0), w2, b2)


def reference_forward(x, params, state=None):
    w1g, b1g, w2g, b2g, wd1, bd1, wd2, bd2 = params
    B, T, C, H, W = x.shape
    Ch = w1g.shape[1]
    s = jnp.zeros((B, Ch, H, W), jnp.float32) if state is None else state
    outs = []
    for t in range(T):
        xt = x[:, t]
        xs = jnp.concatenate([xt, s], axis=1)
        u = _conv_seq_ref(xs, w1g[0], b1g[0], w2g[0], b2g[0])
        r = _conv_seq_ref(xs, w1g[1], b1g[1], w2g[1], b2g[1])
        ug = jax.nn.sigmoid(u + GRU_BIAS_INIT)
        rg = jax.nn.sigmoid(r + GRU_BIAS_INIT)
        xs2 = jnp.concatenate([xt, (1.0 - rg) * s], axis=1)
        tl = _conv_seq_ref(xs2, w1g[2], b1g[2], w2g[2], b2g[2])
        s = (1.0 - ug) * s + ug * tl
        outs.append(_conv_seq_ref(s, wd1, bd1, wd2, bd2))
    return jnp.stack(outs, axis=1)


# ----------------------------------------------------------------------------
# Main
# ----------------------------------------------------------------------------
if __name__ == "__main__":
    B, T, C, Ch, H, W = 2, 3, 4, 32, 16, 16   # input_size=4, hidden_size=32

    key = jax.random.PRNGKey(0)
    ks = jax.random.split(key, 9)

    def init(k, shape, scale=0.1):
        return scale * jax.random.normal(k, shape, jnp.float32)

    params = (
        init(ks[0], (3, Ch, C + Ch, 3, 3)),   # gate conv1 weights [upd, rst, tilde], OIHW
        init(ks[1], (3, Ch)),                 # gate conv1 biases
        init(ks[2], (3, Ch, Ch, 3, 3)),       # gate conv2 weights
        init(ks[3], (3, Ch)),                 # gate conv2 biases
        init(ks[4], (Ch, Ch, 3, 3)),          # decoder conv1 weight
        init(ks[5], (Ch,)),                   # decoder conv1 bias
        init(ks[6], (Ch, Ch, 3, 3)),          # decoder conv2 weight
        init(ks[7], (Ch,)),                   # decoder conv2 bias
    )

    # x in the PyTorch layout (B, T, C, H, W).
    x = jax.random.normal(ks[8], (B, T, C, H, W), jnp.float32)

    out = jax.block_until_ready(jax.jit(spatial_gru_forward)(x, params))
    assert out.shape == (B, T, Ch, H, W), out.shape

    ref = jax.block_until_ready(reference_forward(x, params))
    max_err = float(jnp.max(jnp.abs(out - ref)))
    # Kernel matmuls run in bf16 with f32 accumulation; reference is full f32.
    assert jnp.allclose(out, ref, atol=4e-2, rtol=4e-2), max_err

    print("KERNEL_OK")
</pallas_src>

<mosaic_0001>
module attributes {stable_mosaic.version = 11 : i64} {
  func.func @kernel(%arg0: i32, %arg1: i32, %arg2: memref<1x1x32x256xbf16, #tpu.memory_space<vmem>>, %arg3: memref<32x288xbf16, #tpu.memory_space<vmem>>, %arg4: memref<32x288xbf16, #tpu.memory_space<vmem>>, %arg5: memref<32x1xf32, #tpu.memory_space<vmem>>, %arg6: memref<32x1xf32, #tpu.memory_space<vmem>>, %arg7: memref<1x1x32x256xf32, #tpu.memory_space<vmem>>, %arg8: memref<288x256xbf16, #tpu.memory_space<vmem>>) attributes {dimension_semantics = [#tpu.dimension_semantics<parallel>, #tpu.dimension_semantics<parallel>], iteration_bounds = array<i64: 2, 3>, scalar_prefetch = 0 : i64, scratch_operands = 1 : i64, tpu.core_type = #tpu.core_type<tc>, window_params = [{transform_indices = @transform_0, window_bounds = array<i64: 1, 1, 32, 256>}, {pipeline_mode = #tpu.pipeline_mode<synchronous>, transform_indices = @transform_1, window_bounds = array<i64: 32, 288>}, {pipeline_mode = #tpu.pipeline_mode<synchronous>, transform_indices = @transform_2, window_bounds = array<i64: 32, 288>}, {pipeline_mode = #tpu.pipeline_mode<synchronous>, transform_indices = @transform_3, window_bounds = array<i64: 32, 1>}, {pipeline_mode = #tpu.pipeline_mode<synchronous>, transform_indices = @transform_4, window_bounds = array<i64: 32, 1>}, {transform_indices = @transform_5, window_bounds = array<i64: 1, 1, 32, 256>}]} {
    %0 = tpu.iota {dimensions = array<i32: 1>} : vector<1x256xi32>
    %1 = arith.sitofp %0 : vector<1x256xi32> to vector<1x256xf32>
    %cst = arith.constant 5.000000e-01 : f32
    %2 = vector.broadcast %cst : f32 to vector<1x256xf32>
    %3 = arith.addf %1, %2 : vector<1x256xf32>
    %cst_0 = arith.constant 6.250000e-02 : f32
    %4 = vector.broadcast %cst_0 : f32 to vector<1x256xf32>
    %5 = arith.mulf %3, %4 : vector<1x256xf32>
    %6 = math.floor %5 : vector<1x256xf32>
    %7 = arith.fptosi %6 : vector<1x256xf32> to vector<1x256xi32>
    %c16_i32 = arith.constant 16 : i32
    %8 = vector.broadcast %c16_i32 : i32 to vector<1x256xi32>
    %9 = arith.muli %7, %8 : vector<1x256xi32>
    %10 = arith.subi %0, %9 : vector<1x256xi32>
    %c-1_i32 = arith.constant -1 : i32
    %11 = vector.broadcast %c-1_i32 : i32 to vector<1x256xi32>
    %12 = arith.addi %7, %11 : vector<1x256xi32>
    %c0_i32 = arith.constant 0 : i32
    %13 = vector.broadcast %c0_i32 : i32 to vector<1x256xi32>
    %14 = arith.cmpi sge, %12, %13 : vector<1x256xi32>
    %c-1_i32_1 = arith.constant -1 : i32
    %15 = vector.broadcast %c-1_i32_1 : i32 to vector<1x256xi32>
    %16 = arith.addi %7, %15 : vector<1x256xi32>
    %c16_i32_2 = arith.constant 16 : i32
    %17 = vector.broadcast %c16_i32_2 : i32 to vector<1x256xi32>
    %18 = arith.cmpi slt, %16, %17 : vector<1x256xi32>
    %19 = arith.andi %14, %18 : vector<1x256xi1>
    %c-1_i32_3 = arith.constant -1 : i32
    %20 = vector.broadcast %c-1_i32_3 : i32 to vector<1x256xi32>
    %21 = arith.addi %10, %20 : vector<1x256xi32>
    %c0_i32_4 = arith.constant 0 : i32
    %22 = vector.broadcast %c0_i32_4 : i32 to vector<1x256xi32>
    %23 = arith.cmpi sge, %21, %22 : vector<1x256xi32>
    %24 = arith.andi %19, %23 : vector<1x256xi1>
    %c-1_i32_5 = arith.constant -1 : i32
    %25 = vector.broadcast %c-1_i32_5 : i32 to vector<1x256xi32>
    %26 = arith.addi %10, %25 : vector<1x256xi32>
    %c16_i32_6 = arith.constant 16 : i32
    %27 = vector.broadcast %c16_i32_6 : i32 to vector<1x256xi32>
    %28 = arith.cmpi slt, %26, %27 : vector<1x256xi32>
    %29 = arith.andi %24, %28 : vector<1x256xi1>
    %30 = arith.extui %29 : vector<1x256xi1> to vector<1x256xi32>
    %31 = arith.sitofp %30 : vector<1x256xi32> to vector<1x256xf32>
    %c-1_i32_7 = arith.constant -1 : i32
    %32 = vector.broadcast %c-1_i32_7 : i32 to vector<1x256xi32>
    %33 = arith.addi %7, %32 : vector<1x256xi32>
    %c0_i32_8 = arith.constant 0 : i32
    %34 = vector.broadcast %c0_i32_8 : i32 to vector<1x256xi32>
    %35 = arith.cmpi sge, %33, %34 : vector<1x256xi32>
    %c-1_i32_9 = arith.constant -1 : i32
    %36 = vector.broadcast %c-1_i32_9 : i32 to vector<1x256xi32>
    %37 = arith.addi %7, %36 : vector<1x256xi32>
    %c16_i32_10 = arith.constant 16 : i32
    %38 = vector.broadcast %c16_i32_10 : i32 to vector<1x256xi32>
    %39 = arith.cmpi slt, %37, %38 : vector<1x256xi32>
    %40 = arith.andi %35, %39 : vector<1x256xi1>
    %c0_i32_11 = arith.constant 0 : i32
    %41 = vector.broadcast %c0_i32_11 : i32 to vector<1x256xi32>
    %42 = arith.addi %10, %41 : vector<1x256xi32>
    %c0_i32_12 = arith.constant 0 : i32
    %43 = vector.broadcast %c0_i32_12 : i32 to vector<1x256xi32>
    %44 = arith.cmpi sge, %42, %43 : vector<1x256xi32>
    %45 = arith.andi %40, %44 : vector<1x256xi1>
    %c0_i32_13 = arith.constant 0 : i32
    %46 = vector.broadcast %c0_i32_13 : i32 to vector<1x256xi32>
    %47 = arith.addi %10, %46 : vector<1x256xi32>
    %c16_i32_14 = arith.constant 16 : i32
    %48 = vector.broadcast %c16_i32_14 : i32 to vector<1x256xi32>
    %49 = arith.cmpi slt, %47, %48 : vector<1x256xi32>
    %50 = arith.andi %45, %49 : vector<1x256xi1>
    %51 = arith.extui %50 : vector<1x256xi1> to vector<1x256xi32>
    %52 = arith.sitofp %51 : vector<1x256xi32> to vector<1x256xf32>
    %c-1_i32_15 = arith.constant -1 : i32
    %53 = vector.broadcast %c-1_i32_15 : i32 to vector<1x256xi32>
    %54 = arith.addi %7, %53 : vector<1x256xi32>
    %c0_i32_16 = arith.constant 0 : i32
    %55 = vector.broadcast %c0_i32_16 : i32 to vector<1x256xi32>
    %56 = arith.cmpi sge, %54, %55 : vector<1x256xi32>
    %c-1_i32_17 = arith.constant -1 : i32
    %57 = vector.broadcast %c-1_i32_17 : i32 to vector<1x256xi32>
    %58 = arith.addi %7, %57 : vector<1x256xi32>
    %c16_i32_18 = arith.constant 16 : i32
    %59 = vector.broadcast %c16_i32_18 : i32 to vector<1x256xi32>
    %60 = arith.cmpi slt, %58, %59 : vector<1x256xi32>
    %61 = arith.andi %56, %60 : vector<1x256xi1>
    %c1_i32 = arith.constant 1 : i32
    %62 = vector.broadcast %c1_i32 : i32 to vector<1x256xi32>
    %63 = arith.addi %10, %62 : vector<1x256xi32>
    %c0_i32_19 = arith.constant 0 : i32
    %64 = vector.broadcast %c0_i32_19 : i32 to vector<1x256xi32>
    %65 = arith.cmpi sge, %63, %64 : vector<1x256xi32>
    %66 = arith.andi %61, %65 : vector<1x256xi1>
    %c1_i32_20 = arith.constant 1 : i32
    %67 = vector.broadcast %c1_i32_20 : i32 to vector<1x256xi32>
    %68 = arith.addi %10, %67 : vector<1x256xi32>
    %c16_i32_21 = arith.constant 16 : i32
    %69 = vector.broadcast %c16_i32_21 : i32 to vector<1x256xi32>
    %70 = arith.cmpi slt, %68, %69 : vector<1x256xi32>
    %71 = arith.andi %66, %70 : vector<1x256xi1>
    %72 = arith.extui %71 : vector<1x256xi1> to vector<1x256xi32>
    %73 = arith.sitofp %72 : vector<1x256xi32> to vector<1x256xf32>
    %c0_i32_22 = arith.constant 0 : i32
    %74 = vector.broadcast %c0_i32_22 : i32 to vector<1x256xi32>
    %75 = arith.addi %7, %74 : vector<1x256xi32>
    %c0_i32_23 = arith.constant 0 : i32
    %76 = vector.broadcast %c0_i32_23 : i32 to vector<1x256xi32>
    %77 = arith.cmpi sge, %75, %76 : vector<1x256xi32>
    %c0_i32_24 = arith.constant 0 : i32
    %78 = vector.broadcast %c0_i32_24 : i32 to vector<1x256xi32>
    %79 = arith.addi %7, %78 : vector<1x256xi32>
    %c16_i32_25 = arith.constant 16 : i32
    %80 = vector.broadcast %c16_i32_25 : i32 to vector<1x256xi32>
    %81 = arith.cmpi slt, %79, %80 : vector<1x256xi32>
    %82 = arith.andi %77, %81 : vector<1x256xi1>
    %c-1_i32_26 = arith.constant -1 : i32
    %83 = vector.broadcast %c-1_i32_26 : i32 to vector<1x256xi32>
    %84 = arith.addi %10, %83 : vector<1x256xi32>
    %c0_i32_27 = arith.constant 0 : i32
    %85 = vector.broadcast %c0_i32_27 : i32 to vector<1x256xi32>
    %86 = arith.cmpi sge, %84, %85 : vector<1x256xi32>
    %87 = arith.andi %82, %86 : vector<1x256xi1>
    %c-1_i32_28 = arith.constant -1 : i32
    %88 = vector.broadcast %c-1_i32_28 : i32 to vector<1x256xi32>
    %89 = arith.addi %10, %88 : vector<1x256xi32>
    %c16_i32_29 = arith.constant 16 : i32
    %90 = vector.broadcast %c16_i32_29 : i32 to vector<1x256xi32>
    %91 = arith.cmpi slt, %89, %90 : vector<1x256xi32>
    %92 = arith.andi %87, %91 : vector<1x256xi1>
    %93 = arith.extui %92 : vector<1x256xi1> to vector<1x256xi32>
    %94 = arith.sitofp %93 : vector<1x256xi32> to vector<1x256xf32>
    %c0_i32_30 = arith.constant 0 : i32
    %95 = vector.broadcast %c0_i32_30 : i32 to vector<1x256xi32>
    %96 = arith.addi %7, %95 : vector<1x256xi32>
    %c0_i32_31 = arith.constant 0 : i32
    %97 = vector.broadcast %c0_i32_31 : i32 to vector<1x256xi32>
    %98 = arith.cmpi sge, %96, %97 : vector<1x256xi32>
    %c0_i32_32 = arith.constant 0 : i32
    %99 = vector.broadcast %c0_i32_32 : i32 to vector<1x256xi32>
    %100 = arith.addi %7, %99 : vector<1x256xi32>
    %c16_i32_33 = arith.constant 16 : i32
    %101 = vector.broadcast %c16_i32_33 : i32 to vector<1x256xi32>
    %102 = arith.cmpi slt, %100, %101 : vector<1x256xi32>
    %103 = arith.andi %98, %102 : vector<1x256xi1>
    %c1_i32_34 = arith.constant 1 : i32
    %104 = vector.broadcast %c1_i32_34 : i32 to vector<1x256xi32>
    %105 = arith.addi %10, %104 : vector<1x256xi32>
    %c0_i32_35 = arith.constant 0 : i32
    %106 = vector.broadcast %c0_i32_35 : i32 to vector<1x256xi32>
    %107 = arith.cmpi sge, %105, %106 : vector<1x256xi32>
    %108 = arith.andi %103, %107 : vector<1x256xi1>
    %c1_i32_36 = arith.constant 1 : i32
    %109 = vector.broadcast %c1_i32_36 : i32 to vector<1x256xi32>
    %110 = arith.addi %10, %109 : vector<1x256xi32>
    %c16_i32_37 = arith.constant 16 : i32
    %111 = vector.broadcast %c16_i32_37 : i32 to vector<1x256xi32>
    %112 = arith.cmpi slt, %110, %111 : vector<1x256xi32>
    %113 = arith.andi %108, %112 : vector<1x256xi1>
    %114 = arith.extui %113 : vector<1x256xi1> to vector<1x256xi32>
    %115 = arith.sitofp %114 : vector<1x256xi32> to vector<1x256xf32>
    %c1_i32_38 = arith.constant 1 : i32
    %116 = vector.broadcast %c1_i32_38 : i32 to vector<1x256xi32>
    %117 = arith.addi %7, %116 : vector<1x256xi32>
    %c0_i32_39 = arith.constant 0 : i32
    %118 = vector.broadcast %c0_i32_39 : i32 to vector<1x256xi32>
    %119 = arith.cmpi sge, %117, %118 : vector<1x256xi32>
    %c1_i32_40 = arith.constant 1 : i32
    %120 = vector.broadcast %c1_i32_40 : i32 to vector<1x256xi32>
    %121 = arith.addi %7, %120 : vector<1x256xi32>
    %c16_i32_41 = arith.constant 16 : i32
    %122 = vector.broadcast %c16_i32_41 : i32 to vector<1x256xi32>
    %123 = arith.cmpi slt, %121, %122 : vector<1x256xi32>
    %124 = arith.andi %119, %123 : vector<1x256xi1>
    %c-1_i32_42 = arith.constant -1 : i32
    %125 = vector.broadcast %c-1_i32_42 : i32 to vector<1x256xi32>
    %126 = arith.addi %10, %125 : vector<1x256xi32>
    %c0_i32_43 = arith.constant 0 : i32
    %127 = vector.broadcast %c0_i32_43 : i32 to vector<1x256xi32>
    %128 = arith.cmpi sge, %126, %127 : vector<1x256xi32>
    %129 = arith.andi %124, %128 : vector<1x256xi1>
    %c-1_i32_44 = arith.constant -1 : i32
    %130 = vector.broadcast %c-1_i32_44 : i32 to vector<1x256xi32>
    %131 = arith.addi %10, %130 : vector<1x256xi32>
    %c16_i32_45 = arith.constant 16 : i32
    %132 = vector.broadcast %c16_i32_45 : i32 to vector<1x256xi32>
    %133 = arith.cmpi slt, %131, %132 : vector<1x256xi32>
    %134 = arith.andi %129, %133 : vector<1x256xi1>
    %135 = arith.extui %134 : vector<1x256xi1> to vector<1x256xi32>
    %136 = arith.sitofp %135 : vector<1x256xi32> to vector<1x256xf32>
    %c1_i32_46 = arith.constant 1 : i32
    %137 = vector.broadcast %c1_i32_46 : i32 to vector<1x256xi32>
    %138 = arith.addi %7, %137 : vector<1x256xi32>
    %c0_i32_47 = arith.constant 0 : i32
    %139 = vector.broadcast %c0_i32_47 : i32 to vector<1x256xi32>
    %140 = arith.cmpi sge, %138, %139 : vector<1x256xi32>
    %c1_i32_48 = arith.constant 1 : i32
    %141 = vector.broadcast %c1_i32_48 : i32 to vector<1x256xi32>
    %142 = arith.addi %7, %141 : vector<1x256xi32>
    %c16_i32_49 = arith.constant 16 : i32
    %143 = vector.broadcast %c16_i32_49 : i32 to vector<1x256xi32>
    %144 = arith.cmpi slt, %142, %143 : vector<1x256xi32>
    %145 = arith.andi %140, %144 : vector<1x256xi1>
    %c0_i32_50 = arith.constant 0 : i32
    %146 = vector.broadcast %c0_i32_50 : i32 to vector<1x256xi32>
    %147 = arith.addi %10, %146 : vector<1x256xi32>
    %c0_i32_51 = arith.constant 0 : i32
    %148 = vector.broadcast %c0_i32_51 : i32 to vector<1x256xi32>
    %149 = arith.cmpi sge, %147, %148 : vector<1x256xi32>
    %150 = arith.andi %145, %149 : vector<1x256xi1>
    %c0_i32_52 = arith.constant 0 : i32
    %151 = vector.broadcast %c0_i32_52 : i32 to vector<1x256xi32>
    %152 = arith.addi %10, %151 : vector<1x256xi32>
    %c16_i32_53 = arith.constant 16 : i32
    %153 = vector.broadcast %c16_i32_53 : i32 to vector<1x256xi32>
    %154 = arith.cmpi slt, %152, %153 : vector<1x256xi32>
    %155 = arith.andi %150, %154 : vector<1x256xi1>
    %156 = arith.extui %155 : vector<1x256xi1> to vector<1x256xi32>
    %157 = arith.sitofp %156 : vector<1x256xi32> to vector<1x256xf32>
    %c1_i32_54 = arith.constant 1 : i32
    %158 = vector.broadcast %c1_i32_54 : i32 to vector<1x256xi32>
    %159 = arith.addi %7, %158 : vector<1x256xi32>
    %c0_i32_55 = arith.constant 0 : i32
    %160 = vector.broadcast %c0_i32_55 : i32 to vector<1x256xi32>
    %161 = arith.cmpi sge, %159, %160 : vector<1x256xi32>
    %c1_i32_56 = arith.constant 1 : i32
    %162 = vector.broadcast %c1_i32_56 : i32 to vector<1x256xi32>
    %163 = arith.addi %7, %162 : vector<1x256xi32>
    %c16_i32_57 = arith.constant 16 : i32
    %164 = vector.broadcast %c16_i32_57 : i32 to vector<1x256xi32>
    %165 = arith.cmpi slt, %163, %164 : vector<1x256xi32>
    %166 = arith.andi %161, %165 : vector<1x256xi1>
    %c1_i32_58 = arith.constant 1 : i32
    %167 = vector.broadcast %c1_i32_58 : i32 to vector<1x256xi32>
    %168 = arith.addi %10, %167 : vector<1x256xi32>
    %c0_i32_59 = arith.constant 0 : i32
    %169 = vector.broadcast %c0_i32_59 : i32 to vector<1x256xi32>
    %170 = arith.cmpi sge, %168, %169 : vector<1x256xi32>
    %171 = arith.andi %166, %170 : vector<1x256xi1>
    %c1_i32_60 = arith.constant 1 : i32
    %172 = vector.broadcast %c1_i32_60 : i32 to vector<1x256xi32>
    %173 = arith.addi %10, %172 : vector<1x256xi32>
    %c16_i32_61 = arith.constant 16 : i32
    %174 = vector.broadcast %c16_i32_61 : i32 to vector<1x256xi32>
    %175 = arith.cmpi slt, %173, %174 : vector<1x256xi32>
    %176 = arith.andi %171, %175 : vector<1x256xi1>
    %177 = arith.extui %176 : vector<1x256xi1> to vector<1x256xi32>
    %178 = arith.sitofp %177 : vector<1x256xi32> to vector<1x256xf32>
    %c0 = arith.constant 0 : index
    %c0_62 = arith.constant 0 : index
    %c0_63 = arith.constant 0 : index
    %c0_64 = arith.constant 0 : index
    %179 = vector.load %arg2[%c0, %c0_62, %c0_63, %c0_64] : memref<1x1x32x256xbf16, #tpu.memory_space<vmem>>, vector<1x1x32x256xbf16>
    %180 = vector.shape_cast %179 : vector<1x1x32x256xbf16> to vector<32x256xbf16>
    %181 = arith.extf %180 : vector<32x256xbf16> to vector<32x256xf32>
    %c17_i32 = arith.constant 17 : i32
    %182 = tpu.dynamic_rotate %181 by %c17_i32 dim 1 : vector<32x256xf32>, i32 -> vector<32x256xf32>
    %183 = vector.broadcast %31 : vector<1x256xf32> to vector<32x256xf32>
    %184 = arith.mulf %182, %183 : vector<32x256xf32>
    %185 = arith.truncf %184 : vector<32x256xf32> to vector<32x256xbf16>
    %c0_65 = arith.constant 0 : index
    %c0_66 = arith.constant 0 : index
    %186 = vector.load %arg8[%c0_65, %c0_66] : memref<288x256xbf16, #tpu.memory_space<vmem>>, vector<32x256xbf16>
    tpu.vector_store %arg8[%c0_65, %c0_66], %185 {strides = array<i32>} : memref<288x256xbf16, #tpu.memory_space<vmem>>, vector<32x256xbf16>,
    %c16_i32_67 = arith.constant 16 : i32
    %187 = tpu.dynamic_rotate %181 by %c16_i32_67 dim 1 : vector<32x256xf32>, i32 -> vector<32x256xf32>
    %188 = vector.broadcast %52 : vector<1x256xf32> to vector<32x256xf32>
    %189 = arith.mulf %187, %188 : vector<32x256xf32>
    %190 = arith.truncf %189 : vector<32x256xf32> to vector<32x256xbf16>
    %c32 = arith.constant 32 : index
    %c0_68 = arith.constant 0 : index
    %191 = vector.load %arg8[%c32, %c0_68] : memref<288x256xbf16, #tpu.memory_space<vmem>>, vector<32x256xbf16>
    tpu.vector_store %arg8[%c32, %c0_68], %190 {strides = array<i32>} : memref<288x256xbf16, #tpu.memory_space<vmem>>, vector<32x256xbf16>,
    %c15_i32 = arith.constant 15 : i32
    %192 = tpu.dynamic_rotate %181 by %c15_i32 dim 1 : vector<32x256xf32>, i32 -> vector<32x256xf32>
    %193 = vector.broadcast %73 : vector<1x256xf32> to vector<32x256xf32>
    %194 = arith.mulf %192, %193 : vector<32x256xf32>
    %195 = arith.truncf %194 : vector<32x256xf32> to vector<32x256xbf16>
    %c64 = arith.constant 64 : index
    %c0_69 = arith.constant 0 : index
    %196 = vector.load %arg8[%c64, %c0_69] : memref<288x256xbf16, #tpu.memory_space<vmem>>, vector<32x256xbf16>
    tpu.vector_store %arg8[%c64, %c0_69], %195 {strides = array<i32>} : memref<288x256xbf16, #tpu.memory_space<vmem>>, vector<32x256xbf16>,
    %c1_i32_70 = arith.constant 1 : i32
    %197 = tpu.dynamic_rotate %181 by %c1_i32_70 dim 1 : vector<32x256xf32>, i32 -> vector<32x256xf32>
    %198 = vector.broadcast %94 : vector<1x256xf32> to vector<32x256xf32>
    %199 = arith.mulf %197, %198 : vector<32x256xf32>
    %200 = arith.truncf %199 : vector<32x256xf32> to vector<32x256xbf16>
    %c96 = arith.constant 96 : index
    %c0_71 = arith.constant 0 : index
    %201 = vector.load %arg8[%c96, %c0_71] : memref<288x256xbf16, #tpu.memory_space<vmem>>, vector<32x256xbf16>
    tpu.vector_store %arg8[%c96, %c0_71], %200 {strides = array<i32>} : memref<288x256xbf16, #tpu.memory_space<vmem>>, vector<32x256xbf16>,
    %202 = arith.truncf %181 : vector<32x256xf32> to vector<32x256xbf16>
    %c128 = arith.constant 128 : index
    %c0_72 = arith.constant 0 : index
    %203 = vector.load %arg8[%c128, %c0_72] : memref<288x256xbf16, #tpu.memory_space<vmem>>, vector<32x256xbf16>
    tpu.vector_store %arg8[%c128, %c0_72], %202 {strides = array<i32>} : memref<288x256xbf16, #tpu.memory_space<vmem>>, vector<32x256xbf16>,
    %c255_i32 = arith.constant 255 : i32
    %204 = tpu.dynamic_rotate %181 by %c255_i32 dim 1 : vector<32x256xf32>, i32 -> vector<32x256xf32>
    %205 = vector.broadcast %115 : vector<1x256xf32> to vector<32x256xf32>
    %206 = arith.mulf %204, %205 : vector<32x256xf32>
    %207 = arith.truncf %206 : vector<32x256xf32> to vector<32x256xbf16>
    %c160 = arith.constant 160 : index
    %c0_73 = arith.constant 0 : index
    %208 = vector.load %arg8[%c160, %c0_73] : memref<288x256xbf16, #tpu.memory_space<vmem>>, vector<32x256xbf16>
    tpu.vector_store %arg8[%c160, %c0_73], %207 {strides = array<i32>} : memref<288x256xbf16, #tpu.memory_space<vmem>>, vector<32x256xbf16>,
    %c241_i32 = arith.constant 241 : i32
    %209 = tpu.dynamic_rotate %181 by %c241_i32 dim 1 : vector<32x256xf32>, i32 -> vector<32x256xf32>
    %210 = vector.broadcast %136 : vector<1x256xf32> to vector<32x256xf32>
    %211 = arith.mulf %209, %210 : vector<32x256xf32>
    %212 = arith.truncf %211 : vector<32x256xf32> to vector<32x256xbf16>
    %c192 = arith.constant 192 : index
    %c0_74 = arith.constant 0 : index
    %213 = vector.load %arg8[%c192, %c0_74] : memref<288x256xbf16, #tpu.memory_space<vmem>>, vector<32x256xbf16>
    tpu.vector_store %arg8[%c192, %c0_74], %212 {strides = array<i32>} : memref<288x256xbf16, #tpu.memory_space<vmem>>, vector<32x256xbf16>,
    %c240_i32 = arith.constant 240 : i32
    %214 = tpu.dynamic_rotate %181 by %c240_i32 dim 1 : vector<32x256xf32>, i32 -> vector<32x256xf32>
    %215 = vector.broadcast %157 : vector<1x256xf32> to vector<32x256xf32>
    %216 = arith.mulf %214, %215 : vector<32x256xf32>
    %217 = arith.truncf %216 : vector<32x256xf32> to vector<32x256xbf16>
    %c224 = arith.constant 224 : index
    %c0_75 = arith.constant 0 : index
    %218 = vector.load %arg8[%c224, %c0_75] : memref<288x256xbf16, #tpu.memory_space<vmem>>, vector<32x256xbf16>
    tpu.vector_store %arg8[%c224, %c0_75], %217 {strides = array<i32>} : memref<288x256xbf16, #tpu.memory_space<vmem>>, vector<32x256xbf16>,
    %c239_i32 = arith.constant 239 : i32
    %219 = tpu.dynamic_rotate %181 by %c239_i32 dim 1 : vector<32x256xf32>, i32 -> vector<32x256xf32>
    %220 = vector.broadcast %178 : vector<1x256xf32> to vector<32x256xf32>
    %221 = arith.mulf %219, %220 : vector<32x256xf32>
    %222 = arith.truncf %221 : vector<32x256xf32> to vector<32x256xbf16>
    %c256 = arith.constant 256 : index
    %c0_76 = arith.constant 0 : index
    %223 = vector.load %arg8[%c256, %c0_76] : memref<288x256xbf16, #tpu.memory_space<vmem>>, vector<32x256xbf16>
    tpu.vector_store %arg8[%c256, %c0_76], %222 {strides = array<i32>} : memref<288x256xbf16, #tpu.memory_space<vmem>>, vector<32x256xbf16>,
    %c0_77 = arith.constant 0 : index
    %c0_78 = arith.constant 0 : index
    %224 = vector.load %arg3[%c0_77, %c0_78] : memref<32x288xbf16, #tpu.memory_space<vmem>>, vector<32x288xbf16>
    %c0_79 = arith.constant 0 : index
    %c0_80 = arith.constant 0 : index
    %225 = vector.load %arg8[%c0_79, %c0_80] : memref<288x256xbf16, #tpu.memory_space<vmem>>, vector<288x256xbf16>
    %cst_81 = arith.constant dense<0.000000e+00> : vector<32x256xf32>
    %226 = tpu.matmul %224, %225, %cst_81 {dimension_numbers = #tpu.dot_dimension_numbers<[1], [0], [0], [1], [0, 0, 1, 1], [], []>} : vector<32x288xbf16>, vector<288x256xbf16>, vector<32x256xf32> -> vector<32x256xf32>
    %c0_82 = arith.constant 0 : index
    %c0_83 = arith.constant 0 : index
    %227 = vector.load %arg5[%c0_82, %c0_83] : memref<32x1xf32, #tpu.memory_space<vmem>>, vector<32x1xf32>
    %228 = vector.broadcast %227 : vector<32x1xf32> to vector<32x256xf32>
    %229 = arith.addf %226, %228 : vector<32x256xf32>
    %cst_84 = arith.constant 0.000000e+00 : f32
    %230 = vector.broadcast %cst_84 : f32 to vector<32x256xf32>
    %231 = arith.maximumf %229, %230 : vector<32x256xf32>
    %c17_i32_85 = arith.constant 17 : i32
    %232 = tpu.dynamic_rotate %231 by %c17_i32_85 dim 1 : vector<32x256xf32>, i32 -> vector<32x256xf32>
    %233 = vector.broadcast %31 : vector<1x256xf32> to vector<32x256xf32>
    %234 = arith.mulf %232, %233 : vector<32x256xf32>
    %235 = arith.truncf %234 : vector<32x256xf32> to vector<32x256xbf16>
    %c0_86 = arith.constant 0 : index
    %c0_87 = arith.constant 0 : index
    %236 = vector.load %arg8[%c0_86, %c0_87] : memref<288x256xbf16, #tpu.memory_space<vmem>>, vector<32x256xbf16>
    tpu.vector_store %arg8[%c0_86, %c0_87], %235 {strides = array<i32>} : memref<288x256xbf16, #tpu.memory_space<vmem>>, vector<32x256xbf16>,
    %c16_i32_88 = arith.constant 16 : i32
    %237 = tpu.dynamic_rotate %231 by %c16_i32_88 dim 1 : vector<32x256xf32>, i32 -> vector<32x256xf32>
    %238 = vector.broadcast %52 : vector<1x256xf32> to vector<32x256xf32>
    %239 = arith.mulf %237, %238 : vector<32x256xf32>
    %240 = arith.truncf %239 : vector<32x256xf32> to vector<32x256xbf16>
    %c32_89 = arith.constant 32 : index
    %c0_90 = arith.constant 0 : index
    %241 = vector.load %arg8[%c32_89, %c0_90] : memref<288x256xbf16, #tpu.memory_space<vmem>>, vector<32x256xbf16>
    tpu.vector_store %arg8[%c32_89, %c0_90], %240 {strides = array<i32>} : memref<288x256xbf16, #tpu.memory_space<vmem>>, vector<32x256xbf16>,
    %c15_i32_91 = arith.constant 15 : i32
    %242 = tpu.dynamic_rotate %231 by %c15_i32_91 dim 1 : vector<32x256xf32>, i32 -> vector<32x256xf32>
    %243 = vector.broadcast %73 : vector<1x256xf32> to vector<32x256xf32>
    %244 = arith.mulf %242, %243 : vector<32x256xf32>
    %245 = arith.truncf %244 : vector<32x256xf32> to vector<32x256xbf16>
    %c64_92 = arith.constant 64 : index
    %c0_93 = arith.constant 0 : index
    %246 = vector.load %arg8[%c64_92, %c0_93] : memref<288x256xbf16, #tpu.memory_space<vmem>>, vector<32x256xbf16>
    tpu.vector_store %arg8[%c64_92, %c0_93], %245 {strides = array<i32>} : memref<288x256xbf16, #tpu.memory_space<vmem>>, vector<32x256xbf16>,
    %c1_i32_94 = arith.constant 1 : i32
    %247 = tpu.dynamic_rotate %231 by %c1_i32_94 dim 1 : vector<32x256xf32>, i32 -> vector<32x256xf32>
    %248 = vector.broadcast %94 : vector<1x256xf32> to vector<32x256xf32>
    %249 = arith.mulf %247, %248 : vector<32x256xf32>
    %250 = arith.truncf %249 : vector<32x256xf32> to vector<32x256xbf16>
    %c96_95 = arith.constant 96 : index
    %c0_96 = arith.constant 0 : index
    %251 = vector.load %arg8[%c96_95, %c0_96] : memref<288x256xbf16, #tpu.memory_space<vmem>>, vector<32x256xbf16>
    tpu.vector_store %arg8[%c96_95, %c0_96], %250 {strides = array<i32>} : memref<288x256xbf16, #tpu.memory_space<vmem>>, vector<32x256xbf16>,
    %252 = arith.truncf %231 : vector<32x256xf32> to vector<32x256xbf16>
    %c128_97 = arith.constant 128 : index
    %c0_98 = arith.constant 0 : index
    %253 = vector.load %arg8[%c128_97, %c0_98] : memref<288x256xbf16, #tpu.memory_space<vmem>>, vector<32x256xbf16>
    tpu.vector_store %arg8[%c128_97, %c0_98], %252 {strides = array<i32>} : memref<288x256xbf16, #tpu.memory_space<vmem>>, vector<32x256xbf16>,
    %c255_i32_99 = arith.constant 255 : i32
    %254 = tpu.dynamic_rotate %231 by %c255_i32_99 dim 1 : vector<32x256xf32>, i32 -> vector<32x256xf32>
    %255 = vector.broadcast %115 : vector<1x256xf32> to vector<32x256xf32>
    %256 = arith.mulf %254, %255 : vector<32x256xf32>
    %257 = arith.truncf %256 : vector<32x256xf32> to vector<32x256xbf16>
    %c160_100 = arith.constant 160 : index
    %c0_101 = arith.constant 0 : index
    %258 = vector.load %arg8[%c160_100, %c0_101] : memref<288x256xbf16, #tpu.memory_space<vmem>>, vector<32x256xbf16>
    tpu.vector_store %arg8[%c160_100, %c0_101], %257 {strides = array<i32>} : memref<288x256xbf16, #tpu.memory_space<vmem>>, vector<32x256xbf16>,
    %c241_i32_102 = arith.constant 241 : i32
    %259 = tpu.dynamic_rotate %231 by %c241_i32_102 dim 1 : vector<32x256xf32>, i32 -> vector<32x256xf32>
    %260 = vector.broadcast %136 : vector<1x256xf32> to vector<32x256xf32>
    %261 = arith.mulf %259, %260 : vector<32x256xf32>
    %262 = arith.truncf %261 : vector<32x256xf32> to vector<32x256xbf16>
    %c192_103 = arith.constant 192 : index
    %c0_104 = arith.constant 0 : index
    %263 = vector.load %arg8[%c192_103, %c0_104] : memref<288x256xbf16, #tpu.memory_space<vmem>>, vector<32x256xbf16>
    tpu.vector_store %arg8[%c192_103, %c0_104], %262 {strides = array<i32>} : memref<288x256xbf16, #tpu.memory_space<vmem>>, vector<32x256xbf16>,
    %c240_i32_105 = arith.constant 240 : i32
    %264 = tpu.dynamic_rotate %231 by %c240_i32_105 dim 1 : vector<32x256xf32>, i32 -> vector<32x256xf32>
    %265 = vector.broadcast %157 : vector<1x256xf32> to vector<32x256xf32>
    %266 = arith.mulf %264, %265 : vector<32x256xf32>
    %267 = arith.truncf %266 : vector<32x256xf32> to vector<32x256xbf16>
    %c224_106 = arith.constant 224 : index
    %c0_107 = arith.constant 0 : index
    %268 = vector.load %arg8[%c224_106, %c0_107] : memref<288x256xbf16, #tpu.memory_space<vmem>>, vector<32x256xbf16>
    tpu.vector_store %arg8[%c224_106, %c0_107], %267 {strides = array<i32>} : memref<288x256xbf16, #tpu.memory_space<vmem>>, vector<32x256xbf16>,
    %c239_i32_108 = arith.constant 239 : i32
    %269 = tpu.dynamic_rotate %231 by %c239_i32_108 dim 1 : vector<32x256xf32>, i32 -> vector<32x256xf32>
    %270 = vector.broadcast %178 : vector<1x256xf32> to vector<32x256xf32>
    %271 = arith.mulf %269, %270 : vector<32x256xf32>
    %272 = arith.truncf %271 : vector<32x256xf32> to vector<32x256xbf16>
    %c256_109 = arith.constant 256 : index
    %c0_110 = arith.constant 0 : index
    %273 = vector.load %arg8[%c256_109, %c0_110] : memref<288x256xbf16, #tpu.memory_space<vmem>>, vector<32x256xbf16>
    tpu.vector_store %arg8[%c256_109, %c0_110], %272 {strides = array<i32>} : memref<288x256xbf16, #tpu.memory_space<vmem>>, vector<32x256xbf16>,
    %c0_111 = arith.constant 0 : index
    %c0_112 = arith.constant 0 : index
    %274 = vector.load %arg4[%c0_111, %c0_112] : memref<32x288xbf16, #tpu.memory_space<vmem>>, vector<32x288xbf16>
    %c0_113 = arith.constant 0 : index
    %c0_114 = arith.constant 0 : index
    %275 = vector.load %arg8[%c0_113, %c0_114] : memref<288x256xbf16, #tpu.memory_space<vmem>>, vector<288x256xbf16>
    %cst_115 = arith.constant dense<0.000000e+00> : vector<32x256xf32>
    %276 = tpu.matmul %274, %275, %cst_115 {dimension_numbers = #tpu.dot_dimension_numbers<[1], [0], [0], [1], [0, 0, 1, 1], [], []>} : vector<32x288xbf16>, vector<288x256xbf16>, vector<32x256xf32> -> vector<32x256xf32>
    %c0_116 = arith.constant 0 : index
    %c0_117 = arith.constant 0 : index
    %277 = vector.load %arg6[%c0_116, %c0_117] : memref<32x1xf32, #tpu.memory_space<vmem>>, vector<32x1xf32>
    %278 = vector.broadcast %277 : vector<32x1xf32> to vector<32x256xf32>
    %279 = arith.addf %276, %278 : vector<32x256xf32>
    %c0_118 = arith.constant 0 : index
    %c0_119 = arith.constant 0 : index
    %c0_120 = arith.constant 0 : index
    %c0_121 = arith.constant 0 : index
    %280 = vector.load %arg7[%c0_118, %c0_119, %c0_120, %c0_121] : memref<1x1x32x256xf32, #tpu.memory_space<vmem>>, vector<1x1x32x256xf32>
    %281 = vector.shape_cast %280 : vector<1x1x32x256xf32> to vector<32x256xf32>
    %282 = vector.shape_cast %279 : vector<32x256xf32> to vector<1x1x32x256xf32>
    tpu.vector_store %arg7[%c0_118, %c0_119, %c0_120, %c0_121], %282 {strides = array<i32>} : memref<1x1x32x256xf32, #tpu.memory_space<vmem>>, vector<1x1x32x256xf32>,
    return
  }
  func.func @transform_0(%arg0: i32, %arg1: i32) -> (i32, i32, i32, i32) {
    %c0_i32 = arith.constant 0 : i32
    %c0_i32_0 = arith.constant 0 : i32
    %c0_i32_1 = arith.constant 0 : i32
    return %arg0, %arg1, %c0_i32, %c0_i32_0 : i32, i32, i32, i32
  }
  func.func @transform_1(%arg0: i32, %arg1: i32) -> (i32, i32) {
    %c0_i32 = arith.constant 0 : i32
    %c0_i32_0 = arith.constant 0 : i32
    %c0_i32_1 = arith.constant 0 : i32
    return %c0_i32, %c0_i32_0 : i32, i32
  }
  func.func @transform_2(%arg0: i32, %arg1: i32) -> (i32, i32) {
    %c0_i32 = arith.constant 0 : i32
    %c0_i32_0 = arith.constant 0 : i32
    %c0_i32_1 = arith.constant 0 : i32
    return %c0_i32, %c0_i32_0 : i32, i32
  }
  func.func @transform_3(%arg0: i32, %arg1: i32) -> (i32, i32) {
    %c0_i32 = arith.constant 0 : i32
    %c0_i32_0 = arith.constant 0 : i32
    %c0_i32_1 = arith.constant 0 : i32
    return %c0_i32, %c0_i32_0 : i32, i32
  }
  func.func @transform_4(%arg0: i32, %arg1: i32) -> (i32, i32) {
    %c0_i32 = arith.constant 0 : i32
    %c0_i32_0 = arith.constant 0 : i32
    %c0_i32_1 = arith.constant 0 : i32
    return %c0_i32, %c0_i32_0 : i32, i32
  }
  func.func @transform_5(%arg0: i32, %arg1: i32) -> (i32, i32, i32, i32) {
    %c0_i32 = arith.constant 0 : i32
    %c0_i32_0 = arith.constant 0 : i32
    %c0_i32_1 = arith.constant 0 : i32
    return %arg0, %arg1, %c0_i32, %c0_i32_0 : i32, i32, i32, i32
  }
}

module attributes {stable_mosaic.version = 11 : i64} {
  func.func @kernel(%arg0: i32, %arg1: i32, %arg2: memref<1x1x16x256xbf16, #tpu.memory_space<vmem>>, %arg3: memref<1x32x256xf32, #tpu.memory_space<vmem>>, %arg4: memref<96x432xbf16, #tpu.memory_space<vmem>>, %arg5: memref<64x576xbf16, #tpu.memory_space<vmem>>, %arg6: memref<32x288xbf16, #tpu.memory_space<vmem>>, %arg7: memref<32x288xbf16, #tpu.memory_space<vmem>>, %arg8: memref<96x1xf32, #tpu.memory_space<vmem>>, %arg9: memref<64x1xf32, #tpu.memory_space<vmem>>, %arg10: memref<32x1xf32, #tpu.memory_space<vmem>>, %arg11: memref<1x1x32x256xbf16, #tpu.memory_space<vmem>>, %arg12: memref<32x256xf32, #tpu.memory_space<vmem>>, %arg13: memref<576x256xbf16, #tpu.memory_space<vmem>>) attributes {dimension_semantics = [#tpu.dimension_semantics<parallel>, #tpu.dimension_semantics<arbitrary>], iteration_bounds = array<i64: 2, 3>, scalar_prefetch = 0 : i64, scratch_operands = 2 : i64, tpu.core_type = #tpu.core_type<tc>, window_params = [{transform_indices = @transform_0, window_bounds = array<i64: 1, 1, 16, 256>}, {transform_indices = @transform_1, window_bounds = array<i64: 1, 32, 256>}, {pipeline_mode = #tpu.pipeline_mode<synchronous>, transform_indices = @transform_2, window_bounds = array<i64: 96, 432>}, {pipeline_mode = #tpu.pipeline_mode<synchronous>, transform_indices = @transform_3, window_bounds = array<i64: 64, 576>}, {pipeline_mode = #tpu.pipeline_mode<synchronous>, transform_indices = @transform_4, window_bounds = array<i64: 32, 288>}, {pipeline_mode = #tpu.pipeline_mode<synchronous>, transform_indices = @transform_5, window_bounds = array<i64: 32, 288>}, {pipeline_mode = #tpu.pipeline_mode<synchronous>, transform_indices = @transform_6, window_bounds = array<i64: 96, 1>}, {pipeline_mode = #tpu.pipeline_mode<synchronous>, transform_indices = @transform_7, window_bounds = array<i64: 64, 1>}, {pipeline_mode = #tpu.pipeline_mode<synchronous>, transform_indices = @transform_8, window_bounds = array<i64: 32, 1>}, {transform_indices = @transform_9, window_bounds = array<i64: 1, 1, 32, 256>}]} {
    %c0_i32 = arith.constant 0 : i32
    %0 = arith.cmpi eq, %arg1, %c0_i32 : i32
    %1 = arith.extui %0 : i1 to i32
    %c0_i32_0 = arith.constant 0 : i32
    %2 = arith.cmpi ne, %1, %c0_i32_0 : i32
    scf.if %2 {
      %c0_206 = arith.constant 0 : index
      %c0_207 = arith.constant 0 : index
      %c0_208 = arith.constant 0 : index
      %446 = vector.load %arg3[%c0_206, %c0_207, %c0_208] : memref<1x32x256xf32, #tpu.memory_space<vmem>>, vector<1x32x256xf32>
      %447 = vector.shape_cast %446 : vector<1x32x256xf32> to vector<32x256xf32>
      %c0_209 = arith.constant 0 : index
      %c0_210 = arith.constant 0 : index
      %448 = vector.load %arg12[%c0_209, %c0_210] : memref<32x256xf32, #tpu.memory_space<vmem>>, vector<32x256xf32>
      tpu.vector_store %arg12[%c0_209, %c0_210], %447 {strides = array<i32>} : memref<32x256xf32, #tpu.memory_space<vmem>>, vector<32x256xf32>,
    } else {
    }
    %3 = tpu.iota {dimensions = array<i32: 1>} : vector<1x256xi32>
    %4 = arith.sitofp %3 : vector<1x256xi32> to vector<1x256xf32>
    %cst = arith.constant 5.000000e-01 : f32
    %5 = vector.broadcast %cst : f32 to vector<1x256xf32>
    %6 = arith.addf %4, %5 : vector<1x256xf32>
    %cst_1 = arith.constant 6.250000e-02 : f32
    %7 = vector.broadcast %cst_1 : f32 to vector<1x256xf32>
    %8 = arith.mulf %6, %7 : vector<1x256xf32>
    %9 = math.floor %8 : vector<1x256xf32>
    %10 = arith.fptosi %9 : vector<1x256xf32> to vector<1x256xi32>
    %c16_i32 = arith.constant 16 : i32
    %11 = vector.broadcast %c16_i32 : i32 to vector<1x256xi32>
    %12 = arith.muli %10, %11 : vector<1x256xi32>
    %13 = arith.subi %3, %12 : vector<1x256xi32>
    %c-1_i32 = arith.constant -1 : i32
    %14 = vector.broadcast %c-1_i32 : i32 to vector<1x256xi32>
    %15 = arith.addi %10, %14 : vector<1x256xi32>
    %c0_i32_2 = arith.constant 0 : i32
    %16 = vector.broadcast %c0_i32_2 : i32 to vector<1x256xi32>
    %17 = arith.cmpi sge, %15, %16 : vector<1x256xi32>
    %c-1_i32_3 = arith.constant -1 : i32
    %18 = vector.broadcast %c-1_i32_3 : i32 to vector<1x256xi32>
    %19 = arith.addi %10, %18 : vector<1x256xi32>
    %c16_i32_4 = arith.constant 16 : i32
    %20 = vector.broadcast %c16_i32_4 : i32 to vector<1x256xi32>
    %21 = arith.cmpi slt, %19, %20 : vector<1x256xi32>
    %22 = arith.andi %17, %21 : vector<1x256xi1>
    %c-1_i32_5 = arith.constant -1 : i32
    %23 = vector.broadcast %c-1_i32_5 : i32 to vector<1x256xi32>
    %24 = arith.addi %13, %23 : vector<1x256xi32>
    %c0_i32_6 = arith.constant 0 : i32
    %25 = vector.broadcast %c0_i32_6 : i32 to vector<1x256xi32>
    %26 = arith.cmpi sge, %24, %25 : vector<1x256xi32>
    %27 = arith.andi %22, %26 : vector<1x256xi1>
    %c-1_i32_7 = arith.constant -1 : i32
    %28 = vector.broadcast %c-1_i32_7 : i32 to vector<1x256xi32>
    %29 = arith.addi %13, %28 : vector<1x256xi32>
    %c16_i32_8 = arith.constant 16 : i32
    %30 = vector.broadcast %c16_i32_8 : i32 to vector<1x256xi32>
    %31 = arith.cmpi slt, %29, %30 : vector<1x256xi32>
    %32 = arith.andi %27, %31 : vector<1x256xi1>
    %33 = arith.extui %32 : vector<1x256xi1> to vector<1x256xi32>
    %34 = arith.sitofp %33 : vector<1x256xi32> to vector<1x256xf32>
    %c-1_i32_9 = arith.constant -1 : i32
    %35 = vector.broadcast %c-1_i32_9 : i32 to vector<1x256xi32>
    %36 = arith.addi %10, %35 : vector<1x256xi32>
    %c0_i32_10 = arith.constant 0 : i32
    %37 = vector.broadcast %c0_i32_10 : i32 to vector<1x256xi32>
    %38 = arith.cmpi sge, %36, %37 : vector<1x256xi32>
    %c-1_i32_11 = arith.constant -1 : i32
    %39 = vector.broadcast %c-1_i32_11 : i32 to vector<1x256xi32>
    %40 = arith.addi %10, %39 : vector<1x256xi32>
    %c16_i32_12 = arith.constant 16 : i32
    %41 = vector.broadcast %c16_i32_12 : i32 to vector<1x256xi32>
    %42 = arith.cmpi slt, %40, %41 : vector<1x256xi32>
    %43 = arith.andi %38, %42 : vector<1x256xi1>
    %c0_i32_13 = arith.constant 0 : i32
    %44 = vector.broadcast %c0_i32_13 : i32 to vector<1x256xi32>
    %45 = arith.addi %13, %44 : vector<1x256xi32>
    %c0_i32_14 = arith.constant 0 : i32
    %46 = vector.broadcast %c0_i32_14 : i32 to vector<1x256xi32>
    %47 = arith.cmpi sge, %45, %46 : vector<1x256xi32>
    %48 = arith.andi %43, %47 : vector<1x256xi1>
    %c0_i32_15 = arith.constant 0 : i32
    %49 = vector.broadcast %c0_i32_15 : i32 to vector<1x256xi32>
    %50 = arith.addi %13, %49 : vector<1x256xi32>
    %c16_i32_16 = arith.constant 16 : i32
    %51 = vector.broadcast %c16_i32_16 : i32 to vector<1x256xi32>
    %52 = arith.cmpi slt, %50, %51 : vector<1x256xi32>
    %53 = arith.andi %48, %52 : vector<1x256xi1>
    %54 = arith.extui %53 : vector<1x256xi1> to vector<1x256xi32>
    %55 = arith.sitofp %54 : vector<1x256xi32> to vector<1x256xf32>
    %c-1_i32_17 = arith.constant -1 : i32
    %56 = vector.broadcast %c-1_i32_17 : i32 to vector<1x256xi32>
    %57 = arith.addi %10, %56 : vector<1x256xi32>
    %c0_i32_18 = arith.constant 0 : i32
    %58 = vector.broadcast %c0_i32_18 : i32 to vector<1x256xi32>
    %59 = arith.cmpi sge, %57, %58 : vector<1x256xi32>
    %c-1_i32_19 = arith.constant -1 : i32
    %60 = vector.broadcast %c-1_i32_19 : i32 to vector<1x256xi32>
    %61 = arith.addi %10, %60 : vector<1x256xi32>
    %c16_i32_20 = arith.constant 16 : i32
    %62 = vector.broadcast %c16_i32_20 : i32 to vector<1x256xi32>
    %63 = arith.cmpi slt, %61, %62 : vector<1x256xi32>
    %64 = arith.andi %59, %63 : vector<1x256xi1>
    %c1_i32 = arith.constant 1 : i32
    %65 = vector.broadcast %c1_i32 : i32 to vector<1x256xi32>
    %66 = arith.addi %13, %65 : vector<1x256xi32>
    %c0_i32_21 = arith.constant 0 : i32
    %67 = vector.broadcast %c0_i32_21 : i32 to vector<1x256xi32>
    %68 = arith.cmpi sge, %66, %67 : vector<1x256xi32>
    %69 = arith.andi %64, %68 : vector<1x256xi1>
    %c1_i32_22 = arith.constant 1 : i32
    %70 = vector.broadcast %c1_i32_22 : i32 to vector<1x256xi32>
    %71 = arith.addi %13, %70 : vector<1x256xi32>
    %c16_i32_23 = arith.constant 16 : i32
    %72 = vector.broadcast %c16_i32_23 : i32 to vector<1x256xi32>
    %73 = arith.cmpi slt, %71, %72 : vector<1x256xi32>
    %74 = arith.andi %69, %73 : vector<1x256xi1>
    %75 = arith.extui %74 : vector<1x256xi1> to vector<1x256xi32>
    %76 = arith.sitofp %75 : vector<1x256xi32> to vector<1x256xf32>
    %c0_i32_24 = arith.constant 0 : i32
    %77 = vector.broadcast %c0_i32_24 : i32 to vector<1x256xi32>
    %78 = arith.addi %10, %77 : vector<1x256xi32>
    %c0_i32_25 = arith.constant 0 : i32
    %79 = vector.broadcast %c0_i32_25 : i32 to vector<1x256xi32>
    %80 = arith.cmpi sge, %78, %79 : vector<1x256xi32>
    %c0_i32_26 = arith.constant 0 : i32
    %81 = vector.broadcast %c0_i32_26 : i32 to vector<1x256xi32>
    %82 = arith.addi %10, %81 : vector<1x256xi32>
    %c16_i32_27 = arith.constant 16 : i32
    %83 = vector.broadcast %c16_i32_27 : i32 to vector<1x256xi32>
    %84 = arith.cmpi slt, %82, %83 : vector<1x256xi32>
    %85 = arith.andi %80, %84 : vector<1x256xi1>
    %c-1_i32_28 = arith.constant -1 : i32
    %86 = vector.broadcast %c-1_i32_28 : i32 to vector<1x256xi32>
    %87 = arith.addi %13, %86 : vector<1x256xi32>
    %c0_i32_29 = arith.constant 0 : i32
    %88 = vector.broadcast %c0_i32_29 : i32 to vector<1x256xi32>
    %89 = arith.cmpi sge, %87, %88 : vector<1x256xi32>
    %90 = arith.andi %85, %89 : vector<1x256xi1>
    %c-1_i32_30 = arith.constant -1 : i32
    %91 = vector.broadcast %c-1_i32_30 : i32 to vector<1x256xi32>
    %92 = arith.addi %13, %91 : vector<1x256xi32>
    %c16_i32_31 = arith.constant 16 : i32
    %93 = vector.broadcast %c16_i32_31 : i32 to vector<1x256xi32>
    %94 = arith.cmpi slt, %92, %93 : vector<1x256xi32>
    %95 = arith.andi %90, %94 : vector<1x256xi1>
    %96 = arith.extui %95 : vector<1x256xi1> to vector<1x256xi32>
    %97 = arith.sitofp %96 : vector<1x256xi32> to vector<1x256xf32>
    %c0_i32_32 = arith.constant 0 : i32
    %98 = vector.broadcast %c0_i32_32 : i32 to vector<1x256xi32>
    %99 = arith.addi %10, %98 : vector<1x256xi32>
    %c0_i32_33 = arith.constant 0 : i32
    %100 = vector.broadcast %c0_i32_33 : i32 to vector<1x256xi32>
    %101 = arith.cmpi sge, %99, %100 : vector<1x256xi32>
    %c0_i32_34 = arith.constant 0 : i32
    %102 = vector.broadcast %c0_i32_34 : i32 to vector<1x256xi32>
    %103 = arith.addi %10, %102 : vector<1x256xi32>
    %c16_i32_35 = arith.constant 16 : i32
    %104 = vector.broadcast %c16_i32_35 : i32 to vector<1x256xi32>
    %105 = arith.cmpi slt, %103, %104 : vector<1x256xi32>
    %106 = arith.andi %101, %105 : vector<1x256xi1>
    %c1_i32_36 = arith.constant 1 : i32
    %107 = vector.broadcast %c1_i32_36 : i32 to vector<1x256xi32>
    %108 = arith.addi %13, %107 : vector<1x256xi32>
    %c0_i32_37 = arith.constant 0 : i32
    %109 = vector.broadcast %c0_i32_37 : i32 to vector<1x256xi32>
    %110 = arith.cmpi sge, %108, %109 : vector<1x256xi32>
    %111 = arith.andi %106, %110 : vector<1x256xi1>
    %c1_i32_38 = arith.constant 1 : i32
    %112 = vector.broadcast %c1_i32_38 : i32 to vector<1x256xi32>
    %113 = arith.addi %13, %112 : vector<1x256xi32>
    %c16_i32_39 = arith.constant 16 : i32
    %114 = vector.broadcast %c16_i32_39 : i32 to vector<1x256xi32>
    %115 = arith.cmpi slt, %113, %114 : vector<1x256xi32>
    %116 = arith.andi %111, %115 : vector<1x256xi1>
    %117 = arith.extui %116 : vector<1x256xi1> to vector<1x256xi32>
    %118 = arith.sitofp %117 : vector<1x256xi32> to vector<1x256xf32>
    %c1_i32_40 = arith.constant 1 : i32
    %119 = vector.broadcast %c1_i32_40 : i32 to vector<1x256xi32>
    %120 = arith.addi %10, %119 : vector<1x256xi32>
    %c0_i32_41 = arith.constant 0 : i32
    %121 = vector.broadcast %c0_i32_41 : i32 to vector<1x256xi32>
    %122 = arith.cmpi sge, %120, %121 : vector<1x256xi32>
    %c1_i32_42 = arith.constant 1 : i32
    %123 = vector.broadcast %c1_i32_42 : i32 to vector<1x256xi32>
    %124 = arith.addi %10, %123 : vector<1x256xi32>
    %c16_i32_43 = arith.constant 16 : i32
    %125 = vector.broadcast %c16_i32_43 : i32 to vector<1x256xi32>
    %126 = arith.cmpi slt, %124, %125 : vector<1x256xi32>
    %127 = arith.andi %122, %126 : vector<1x256xi1>
    %c-1_i32_44 = arith.constant -1 : i32
    %128 = vector.broadcast %c-1_i32_44 : i32 to vector<1x256xi32>
    %129 = arith.addi %13, %128 : vector<1x256xi32>
    %c0_i32_45 = arith.constant 0 : i32
    %130 = vector.broadcast %c0_i32_45 : i32 to vector<1x256xi32>
    %131 = arith.cmpi sge, %129, %130 : vector<1x256xi32>
    %132 = arith.andi %127, %131 : vector<1x256xi1>
    %c-1_i32_46 = arith.constant -1 : i32
    %133 = vector.broadcast %c-1_i32_46 : i32 to vector<1x256xi32>
    %134 = arith.addi %13, %133 : vector<1x256xi32>
    %c16_i32_47 = arith.constant 16 : i32
    %135 = vector.broadcast %c16_i32_47 : i32 to vector<1x256xi32>
    %136 = arith.cmpi slt, %134, %135 : vector<1x256xi32>
    %137 = arith.andi %132, %136 : vector<1x256xi1>
    %138 = arith.extui %137 : vector<1x256xi1> to vector<1x256xi32>
    %139 = arith.sitofp %138 : vector<1x256xi32> to vector<1x256xf32>
    %c1_i32_48 = arith.constant 1 : i32
    %140 = vector.broadcast %c1_i32_48 : i32 to vector<1x256xi32>
    %141 = arith.addi %10, %140 : vector<1x256xi32>
    %c0_i32_49 = arith.constant 0 : i32
    %142 = vector.broadcast %c0_i32_49 : i32 to vector<1x256xi32>
    %143 = arith.cmpi sge, %141, %142 : vector<1x256xi32>
    %c1_i32_50 = arith.constant 1 : i32
    %144 = vector.broadcast %c1_i32_50 : i32 to vector<1x256xi32>
    %145 = arith.addi %10, %144 : vector<1x256xi32>
    %c16_i32_51 = arith.constant 16 : i32
    %146 = vector.broadcast %c16_i32_51 : i32 to vector<1x256xi32>
    %147 = arith.cmpi slt, %145, %146 : vector<1x256xi32>
    %148 = arith.andi %143, %147 : vector<1x256xi1>
    %c0_i32_52 = arith.constant 0 : i32
    %149 = vector.broadcast %c0_i32_52 : i32 to vector<1x256xi32>
    %150 = arith.addi %13, %149 : vector<1x256xi32>
    %c0_i32_53 = arith.constant 0 : i32
    %151 = vector.broadcast %c0_i32_53 : i32 to vector<1x256xi32>
    %152 = arith.cmpi sge, %150, %151 : vector<1x256xi32>
    %153 = arith.andi %148, %152 : vector<1x256xi1>
    %c0_i32_54 = arith.constant 0 : i32
    %154 = vector.broadcast %c0_i32_54 : i32 to vector<1x256xi32>
    %155 = arith.addi %13, %154 : vector<1x256xi32>
    %c16_i32_55 = arith.constant 16 : i32
    %156 = vector.broadcast %c16_i32_55 : i32 to vector<1x256xi32>
    %157 = arith.cmpi slt, %155, %156 : vector<1x256xi32>
    %158 = arith.andi %153, %157 : vector<1x256xi1>
    %159 = arith.extui %158 : vector<1x256xi1> to vector<1x256xi32>
    %160 = arith.sitofp %159 : vector<1x256xi32> to vector<1x256xf32>
    %c1_i32_56 = arith.constant 1 : i32
    %161 = vector.broadcast %c1_i32_56 : i32 to vector<1x256xi32>
    %162 = arith.addi %10, %161 : vector<1x256xi32>
    %c0_i32_57 = arith.constant 0 : i32
    %163 = vector.broadcast %c0_i32_57 : i32 to vector<1x256xi32>
    %164 = arith.cmpi sge, %162, %163 : vector<1x256xi32>
    %c1_i32_58 = arith.constant 1 : i32
    %165 = vector.broadcast %c1_i32_58 : i32 to vector<1x256xi32>
    %166 = arith.addi %10, %165 : vector<1x256xi32>
    %c16_i32_59 = arith.constant 16 : i32
    %167 = vector.broadcast %c16_i32_59 : i32 to vector<1x256xi32>
    %168 = arith.cmpi slt, %166, %167 : vector<1x256xi32>
    %169 = arith.andi %164, %168 : vector<1x256xi1>
    %c1_i32_60 = arith.constant 1 : i32
    %170 = vector.broadcast %c1_i32_60 : i32 to vector<1x256xi32>
    %171 = arith.addi %13, %170 : vector<1x256xi32>
    %c0_i32_61 = arith.constant 0 : i32
    %172 = vector.broadcast %c0_i32_61 : i32 to vector<1x256xi32>
    %173 = arith.cmpi sge, %171, %172 : vector<1x256xi32>
    %174 = arith.andi %169, %173 : vector<1x256xi1>
    %c1_i32_62 = arith.constant 1 : i32
    %175 = vector.broadcast %c1_i32_62 : i32 to vector<1x256xi32>
    %176 = arith.addi %13, %175 : vector<1x256xi32>
    %c16_i32_63 = arith.constant 16 : i32
    %177 = vector.broadcast %c16_i32_63 : i32 to vector<1x256xi32>
    %178 = arith.cmpi slt, %176, %177 : vector<1x256xi32>
    %179 = arith.andi %174, %178 : vector<1x256xi1>
    %180 = arith.extui %179 : vector<1x256xi1> to vector<1x256xi32>
    %181 = arith.sitofp %180 : vector<1x256xi32> to vector<1x256xf32>
    %c0 = arith.constant 0 : index
    %c0_64 = arith.constant 0 : index
    %c0_65 = arith.constant 0 : index
    %c0_66 = arith.constant 0 : index
    %182 = vector.load %arg2[%c0, %c0_64, %c0_65, %c0_66] : memref<1x1x16x256xbf16, #tpu.memory_space<vmem>>, vector<1x1x16x256xbf16>
    %183 = vector.shape_cast %182 : vector<1x1x16x256xbf16> to vector<16x256xbf16>
    %184 = arith.extf %183 : vector<16x256xbf16> to vector<16x256xf32>
    %c0_67 = arith.constant 0 : index
    %c0_68 = arith.constant 0 : index
    %185 = vector.load %arg12[%c0_67, %c0_68] : memref<32x256xf32, #tpu.memory_space<vmem>>, vector<32x256xf32>
    %c17_i32 = arith.constant 17 : i32
    %186 = tpu.dynamic_rotate %184 by %c17_i32 dim 1 : vector<16x256xf32>, i32 -> vector<16x256xf32>
    %187 = vector.broadcast %34 : vector<1x256xf32> to vector<16x256xf32>
    %188 = arith.mulf %186, %187 : vector<16x256xf32>
    %189 = arith.truncf %188 : vector<16x256xf32> to vector<16x256xbf16>
    %c0_69 = arith.constant 0 : index
    %c0_70 = arith.constant 0 : index
    %190 = vector.load %arg13[%c0_69, %c0_70] : memref<576x256xbf16, #tpu.memory_space<vmem>>, vector<16x256xbf16>
    tpu.vector_store %arg13[%c0_69, %c0_70], %189 {strides = array<i32>} : memref<576x256xbf16, #tpu.memory_space<vmem>>, vector<16x256xbf16>,
    %c16_i32_71 = arith.constant 16 : i32
    %191 = tpu.dynamic_rotate %184 by %c16_i32_71 dim 1 : vector<16x256xf32>, i32 -> vector<16x256xf32>
    %192 = vector.broadcast %55 : vector<1x256xf32> to vector<16x256xf32>
    %193 = arith.mulf %191, %192 : vector<16x256xf32>
    %194 = arith.truncf %193 : vector<16x256xf32> to vector<16x256xbf16>
    %c16 = arith.constant 16 : index
    %c0_72 = arith.constant 0 : index
    %195 = vector.load %arg13[%c16, %c0_72] : memref<576x256xbf16, #tpu.memory_space<vmem>>, vector<16x256xbf16>
    tpu.vector_store %arg13[%c16, %c0_72], %194 {strides = array<i32>} : memref<576x256xbf16, #tpu.memory_space<vmem>>, vector<16x256xbf16>,
    %c15_i32 = arith.constant 15 : i32
    %196 = tpu.dynamic_rotate %184 by %c15_i32 dim 1 : vector<16x256xf32>, i32 -> vector<16x256xf32>
    %197 = vector.broadcast %76 : vector<1x256xf32> to vector<16x256xf32>
    %198 = arith.mulf %196, %197 : vector<16x256xf32>
    %199 = arith.truncf %198 : vector<16x256xf32> to vector<16x256xbf16>
    %c32 = arith.constant 32 : index
    %c0_73 = arith.constant 0 : index
    %200 = vector.load %arg13[%c32, %c0_73] : memref<576x256xbf16, #tpu.memory_space<vmem>>, vector<16x256xbf16>
    tpu.vector_store %arg13[%c32, %c0_73], %199 {strides = array<i32>} : memref<576x256xbf16, #tpu.memory_space<vmem>>, vector<16x256xbf16>,
    %c1_i32_74 = arith.constant 1 : i32
    %201 = tpu.dynamic_rotate %184 by %c1_i32_74 dim 1 : vector<16x256xf32>, i32 -> vector<16x256xf32>
    %202 = vector.broadcast %97 : vector<1x256xf32> to vector<16x256xf32>
    %203 = arith.mulf %201, %202 : vector<16x256xf32>
    %204 = arith.truncf %203 : vector<16x256xf32> to vector<16x256xbf16>
    %c48 = arith.constant 48 : index
    %c0_75 = arith.constant 0 : index
    %205 = vector.load %arg13[%c48, %c0_75] : memref<576x256xbf16, #tpu.memory_space<vmem>>, vector<16x256xbf16>
    tpu.vector_store %arg13[%c48, %c0_75], %204 {strides = array<i32>} : memref<576x256xbf16, #tpu.memory_space<vmem>>, vector<16x256xbf16>,
    %206 = arith.truncf %184 : vector<16x256xf32> to vector<16x256xbf16>
    %c64 = arith.constant 64 : index
    %c0_76 = arith.constant 0 : index
    %207 = vector.load %arg13[%c64, %c0_76] : memref<576x256xbf16, #tpu.memory_space<vmem>>, vector<16x256xbf16>
    tpu.vector_store %arg13[%c64, %c0_76], %206 {strides = array<i32>} : memref<576x256xbf16, #tpu.memory_space<vmem>>, vector<16x256xbf16>,
    %c255_i32 = arith.constant 255 : i32
    %208 = tpu.dynamic_rotate %184 by %c255_i32 dim 1 : vector<16x256xf32>, i32 -> vector<16x256xf32>
    %209 = vector.broadcast %118 : vector<1x256xf32> to vector<16x256xf32>
    %210 = arith.mulf %208, %209 : vector<16x256xf32>
    %211 = arith.truncf %210 : vector<16x256xf32> to vector<16x256xbf16>
    %c80 = arith.constant 80 : index
    %c0_77 = arith.constant 0 : index
    %212 = vector.load %arg13[%c80, %c0_77] : memref<576x256xbf16, #tpu.memory_space<vmem>>, vector<16x256xbf16>
    tpu.vector_store %arg13[%c80, %c0_77], %211 {strides = array<i32>} : memref<576x256xbf16, #tpu.memory_space<vmem>>, vector<16x256xbf16>,
    %c241_i32 = arith.constant 241 : i32
    %213 = tpu.dynamic_rotate %184 by %c241_i32 dim 1 : vector<16x256xf32>, i32 -> vector<16x256xf32>
    %214 = vector.broadcast %139 : vector<1x256xf32> to vector<16x256xf32>
    %215 = arith.mulf %213, %214 : vector<16x256xf32>
    %216 = arith.truncf %215 : vector<16x256xf32> to vector<16x256xbf16>
    %c96 = arith.constant 96 : index
    %c0_78 = arith.constant 0 : index
    %217 = vector.load %arg13[%c96, %c0_78] : memref<576x256xbf16, #tpu.memory_space<vmem>>, vector<16x256xbf16>
    tpu.vector_store %arg13[%c96, %c0_78], %216 {strides = array<i32>} : memref<576x256xbf16, #tpu.memory_space<vmem>>, vector<16x256xbf16>,
    %c240_i32 = arith.constant 240 : i32
    %218 = tpu.dynamic_rotate %184 by %c240_i32 dim 1 : vector<16x256xf32>, i32 -> vector<16x256xf32>
    %219 = vector.broadcast %160 : vector<1x256xf32> to vector<16x256xf32>
    %220 = arith.mulf %218, %219 : vector<16x256xf32>
    %221 = arith.truncf %220 : vector<16x256xf32> to vector<16x256xbf16>
    %c112 = arith.constant 112 : index
    %c0_79 = arith.constant 0 : index
    %222 = vector.load %arg13[%c112, %c0_79] : memref<576x256xbf16, #tpu.memory_space<vmem>>, vector<16x256xbf16>
    tpu.vector_store %arg13[%c112, %c0_79], %221 {strides = array<i32>} : memref<576x256xbf16, #tpu.memory_space<vmem>>, vector<16x256xbf16>,
    %c239_i32 = arith.constant 239 : i32
    %223 = tpu.dynamic_rotate %184 by %c239_i32 dim 1 : vector<16x256xf32>, i32 -> vector<16x256xf32>
    %224 = vector.broadcast %181 : vector<1x256xf32> to vector<16x256xf32>
    %225 = arith.mulf %223, %224 : vector<16x256xf32>
    %226 = arith.truncf %225 : vector<16x256xf32> to vector<16x256xbf16>
    %c128 = arith.constant 128 : index
    %c0_80 = arith.constant 0 : index
    %227 = vector.load %arg13[%c128, %c0_80] : memref<576x256xbf16, #tpu.memory_space<vmem>>, vector<16x256xbf16>
    tpu.vector_store %arg13[%c128, %c0_80], %226 {strides = array<i32>} : memref<576x256xbf16, #tpu.memory_space<vmem>>, vector<16x256xbf16>,
    %c17_i32_81 = arith.constant 17 : i32
    %228 = tpu.dynamic_rotate %185 by %c17_i32_81 dim 1 : vector<32x256xf32>, i32 -> vector<32x256xf32>
    %229 = vector.broadcast %34 : vector<1x256xf32> to vector<32x256xf32>
    %230 = arith.mulf %228, %229 : vector<32x256xf32>
    %231 = arith.truncf %230 : vector<32x256xf32> to vector<32x256xbf16>
    %c144 = arith.constant 144 : index
    %c0_82 = arith.constant 0 : index
    %232 = vector.load %arg13[%c144, %c0_82] : memref<576x256xbf16, #tpu.memory_space<vmem>>, vector<32x256xbf16>
    tpu.vector_store %arg13[%c144, %c0_82], %231 {strides = array<i32>} : memref<576x256xbf16, #tpu.memory_space<vmem>>, vector<32x256xbf16>,
    %c16_i32_83 = arith.constant 16 : i32
    %233 = tpu.dynamic_rotate %185 by %c16_i32_83 dim 1 : vector<32x256xf32>, i32 -> vector<32x256xf32>
    %234 = vector.broadcast %55 : vector<1x256xf32> to vector<32x256xf32>
    %235 = arith.mulf %233, %234 : vector<32x256xf32>
    %236 = arith.truncf %235 : vector<32x256xf32> to vector<32x256xbf16>
    %c176 = arith.constant 176 : index
    %c0_84 = arith.constant 0 : index
    %237 = vector.load %arg13[%c176, %c0_84] : memref<576x256xbf16, #tpu.memory_space<vmem>>, vector<32x256xbf16>
    tpu.vector_store %arg13[%c176, %c0_84], %236 {strides = array<i32>} : memref<576x256xbf16, #tpu.memory_space<vmem>>, vector<32x256xbf16>,
    %c15_i32_85 = arith.constant 15 : i32
    %238 = tpu.dynamic_rotate %185 by %c15_i32_85 dim 1 : vector<32x256xf32>, i32 -> vector<32x256xf32>
    %239 = vector.broadcast %76 : vector<1x256xf32> to vector<32x256xf32>
    %240 = arith.mulf %238, %239 : vector<32x256xf32>
    %241 = arith.truncf %240 : vector<32x256xf32> to vector<32x256xbf16>
    %c208 = arith.constant 208 : index
    %c0_86 = arith.constant 0 : index
    %242 = vector.load %arg13[%c208, %c0_86] : memref<576x256xbf16, #tpu.memory_space<vmem>>, vector<32x256xbf16>
    tpu.vector_store %arg13[%c208, %c0_86], %241 {strides = array<i32>} : memref<576x256xbf16, #tpu.memory_space<vmem>>, vector<32x256xbf16>,
    %c1_i32_87 = arith.constant 1 : i32
    %243 = tpu.dynamic_rotate %185 by %c1_i32_87 dim 1 : vector<32x256xf32>, i32 -> vector<32x256xf32>
    %244 = vector.broadcast %97 : vector<1x256xf32> to vector<32x256xf32>
    %245 = arith.mulf %243, %244 : vector<32x256xf32>
    %246 = arith.truncf %245 : vector<32x256xf32> to vector<32x256xbf16>
    %c240 = arith.constant 240 : index
    %c0_88 = arith.constant 0 : index
    %247 = vector.load %arg13[%c240, %c0_88] : memref<576x256xbf16, #tpu.memory_space<vmem>>, vector<32x256xbf16>
    tpu.vector_store %arg13[%c240, %c0_88], %246 {strides = array<i32>} : memref<576x256xbf16, #tpu.memory_space<vmem>>, vector<32x256xbf16>,
    %248 = arith.truncf %185 : vector<32x256xf32> to vector<32x256xbf16>
    %c272 = arith.constant 272 : index
    %c0_89 = arith.constant 0 : index
    %249 = vector.load %arg13[%c272, %c0_89] : memref<576x256xbf16, #tpu.memory_space<vmem>>, vector<32x256xbf16>
    tpu.vector_store %arg13[%c272, %c0_89], %248 {strides = array<i32>} : memref<576x256xbf16, #tpu.memory_space<vmem>>, vector<32x256xbf16>,
    %c255_i32_90 = arith.constant 255 : i32
    %250 = tpu.dynamic_rotate %185 by %c255_i32_90 dim 1 : vector<32x256xf32>, i32 -> vector<32x256xf32>
    %251 = vector.broadcast %118 : vector<1x256xf32> to vector<32x256xf32>
    %252 = arith.mulf %250, %251 : vector<32x256xf32>
    %253 = arith.truncf %252 : vector<32x256xf32> to vector<32x256xbf16>
    %c304 = arith.constant 304 : index
    %c0_91 = arith.constant 0 : index
    %254 = vector.load %arg13[%c304, %c0_91] : memref<576x256xbf16, #tpu.memory_space<vmem>>, vector<32x256xbf16>
    tpu.vector_store %arg13[%c304, %c0_91], %253 {strides = array<i32>} : memref<576x256xbf16, #tpu.memory_space<vmem>>, vector<32x256xbf16>,
    %c241_i32_92 = arith.constant 241 : i32
    %255 = tpu.dynamic_rotate %185 by %c241_i32_92 dim 1 : vector<32x256xf32>, i32 -> vector<32x256xf32>
    %256 = vector.broadcast %139 : vector<1x256xf32> to vector<32x256xf32>
    %257 = arith.mulf %255, %256 : vector<32x256xf32>
    %258 = arith.truncf %257 : vector<32x256xf32> to vector<32x256xbf16>
    %c336 = arith.constant 336 : index
    %c0_93 = arith.constant 0 : index
    %259 = vector.load %arg13[%c336, %c0_93] : memref<576x256xbf16, #tpu.memory_space<vmem>>, vector<32x256xbf16>
    tpu.vector_store %arg13[%c336, %c0_93], %258 {strides = array<i32>} : memref<576x256xbf16, #tpu.memory_space<vmem>>, vector<32x256xbf16>,
    %c240_i32_94 = arith.constant 240 : i32
    %260 = tpu.dynamic_rotate %185 by %c240_i32_94 dim 1 : vector<32x256xf32>, i32 -> vector<32x256xf32>
    %261 = vector.broadcast %160 : vector<1x256xf32> to vector<32x256xf32>
    %262 = arith.mulf %260, %261 : vector<32x256xf32>
    %263 = arith.truncf %262 : vector<32x256xf32> to vector<32x256xbf16>
    %c368 = arith.constant 368 : index
    %c0_95 = arith.constant 0 : index
    %264 = vector.load %arg13[%c368, %c0_95] : memref<576x256xbf16, #tpu.memory_space<vmem>>, vector<32x256xbf16>
    tpu.vector_store %arg13[%c368, %c0_95], %263 {strides = array<i32>} : memref<576x256xbf16, #tpu.memory_space<vmem>>, vector<32x256xbf16>,
    %c239_i32_96 = arith.constant 239 : i32
    %265 = tpu.dynamic_rotate %185 by %c239_i32_96 dim 1 : vector<32x256xf32>, i32 -> vector<32x256xf32>
    %266 = vector.broadcast %181 : vector<1x256xf32> to vector<32x256xf32>
    %267 = arith.mulf %265, %266 : vector<32x256xf32>
    %268 = arith.truncf %267 : vector<32x256xf32> to vector<32x256xbf16>
    %c400 = arith.constant 400 : index
    %c0_97 = arith.constant 0 : index
    %269 = vector.load %arg13[%c400, %c0_97] : memref<576x256xbf16, #tpu.memory_space<vmem>>, vector<32x256xbf16>
    tpu.vector_store %arg13[%c400, %c0_97], %268 {strides = array<i32>} : memref<576x256xbf16, #tpu.memory_space<vmem>>, vector<32x256xbf16>,
    %c0_98 = arith.constant 0 : index
    %c0_99 = arith.constant 0 : index
    %270 = vector.load %arg4[%c0_98, %c0_99] : memref<96x432xbf16, #tpu.memory_space<vmem>>, vector<96x432xbf16>
    %c0_100 = arith.constant 0 : index
    %c0_101 = arith.constant 0 : index
    %271 = vector.load %arg13[%c0_100, %c0_101] : memref<576x256xbf16, #tpu.memory_space<vmem>>, vector<432x256xbf16>
    %cst_102 = arith.constant dense<0.000000e+00> : vector<96x256xf32>
    %272 = tpu.matmul %270, %271, %cst_102 {dimension_numbers = #tpu.dot_dimension_numbers<[1], [0], [0], [1], [0, 0, 1, 1], [], []>} : vector<96x432xbf16>, vector<432x256xbf16>, vector<96x256xf32> -> vector<96x256xf32>
    %c0_103 = arith.constant 0 : index
    %c0_104 = arith.constant 0 : index
    %273 = vector.load %arg8[%c0_103, %c0_104] : memref<96x1xf32, #tpu.memory_space<vmem>>, vector<96x1xf32>
    %274 = vector.broadcast %273 : vector<96x1xf32> to vector<96x256xf32>
    %275 = arith.addf %272, %274 : vector<96x256xf32>
    %276 = vector.extract_strided_slice %275 {offsets = [0, 0], sizes = [64, 256], strides = [1, 1]} : vector<96x256xf32> to vector<64x256xf32>
    %cst_105 = arith.constant 0.000000e+00 : f32
    %277 = vector.broadcast %cst_105 : f32 to vector<64x256xf32>
    %278 = arith.maximumf %276, %277 : vector<64x256xf32>
    %279 = vector.extract_strided_slice %275 {offsets = [64, 0], sizes = [32, 256], strides = [1, 1]} : vector<96x256xf32> to vector<32x256xf32>
    %c17_i32_106 = arith.constant 17 : i32
    %280 = tpu.dynamic_rotate %278 by %c17_i32_106 dim 1 : vector<64x256xf32>, i32 -> vector<64x256xf32>
    %281 = vector.broadcast %34 : vector<1x256xf32> to vector<64x256xf32>
    %282 = arith.mulf %280, %281 : vector<64x256xf32>
    %283 = arith.truncf %282 : vector<64x256xf32> to vector<64x256xbf16>
    %c0_107 = arith.constant 0 : index
    %c0_108 = arith.constant 0 : index
    %284 = vector.load %arg13[%c0_107, %c0_108] : memref<576x256xbf16, #tpu.memory_space<vmem>>, vector<64x256xbf16>
    tpu.vector_store %arg13[%c0_107, %c0_108], %283 {strides = array<i32>} : memref<576x256xbf16, #tpu.memory_space<vmem>>, vector<64x256xbf16>,
    %c16_i32_109 = arith.constant 16 : i32
    %285 = tpu.dynamic_rotate %278 by %c16_i32_109 dim 1 : vector<64x256xf32>, i32 -> vector<64x256xf32>
    %286 = vector.broadcast %55 : vector<1x256xf32> to vector<64x256xf32>
    %287 = arith.mulf %285, %286 : vector<64x256xf32>
    %288 = arith.truncf %287 : vector<64x256xf32> to vector<64x256xbf16>
    %c64_110 = arith.constant 64 : index
    %c0_111 = arith.constant 0 : index
    %289 = vector.load %arg13[%c64_110, %c0_111] : memref<576x256xbf16, #tpu.memory_space<vmem>>, vector<64x256xbf16>
    tpu.vector_store %arg13[%c64_110, %c0_111], %288 {strides = array<i32>} : memref<576x256xbf16, #tpu.memory_space<vmem>>, vector<64x256xbf16>,
    %c15_i32_112 = arith.constant 15 : i32
    %290 = tpu.dynamic_rotate %278 by %c15_i32_112 dim 1 : vector<64x256xf32>, i32 -> vector<64x256xf32>
    %291 = vector.broadcast %76 : vector<1x256xf32> to vector<64x256xf32>
    %292 = arith.mulf %290, %291 : vector<64x256xf32>
    %293 = arith.truncf %292 : vector<64x256xf32> to vector<64x256xbf16>
    %c128_113 = arith.constant 128 : index
    %c0_114 = arith.constant 0 : index
    %294 = vector.load %arg13[%c128_113, %c0_114] : memref<576x256xbf16, #tpu.memory_space<vmem>>, vector<64x256xbf16>
    tpu.vector_store %arg13[%c128_113, %c0_114], %293 {strides = array<i32>} : memref<576x256xbf16, #tpu.memory_space<vmem>>, vector<64x256xbf16>,
    %c1_i32_115 = arith.constant 1 : i32
    %295 = tpu.dynamic_rotate %278 by %c1_i32_115 dim 1 : vector<64x256xf32>, i32 -> vector<64x256xf32>
    %296 = vector.broadcast %97 : vector<1x256xf32> to vector<64x256xf32>
    %297 = arith.mulf %295, %296 : vector<64x256xf32>
    %298 = arith.truncf %297 : vector<64x256xf32> to vector<64x256xbf16>
    %c192 = arith.constant 192 : index
    %c0_116 = arith.constant 0 : index
    %299 = vector.load %arg13[%c192, %c0_116] : memref<576x256xbf16, #tpu.memory_space<vmem>>, vector<64x256xbf16>
    tpu.vector_store %arg13[%c192, %c0_116], %298 {strides = array<i32>} : memref<576x256xbf16, #tpu.memory_space<vmem>>, vector<64x256xbf16>,
    %300 = arith.truncf %278 : vector<64x256xf32> to vector<64x256xbf16>
    %c256 = arith.constant 256 : index
    %c0_117 = arith.constant 0 : index
    %301 = vector.load %arg13[%c256, %c0_117] : memref<576x256xbf16, #tpu.memory_space<vmem>>, vector<64x256xbf16>
    tpu.vector_store %arg13[%c256, %c0_117], %300 {strides = array<i32>} : memref<576x256xbf16, #tpu.memory_space<vmem>>, vector<64x256xbf16>,
    %c255_i32_118 = arith.constant 255 : i32
    %302 = tpu.dynamic_rotate %278 by %c255_i32_118 dim 1 : vector<64x256xf32>, i32 -> vector<64x256xf32>
    %303 = vector.broadcast %118 : vector<1x256xf32> to vector<64x256xf32>
    %304 = arith.mulf %302, %303 : vector<64x256xf32>
    %305 = arith.truncf %304 : vector<64x256xf32> to vector<64x256xbf16>
    %c320 = arith.constant 320 : index
    %c0_119 = arith.constant 0 : index
    %306 = vector.load %arg13[%c320, %c0_119] : memref<576x256xbf16, #tpu.memory_space<vmem>>, vector<64x256xbf16>
    tpu.vector_store %arg13[%c320, %c0_119], %305 {strides = array<i32>} : memref<576x256xbf16, #tpu.memory_space<vmem>>, vector<64x256xbf16>,
    %c241_i32_120 = arith.constant 241 : i32
    %307 = tpu.dynamic_rotate %278 by %c241_i32_120 dim 1 : vector<64x256xf32>, i32 -> vector<64x256xf32>
    %308 = vector.broadcast %139 : vector<1x256xf32> to vector<64x256xf32>
    %309 = arith.mulf %307, %308 : vector<64x256xf32>
    %310 = arith.truncf %309 : vector<64x256xf32> to vector<64x256xbf16>
    %c384 = arith.constant 384 : index
    %c0_121 = arith.constant 0 : index
    %311 = vector.load %arg13[%c384, %c0_121] : memref<576x256xbf16, #tpu.memory_space<vmem>>, vector<64x256xbf16>
    tpu.vector_store %arg13[%c384, %c0_121], %310 {strides = array<i32>} : memref<576x256xbf16, #tpu.memory_space<vmem>>, vector<64x256xbf16>,
    %c240_i32_122 = arith.constant 240 : i32
    %312 = tpu.dynamic_rotate %278 by %c240_i32_122 dim 1 : vector<64x256xf32>, i32 -> vector<64x256xf32>
    %313 = vector.broadcast %160 : vector<1x256xf32> to vector<64x256xf32>
    %314 = arith.mulf %312, %313 : vector<64x256xf32>
    %315 = arith.truncf %314 : vector<64x256xf32> to vector<64x256xbf16>
    %c448 = arith.constant 448 : index
    %c0_123 = arith.constant 0 : index
    %316 = vector.load %arg13[%c448, %c0_123] : memref<576x256xbf16, #tpu.memory_space<vmem>>, vector<64x256xbf16>
    tpu.vector_store %arg13[%c448, %c0_123], %315 {strides = array<i32>} : memref<576x256xbf16, #tpu.memory_space<vmem>>, vector<64x256xbf16>,
    %c239_i32_124 = arith.constant 239 : i32
    %317 = tpu.dynamic_rotate %278 by %c239_i32_124 dim 1 : vector<64x256xf32>, i32 -> vector<64x256xf32>
    %318 = vector.broadcast %181 : vector<1x256xf32> to vector<64x256xf32>
    %319 = arith.mulf %317, %318 : vector<64x256xf32>
    %320 = arith.truncf %319 : vector<64x256xf32> to vector<64x256xbf16>
    %c512 = arith.constant 512 : index
    %c0_125 = arith.constant 0 : index
    %321 = vector.load %arg13[%c512, %c0_125] : memref<576x256xbf16, #tpu.memory_space<vmem>>, vector<64x256xbf16>
    tpu.vector_store %arg13[%c512, %c0_125], %320 {strides = array<i32>} : memref<576x256xbf16, #tpu.memory_space<vmem>>, vector<64x256xbf16>,
    %c0_126 = arith.constant 0 : index
    %c0_127 = arith.constant 0 : index
    %322 = vector.load %arg5[%c0_126, %c0_127] : memref<64x576xbf16, #tpu.memory_space<vmem>>, vector<64x576xbf16>
    %c0_128 = arith.constant 0 : index
    %c0_129 = arith.constant 0 : index
    %323 = vector.load %arg13[%c0_128, %c0_129] : memref<576x256xbf16, #tpu.memory_space<vmem>>, vector<576x256xbf16>
    %cst_130 = arith.constant dense<0.000000e+00> : vector<64x256xf32>
    %324 = tpu.matmul %322, %323, %cst_130 {dimension_numbers = #tpu.dot_dimension_numbers<[1], [0], [0], [1], [0, 0, 1, 1], [], []>} : vector<64x576xbf16>, vector<576x256xbf16>, vector<64x256xf32> -> vector<64x256xf32>
    %c0_131 = arith.constant 0 : index
    %c0_132 = arith.constant 0 : index
    %325 = vector.load %arg9[%c0_131, %c0_132] : memref<64x1xf32, #tpu.memory_space<vmem>>, vector<64x1xf32>
    %326 = vector.broadcast %325 : vector<64x1xf32> to vector<64x256xf32>
    %327 = arith.addf %324, %326 : vector<64x256xf32>
    %cst_133 = arith.constant 0.000000e+00 : f32
    %328 = vector.broadcast %cst_133 : f32 to vector<64x256xf32>
    %329 = arith.addf %327, %328 : vector<64x256xf32>
    %330 = arith.negf %329 : vector<64x256xf32>
    %331 = math.exp %330 : vector<64x256xf32>
    %cst_134 = arith.constant 1.000000e+00 : f32
    %332 = vector.broadcast %cst_134 : f32 to vector<64x256xf32>
    %333 = arith.addf %332, %331 : vector<64x256xf32>
    %334 = arith.divf %332, %333 : vector<64x256xf32>
    %335 = vector.extract_strided_slice %334 {offsets = [0, 0], sizes = [32, 256], strides = [1, 1]} : vector<64x256xf32> to vector<32x256xf32>
    %336 = vector.extract_strided_slice %334 {offsets = [32, 0], sizes = [32, 256], strides = [1, 1]} : vector<64x256xf32> to vector<32x256xf32>
    %cst_135 = arith.constant 1.000000e+00 : f32
    %337 = vector.broadcast %cst_135 : f32 to vector<32x256xf32>
    %338 = arith.subf %337, %336 : vector<32x256xf32>
    %339 = arith.mulf %338, %185 : vector<32x256xf32>
    %c17_i32_136 = arith.constant 17 : i32
    %340 = tpu.dynamic_rotate %339 by %c17_i32_136 dim 1 : vector<32x256xf32>, i32 -> vector<32x256xf32>
    %341 = vector.broadcast %34 : vector<1x256xf32> to vector<32x256xf32>
    %342 = arith.mulf %340, %341 : vector<32x256xf32>
    %343 = arith.truncf %342 : vector<32x256xf32> to vector<32x256xbf16>
    %c0_137 = arith.constant 0 : index
    %c0_138 = arith.constant 0 : index
    %344 = vector.load %arg13[%c0_137, %c0_138] : memref<576x256xbf16, #tpu.memory_space<vmem>>, vector<32x256xbf16>
    tpu.vector_store %arg13[%c0_137, %c0_138], %343 {strides = array<i32>} : memref<576x256xbf16, #tpu.memory_space<vmem>>, vector<32x256xbf16>,
    %c16_i32_139 = arith.constant 16 : i32
    %345 = tpu.dynamic_rotate %339 by %c16_i32_139 dim 1 : vector<32x256xf32>, i32 -> vector<32x256xf32>
    %346 = vector.broadcast %55 : vector<1x256xf32> to vector<32x256xf32>
    %347 = arith.mulf %345, %346 : vector<32x256xf32>
    %348 = arith.truncf %347 : vector<32x256xf32> to vector<32x256xbf16>
    %c32_140 = arith.constant 32 : index
    %c0_141 = arith.constant 0 : index
    %349 = vector.load %arg13[%c32_140, %c0_141] : memref<576x256xbf16, #tpu.memory_space<vmem>>, vector<32x256xbf16>
    tpu.vector_store %arg13[%c32_140, %c0_141], %348 {strides = array<i32>} : memref<576x256xbf16, #tpu.memory_space<vmem>>, vector<32x256xbf16>,
    %c15_i32_142 = arith.constant 15 : i32
    %350 = tpu.dynamic_rotate %339 by %c15_i32_142 dim 1 : vector<32x256xf32>, i32 -> vector<32x256xf32>
    %351 = vector.broadcast %76 : vector<1x256xf32> to vector<32x256xf32>
    %352 = arith.mulf %350, %351 : vector<32x256xf32>
    %353 = arith.truncf %352 : vector<32x256xf32> to vector<32x256xbf16>
    %c64_143 = arith.constant 64 : index
    %c0_144 = arith.constant 0 : index
    %354 = vector.load %arg13[%c64_143, %c0_144] : memref<576x256xbf16, #tpu.memory_space<vmem>>, vector<32x256xbf16>
    tpu.vector_store %arg13[%c64_143, %c0_144], %353 {strides = array<i32>} : memref<576x256xbf16, #tpu.memory_space<vmem>>, vector<32x256xbf16>,
    %c1_i32_145 = arith.constant 1 : i32
    %355 = tpu.dynamic_rotate %339 by %c1_i32_145 dim 1 : vector<32x256xf32>, i32 -> vector<32x256xf32>
    %356 = vector.broadcast %97 : vector<1x256xf32> to vector<32x256xf32>
    %357 = arith.mulf %355, %356 : vector<32x256xf32>
    %358 = arith.truncf %357 : vector<32x256xf32> to vector<32x256xbf16>
    %c96_146 = arith.constant 96 : index
    %c0_147 = arith.constant 0 : index
    %359 = vector.load %arg13[%c96_146, %c0_147] : memref<576x256xbf16, #tpu.memory_space<vmem>>, vector<32x256xbf16>
    tpu.vector_store %arg13[%c96_146, %c0_147], %358 {strides = array<i32>} : memref<576x256xbf16, #tpu.memory_space<vmem>>, vector<32x256xbf16>,
    %360 = arith.truncf %339 : vector<32x256xf32> to vector<32x256xbf16>
    %c128_148 = arith.constant 128 : index
    %c0_149 = arith.constant 0 : index
    %361 = vector.load %arg13[%c128_148, %c0_149] : memref<576x256xbf16, #tpu.memory_space<vmem>>, vector<32x256xbf16>
    tpu.vector_store %arg13[%c128_148, %c0_149], %360 {strides = array<i32>} : memref<576x256xbf16, #tpu.memory_space<vmem>>, vector<32x256xbf16>,
    %c255_i32_150 = arith.constant 255 : i32
    %362 = tpu.dynamic_rotate %339 by %c255_i32_150 dim 1 : vector<32x256xf32>, i32 -> vector<32x256xf32>
    %363 = vector.broadcast %118 : vector<1x256xf32> to vector<32x256xf32>
    %364 = arith.mulf %362, %363 : vector<32x256xf32>
    %365 = arith.truncf %364 : vector<32x256xf32> to vector<32x256xbf16>
    %c160 = arith.constant 160 : index
    %c0_151 = arith.constant 0 : index
    %366 = vector.load %arg13[%c160, %c0_151] : memref<576x256xbf16, #tpu.memory_space<vmem>>, vector<32x256xbf16>
    tpu.vector_store %arg13[%c160, %c0_151], %365 {strides = array<i32>} : memref<576x256xbf16, #tpu.memory_space<vmem>>, vector<32x256xbf16>,
    %c241_i32_152 = arith.constant 241 : i32
    %367 = tpu.dynamic_rotate %339 by %c241_i32_152 dim 1 : vector<32x256xf32>, i32 -> vector<32x256xf32>
    %368 = vector.broadcast %139 : vector<1x256xf32> to vector<32x256xf32>
    %369 = arith.mulf %367, %368 : vector<32x256xf32>
    %370 = arith.truncf %369 : vector<32x256xf32> to vector<32x256xbf16>
    %c192_153 = arith.constant 192 : index
    %c0_154 = arith.constant 0 : index
    %371 = vector.load %arg13[%c192_153, %c0_154] : memref<576x256xbf16, #tpu.memory_space<vmem>>, vector<32x256xbf16>
    tpu.vector_store %arg13[%c192_153, %c0_154], %370 {strides = array<i32>} : memref<576x256xbf16, #tpu.memory_space<vmem>>, vector<32x256xbf16>,
    %c240_i32_155 = arith.constant 240 : i32
    %372 = tpu.dynamic_rotate %339 by %c240_i32_155 dim 1 : vector<32x256xf32>, i32 -> vector<32x256xf32>
    %373 = vector.broadcast %160 : vector<1x256xf32> to vector<32x256xf32>
    %374 = arith.mulf %372, %373 : vector<32x256xf32>
    %375 = arith.truncf %374 : vector<32x256xf32> to vector<32x256xbf16>
    %c224 = arith.constant 224 : index
    %c0_156 = arith.constant 0 : index
    %376 = vector.load %arg13[%c224, %c0_156] : memref<576x256xbf16, #tpu.memory_space<vmem>>, vector<32x256xbf16>
    tpu.vector_store %arg13[%c224, %c0_156], %375 {strides = array<i32>} : memref<576x256xbf16, #tpu.memory_space<vmem>>, vector<32x256xbf16>,
    %c239_i32_157 = arith.constant 239 : i32
    %377 = tpu.dynamic_rotate %339 by %c239_i32_157 dim 1 : vector<32x256xf32>, i32 -> vector<32x256xf32>
    %378 = vector.broadcast %181 : vector<1x256xf32> to vector<32x256xf32>
    %379 = arith.mulf %377, %378 : vector<32x256xf32>
    %380 = arith.truncf %379 : vector<32x256xf32> to vector<32x256xbf16>
    %c256_158 = arith.constant 256 : index
    %c0_159 = arith.constant 0 : index
    %381 = vector.load %arg13[%c256_158, %c0_159] : memref<576x256xbf16, #tpu.memory_space<vmem>>, vector<32x256xbf16>
    tpu.vector_store %arg13[%c256_158, %c0_159], %380 {strides = array<i32>} : memref<576x256xbf16, #tpu.memory_space<vmem>>, vector<32x256xbf16>,
    %c0_160 = arith.constant 0 : index
    %c0_161 = arith.constant 0 : index
    %382 = vector.load %arg6[%c0_160, %c0_161] : memref<32x288xbf16, #tpu.memory_space<vmem>>, vector<32x288xbf16>
    %c0_162 = arith.constant 0 : index
    %c0_163 = arith.constant 0 : index
    %383 = vector.load %arg13[%c0_162, %c0_163] : memref<576x256xbf16, #tpu.memory_space<vmem>>, vector<288x256xbf16>
    %cst_164 = arith.constant dense<0.000000e+00> : vector<32x256xf32>
    %384 = tpu.matmul %382, %383, %cst_164 {dimension_numbers = #tpu.dot_dimension_numbers<[1], [0], [0], [1], [0, 0, 1, 1], [], []>} : vector<32x288xbf16>, vector<288x256xbf16>, vector<32x256xf32> -> vector<32x256xf32>
    %385 = arith.addf %279, %384 : vector<32x256xf32>
    %cst_165 = arith.constant 0.000000e+00 : f32
    %386 = vector.broadcast %cst_165 : f32 to vector<32x256xf32>
    %387 = arith.maximumf %385, %386 : vector<32x256xf32>
    %c17_i32_166 = arith.constant 17 : i32
    %388 = tpu.dynamic_rotate %387 by %c17_i32_166 dim 1 : vector<32x256xf32>, i32 -> vector<32x256xf32>
    %389 = vector.broadcast %34 : vector<1x256xf32> to vector<32x256xf32>
    %390 = arith.mulf %388, %389 : vector<32x256xf32>
    %391 = arith.truncf %390 : vector<32x256xf32> to vector<32x256xbf16>
    %c0_167 = arith.constant 0 : index
    %c0_168 = arith.constant 0 : index
    %392 = vector.load %arg13[%c0_167, %c0_168] : memref<576x256xbf16, #tpu.memory_space<vmem>>, vector<32x256xbf16>
    tpu.vector_store %arg13[%c0_167, %c0_168], %391 {strides = array<i32>} : memref<576x256xbf16, #tpu.memory_space<vmem>>, vector<32x256xbf16>,
    %c16_i32_169 = arith.constant 16 : i32
    %393 = tpu.dynamic_rotate %387 by %c16_i32_169 dim 1 : vector<32x256xf32>, i32 -> vector<32x256xf32>
    %394 = vector.broadcast %55 : vector<1x256xf32> to vector<32x256xf32>
    %395 = arith.mulf %393, %394 : vector<32x256xf32>
    %396 = arith.truncf %395 : vector<32x256xf32> to vector<32x256xbf16>
    %c32_170 = arith.constant 32 : index
    %c0_171 = arith.constant 0 : index
    %397 = vector.load %arg13[%c32_170, %c0_171] : memref<576x256xbf16, #tpu.memory_space<vmem>>, vector<32x256xbf16>
    tpu.vector_store %arg13[%c32_170, %c0_171], %396 {strides = array<i32>} : memref<576x256xbf16, #tpu.memory_space<vmem>>, vector<32x256xbf16>,
    %c15_i32_172 = arith.constant 15 : i32
    %398 = tpu.dynamic_rotate %387 by %c15_i32_172 dim 1 : vector<32x256xf32>, i32 -> vector<32x256xf32>
    %399 = vector.broadcast %76 : vector<1x256xf32> to vector<32x256xf32>
    %400 = arith.mulf %398, %399 : vector<32x256xf32>
    %401 = arith.truncf %400 : vector<32x256xf32> to vector<32x256xbf16>
    %c64_173 = arith.constant 64 : index
    %c0_174 = arith.constant 0 : index
    %402 = vector.load %arg13[%c64_173, %c0_174] : memref<576x256xbf16, #tpu.memory_space<vmem>>, vector<32x256xbf16>
    tpu.vector_store %arg13[%c64_173, %c0_174], %401 {strides = array<i32>} : memref<576x256xbf16, #tpu.memory_space<vmem>>, vector<32x256xbf16>,
    %c1_i32_175 = arith.constant 1 : i32
    %403 = tpu.dynamic_rotate %387 by %c1_i32_175 dim 1 : vector<32x256xf32>, i32 -> vector<32x256xf32>
    %404 = vector.broadcast %97 : vector<1x256xf32> to vector<32x256xf32>
    %405 = arith.mulf %403, %404 : vector<32x256xf32>
    %406 = arith.truncf %405 : vector<32x256xf32> to vector<32x256xbf16>
    %c96_176 = arith.constant 96 : index
    %c0_177 = arith.constant 0 : index
    %407 = vector.load %arg13[%c96_176, %c0_177] : memref<576x256xbf16, #tpu.memory_space<vmem>>, vector<32x256xbf16>
    tpu.vector_store %arg13[%c96_176, %c0_177], %406 {strides = array<i32>} : memref<576x256xbf16, #tpu.memory_space<vmem>>, vector<32x256xbf16>,
    %408 = arith.truncf %387 : vector<32x256xf32> to vector<32x256xbf16>
    %c128_178 = arith.constant 128 : index
    %c0_179 = arith.constant 0 : index
    %409 = vector.load %arg13[%c128_178, %c0_179] : memref<576x256xbf16, #tpu.memory_space<vmem>>, vector<32x256xbf16>
    tpu.vector_store %arg13[%c128_178, %c0_179], %408 {strides = array<i32>} : memref<576x256xbf16, #tpu.memory_space<vmem>>, vector<32x256xbf16>,
    %c255_i32_180 = arith.constant 255 : i32
    %410 = tpu.dynamic_rotate %387 by %c255_i32_180 dim 1 : vector<32x256xf32>, i32 -> vector<32x256xf32>
    %411 = vector.broadcast %118 : vector<1x256xf32> to vector<32x256xf32>
    %412 = arith.mulf %410, %411 : vector<32x256xf32>
    %413 = arith.truncf %412 : vector<32x256xf32> to vector<32x256xbf16>
    %c160_181 = arith.constant 160 : index
    %c0_182 = arith.constant 0 : index
    %414 = vector.load %arg13[%c160_181, %c0_182] : memref<576x256xbf16, #tpu.memory_space<vmem>>, vector<32x256xbf16>
    tpu.vector_store %arg13[%c160_181, %c0_182], %413 {strides = array<i32>} : memref<576x256xbf16, #tpu.memory_space<vmem>>, vector<32x256xbf16>,
    %c241_i32_183 = arith.constant 241 : i32
    %415 = tpu.dynamic_rotate %387 by %c241_i32_183 dim 1 : vector<32x256xf32>, i32 -> vector<32x256xf32>
    %416 = vector.broadcast %139 : vector<1x256xf32> to vector<32x256xf32>
    %417 = arith.mulf %415, %416 : vector<32x256xf32>
    %418 = arith.truncf %417 : vector<32x256xf32> to vector<32x256xbf16>
    %c192_184 = arith.constant 192 : index
    %c0_185 = arith.constant 0 : index
    %419 = vector.load %arg13[%c192_184, %c0_185] : memref<576x256xbf16, #tpu.memory_space<vmem>>, vector<32x256xbf16>
    tpu.vector_store %arg13[%c192_184, %c0_185], %418 {strides = array<i32>} : memref<576x256xbf16, #tpu.memory_space<vmem>>, vector<32x256xbf16>,
    %c240_i32_186 = arith.constant 240 : i32
    %420 = tpu.dynamic_rotate %387 by %c240_i32_186 dim 1 : vector<32x256xf32>, i32 -> vector<32x256xf32>
    %421 = vector.broadcast %160 : vector<1x256xf32> to vector<32x256xf32>
    %422 = arith.mulf %420, %421 : vector<32x256xf32>
    %423 = arith.truncf %422 : vector<32x256xf32> to vector<32x256xbf16>
    %c224_187 = arith.constant 224 : index
    %c0_188 = arith.constant 0 : index
    %424 = vector.load %arg13[%c224_187, %c0_188] : memref<576x256xbf16, #tpu.memory_space<vmem>>, vector<32x256xbf16>
    tpu.vector_store %arg13[%c224_187, %c0_188], %423 {strides = array<i32>} : memref<576x256xbf16, #tpu.memory_space<vmem>>, vector<32x256xbf16>,
    %c239_i32_189 = arith.constant 239 : i32
    %425 = tpu.dynamic_rotate %387 by %c239_i32_189 dim 1 : vector<32x256xf32>, i32 -> vector<32x256xf32>
    %426 = vector.broadcast %181 : vector<1x256xf32> to vector<32x256xf32>
    %427 = arith.mulf %425, %426 : vector<32x256xf32>
    %428 = arith.truncf %427 : vector<32x256xf32> to vector<32x256xbf16>
    %c256_190 = arith.constant 256 : index
    %c0_191 = arith.constant 0 : index
    %429 = vector.load %arg13[%c256_190, %c0_191] : memref<576x256xbf16, #tpu.memory_space<vmem>>, vector<32x256xbf16>
    tpu.vector_store %arg13[%c256_190, %c0_191], %428 {strides = array<i32>} : memref<576x256xbf16, #tpu.memory_space<vmem>>, vector<32x256xbf16>,
    %c0_192 = arith.constant 0 : index
    %c0_193 = arith.constant 0 : index
    %430 = vector.load %arg7[%c0_192, %c0_193] : memref<32x288xbf16, #tpu.memory_space<vmem>>, vector<32x288xbf16>
    %c0_194 = arith.constant 0 : index
    %c0_195 = arith.constant 0 : index
    %431 = vector.load %arg13[%c0_194, %c0_195] : memref<576x256xbf16, #tpu.memory_space<vmem>>, vector<288x256xbf16>
    %cst_196 = arith.constant dense<0.000000e+00> : vector<32x256xf32>
    %432 = tpu.matmul %430, %431, %cst_196 {dimension_numbers = #tpu.dot_dimension_numbers<[1], [0], [0], [1], [0, 0, 1, 1], [], []>} : vector<32x288xbf16>, vector<288x256xbf16>, vector<32x256xf32> -> vector<32x256xf32>
    %c0_197 = arith.constant 0 : index
    %c0_198 = arith.constant 0 : index
    %433 = vector.load %arg10[%c0_197, %c0_198] : memref<32x1xf32, #tpu.memory_space<vmem>>, vector<32x1xf32>
    %434 = vector.broadcast %433 : vector<32x1xf32> to vector<32x256xf32>
    %435 = arith.addf %432, %434 : vector<32x256xf32>
    %cst_199 = arith.constant 1.000000e+00 : f32
    %436 = vector.broadcast %cst_199 : f32 to vector<32x256xf32>
    %437 = arith.subf %436, %335 : vector<32x256xf32>
    %438 = arith.mulf %437, %185 : vector<32x256xf32>
    %439 = arith.mulf %335, %435 : vector<32x256xf32>
    %440 = arith.addf %438, %439 : vector<32x256xf32>
    %c0_200 = arith.constant 0 : index
    %c0_201 = arith.constant 0 : index
    %441 = vector.load %arg12[%c0_200, %c0_201] : memref<32x256xf32, #tpu.memory_space<vmem>>, vector<32x256xf32>
    tpu.vector_store %arg12[%c0_200, %c0_201], %440 {strides = array<i32>} : memref<32x256xf32, #tpu.memory_space<vmem>>, vector<32x256xf32>,
    %442 = arith.truncf %440 : vector<32x256xf32> to vector<32x256xbf16>
    %c0_202 = arith.constant 0 : index
    %c0_203 = arith.constant 0 : index
    %c0_204 = arith.constant 0 : index
    %c0_205 = arith.constant 0 : index
    %443 = vector.load %arg11[%c0_202, %c0_203, %c0_204, %c0_205] : memref<1x1x32x256xbf16, #tpu.memory_space<vmem>>, vector<1x1x32x256xbf16>
    %444 = vector.shape_cast %443 : vector<1x1x32x256xbf16> to vector<32x256xbf16>
    %445 = vector.shape_cast %442 : vector<32x256xbf16> to vector<1x1x32x256xbf16>
    tpu.vector_store %arg11[%c0_202, %c0_203, %c0_204, %c0_205], %445 {strides = array<i32>} : memref<1x1x32x256xbf16, #tpu.memory_space<vmem>>, vector<1x1x32x256xbf16>,
    return
  }
  func.func @transform_0(%arg0: i32, %arg1: i32) -> (i32, i32, i32, i32) {
    %c0_i32 = arith.constant 0 : i32
    %c0_i32_0 = arith.constant 0 : i32
    %c0_i32_1 = arith.constant 0 : i32
    return %arg0, %arg1, %c0_i32, %c0_i32_0 : i32, i32, i32, i32
  }
  func.func @transform_1(%arg0: i32, %arg1: i32) -> (i32, i32, i32) {
    %c0_i32 = arith.constant 0 : i32
    %c0_i32_0 = arith.constant 0 : i32
    %c0_i32_1 = arith.constant 0 : i32
    return %arg0, %c0_i32, %c0_i32_0 : i32, i32, i32
  }
  func.func @transform_2(%arg0: i32, %arg1: i32) -> (i32, i32) {
    %c0_i32 = arith.constant 0 : i32
    %c0_i32_0 = arith.constant 0 : i32
    %c0_i32_1 = arith.constant 0 : i32
    return %c0_i32, %c0_i32_0 : i32, i32
  }
  func.func @transform_3(%arg0: i32, %arg1: i32) -> (i32, i32) {
    %c0_i32 = arith.constant 0 : i32
    %c0_i32_0 = arith.constant 0 : i32
    %c0_i32_1 = arith.constant 0 : i32
    return %c0_i32, %c0_i32_0 : i32, i32
  }
  func.func @transform_4(%arg0: i32, %arg1: i32) -> (i32, i32) {
    %c0_i32 = arith.constant 0 : i32
    %c0_i32_0 = arith.constant 0 : i32
    %c0_i32_1 = arith.constant 0 : i32
    return %c0_i32, %c0_i32_0 : i32, i32
  }
  func.func @transform_5(%arg0: i32, %arg1: i32) -> (i32, i32) {
    %c0_i32 = arith.constant 0 : i32
    %c0_i32_0 = arith.constant 0 : i32
    %c0_i32_1 = arith.constant 0 : i32
    return %c0_i32, %c0_i32_0 : i32, i32
  }
  func.func @transform_6(%arg0: i32, %arg1: i32) -> (i32, i32) {
    %c0_i32 = arith.constant 0 : i32
    %c0_i32_0 = arith.constant 0 : i32
    %c0_i32_1 = arith.constant 0 : i32
    return %c0_i32, %c0_i32_0 : i32, i32
  }
  func.func @transform_7(%arg0: i32, %arg1: i32) -> (i32, i32) {
    %c0_i32 = arith.constant 0 : i32
    %c0_i32_0 = arith.constant 0 : i32
    %c0_i32_1 = arith.constant 0 : i32
    return %c0_i32, %c0_i32_0 : i32, i32
  }
  func.func @transform_8(%arg0: i32, %arg1: i32) -> (i32, i32) {
    %c0_i32 = arith.constant 0 : i32
    %c0_i32_0 = arith.constant 0 : i32
    %c0_i32_1 = arith.constant 0 : i32
    return %c0_i32, %c0_i32_0 : i32, i32
  }
  func.func @transform_9(%arg0: i32, %arg1: i32) -> (i32, i32, i32, i32) {
    %c0_i32 = arith.constant 0 : i32
    %c0_i32_0 = arith.constant 0 : i32
    %c0_i32_1 = arith.constant 0 : i32
    return %arg0, %arg1, %c0_i32, %c0_i32_0 : i32, i32, i32, i32
  }
}

</mosaic_0001>

<bundles_post_ra>
// kernel: spatial_gru_forward.3
= control target key start
LH: loop header
LB: loop body
LE: loop exit
PB: predicated region body
PF: predicated region fallthrough
CT: control target
= control target key end

     0   :  { %s2722_s18 = smov 0   ;;  %s2724_s19 = smov 0   ;;  %s3953_s0 = inlined_call_operand.vmem [shape: bf16[2,3,32,256], index: 0, kind: input, shape index: {}]   ;;  %s3954_s1 = inlined_call_operand.vmem [shape: bf16[32,288], index: 1, kind: input, shape index: {}]   ;;  %s3955_s2 = inlined_call_operand.vmem [shape: bf16[32,288], index: 2, kind: input, shape index: {}]   ;;  %s3956_s3 = inlined_call_operand.vmem [shape: f32[32,1], index: 3, kind: input, shape index: {}]   ;;  %s3957_s4 = inlined_call_operand.vmem [shape: f32[32,1], index: 4, kind: input, shape index: {}]   ;;  %s3958_s5 = inlined_call_operand.vmem [shape: f32[2,3,32,256], index: 5, kind: output, shape index: {}]  }
   0x1   :  { %s2726_s20 = smov 0   ;;  %s2728_s21 = smov 0  }
   0x2   :  { %s2730_s22 = smov 0  }
   0x3 LB: > { %s24_s23 = sadd.s32 1, %s2672_s20  ;;  %s27_s24 = sadd.s32 1, %s2676_s21  ;;  %s2680_s22 = sphi %s2730_s22, %s15_s22   ;;  %s2676_s21 = sphi %s2728_s21, %s4060_s21   ;;  %s2672_s20 = sphi %s2726_s20, %s4059_s20   ;;  %s2668_s19 = sphi %s2724_s19, %s4058_s19   ;;  %s2664_s18 = sphi %s2722_s18, %s4057_s18  }
   0x4   : > { %p25_p0 = scmp.ge.s32.totalorder %s24_s23, 3  ;;  %p1965_p1 = scmp.ge.s32.totalorder %s2680_s22, 1 }
   0x5   : > { %p207_p2 = scmp.lt.s32.totalorder %s2680_s22, 7 }
   0x6   : > { %s4062_s23 = smov (%p25_p0, %s24_s23), 0  ;;  %s4064_s24 = smov (!%p25_p0, %s27_s24), %s2676_s21 }
   0x7   : > { %p208_p3 = pnand %p1965_p1, %p207_p2  ;;  %p29_p4 = scmp.ge.s32.totalorder %s4064_s24, 2 }
   0x8   : > { %p243_p5 = scmp.lt.s32.totalorder (!%p208_p3), %s2668_s19, 1  ;;  %p245_p6 = scmp.lt.s32.totalorder (!%p208_p3), %s2664_s18, 2 }
   0x9   : > { %s4066_s24 = smov (%p29_p4, %s4064_s24), 0  ;;  %211 = sbr.rel (%p208_p3) target bundleno = 862 (0x35e), region = 40 }
   0xa   : > { %s2682_s7 = smov (!%p208_p3), 1   ;;  %s2683_s8 = smov (!%p208_p3), 15  }
   0xb   : > { %s2684_s9 = smov (!%p208_p3), 16   ;;  %s2685_s10 = smov (!%p208_p3), 111  }
   0xc   : > { %s2686_s11 = smov (!%p208_p3), 17   ;;  %s2687_s12 = smov (!%p208_p3), 112  }
   0xd   : > { %s2688_s13 = smov (!%p208_p3), 113   ;;  %s2689_s14 = smov (!%p208_p3), 127  }
   0xe   : > { %s4068_s19 = smov (!%p243_p5, %s2668_s19), 1  ;;  %s4070_s18 = smov (!%p245_p6, %s2664_s18), 2  ;;  %v262_v16 = vlaneseq  ;;  %v2690_v43 = vmov 0.0   ;;  %v3979_v61 = vmov 0 }
   0xf   : > { %s2424_s25 = smul.u32 24, %s4068_s19  ;;  %s1966_s26 = sshll.u32 %s4070_s18, 3 }
  0x10   : > { %v2785_v17 = vand.u32 127, %v262_v16 }
  0x11   : > { %s2752_s27 = sadd.s32 %s2424_s25, %s1966_s26 }
  0x12   : > { %s1967_s28 = sshll.u32 %s2752_s27, 2  ;;  %v264_v18 = vadd.s32 128, %v2785_v17  ;;  %v265_v19 = vcvt.s32.f32 %v2785_v17  ;;  %vm3969_vm14 = vcmp.lt.s32.totalorder %v2785_v17, 15  ;;  %s1969_s19 = sshll.u32 %s2752_s27, 3 }
  0x13   : > { %s251_s6 = scalar_lea.vmem %s3953_s0, %s1967_s28  ;;  %s3928_s28 = scalar_lea.vmem %s3958_s5, %s1969_s19 }
  0x14   : > { %v383_v0 = vld [vmem:[%s251_s6 + $0x10] sm:$0xff]  ;;  %v384_v1 = vld [vmem:[%s251_s6 + $0x18] sm:$0xff]  ;;  %v381_v2 = vld [vmem:[%s251_s6] sm:$0xff]  ;;  %v266_v20 = vcvt.s32.f32 %v264_v18  ;;  %v267_v21 = vadd.f32 0.5, %v265_v19 }
  0x15   : > { %v389_v3 = vunpack.c.l.bf16 %v383_v0  ;;  %v391_v4 = vunpack.c.l.bf16 %v384_v1  ;;  %559 = vst [vmem:[#allocation2 + $0x90] sm:$0xff] %v383_v0  ;;  %v382_v5 = vld [vmem:[%s251_s6 + $0x8] sm:$0xff]  ;;  %v385_v6 = vunpack.c.l.bf16 %v381_v2  ;;  %v390_v10 = vunpack.c.h.bf16 %v383_v0 }
  0x16   : > { %560 = vst [vmem:[#allocation2 + $0x98] sm:$0xff] %v384_v1  ;;  %v387_v7 = vunpack.c.l.bf16 %v382_v5  ;;  %v392_v11 = vunpack.c.h.bf16 %v384_v1  ;;  %v386_v12 = vunpack.c.h.bf16 %v381_v2  ;;  %v388_v13 = vunpack.c.h.bf16 %v382_v5 }
  0x17   : > { %v2479_v8 = vpack.i.bf16 %v391_v4, %v389_v3  ;;  %557 = vst [vmem:[#allocation2 + $0x80] sm:$0xff] %v381_v2  ;;  %v268_v22 = vadd.f32 0.5, %v266_v20  ;;  %v269_v23 = vmul.f32 0.0625, %v267_v21 }
  0x18   : > { %v2489_v9 = vpack.i.bf16 %v387_v7, %v385_v6  ;;  %558 = vst [vmem:[#allocation2 + $0x88] sm:$0xff] %v382_v5  ;;  %v2484_v14 = vpack.i.bf16 %v392_v11, %v390_v10  ;;  %v2494_v15 = vpack.i.bf16 %v388_v13, %v386_v12 }
  0x19   : > { %2480 = vrot.lane.b32.xlu0 %v2479_v8, %s2682_s7  ;;  %2500 = vrot.lane.b32.xlu2 %v2479_v8, %s2683_s8  ;;  %v270_v24 = vmul.f32 0.0625, %v268_v22  ;;  %v271_v25 = vfloor.f32 %v269_v23 }
  0x1a   : > { %2490 = vrot.lane.b32.xlu1 %v2489_v9, %s2682_s7 }
  0x1b   : > { %v272_v26 = vfloor.f32 %v270_v24  ;;  %v2792_v27 = vcvt.f32.s32 %v271_v25 }
  0x1d   : > { %v2794_v28 = vcvt.f32.s32 %v272_v26  ;;  %v275_v29 = vmul.u32 16, %v2792_v27  ;;  %v279_v33 = vadd.s32 4294967295, %v2792_v27  ;;  %vm327_vm15 = vcmp.ge.s32.totalorder %v2792_v27, 0 }
  0x1e   : > { %v349_v1 = vadd.s32 1, %v2792_v27 }
  0x1f   : > { %v276_v30 = vmul.u32 16, %v2794_v28  ;;  %v2801_v31 = vsub.s32 %v2785_v17, %v275_v29  ;;  %v280_v34 = vadd.s32 4294967295, %v2794_v28  ;;  %vm281_vm0 = vcmp.ge.s32.totalorder %v279_v33, 0 }
  0x20   : > { %vm283_vm1 = vcmp.lt.s32.totalorder %v279_v33, 16  ;;  %v350_v2 = vadd.s32 1, %v2794_v28 }
  0x21   : > { %2485 = vrot.lane.b32.xlu0 %v2484_v14, %s2682_s7  ;;  %2505 = vrot.lane.b32.xlu2 %v2484_v14, %s2683_s8  ;;  %v2803_v32 = vsub.s32 %v264_v18, %v276_v30  ;;  %v2808_v35 = vadd.s32 1, %v2801_v31  ;;  %vm282_vm2 = vcmp.ge.s32.totalorder %v280_v34, 0  ;;  %vm284_vm3 = vcmp.lt.s32.totalorder %v280_v34, 16  ;;  %vm2813_vm4 = vmand %vm281_vm0, %vm283_vm1 }
  0x22   : > { %2495 = vrot.lane.b32.xlu1 %v2494_v15, %s2682_s7  ;;  %vm2818_vm6 = vmand %vm282_vm2, %vm284_vm3  ;;  %v2857_v58 = vadd.s32 4294967295, %v2801_v31  ;;  %vm329_vm0 = vcmp.lt.s32.totalorder %v2792_v27, 16  ;;  %vm328_vm1 = vcmp.ge.s32.totalorder %v2794_v28, 0  ;;  %vm330_vm2 = vcmp.lt.s32.totalorder %v2794_v28, 16 }
  0x23   : > { %v2811_v36 = vadd.s32 1, %v2803_v32  ;;  %vm3970_vm5 = vcmp.ge.s32.totalorder %v2808_v35, 0  ;;  %vm3962_vm9 = vcmp.lt.s32.totalorder %v2808_v35, 16  ;;  %v2860_v59 = vadd.s32 4294967295, %v2803_v32 }
  0x24   : > { %vm317_vm8 = vmand %vm2813_vm4, %vm3970_vm5  ;;  %vm3960_vm3 = vcmp.ge.s32.totalorder %v2857_v58, 0 }
  0x25   : > { %vm3968_vm7 = vcmp.ge.s32.totalorder %v2811_v36, 0  ;;  %vm3959_vm11 = vcmp.lt.s32.totalorder %v2811_v36, 16  ;;  %vm321_vm12 = vmand %vm317_vm8, %vm3962_vm9  ;;  %vm3967_vm9 = vcmp.ge.s32.totalorder %v2803_v32, 0 }
  0x26   : > { %vm318_vm10 = vmand %vm2818_vm6, %vm3968_vm7  ;;  %v2839_v44 = vsel %vm321_vm12, 1.0, %v2690_v43  ;;  %vm306_vm7 = vcmp.lt.s32.totalorder %v2803_v32, 16 }
  0x27   : > { %vm322_vm13 = vmand %vm318_vm10, %vm3959_vm11  ;;  %vm3961_vm10 = vcmp.ge.s32.totalorder %v2860_v59, 0 }
  0x28   : > { %v2842_v45 = vsel %vm322_vm13, 1.0, %v2690_v43  ;;  %vm2867_vm8 = vmand %vm327_vm15, %vm329_vm0  ;;  %vm3963_vm13 = vcmp.lt.s32.totalorder %v2857_v58, 16  ;;  %vm3964_vm15 = vcmp.lt.s32.totalorder %v2860_v59, 16 }
  0x29   : > { %2510 = vrot.lane.b32.xlu0 %v2489_v9, %s2683_s8  ;;  %2520 = vrot.lane.b32.xlu2 %v2479_v8, %s2684_s9  ;;  %vm2872_vm12 = vmand %vm328_vm1, %vm330_vm2 }
  0x2a   : > { %2515 = vrot.lane.b32.xlu1 %v2494_v15, %s2683_s8  ;;  %v3980_v61 = vsel %vm2872_vm12, 4294967295, %v3979_v61  ;;  %vm333_vm11 = vmand %vm2867_vm8, %vm3960_vm3  ;;  %vm3965_vm3 = vcmp.lt.s32.totalorder %v2785_v17, 1 }
  0x2b   : > { %vm334_vm0 = vmand %vm2872_vm12, %vm3961_vm10  ;;  %vm3966_vm10 = vcmp.ge.s32.totalorder %v2801_v31, 0 }
  0x2c   : > { %vm335_vm1 = vmand %vm333_vm11, %vm3963_vm13  ;;  %vm351_vm11 = vcmp.ge.s32.totalorder %v349_v1, 0  ;;  %vm352_vm13 = vcmp.ge.s32.totalorder %v350_v2, 0 }
  0x2d   : > { %vm336_vm2 = vmand %vm334_vm0, %vm3964_vm15  ;;  %v2896_v3 = vsel %vm335_vm1, 1.0, %v2690_v43  ;;  %vm353_vm0 = vcmp.lt.s32.totalorder %v349_v1, 16  ;;  %vm354_vm15 = vcmp.lt.s32.totalorder %v350_v2, 16 }
  0x2e   : > { %v2899_v4 = vsel %vm336_vm2, 1.0, %v2690_v43  ;;  %vm2931_vm1 = vmand %vm2813_vm4, %vm3966_vm10 }
  0x2f   : > { %vm2941_vm2 = vmand %vm2818_vm6, %vm3967_vm9 }
  0x30   : > { %vm2948_vm10 = vmand %vm351_vm11, %vm353_vm0 }
  0x31   : > { %2525 = vrot.lane.b32.xlu0 %v2484_v14, %s2684_s9  ;;  %2535 = vrot.lane.b32.xlu2 %v2484_v14, %s2685_s10  ;;  %vm2954_vm9 = vmand %vm352_vm13, %vm354_vm15  ;;  %vm3991_vm15 = vcmp.ge.s32.totalorder %v2811_v36, 0 }
  0x32   : > { %2530 = vrot.lane.b32.xlu1 %v2479_v8, %s2685_s10  ;;  %vm373_vm13 = vmand %vm2948_vm10, %vm3970_vm5  ;;  %vm450_vm5 = vcmp.lt.s32.totalorder %v2785_v17, 16 }
  0x33   : > { %vm374_vm0 = vmand %vm2954_vm9, %vm3991_vm15 }
  0x39   : > { %2540 = vrot.lane.b32.xlu0 %v2489_v9, %s2684_s9  ;;  %2550 = vrot.lane.b32.xlu2 %v2489_v9, %s2685_s10 }
  0x3a   : > { %2545 = vrot.lane.b32.xlu1 %v2494_v15, %s2684_s9 }
  0x41   : > { %2555 = vrot.lane.b32.xlu0 %v2494_v15, %s2685_s10  ;;  %2565 = vrot.lane.b32.xlu2 %v2484_v14, %s2686_s11 }
  0x42   : > { %2560 = vrot.lane.b32.xlu1 %v2479_v8, %s2686_s11 }
  0x49   : > { %2570 = vrot.lane.b32.xlu0 %v2479_v8, %s2687_s12  ;;  %2580 = vrot.lane.b32.xlu2 %v2489_v9, %s2686_s11 }
  0x4a   : > { %2575 = vrot.lane.b32.xlu1 %v2484_v14, %s2687_s12 }
  0x51   : > { %2585 = vrot.lane.b32.xlu0 %v2494_v15, %s2686_s11  ;;  %2595 = vrot.lane.b32.xlu2 %v2494_v15, %s2687_s12 }
  0x52   : > { %2590 = vrot.lane.b32.xlu1 %v2489_v9, %s2687_s12 }
  0x59   : > { %2600 = vrot.lane.b32.xlu0 %v2479_v8, %s2688_s13  ;;  %2610 = vrot.lane.b32.xlu2 %v2489_v9, %s2688_s13 }
  0x5a   : > { %2605 = vrot.lane.b32.xlu1 %v2484_v14, %s2688_s13 }
  0x61   : > { %2615 = vrot.lane.b32.xlu0 %v2494_v15, %s2688_s13  ;;  %2625 = vrot.lane.b32.xlu2 %v2484_v14, %s2689_s14 }
  0x62   : > { %2620 = vrot.lane.b32.xlu1 %v2479_v8, %s2689_s14 }
  0x69   : > { %2630 = vrot.lane.b32.xlu0 %v2489_v9, %s2689_s14 }
  0x6a   : > { %2635 = vrot.lane.b32.xlu1 %v2494_v15, %s2689_s14 }
  0x73   : > { %v2501_v38 = vpop.permute.xlu2 %2500 }
  0x74   : > { %v2503_v40 = vunpack.i.h.bf16 %v2501_v38  ;;  %v2502_v41 = vunpack.i.l.bf16 %v2501_v38 }
  0x7b   : > { %v2506_v42 = vpop.permute.xlu2 %2505 }
  0x7c   : > { %v2508_v46 = vunpack.i.h.bf16 %v2506_v42  ;;  %v2507_v47 = vunpack.i.l.bf16 %v2506_v42 }
  0x7e   : > { %v494_v48 = vsel %vm3969_vm14, %v2502_v41, %v2507_v47  ;;  %v495_v49 = vsel %vm3969_vm14, %v2503_v40, %v2508_v46  ;;  %v498_v50 = vsel %vm3969_vm14, %v2507_v47, %v2502_v41  ;;  %v499_v51 = vsel %vm3969_vm14, %v2508_v46, %v2503_v40 }
  0x7f   : > { %v504_v52 = vmul.f32 %v2839_v44, %v498_v50  ;;  %v505_v53 = vmul.f32 %v2842_v45, %v494_v48  ;;  %v506_v54 = vmul.f32 %v2839_v44, %v499_v51  ;;  %v507_v55 = vmul.f32 %v2842_v45, %v495_v49 }
  0x81   : > { %v510_v56 = vpack.c.bf16 %v505_v53, %v504_v52  ;;  %v511_v57 = vpack.c.bf16 %v507_v55, %v506_v54 }
  0x83   : > { %514 = vst [vmem:[#allocation2 + $0x50] sm:$0xff] %v510_v56  ;;  %v2876_v62 = vpop.permute.xlu2 %2520 }
  0x84   : > { %515 = vst [vmem:[#allocation2 + $0x58] sm:$0xff] %v511_v57 }
  0x8b   : > { %v2481_v63 = vpop.permute.xlu0 %2480  ;;  %v2903_v11 = vpop.permute.xlu2 %2535 }
  0x8c   : > { %v2491_v0 = vpop.permute.xlu1 %2490  ;;  %v2483_v6 = vunpack.i.h.bf16 %v2481_v63  ;;  %v2482_v7 = vunpack.i.l.bf16 %v2481_v63 }
  0x8d   : > { %v2493_v12 = vunpack.i.h.bf16 %v2491_v0  ;;  %v2492_v13 = vunpack.i.l.bf16 %v2491_v0 }
  0x93   : > { %v2486_v5 = vpop.permute.xlu0 %2485  ;;  %v2971_v57 = vpop.permute.xlu2 %2550 }
  0x94   : > { %v2488_v8 = vunpack.i.h.bf16 %v2486_v5  ;;  %v2487_v9 = vunpack.i.l.bf16 %v2486_v5  ;;  %v2496_v10 = vpop.permute.xlu1 %2495 }
  0x95   : > { %v2498_v14 = vunpack.i.h.bf16 %v2496_v10  ;;  %v2497_v15 = vunpack.i.l.bf16 %v2496_v10  ;;  %v2522_v10 = vunpack.i.l.bf16 %v2876_v62 }
  0x96   : > { %v535_v16 = vsel %vm3965_vm3, %v2482_v7, %v2487_v9  ;;  %v536_v18 = vsel %vm3965_vm3, %v2483_v6, %v2488_v8  ;;  %v539_v19 = vsel %vm3965_vm3, %v2487_v9, %v2482_v7  ;;  %v540_v20 = vsel %vm3965_vm3, %v2488_v8, %v2483_v6 }
  0x97   : > { %v545_v21 = vmul.f32 %v2896_v3, %v539_v19  ;;  %v546_v22 = vmul.f32 %v2899_v4, %v535_v16  ;;  %v547_v23 = vmul.f32 %v2896_v3, %v540_v20  ;;  %v548_v24 = vmul.f32 %v2899_v4, %v536_v18 }
  0x98   : > { %v533_v25 = vsel %vm3965_vm3, %v2492_v13, %v2497_v15  ;;  %v534_v26 = vsel %vm3965_vm3, %v2493_v12, %v2498_v14  ;;  %v537_v27 = vsel %vm3965_vm3, %v2497_v15, %v2492_v13  ;;  %v538_v28 = vsel %vm3965_vm3, %v2498_v14, %v2493_v12  ;;  %v2348_v15 = vld [vmem:[#allocation2 + $0x54] sm:$0xf] }
  0x99   : > { %v551_v29 = vpack.c.bf16 %v546_v22, %v545_v21  ;;  %v552_v30 = vpack.c.bf16 %v548_v24, %v547_v23  ;;  %v541_v33 = vmul.f32 %v2896_v3, %v537_v27  ;;  %v542_v34 = vmul.f32 %v2899_v4, %v533_v25 }
  0x9a   : > { %v543_v40 = vmul.f32 %v2896_v3, %v538_v28  ;;  %v544_v41 = vmul.f32 %v2899_v4, %v534_v26  ;;  %vm3971_vm3 = vcmp.lt.s32.totalorder %v2801_v31, 16  ;;  %v2523_v9 = vunpack.i.h.bf16 %v2876_v62 }
  0x9b   : > { %555 = vst [vmem:[#allocation2 + $0x70] sm:$0xff] %v551_v29  ;;  %v549_v46 = vpack.c.bf16 %v542_v34, %v541_v33  ;;  %v2511_v47 = vpop.permute.xlu0 %2510  ;;  %vm2963_vm11 = vmand %vm2931_vm1, %vm3971_vm3  ;;  %vm3995_vm3 = vcmp.lt.s32.totalorder %v2811_v36, 16  ;;  %v2538_v18 = vunpack.i.h.bf16 %v2903_v11  ;;  %v2537_v19 = vunpack.i.l.bf16 %v2903_v11 }
  0x9c   : > { %556 = vst [vmem:[#allocation2 + $0x78] sm:$0xff] %v552_v30  ;;  %v550_v49 = vpack.c.bf16 %v544_v41, %v543_v40  ;;  %v2513_v50 = vunpack.i.h.bf16 %v2511_v47  ;;  %v2512_v51 = vunpack.i.l.bf16 %v2511_v47  ;;  %v2516_v52 = vpop.permute.xlu1 %2515  ;;  %vm308_vm1 = vmand %vm2941_vm2, %vm306_vm7  ;;  %vm700_vm2 = vcmp.lt.s32.totalorder %v2785_v17, 111 }
  0x9d   : > { %553 = vst [vmem:[#allocation2 + $0x60] sm:$0xff] %v549_v46  ;;  %v2518_v54 = vunpack.i.h.bf16 %v2516_v52  ;;  %v2517_v55 = vunpack.i.l.bf16 %v2516_v52  ;;  %vm3004_vm12 = vmand %vm374_vm0, %vm3995_vm3  ;;  %v3014_v20 = vsel %vm2963_vm11, 1.0, %v2690_v43  ;;  %v3017_v21 = vsel %vm308_vm1, 1.0, %v2690_v43 }
  0x9e   : > { %554 = vst [vmem:[#allocation2 + $0x68] sm:$0xff] %v550_v49  ;;  %v3027_v30 = vsel %vm3004_vm12, 1.0, %v2690_v43  ;;  %vm4001_vm12 = vcmp.ge.s32.totalorder %v2860_v59, 0  ;;  %vm4004_vm11 = vcmp.lt.s32.totalorder %v2857_v58, 16  ;;  %vm409_vm1 = vcmp.lt.s32.totalorder %v2785_v17, 17 }
  0x9f   : > { %v493_v63 = vsel %vm3969_vm14, %v2513_v50, %v2518_v54  ;;  %v497_v0 = vsel %vm3969_vm14, %v2518_v54, %v2513_v50  ;;  %v492_v1 = vsel %vm3969_vm14, %v2512_v51, %v2517_v55  ;;  %v496_v2 = vsel %vm3969_vm14, %v2517_v55, %v2512_v51 }
  0xa0   : > { %v502_v5 = vmul.f32 %v2839_v44, %v497_v0  ;;  %v503_v6 = vmul.f32 %v2842_v45, %v493_v63  ;;  %v500_v7 = vmul.f32 %v2839_v44, %v496_v2  ;;  %v501_v8 = vmul.f32 %v2842_v45, %v492_v1  ;;  %v3049_v2 = vpop.permute.xlu2 %2565 }
  0xa1   : > { %vm3992_vm14 = vcmp.lt.s32.totalorder %v2808_v35, 16 }
  0xa2   : > { %vm2997_vm15 = vmand %vm373_vm13, %vm3992_vm14  ;;  %v509_v13 = vpack.c.bf16 %v503_v6, %v502_v5  ;;  %v508_v14 = vpack.c.bf16 %v501_v8, %v500_v7  ;;  %v2068_v16 = vld [vmem:[#allocation2 + $0x70] sm:$0xf]  ;;  %v2352_v62 = vld [vmem:[#allocation2 + $0x74] sm:$0xf]  ;;  %vm3998_vm14 = vcmp.ge.s32.totalorder %v2857_v58, 0  ;;  %vm4007_vm13 = vcmp.lt.s32.totalorder %v2860_v59, 16 }
  0xa3   : > { %v2526_v22 = vpop.permute.xlu0 %2525  ;;  %v2353_v23 = vld [vmem:[#allocation2 + $0x74] sm:$0xf0]  ;;  %v2070_v24 = vld [vmem:[#allocation2 + $0x78] sm:$0xf0]  ;;  %v3022_v11 = vsel %vm2997_vm15, 1.0, %v2690_v43  ;;  %vm3059_vm3 = vmand %vm2813_vm4, %vm3998_vm14  ;;  %vm4010_vm15 = vcmp.ge.s32.totalorder %v2801_v31, 0 }
  0xa4   : > { %513 = vst [vmem:[#allocation2 + $0x48] sm:$0xff] %v509_v13  ;;  %v2528_v25 = vunpack.i.h.bf16 %v2526_v22  ;;  %v2527_v26 = vunpack.i.l.bf16 %v2526_v22  ;;  %v2531_v27 = vpop.permute.xlu1 %2530  ;;  %v2069_v28 = vor.u32 %v2353_v23, %v2068_v16  ;;  %v2073_v29 = vor.u32 %v2352_v62, %v2070_v24  ;;  %v2060_v46 = vld [vmem:[#allocation2 + $0x60] sm:$0xf]  ;;  %v2350_v54 = vld [vmem:[#allocation2 + $0x64] sm:$0xf]  ;;  %vm3075_vm4 = vmand %vm2818_vm6, %vm4001_vm12 }
  0xa5   : > { %512 = vst [vmem:[#allocation2 + $0x40] sm:$0xff] %v508_v14  ;;  %v2533_v33 = vunpack.i.h.bf16 %v2531_v27  ;;  %v2532_v34 = vunpack.i.l.bf16 %v2531_v27  ;;  %v2351_v52 = vld [vmem:[#allocation2 + $0x64] sm:$0xf0]  ;;  %v2062_v55 = vld [vmem:[#allocation2 + $0x68] sm:$0xf0]  ;;  %vm3088_vm6 = vmand %vm3059_vm3, %vm4004_vm11  ;;  %vm4013_vm3 = vcmp.ge.s32.totalorder %v2803_v32, 0 }
  0xa6   : > { %v454_v38 = vsel %vm450_vm5, %v2523_v9, %v2528_v25  ;;  %v458_v40 = vsel %vm450_vm5, %v2528_v25, %v2523_v9  ;;  %v453_v41 = vsel %vm450_vm5, %v2522_v10, %v2527_v26  ;;  %v457_v42 = vsel %vm450_vm5, %v2527_v26, %v2522_v10  ;;  %1010 = vmatpush.bf16.msra.mxu0 %v2069_v28  ;;  %v2052_v14 = vld [vmem:[#allocation2 + $0x50] sm:$0xf]  ;;  %vm3097_vm0 = vmand %vm3075_vm4, %vm4007_vm13 }
  0xa7   : > { %v465_v47 = vmul.f32 %v3014_v20, %v458_v40  ;;  %v466_v49 = vmul.f32 %v3017_v21, %v454_v38  ;;  %v463_v50 = vmul.f32 %v3014_v20, %v457_v42  ;;  %v464_v51 = vmul.f32 %v3017_v21, %v453_v41  ;;  %1067 = vmatpush.bf16.msra.mxu3 %v2073_v29  ;;  %vm3120_vm14 = vmand %vm2948_vm10, %vm4010_vm15 }
  0xa8   : > { %v704_v56 = vsel %vm700_vm2, %v2533_v33, %v2538_v18  ;;  %v708_v63 = vsel %vm700_vm2, %v2538_v18, %v2533_v33  ;;  %v703_v0 = vsel %vm700_vm2, %v2532_v34, %v2537_v19  ;;  %v707_v1 = vsel %vm700_vm2, %v2537_v19, %v2532_v34  ;;  %v2349_v18 = vld [vmem:[#allocation2 + $0x54] sm:$0xf0]  ;;  %v2054_v19 = vld [vmem:[#allocation2 + $0x58] sm:$0xf0]  ;;  %vm3136_vm12 = vmand %vm2954_vm9, %vm4013_vm3 }
  0xa9   : > { %v470_v5 = vpack.c.bf16 %v466_v49, %v465_v47  ;;  %v469_v6 = vpack.c.bf16 %v464_v51, %v463_v50  ;;  %v715_v7 = vmul.f32 %v3022_v11, %v704_v56  ;;  %v716_v8 = vmul.f32 %v3027_v30, %v708_v63 }
  0xaa   : > { %v713_v9 = vmul.f32 %v3022_v11, %v703_v0  ;;  %v714_v10 = vmul.f32 %v3027_v30, %v707_v1  ;;  %v2061_v12 = vor.u32 %v2351_v52, %v2060_v46  ;;  %v2065_v13 = vor.u32 %v2350_v54, %v2062_v55 }
  0xab   : > { %474 = vst [vmem:[#allocation2 + $0x38] sm:$0xff] %v470_v5  ;;  %v720_v16 = vpack.c.bf16 %v716_v8, %v715_v7  ;;  %v2541_v62 = vpop.permute.xlu0 %2540  ;;  %v2053_v28 = vor.u32 %v2349_v18, %v2052_v14  ;;  %v2057_v29 = vor.u32 %v2348_v15, %v2054_v19  ;;  %v2347_v46 = vld [vmem:[#allocation2 + $0x44] sm:$0xf0]  ;;  %v2046_v54 = vld [vmem:[#allocation2 + $0x48] sm:$0xf0]  ;;  %v2553_v55 = vunpack.i.h.bf16 %v2971_v57  ;;  %v3101_v8 = vpop.permute.xlu2 %2580 }
  0xac   : > { %473 = vst [vmem:[#allocation2 + $0x30] sm:$0xff] %v469_v6  ;;  %v719_v22 = vpack.c.bf16 %v714_v10, %v713_v9  ;;  %1011 = vmatpush.bf16.msra.mxu0 %v2061_v12  ;;  %1068 = vmatpush.bf16.msra.mxu3 %v2065_v13  ;;  %v2543_v23 = vunpack.i.h.bf16 %v2541_v62  ;;  %v2542_v24 = vunpack.i.l.bf16 %v2541_v62  ;;  %v2546_v25 = vpop.permute.xlu1 %2545  ;;  %v2044_v42 = vld [vmem:[#allocation2 + $0x40] sm:$0xf]  ;;  %v2346_v52 = vld [vmem:[#allocation2 + $0x44] sm:$0xf]  ;;  %v2552_v56 = vunpack.i.l.bf16 %v2971_v57 }
  0xad   : > { %724 = vst [vmem:[#allocation2 + $0x118] sm:$0xff] %v720_v16  ;;  %v2548_v26 = vunpack.i.h.bf16 %v2546_v25  ;;  %v2547_v27 = vunpack.i.l.bf16 %v2546_v25  ;;  %v2045_v1 = vor.u32 %v2347_v46, %v2044_v42  ;;  %v2049_v9 = vor.u32 %v2346_v52, %v2046_v54 }
  0xae   : > { %723 = vst [vmem:[#allocation2 + $0x110] sm:$0xff] %v719_v22  ;;  %v2568_v10 = vunpack.i.h.bf16 %v3049_v2  ;;  %v2567_v57 = vunpack.i.l.bf16 %v3049_v2  ;;  %v3109_v62 = vsel %vm3088_vm6, 1.0, %v2690_v43  ;;  %v3114_v2 = vsel %vm3097_vm0, 1.0, %v2690_v43  ;;  %vm3162_vm6 = vmand %vm3136_vm12, %vm306_vm7 }
  0xaf   : > { %v452_v34 = vsel %vm450_vm5, %v2543_v23, %v2548_v26  ;;  %v456_v38 = vsel %vm450_vm5, %v2548_v26, %v2543_v23  ;;  %v451_v40 = vsel %vm450_vm5, %v2542_v24, %v2547_v27  ;;  %v455_v41 = vsel %vm450_vm5, %v2547_v27, %v2542_v24 }
  0xb0   : > { %v461_v47 = vmul.f32 %v3014_v20, %v456_v38  ;;  %v462_v49 = vmul.f32 %v3017_v21, %v452_v34  ;;  %v459_v50 = vmul.f32 %v3014_v20, %v455_v41  ;;  %v460_v51 = vmul.f32 %v3017_v21, %v451_v40  ;;  %1012 = vmatpush.bf16.msra.mxu0 %v2053_v28 }
  0xb1   : > { %1069 = vmatpush.bf16.msra.mxu3 %v2057_v29  ;;  %vm4016_vm4 = vcmp.lt.s32.totalorder %v2801_v31, 16  ;;  %vm659_vm13 = vcmp.lt.s32.totalorder %v2785_v17, 112  ;;  %vm4019_vm7 = vcmp.ge.s32.totalorder %v2857_v58, 0  ;;  %vm618_vm15 = vcmp.lt.s32.totalorder %v2785_v17, 113 }
  0xb2   : > { %v468_v63 = vpack.c.bf16 %v462_v49, %v461_v47  ;;  %v467_v0 = vpack.c.bf16 %v460_v51, %v459_v50  ;;  %v2345_v6 = vld [vmem:[#allocation2 + $0x34] sm:$0xf0]  ;;  %v2038_v7 = vld [vmem:[#allocation2 + $0x38] sm:$0xf0]  ;;  %vm367_vm11 = vmand %vm3120_vm14, %vm4016_vm4  ;;  %vm4022_vm14 = vcmp.ge.s32.totalorder %v2860_v59, 0  ;;  %vm4028_vm4 = vcmp.ge.s32.totalorder %v2808_v35, 0 }
  0xb3   : > { %v2556_v12 = vpop.permute.xlu0 %2555  ;;  %v2036_v13 = vld [vmem:[#allocation2 + $0x30] sm:$0xf]  ;;  %v2344_v14 = vld [vmem:[#allocation2 + $0x34] sm:$0xf]  ;;  %v3170_v5 = vsel %vm367_vm11, 1.0, %v2690_v43  ;;  %vm3201_vm0 = vmand %vm2948_vm10, %vm4019_vm7  ;;  %vm1003_vm10 = vcmask 261120  }
  0xb4   : > { %472 = vst [vmem:[#allocation2 + $0x28] sm:$0xff] %v468_v63  ;;  %1013 = vmatpush.bf16.msra.mxu0 %v2045_v1  ;;  %v2558_v15 = vunpack.i.h.bf16 %v2556_v12  ;;  %v2557_v16 = vunpack.i.l.bf16 %v2556_v12  ;;  %v2561_v18 = vpop.permute.xlu1 %2560  ;;  %v2037_v19 = vor.u32 %v2345_v6, %v2036_v13  ;;  %v2041_v24 = vor.u32 %v2344_v14, %v2038_v7  ;;  %v2373_v46 = vld [vmem:[#allocation2 + $0x114] sm:$0xf0]  ;;  %vm3210_vm3 = vmand %vm2954_vm9, %vm4022_vm14 }
  0xb5   : > { %471 = vst [vmem:[#allocation2 + $0x20] sm:$0xff] %v467_v0  ;;  %1070 = vmatpush.bf16.msra.mxu3 %v2049_v9  ;;  %v2563_v22 = vunpack.i.h.bf16 %v2561_v18  ;;  %v2562_v23 = vunpack.i.l.bf16 %v2561_v18  ;;  %v2148_v42 = vld [vmem:[#allocation2 + $0x110] sm:$0xf]  ;;  %vm4025_vm9 = vcmp.lt.s32.totalorder %v2857_v58, 16  ;;  %vm3250_vm11 = vmand %vm2867_vm8, %vm4028_vm4  ;;  %vm4034_vm8 = vcmp.lt.s32.totalorder %v2808_v35, 16 }
  0xb6   : > { %v702_v26 = vsel %vm700_vm2, %v2553_v55, %v2558_v15  ;;  %v706_v27 = vsel %vm700_vm2, %v2558_v15, %v2553_v55  ;;  %v701_v28 = vsel %vm700_vm2, %v2552_v56, %v2557_v16  ;;  %v705_v29 = vsel %vm700_vm2, %v2557_v16, %v2552_v56  ;;  %v2596_v15 = vpop.permute.xlu2 %2595  ;;  %vm3230_vm12 = vmand %vm3201_vm0, %vm4025_vm9 }
  0xb7   : > { %v711_v34 = vmul.f32 %v3022_v11, %v702_v26  ;;  %v712_v38 = vmul.f32 %v3027_v30, %v706_v27  ;;  %v709_v40 = vmul.f32 %v3022_v11, %v701_v28  ;;  %v710_v41 = vmul.f32 %v3027_v30, %v705_v29  ;;  %vm3277_vm0 = vmand %vm3250_vm11, %vm4034_vm8 }
  0xb8   : > { %v413_v37 = vsel %vm409_vm1, %v2563_v22, %v2568_v10  ;;  %v417_v47 = vsel %vm409_vm1, %v2568_v10, %v2563_v22  ;;  %v412_v49 = vsel %vm409_vm1, %v2562_v23, %v2567_v57  ;;  %v416_v50 = vsel %vm409_vm1, %v2567_v57, %v2562_v23  ;;  %1014 = vmatpush.bf16.msra.mxu0 %v2037_v19 }
  0xb9   : > { %v718_v51 = vpack.c.bf16 %v712_v38, %v711_v34  ;;  %v717_v52 = vpack.c.bf16 %v710_v41, %v709_v40  ;;  %v424_v54 = vmul.f32 %v3109_v62, %v417_v47  ;;  %v425_v55 = vmul.f32 %v3114_v2, %v413_v37  ;;  %1071 = vmatpush.bf16.msra.mxu3 %v2041_v24  ;;  %v1996_v41 = vld [vmem:[%s3954_s1 + $0x8] sm:$0xf] }
  0xba   : > { %v422_v31 = vmul.f32 %v3109_v62, %v416_v50  ;;  %v423_v56 = vmul.f32 %v3114_v2, %v412_v49  ;;  %v2149_v63 = vor.u32 %v2373_v46, %v2148_v42  ;;  %v3175_v57 = vsel %vm3162_vm6, 1.0, %v2690_v43  ;;  %v2334_v42 = vld [vmem:[%s3954_s1 + $0x10] sm:$0xf0] }
  0xbb   : > { %722 = vst [vmem:[#allocation2 + $0x108] sm:$0xff] %v718_v51  ;;  %v429_v0 = vpack.c.bf16 %v425_v55, %v424_v54  ;;  %v2571_v1 = vpop.permute.xlu0 %2570  ;;  %v2343_v32 = vld [vmem:[#allocation2 + $0x24] sm:$0xf0]  ;;  %v2030_v6 = vld [vmem:[#allocation2 + $0x28] sm:$0xf0]  ;;  %v2583_v46 = vunpack.i.h.bf16 %v3101_v8  ;;  %v2582_v37 = vunpack.i.l.bf16 %v3101_v8  ;;  %v2598_v47 = vunpack.i.h.bf16 %v2596_v15 }
  0xbc   : > { %721 = vst [vmem:[#allocation2 + $0x100] sm:$0xff] %v717_v52  ;;  %v428_v7 = vpack.c.bf16 %v423_v56, %v422_v31  ;;  %1054 = vmatpush.bf16.msra.mxu2 %v2149_v63  ;;  %v2573_v9 = vunpack.i.h.bf16 %v2571_v1  ;;  %v2572_v10 = vunpack.i.l.bf16 %v2571_v1  ;;  %v2576_v12 = vpop.permute.xlu1 %2575  ;;  %v2028_v13 = vld [vmem:[#allocation2 + $0x20] sm:$0xf]  ;;  %v2342_v14 = vld [vmem:[#allocation2 + $0x24] sm:$0xf]  ;;  %v2597_v49 = vunpack.i.l.bf16 %v2596_v15 }
  0xbd   : > { %433 = vst [vmem:[#allocation2 + $0x18] sm:$0xff] %v429_v0  ;;  %v2578_v16 = vunpack.i.h.bf16 %v2576_v12  ;;  %v2577_v18 = vunpack.i.l.bf16 %v2576_v12  ;;  %v2029_v19 = vor.u32 %v2343_v32, %v2028_v13  ;;  %v2033_v22 = vor.u32 %v2342_v14, %v2030_v6 }
  0xbe   : > { %432 = vst [vmem:[#allocation2 + $0x10] sm:$0xff] %v428_v7  ;;  %v3214_v63 = vor.u32 %v2334_v42, %v1996_v41  ;;  %v3224_v7 = vpop.permute.xlu2 %2610  ;;  %vm4031_vm6 = vcmp.lt.s32.totalorder %v2860_v59, 16  ;;  %v3271_v59 = vsel %vm3230_vm12, 1.0, %v2690_v43  ;;  %vm4037_vm14 = vcmp.ge.s32.totalorder %v2811_v36, 0 }
  0xbf   : > { %v663_v23 = vsel %vm659_vm13, %v2573_v9, %v2578_v16  ;;  %v667_v24 = vsel %vm659_vm13, %v2578_v16, %v2573_v9  ;;  %v662_v25 = vsel %vm659_vm13, %v2572_v10, %v2577_v18  ;;  %v666_v26 = vsel %vm659_vm13, %v2577_v18, %v2572_v10  ;;  %1015 = vmatpush.bf16.msra.mxu0 %v2029_v19  ;;  %vm3260_vm7 = vmand %vm3210_vm3, %vm4031_vm6 }
  0xc0   : > { %v674_v27 = vmul.f32 %v3170_v5, %v663_v23  ;;  %v675_v28 = vmul.f32 %v3175_v57, %v667_v24  ;;  %v672_v29 = vmul.f32 %v3170_v5, %v662_v25  ;;  %v673_v33 = vmul.f32 %v3175_v57, %v666_v26  ;;  %1072 = vmatpush.bf16.msra.mxu3 %v2033_v22 }
  0xc1   : > { %vm4038_vm3 = vnez %v3980_v61  ;;  %v3297_v48 = vsel %vm3277_vm0, 1.0, %v2690_v43  ;;  %vm4041_vm12 = vcmp.lt.s32.totalorder %v2811_v36, 16  ;;  %vm577_vm11 = vcmp.lt.s32.totalorder %v2785_v17, 127 }
  0xc2   : > { %v679_v34 = vpack.c.bf16 %v675_v28, %v674_v27  ;;  %v678_v38 = vpack.c.bf16 %v673_v33, %v672_v29  ;;  %v2371_v40 = vld [vmem:[#allocation2 + $0x104] sm:$0xf0]  ;;  %vm3290_vm9 = vmand %vm4038_vm3, %vm4037_vm14  ;;  %vm4042_vm6 = vcmp.lt.s32.totalorder %v2785_v17, 15  ;;  %vm4044_vm8 = vcmp.lt.s32.totalorder %v2785_v17, 1 }
  0xc3   : > { %v2586_v50 = vpop.permute.xlu0 %2585  ;;  %v2140_v51 = vld [vmem:[#allocation2 + $0x100] sm:$0xf]  ;;  %vm344_vm4 = vmand %vm3290_vm9, %vm4041_vm12 }
  0xc4   : > { %683 = vst [vmem:[#allocation2 + $0xf8] sm:$0xff] %v679_v34  ;;  %v2588_v54 = vunpack.i.h.bf16 %v2586_v50  ;;  %v2587_v55 = vunpack.i.l.bf16 %v2586_v50  ;;  %v2591_v39 = vpop.permute.xlu1 %2590  ;;  %v2141_v31 = vor.u32 %v2371_v40, %v2140_v51  ;;  %v2341_v53 = vld [vmem:[#allocation2 + $0x14] sm:$0xf0]  ;;  %v2022_v18 = vld [vmem:[#allocation2 + $0x18] sm:$0xf0]  ;;  %v3284_v51 = vsel %vm3260_vm7, 1.0, %v2690_v43  ;;  %vm4043_vm7 = vmmov %vm4042_vm6 }
  0xc5   : > { %682 = vst [vmem:[#allocation2 + $0xf0] sm:$0xff] %v678_v38  ;;  %v2593_v8 = vunpack.i.h.bf16 %v2591_v39  ;;  %v2592_v56 = vunpack.i.l.bf16 %v2591_v39  ;;  %v2020_v15 = vld [vmem:[#allocation2 + $0x10] sm:$0xf]  ;;  %v2340_v16 = vld [vmem:[#allocation2 + $0x14] sm:$0xf]  ;;  %vm4045_vm0 = vmmov %vm4044_vm8 }
  0xc6   : > { %v411_v0 = vsel %vm409_vm1, %v2583_v46, %v2588_v54  ;;  %v415_v1 = vsel %vm409_vm1, %v2588_v54, %v2583_v46  ;;  %v410_v32 = vsel %vm409_vm1, %v2582_v37, %v2587_v55  ;;  %v414_v6 = vsel %vm409_vm1, %v2587_v55, %v2582_v37  ;;  %1055 = vmatpush.bf16.msra.mxu2 %v2141_v31  ;;  %vm4046_vm14 = vmmov %vm4042_vm6 }
  0xc7   : > { %v420_v10 = vmul.f32 %v3109_v62, %v415_v1  ;;  %v421_v12 = vmul.f32 %v3114_v2, %v411_v0  ;;  %v418_v13 = vmul.f32 %v3109_v62, %v414_v6  ;;  %v419_v14 = vmul.f32 %v3114_v2, %v410_v32  ;;  %v2372_v6 = vld [vmem:[#allocation2 + $0x114] sm:$0xf]  ;;  %vm4047_vm3 = vmmov %vm4042_vm6 }
  0xc8   : > { %v661_v58 = vsel %vm659_vm13, %v2593_v8, %v2598_v47  ;;  %v665_v19 = vsel %vm659_vm13, %v2598_v47, %v2593_v8  ;;  %v660_v22 = vsel %vm659_vm13, %v2592_v56, %v2597_v49  ;;  %v664_v23 = vsel %vm659_vm13, %v2597_v49, %v2592_v56  ;;  %vm4048_vm9 = vmmov %vm4047_vm3 }
  0xc9   : > { %v427_v25 = vpack.c.bf16 %v421_v12, %v420_v10  ;;  %v426_v26 = vpack.c.bf16 %v419_v14, %v418_v13  ;;  %v670_v27 = vmul.f32 %v3170_v5, %v661_v58  ;;  %v671_v28 = vmul.f32 %v3175_v57, %v665_v19  ;;  %2154 = vmatmul.msk.bf16.vlgmr.msra.gmra.mxu2 %vm1003_vm10, %v3214_v63  ;;  %v2626_v14 = vpop.permute.xlu2 %2625  ;;  %v2008_v58 = vld [vmem:[%s3954_s1 + $0x20] sm:$0xf]  ;;  %vm4049_vm12 = vmmov %vm4047_vm3 }
  0xca   : > { %v668_v60 = vmul.f32 %v3170_v5, %v660_v22  ;;  %v669_v33 = vmul.f32 %v3175_v57, %v664_v23  ;;  %v2021_v34 = vor.u32 %v2341_v53, %v2020_v15  ;;  %v2025_v38 = vor.u32 %v2340_v16, %v2022_v18  ;;  %v2150_v53 = vld [vmem:[#allocation2 + $0x118] sm:$0xf0]  ;;  %v1988_v16 = vld [vmem:[%s3954_s1] sm:$0xf]  ;;  %v2333_v18 = vld [vmem:[%s3954_s1 + $0x8] sm:$0xf0] }
  0xcb   : > { %431 = vst [vmem:[#allocation2 + $0x8] sm:$0xff] %v427_v25  ;;  %v677_v40 = vpack.c.bf16 %v671_v28, %v670_v27  ;;  %v2601_v41 = vpop.permute.xlu0 %2600  ;;  %v2369_v42 = vld [vmem:[#allocation2 + $0xf4] sm:$0xf0]  ;;  %v2134_v46 = vld [vmem:[#allocation2 + $0xf8] sm:$0xf0]  ;;  %v2613_v15 = vunpack.i.h.bf16 %v3224_v7  ;;  %v2612_v19 = vunpack.i.l.bf16 %v3224_v7  ;;  %v2153_v25 = vor.u32 %v2372_v6, %v2150_v53 }
  0xcc   : > { %430 = vst [vmem:[#allocation2] sm:$0xff] %v426_v26  ;;  %v676_v47 = vpack.c.bf16 %v669_v33, %v668_v60  ;;  %1016 = vmatpush.bf16.msra.mxu0 %v2021_v34  ;;  %1073 = vmatpush.bf16.msra.mxu3 %v2025_v38  ;;  %v2603_v49 = vunpack.i.h.bf16 %v2601_v41  ;;  %v2602_v50 = vunpack.i.l.bf16 %v2601_v41  ;;  %v2606_v52 = vpop.permute.xlu1 %2605  ;;  %v2132_v54 = vld [vmem:[#allocation2 + $0xf0] sm:$0xf]  ;;  %v2368_v35 = vld [vmem:[#allocation2 + $0xf4] sm:$0xf]  ;;  %v2628_v27 = vunpack.i.h.bf16 %v2626_v14 }
  0xcd   : > { %681 = vst [vmem:[#allocation2 + $0xe8] sm:$0xff] %v677_v40  ;;  %v2608_v55 = vunpack.i.h.bf16 %v2606_v52  ;;  %v2607_v39 = vunpack.i.l.bf16 %v2606_v52  ;;  %v2133_v31 = vor.u32 %v2369_v42, %v2132_v54  ;;  %v2137_v8 = vor.u32 %v2368_v35, %v2134_v46  ;;  %v2337_v26 = vld [vmem:[%s3954_s1 + $0x28] sm:$0xf0] }
  0xce   : > { %680 = vst [vmem:[#allocation2 + $0xe0] sm:$0xff] %v676_v47  ;;  %v2627_v28 = vunpack.i.l.bf16 %v2626_v14  ;;  %v3330_v60 = vsel %vm344_vm4, 1.0, %v2690_v43  ;;  %v1989_v47 = vor.u32 %v2333_v18, %v1988_v16  ;;  %vm4050_vm4 = vmmov %vm4045_vm0 }
  0xcf   : > { %v622_v0 = vsel %vm618_vm15, %v2603_v49, %v2608_v55  ;;  %v626_v1 = vsel %vm618_vm15, %v2608_v55, %v2603_v49  ;;  %v621_v32 = vsel %vm618_vm15, %v2602_v50, %v2607_v39  ;;  %v625_v61 = vsel %vm618_vm15, %v2607_v39, %v2602_v50  ;;  %1029 = vmatpush.bf16.msra.mxu1 %v2133_v31 }
  0xd0   : > { %v633_v9 = vmul.f32 %v3271_v59, %v622_v0  ;;  %v634_v10 = vmul.f32 %v3284_v51, %v626_v1  ;;  %v631_v12 = vmul.f32 %v3271_v59, %v621_v32  ;;  %v632_v13 = vmul.f32 %v3284_v51, %v625_v61  ;;  %1086 = vmatpush.bf16.msrb.mxu2 %v2137_v8 }
  0xd1   : > { %v3333_v49 = vor.u32 %v2337_v26, %v2008_v58 }
  0xd2   : > { %v638_v36 = vpack.c.bf16 %v634_v10, %v633_v9  ;;  %v637_v22 = vpack.c.bf16 %v632_v13, %v631_v12  ;;  %v2339_v23 = vld [vmem:[#allocation2 + $0x4] sm:$0xf0]  ;;  %v2014_v24 = vld [vmem:[#allocation2 + $0x8] sm:$0xf0]  ;;  %v2370_v9 = vld [vmem:[#allocation2 + $0x104] sm:$0xf] }
  0xd3   : > { %v2616_v29 = vpop.permute.xlu0 %2615  ;;  %v2012_v33 = vld [vmem:[#allocation2] sm:$0xf]  ;;  %v2338_v34 = vld [vmem:[#allocation2 + $0x4] sm:$0xf]  ;;  %v2142_v10 = vld [vmem:[#allocation2 + $0x108] sm:$0xf0] }
  0xd4   : > { %642 = vst [vmem:[#allocation2 + $0xd8] sm:$0xff] %v638_v36  ;;  %v2618_v7 = vunpack.i.h.bf16 %v2616_v29  ;;  %v2617_v38 = vunpack.i.l.bf16 %v2616_v29  ;;  %v2621_v40 = vpop.permute.xlu1 %2620  ;;  %v2013_v41 = vor.u32 %v2339_v23, %v2012_v33  ;;  %v2017_v42 = vor.u32 %v2338_v34, %v2014_v24  ;;  %v2367_v35 = vld [vmem:[#allocation2 + $0xe4] sm:$0xf0]  ;;  %v2126_v1 = vld [vmem:[#allocation2 + $0xe8] sm:$0xf0]  ;;  %v769_v36 = vld [vmem:[%s3956_s3] sm:$0xff] }
  0xd5   : > { %641 = vst [vmem:[#allocation2 + $0xd0] sm:$0xff] %v637_v22  ;;  %v2623_v46 = vunpack.i.h.bf16 %v2621_v40  ;;  %v2622_v37 = vunpack.i.l.bf16 %v2621_v40  ;;  %v2124_v56 = vld [vmem:[#allocation2 + $0xe0] sm:$0xf]  ;;  %v2366_v0 = vld [vmem:[#allocation2 + $0xe4] sm:$0xf]  ;;  %v2145_v23 = vor.u32 %v2370_v9, %v2142_v10 }
  0xd6   : > { %v620_v43 = vsel %vm618_vm15, %v2613_v15, %v2618_v7  ;;  %v624_v50 = vsel %vm618_vm15, %v2618_v7, %v2613_v15  ;;  %v619_v52 = vsel %vm618_vm15, %v2612_v19, %v2617_v38  ;;  %v623_v54 = vsel %vm618_vm15, %v2617_v38, %v2612_v19  ;;  %1017 = vmatpush.bf16.msra.mxu0 %v2013_v41 }
  0xd7   : > { %v629_v55 = vmul.f32 %v3271_v59, %v620_v43  ;;  %v630_v39 = vmul.f32 %v3284_v51, %v624_v50  ;;  %v627_v31 = vmul.f32 %v3271_v59, %v619_v52  ;;  %v628_v8 = vmul.f32 %v3284_v51, %v623_v54  ;;  %1074 = vmatpush.bf16.msra.mxu3 %v2017_v42 }
  0xd8   : > { %v581_v32 = vsel %vm577_vm11, %v2623_v46, %v2628_v27  ;;  %v585_v61 = vsel %vm577_vm11, %v2628_v27, %v2623_v46  ;;  %v580_v6 = vsel %vm577_vm11, %v2622_v37, %v2627_v28  ;;  %v584_v53 = vsel %vm577_vm11, %v2627_v28, %v2622_v37 }
  0xd9   : > { %v636_v12 = vpack.c.bf16 %v630_v39, %v629_v55  ;;  %v635_v13 = vpack.c.bf16 %v628_v8, %v627_v31  ;;  %v592_v14 = vmul.f32 %v3297_v48, %v581_v32  ;;  %v593_v15 = vmul.f32 %v3330_v60, %v585_v61  ;;  %1018 = vmatmul.bf16.vlgmr.msra.gmra.mxu0 %v1989_v47  ;;  %v2000_v39 = vld [vmem:[%s3954_s1 + $0x18] sm:$0xf] }
  0xda   : > { %1111 = vmatpush.bf16.msrb.mxu0 %v2153_v25  ;;  %v590_v16 = vmul.f32 %v3297_v48, %v580_v6  ;;  %v591_v18 = vmul.f32 %v3330_v60, %v584_v53  ;;  %v2125_v58 = vor.u32 %v2367_v35, %v2124_v56  ;;  %v2129_v19 = vor.u32 %v2366_v0, %v2126_v1  ;;  %v2336_v1 = vld [vmem:[%s3954_s1 + $0x20] sm:$0xf0] }
  0xdb   : > { %2155 = vmatmul.msk.bf16.gmra.mxu2 %vm1003_vm10, %v3333_v49  ;;  %640 = vst [vmem:[#allocation2 + $0xc8] sm:$0xff] %v636_v12  ;;  %v597_v22 = vpack.c.bf16 %v593_v15, %v592_v14  ;;  %v2631_v24 = vpop.permute.xlu0 %2630  ;;  %v2365_v25 = vld [vmem:[#allocation2 + $0xd4] sm:$0xf0]  ;;  %v2118_v26 = vld [vmem:[#allocation2 + $0xd8] sm:$0xf0]  ;;  %1075 = vmatmul.bf16.vlgmr.msra.gmra.mxu3 %v1989_v47  ;;  %v2691_v46 = vmov 0   ;;  %v2001_v14 = vor.u32 %v2336_v1, %v2000_v39 }
  0xdc   : > { %639 = vst [vmem:[#allocation2 + $0xc0] sm:$0xff] %v635_v13  ;;  %v596_v27 = vpack.c.bf16 %v591_v18, %v590_v16  ;;  %1030 = vmatpush.bf16.msra.mxu1 %v2125_v58  ;;  %1087 = vmatpush.bf16.msrb.mxu2 %v2129_v19  ;;  %v2633_v28 = vunpack.i.h.bf16 %v2631_v24  ;;  %v2632_v29 = vunpack.i.l.bf16 %v2631_v24  ;;  %v2636_v33 = vpop.permute.xlu1 %2635  ;;  %v2116_v34 = vld [vmem:[#allocation2 + $0xd0] sm:$0xf]  ;;  %v2364_v7 = vld [vmem:[#allocation2 + $0xd4] sm:$0xf] }
  0xdd   : > { %601 = vst [vmem:[#allocation2 + $0xb8] sm:$0xff] %v597_v22  ;;  %v2638_v38 = vunpack.i.h.bf16 %v2636_v33  ;;  %v2637_v40 = vunpack.i.l.bf16 %v2636_v33  ;;  %v2117_v41 = vor.u32 %v2365_v25, %v2116_v34  ;;  %v2121_v42 = vor.u32 %v2364_v7, %v2118_v26  ;;  %2641 = vset.pattern.permute.xlu1 %v2691_v46  ;;  %2639 = vset.pattern.permute.xlu2 %v2691_v46  ;;  %v2084_v18 = vld [vmem:[#allocation2 + $0x90] sm:$0xf]  ;;  %v2357_v58 = vld [vmem:[#allocation2 + $0x94] sm:$0xf0] }
  0xde   : > { %1112 = vmatpush.bf16.msrb.mxu0 %v2145_v23  ;;  %600 = vst [vmem:[#allocation2 + $0xb0] sm:$0xff] %v596_v27  ;;  %775 = vperm.xlu1 %2641, %v769_v36   ;;  %v771_v19 = vld [vmem:[%s3956_s3 + $0x10] sm:$0xff]  ;;  %v772_v36 = vld [vmem:[%s3956_s3 + $0x18] sm:$0xff]  ;;  %v2085_v33 = vor.u32 %v2357_v58, %v2084_v18  ;;  %v2076_v7 = vld [vmem:[#allocation2 + $0x80] sm:$0xf] }
  0xdf   : > { %v579_v37 = vsel %vm577_vm11, %v2633_v28, %v2638_v38  ;;  %v583_v47 = vsel %vm577_vm11, %v2638_v38, %v2633_v28  ;;  %v578_v43 = vsel %vm577_vm11, %v2632_v29, %v2637_v40  ;;  %v582_v50 = vsel %vm577_vm11, %v2637_v40, %v2632_v29  ;;  %2640 = vset.pattern.permute.xlu0 %v2691_v46  ;;  %v2356_v24 = vld [vmem:[#allocation2 + $0x94] sm:$0xf]  ;;  %v2086_v27 = vld [vmem:[#allocation2 + $0x98] sm:$0xf0]  ;;  %v2355_v38 = vld [vmem:[#allocation2 + $0x84] sm:$0xf0] }
  0xe0   : > { %v588_v52 = vmul.f32 %v3297_v48, %v579_v37  ;;  %v589_v54 = vmul.f32 %v3330_v60, %v583_v47  ;;  %v586_v35 = vmul.f32 %v3297_v48, %v578_v43  ;;  %v587_v55 = vmul.f32 %v3330_v60, %v582_v50  ;;  %1031 = vmatpush.bf16.msra.mxu1 %v2117_v41  ;;  %v2354_v40 = vld [vmem:[#allocation2 + $0x84] sm:$0xf]  ;;  %v2078_v41 = vld [vmem:[#allocation2 + $0x88] sm:$0xf0]  ;;  %v1990_v43 = vld [vmem:[%s3954_s1 + $0xc] sm:$0xf0] }
  0xe1   : > { %1088 = vmatpush.bf16.msrb.mxu2 %v2121_v42  ;;  %785 = vperm.xlu2 %2639, %v771_v19   ;;  %v2089_v34 = vor.u32 %v2356_v24, %v2086_v27  ;;  %v770_v42 = vld [vmem:[%s3956_s3 + $0x8] sm:$0xff]  ;;  %v2077_v46 = vor.u32 %v2355_v38, %v2076_v7  ;;  %v2081_v37 = vor.u32 %v2354_v40, %v2078_v41  ;;  %v2332_v47 = vld [vmem:[%s3954_s1 + $0x4] sm:$0xf] }
  0xe2   : > { %v595_v31 = vpack.c.bf16 %v589_v54, %v588_v52  ;;  %v594_v8 = vpack.c.bf16 %v587_v55, %v586_v35  ;;  %v2363_v56 = vld [vmem:[#allocation2 + $0xc4] sm:$0xf0]  ;;  %v2110_v0 = vld [vmem:[#allocation2 + $0xc8] sm:$0xf0]  ;;  %790 = vperm.xlu0 %2640, %v772_v36   ;;  %v1993_v50 = vor.u32 %v2332_v47, %v1990_v43  ;;  %v2335_v52 = vld [vmem:[%s3954_s1 + $0x1c] sm:$0xf] }
  0xe3   : > { %v2108_v32 = vld [vmem:[#allocation2 + $0xc0] sm:$0xf]  ;;  %v2362_v61 = vld [vmem:[#allocation2 + $0xc4] sm:$0xf]  ;;  %v2002_v54 = vld [vmem:[%s3954_s1 + $0x24] sm:$0xf0] }
  0xe4   : > { %599 = vst [vmem:[#allocation2 + $0xa8] sm:$0xff] %v595_v31  ;;  %v2109_v6 = vor.u32 %v2363_v56, %v2108_v32  ;;  %v2113_v53 = vor.u32 %v2362_v61, %v2110_v0  ;;  %v2361_v9 = vld [vmem:[#allocation2 + $0xb4] sm:$0xf0]  ;;  %v2102_v10 = vld [vmem:[#allocation2 + $0xb8] sm:$0xf0]  ;;  %v2005_v35 = vor.u32 %v2335_v52, %v2002_v54 }
  0xe5   : > { %598 = vst [vmem:[#allocation2 + $0xa0] sm:$0xff] %v594_v8  ;;  %v2100_v12 = vld [vmem:[#allocation2 + $0xb0] sm:$0xf]  ;;  %v2360_v13 = vld [vmem:[#allocation2 + $0xb4] sm:$0xf] }
  0xe6   : > { %1032 = vmatpush.bf16.msra.mxu1 %v2109_v6  ;;  %1089 = vmatpush.bf16.msrb.mxu2 %v2113_v53  ;;  %v2101_v15 = vor.u32 %v2361_v9, %v2100_v12  ;;  %v2105_v16 = vor.u32 %v2360_v13, %v2102_v10 }
  0xe9   : > { %1023 = vmatmul.bf16.gmra.mxu0 %v2001_v14  ;;  %780 = vperm.xlu2 %2639, %v770_v42  }
  0xea   : > { %1033 = vmatpush.bf16.msra.mxu1 %v2101_v15  ;;  %1090 = vmatpush.bf16.msrb.mxu2 %v2105_v16 }
  0xeb   : > { %v2359_v22 = vld [vmem:[#allocation2 + $0xa4] sm:$0xf0]  ;;  %v2094_v23 = vld [vmem:[#allocation2 + $0xa8] sm:$0xf0]  ;;  %1080 = vmatmul.bf16.gmra.mxu3 %v2001_v14 }
  0xec   : > { %v2092_v25 = vld [vmem:[#allocation2 + $0xa0] sm:$0xf]  ;;  %v2358_v26 = vld [vmem:[#allocation2 + $0xa4] sm:$0xf] }
  0xed   : > { %v2093_v28 = vor.u32 %v2359_v22, %v2092_v25  ;;  %v2097_v29 = vor.u32 %v2358_v26, %v2094_v23 }
  0xef   : > { %1034 = vmatpush.bf16.msra.mxu1 %v2093_v28  ;;  %1091 = vmatpush.bf16.msrb.mxu2 %v2097_v29 }
  0xf3   : > { %1035 = vmatpush.bf16.msra.mxu1 %v2085_v33  ;;  %1092 = vmatpush.bf16.msrb.mxu2 %v2089_v34 }
  0xf7   : > { %1036 = vmatpush.bf16.msra.mxu1 %v2077_v46  ;;  %1093 = vmatpush.bf16.msrb.mxu2 %v2081_v37 }
  0xf9   : > { %2156 = vmatmul.msk.bf16.vlgmr.msrb.gmra.mxu0 %vm1003_vm10, %v3214_v63 }
  0xfa   : > { %1037 = vmatmul.bf16.vlgmr.msra.gmra.mxu1 %v1993_v50  ;;  %1094 = vmatmul.bf16.vlgmr.msrb.gmra.mxu2 %v1993_v50 }
 0x109   : > { %2157 = vmatmul.msk.bf16.gmra.mxu0 %vm1003_vm10, %v3333_v49 }
 0x10a   : > { %1042 = vmatmul.bf16.gmra.mxu1 %v2005_v35  ;;  %1099 = vmatmul.bf16.gmra.mxu2 %v2005_v35 }
 0x13b   : > { %v786_v32 = vpop.permute.xlu2 %785 }
 0x143   : > { %v781_v14 = vpop.permute.xlu2 %780 }
 0x14c   : > { %v1057_v55 = vpop.f32.mrf.mxu2 }
 0x150   : > { %v776_v1 = vpop.permute.xlu1 %775 }
 0x154   : > { %v1059_v63 = vpop.f32.mrf.mxu2  ;;  %v791_v41 = vpop.permute.xlu0 %790 }
 0x156   : > { %v1019_v39 = vpop.f32.mrf.mxu0 }
 0x157   : > { %v1020_v53 = vadd.f32 %v1019_v39, %v776_v1 }
 0x15e   : > { %v1021_v31 = vpop.f32.mrf.mxu0  ;;  %v1062_v56 = vpop.f32.mrf.mxu2 }
 0x15f   : > { %v1076_v61 = vpop.f32.mrf.mxu3  ;;  %v1022_v36 = vadd.f32 %v1021_v31, %v781_v14 }
 0x160   : > { %v1077_v49 = vadd.f32 %v1076_v61, %v776_v1 }
 0x166   : > { %v1024_v8 = vpop.f32.mrf.mxu0  ;;  %v1064_v6 = vpop.f32.mrf.mxu2 }
 0x167   : > { %v1078_v16 = vpop.f32.mrf.mxu3  ;;  %v1025_v38 = vadd.f32 %v1024_v8, %v786_v32 }
 0x168   : > { %v1079_v26 = vadd.f32 %v1078_v16, %v781_v14 }
 0x16e   : > { %v1026_v0 = vpop.f32.mrf.mxu0 }
 0x16f   : > { %v1081_v34 = vpop.f32.mrf.mxu3  ;;  %v1027_v52 = vadd.f32 %v1026_v0, %v791_v41 }
 0x170   : > { %v1082_v43 = vadd.f32 %v1081_v34, %v786_v32 }
 0x176   : > { %v1114_v10 = vpop.f32.mrf.mxu0 }
 0x177   : > { %v1038_v9 = vpop.f32.mrf.mxu1  ;;  %v1083_v39 = vpop.f32.mrf.mxu3 }
 0x178   : > { %v1039_v12 = vadd.f32 %v1038_v9, %v1020_v53 }
 0x17a   : > { %v1058_v13 = vadd.f32 %v1057_v55, %v1039_v12 }
 0x17c   : > { %v3407_v15 = vmax.f32 %v1058_v13, 0.0 }
 0x17d   : > { %v1095_v18 = vpop.f32.mrf.mxu2 }
 0x17e   : > { %v1096_v58 = vadd.f32 %v1095_v18, %v1077_v49  ;;  %1212 = vrot.lane.b32.xlu2 %v3407_v15, %s2683_s8  ;;  %1252 = vrot.lane.b32.xlu1 %v3407_v15, %s2682_s7  ;;  %v1116_v23 = vpop.f32.mrf.mxu0 }
 0x17f   : > { %1380 = vrot.lane.b32.xlu0 %v3407_v15, %s2687_s12  ;;  %v1040_v19 = vpop.f32.mrf.mxu1 }
 0x180   : > { %v1115_v22 = vadd.f32 %v1114_v10, %v1096_v58  ;;  %v1041_v24 = vadd.f32 %v1040_v19, %v1022_v36 }
 0x182   : > { %v3415_v25 = vmax.f32 %v1115_v22, 0.0  ;;  %v1060_v29 = vadd.f32 %v1059_v63, %v1041_v24 }
 0x184   : > { %v1292_v27 = vpack.c.bf16 %v3415_v25, %v3407_v15  ;;  %v3425_v42 = vmax.f32 %v1060_v29, 0.0 }
 0x185   : > { %v1097_v28 = vpop.f32.mrf.mxu2 }
 0x186   : > { %1296 = vst [vmem:[#allocation2 + $0x80] sm:$0xff] %v1292_v27  ;;  %v1098_v33 = vadd.f32 %v1097_v28, %v1079_v26  ;;  %1300 = vrot.lane.b32.xlu2 %v3407_v15, %s2689_s14  ;;  %1340 = vrot.lane.b32.xlu1 %v3407_v15, %s2688_s13  ;;  %v1119_v47 = vpop.f32.mrf.mxu0 }
 0x187   : > { %1172 = vrot.lane.b32.xlu0 %v3407_v15, %s2684_s9  ;;  %v1043_v7 = vpop.f32.mrf.mxu1 }
 0x188   : > { %v1117_v40 = vadd.f32 %v1116_v23, %v1098_v33  ;;  %v1044_v46 = vadd.f32 %v1043_v7, %v1025_v38 }
 0x18a   : > { %v3427_v37 = vmax.f32 %v1117_v40, 0.0  ;;  %v1063_v35 = vadd.f32 %v1062_v56, %v1044_v46  ;;  %v1084_v56 = vadd.f32 %v1083_v39, %v791_v41  ;;  %v1505_v39 = vld [vmem:[%s3957_s4 + $0x8] sm:$0xff] }
 0x18c   : > { %v1293_v50 = vpack.c.bf16 %v3427_v37, %v3425_v42  ;;  %v3437_v1 = vmax.f32 %v1063_v35, 0.0 }
 0x18d   : > { %v1100_v54 = vpop.f32.mrf.mxu2 }
 0x18e   : > { %1297 = vst [vmem:[#allocation2 + $0x88] sm:$0xff] %v1293_v50  ;;  %v1101_v55 = vadd.f32 %v1100_v54, %v1082_v43  ;;  %1254 = vrot.lane.b32.xlu2 %v3425_v42, %s2682_s7  ;;  %1382 = vrot.lane.b32.xlu1 %v3425_v42, %s2687_s12  ;;  %v1121_v9 = vpop.f32.mrf.mxu0 }
 0x18f   : > { %1214 = vrot.lane.b32.xlu0 %v3425_v42, %s2683_s8  ;;  %v1045_v31 = vpop.f32.mrf.mxu1 }
 0x190   : > { %v1120_v63 = vadd.f32 %v1119_v47, %v1101_v55  ;;  %v1046_v8 = vadd.f32 %v1045_v31, %v1027_v52 }
 0x192   : > { %v3439_v0 = vmax.f32 %v1120_v63, 0.0  ;;  %v1065_v61 = vadd.f32 %v1064_v6, %v1046_v8 }
 0x194   : > { %v1294_v32 = vpack.c.bf16 %v3439_v0, %v3437_v1  ;;  %v1130_v12 = vmax.f32 %v1065_v61, 0.0  ;;  %v1507_v61 = vld [vmem:[%s3957_s4 + $0x18] sm:$0xff] }
 0x195   : > { %v1102_v53 = vpop.f32.mrf.mxu2 }
 0x196   : > { %1298 = vst [vmem:[#allocation2 + $0x90] sm:$0xff] %v1294_v32  ;;  %v1103_v10 = vadd.f32 %v1102_v53, %v1084_v56  ;;  %1342 = vrot.lane.b32.xlu2 %v3425_v42, %s2688_s13  ;;  %1174 = vrot.lane.b32.xlu1 %v3425_v42, %s2684_s9 }
 0x197   : > { %1302 = vrot.lane.b32.xlu0 %v3425_v42, %s2689_s14 }
 0x198   : > { %v1122_v13 = vadd.f32 %v1121_v9, %v1103_v10 }
 0x19a   : > { %v3449_v14 = vmax.f32 %v1122_v13, 0.0 }
 0x19c   : > { %v1295_v49 = vpack.c.bf16 %v3449_v14, %v1130_v12 }
 0x19e   : > { %1299 = vst [vmem:[#allocation2 + $0x98] sm:$0xff] %v1295_v49  ;;  %1256 = vrot.lane.b32.xlu2 %v3437_v1, %s2682_s7  ;;  %1384 = vrot.lane.b32.xlu1 %v3437_v1, %s2687_s12 }
 0x19f   : > { %1216 = vrot.lane.b32.xlu0 %v3437_v1, %s2683_s8 }
 0x1a6   : > { %1344 = vrot.lane.b32.xlu2 %v3437_v1, %s2688_s13  ;;  %1176 = vrot.lane.b32.xlu1 %v3437_v1, %s2684_s9 }
 0x1a7   : > { %1304 = vrot.lane.b32.xlu0 %v3437_v1, %s2689_s14 }
 0x1ae   : > { %1386 = vrot.lane.b32.xlu2 %v1130_v12, %s2687_s12  ;;  %1136 = vrot.lane.b32.xlu1 %v3437_v1, %s2686_s11 }
 0x1af   : > { %1258 = vrot.lane.b32.xlu0 %v1130_v12, %s2682_s7 }
 0x1b6   : > { %1178 = vrot.lane.b32.xlu2 %v1130_v12, %s2684_s9  ;;  %1218 = vrot.lane.b32.xlu1 %v1130_v12, %s2683_s8 }
 0x1b7   : > { %1346 = vrot.lane.b32.xlu0 %v1130_v12, %s2688_s13 }
 0x1be   : > { %1138 = vrot.lane.b32.xlu2 %v1130_v12, %s2686_s11  ;;  %1306 = vrot.lane.b32.xlu1 %v1130_v12, %s2689_s14 }
 0x1bf   : > { %1260 = vrot.lane.b32.xlu0 %v3415_v25, %s2682_s7 }
 0x1c6   : > { %1220 = vrot.lane.b32.xlu1 %v3415_v25, %s2683_s8  ;;  %1388 = vrot.lane.b32.xlu2 %v3415_v25, %s2687_s12 }
 0x1c7   : > { %1348 = vrot.lane.b32.xlu0 %v3415_v25, %s2688_s13 }
 0x1ce   : > { %1308 = vrot.lane.b32.xlu1 %v3415_v25, %s2689_s14  ;;  %1180 = vrot.lane.b32.xlu2 %v3415_v25, %s2684_s9 }
 0x1cf   : > { %1390 = vrot.lane.b32.xlu0 %v3427_v37, %s2687_s12 }
 0x1d6   : > { %1262 = vrot.lane.b32.xlu1 %v3427_v37, %s2682_s7  ;;  %1222 = vrot.lane.b32.xlu2 %v3427_v37, %s2683_s8 }
 0x1d7   : > { %1182 = vrot.lane.b32.xlu0 %v3427_v37, %s2684_s9 }
 0x1d8   : > { %v3493_v6 = vpop.permute.xlu2 %1212 }
 0x1de   : > { %1350 = vrot.lane.b32.xlu1 %v3427_v37, %s2688_s13  ;;  %1310 = vrot.lane.b32.xlu2 %v3427_v37, %s2689_s14 }
 0x1df   : > { %1392 = vrot.lane.b32.xlu0 %v3439_v0, %s2687_s12 }
 0x1e0   : > { %v3501_v16 = vpop.permute.xlu2 %1300 }
 0x1e6   : > { %1264 = vrot.lane.b32.xlu1 %v3439_v0, %s2682_s7  ;;  %1224 = vrot.lane.b32.xlu2 %v3439_v0, %s2683_s8 }
 0x1e7   : > { %1184 = vrot.lane.b32.xlu0 %v3439_v0, %s2684_s9 }
 0x1e8   : > { %v3509_v18 = vpop.permute.xlu2 %1254 }
 0x1ee   : > { %1352 = vrot.lane.b32.xlu1 %v3439_v0, %s2688_s13  ;;  %1312 = vrot.lane.b32.xlu2 %v3439_v0, %s2689_s14 }
 0x1ef   : > { %1144 = vrot.lane.b32.xlu0 %v3439_v0, %s2686_s11 }
 0x1f0   : > { %v3517_v58 = vpop.permute.xlu2 %1342  ;;  %v3519_v19 = vpop.permute.xlu1 %1252 }
 0x1f1   : > { %v1381_v36 = vpop.permute.xlu0 %1380 }
 0x1f6   : > { %1394 = vrot.lane.b32.xlu1 %v3449_v14, %s2687_s12  ;;  %1266 = vrot.lane.b32.xlu2 %v3449_v14, %s2682_s7 }
 0x1f7   : > { %1134 = vrot.lane.b32.xlu0 %v3425_v42, %s2686_s11 }
 0x1f8   : > { %v3527_v22 = vpop.permute.xlu2 %1256  ;;  %v3529_v23 = vpop.permute.xlu1 %1340 }
 0x1f9   : > { %v1173_v24 = vpop.permute.xlu0 %1172 }
 0x1fe   : > { %1140 = vrot.lane.b32.xlu1 %v3415_v25, %s2686_s11  ;;  %1354 = vrot.lane.b32.xlu2 %v3449_v14, %s2688_s13 }
 0x1ff   : > { %1226 = vrot.lane.b32.xlu0 %v3449_v14, %s2683_s8 }
 0x200   : > { %v3537_v26 = vpop.permute.xlu2 %1344  ;;  %v3539_v27 = vpop.permute.xlu1 %1382 }
 0x201   : > { %v1215_v28 = vpop.permute.xlu0 %1214 }
 0x206   : > { %1426 = vrot.lane.b32.xlu1 %v1130_v12, %s2685_s10  ;;  %1132 = vrot.lane.b32.xlu2 %v3407_v15, %s2686_s11 }
 0x207   : > { %1314 = vrot.lane.b32.xlu0 %v3449_v14, %s2689_s14 }
 0x208   : > { %v3546_v29 = vpop.permute.xlu2 %1386  ;;  %v3548_v33 = vpop.permute.xlu1 %1174 }
 0x209   : > { %v3550_v34 = vpop.permute.xlu0 %1302 }
 0x20e   : > { %1186 = vrot.lane.b32.xlu1 %v3449_v14, %s2684_s9  ;;  %1142 = vrot.lane.b32.xlu2 %v3427_v37, %s2686_s11 }
 0x20f   : > { %1424 = vrot.lane.b32.xlu0 %v3437_v1, %s2685_s10 }
 0x210   : > { %v3558_v7 = vpop.permute.xlu2 %1178  ;;  %v3560_v38 = vpop.permute.xlu1 %1384 }
 0x211   : > { %v3562_v40 = vpop.permute.xlu0 %1216 }
 0x216   : > { %1146 = vrot.lane.b32.xlu1 %v3449_v14, %s2686_s11  ;;  %1432 = vrot.lane.b32.xlu2 %v3439_v0, %s2685_s10 }
 0x217   : > { %1434 = vrot.lane.b32.xlu0 %v3449_v14, %s2685_s10 }
 0x218   : > { %v3570_v41 = vpop.permute.xlu2 %1138  ;;  %v3572_v46 = vpop.permute.xlu1 %1176 }
 0x219   : > { %v3574_v47 = vpop.permute.xlu0 %1304 }
 0x21e   : > { %1420 = vrot.lane.b32.xlu1 %v3407_v15, %s2685_s10  ;;  %1422 = vrot.lane.b32.xlu2 %v3425_v42, %s2685_s10  ;;  %v1504_v42 = vld [vmem:[%s3957_s4] sm:$0xff] }
 0x21f   : > { %1428 = vrot.lane.b32.xlu0 %v3415_v25, %s2685_s10 }
 0x220   : > { %v3582_v43 = vpop.permute.xlu1 %1136  ;;  %v1389_v50 = vpop.permute.xlu2 %1388 }
 0x221   : > { %v3584_v52 = vpop.permute.xlu0 %1258  ;;  %v1396_v54 = vsel %vm659_vm13, %v1381_v36, %v1389_v50  ;;  %v1400_v35 = vsel %vm659_vm13, %v1389_v50, %v1381_v36 }
 0x222   : > { %v1404_v55 = vmul.f32 %v3170_v5, %v1396_v54  ;;  %v1405_v15 = vmul.f32 %v3175_v57, %v1400_v35 }
 0x224   : > { %v1412_v25 = vpack.c.bf16 %v1405_v15, %v1404_v55 }
 0x226   : > { %1416 = vst [vmem:[#allocation2 + $0xe0] sm:$0xff] %v1412_v25  ;;  %1430 = vrot.lane.b32.xlu1 %v3427_v37, %s2685_s10  ;;  %1510 = vperm.xlu2 %2639, %v1504_v42   ;;  %v1506_v37 = vld [vmem:[%s3957_s4 + $0x10] sm:$0xff] }
 0x227   : > { %1515 = vperm.xlu0 %2640, %v1505_v39  }
 0x228   : > { %v3600_v31 = vpop.permute.xlu1 %1218  ;;  %v1181_v63 = vpop.permute.xlu2 %1180 }
 0x229   : > { %v3602_v8 = vpop.permute.xlu0 %1346  ;;  %v1188_v1 = vsel %vm450_vm5, %v1173_v24, %v1181_v63  ;;  %v1192_v0 = vsel %vm450_vm5, %v1181_v63, %v1173_v24 }
 0x22a   : > { %v1196_v56 = vmul.f32 %v3014_v20, %v1192_v0  ;;  %v1197_v32 = vmul.f32 %v3017_v21, %v1188_v1 }
 0x22c   : > { %v1204_v53 = vpack.c.bf16 %v1197_v32, %v1196_v56 }
 0x22e   : > { %1208 = vst [vmem:[#allocation2 + $0x20] sm:$0xff] %v1204_v53  ;;  %1520 = vperm.xlu1 %2641, %v1506_v37   ;;  %1525 = vperm.xlu2 %2639, %v1507_v61  }
 0x230   : > { %v3616_v9 = vpop.permute.xlu1 %1306  ;;  %v1223_v10 = vpop.permute.xlu2 %1222 }
 0x231   : > { %v1261_v12 = vpop.permute.xlu0 %1260  ;;  %v1229_v13 = vsel %vm4042_vm6, %v1215_v28, %v1223_v10  ;;  %v1233_v14 = vsel %vm4043_vm7, %v1223_v10, %v1215_v28  ;;  %vm4051_vm6 = vmmov %vm4045_vm0 }
 0x232   : > { %v1268_v49 = vsel %vm4044_vm8, %v3519_v19, %v1261_v12  ;;  %v1272_v36 = vsel %vm4045_vm0, %v1261_v12, %v3519_v19  ;;  %v1238_v24 = vmul.f32 %v2839_v44, %v1233_v14  ;;  %v1239_v50 = vmul.f32 %v2842_v45, %v1229_v13  ;;  %vm4052_vm7 = vmmov %vm4045_vm0 }
 0x233   : > { %v1276_v54 = vmul.f32 %v2896_v3, %v1272_v36  ;;  %v1277_v35 = vmul.f32 %v2899_v4, %v1268_v49  ;;  %vm4053_vm8 = vmmov %vm4045_vm0 }
 0x234   : > { %v1245_v55 = vpack.c.bf16 %v1239_v50, %v1238_v24 }
 0x235   : > { %v1284_v15 = vpack.c.bf16 %v1277_v35, %v1276_v54 }
 0x236   : > { %1249 = vst [vmem:[#allocation2 + $0x48] sm:$0xff] %v1245_v55 }
 0x237   : > { %1288 = vst [vmem:[#allocation2 + $0x60] sm:$0xff] %v1284_v15 }
 0x238   : > { %v1221_v28 = vpop.permute.xlu1 %1220  ;;  %v1311_v42 = vpop.permute.xlu2 %1310 }
 0x239   : > { %v1228_v25 = vsel %vm4046_vm14, %v3493_v6, %v1221_v28  ;;  %v1232_v19 = vsel %vm4047_vm3, %v1221_v28, %v3493_v6  ;;  %v1349_v39 = vpop.permute.xlu0 %1348  ;;  %v1317_v63 = vsel %vm577_vm11, %v3550_v34, %v1311_v42  ;;  %v1321_v1 = vsel %vm577_vm11, %v1311_v42, %v3550_v34  ;;  %vm4054_vm14 = vmmov %vm4045_vm0 }
 0x23a   : > { %v1236_v0 = vmul.f32 %v2839_v44, %v1232_v19  ;;  %v1237_v56 = vmul.f32 %v2842_v45, %v1228_v25  ;;  %v1356_v32 = vsel %vm618_vm15, %v3529_v23, %v1349_v39  ;;  %v1360_v6 = vsel %vm618_vm15, %v1349_v39, %v3529_v23 }
 0x23b   : > { %v1364_v37 = vmul.f32 %v3271_v59, %v1356_v32  ;;  %v1365_v61 = vmul.f32 %v3284_v51, %v1360_v6  ;;  %v1326_v53 = vmul.f32 %v3297_v48, %v1317_v63  ;;  %v1327_v34 = vmul.f32 %v3330_v60, %v1321_v1 }
 0x23c   : > { %v1244_v10 = vpack.c.bf16 %v1237_v56, %v1236_v0 }
 0x23d   : > { %v1372_v12 = vpack.c.bf16 %v1365_v61, %v1364_v37  ;;  %v1333_v13 = vpack.c.bf16 %v1327_v34, %v1326_v53 }
 0x23e   : > { %1248 = vst [vmem:[#allocation2 + $0x40] sm:$0xff] %v1244_v10 }
 0x23f   : > { %1376 = vst [vmem:[#allocation2 + $0xc0] sm:$0xff] %v1372_v12 }
 0x240   : > { %1337 = vst [vmem:[#allocation2 + $0xa8] sm:$0xff] %v1333_v13  ;;  %v1309_v14 = vpop.permute.xlu1 %1308  ;;  %v1225_v49 = vpop.permute.xlu2 %1224 }
 0x241   : > { %v1316_v23 = vsel %vm577_vm11, %v3501_v16, %v1309_v14  ;;  %v1320_v36 = vsel %vm577_vm11, %v1309_v14, %v3501_v16  ;;  %v1391_v24 = vpop.permute.xlu0 %1390  ;;  %v1230_v50 = vsel %vm4048_vm9, %v3562_v40, %v1225_v49  ;;  %v1234_v54 = vsel %vm4049_vm12, %v1225_v49, %v3562_v40 }
 0x242   : > { %v1324_v35 = vmul.f32 %v3297_v48, %v1316_v23  ;;  %v1325_v55 = vmul.f32 %v3330_v60, %v1320_v36  ;;  %v1397_v15 = vsel %vm659_vm13, %v3539_v27, %v1391_v24  ;;  %v1401_v16 = vsel %vm659_vm13, %v1391_v24, %v3539_v27 }
 0x243   : > { %v1406_v28 = vmul.f32 %v3170_v5, %v1397_v15  ;;  %v1407_v42 = vmul.f32 %v3175_v57, %v1401_v16  ;;  %v1240_v25 = vmul.f32 %v2839_v44, %v1234_v54  ;;  %v1241_v40 = vmul.f32 %v2842_v45, %v1230_v50 }
 0x244   : > { %v1332_v19 = vpack.c.bf16 %v1325_v55, %v1324_v35 }
 0x245   : > { %v1413_v39 = vpack.c.bf16 %v1407_v42, %v1406_v28  ;;  %v1246_v63 = vpack.c.bf16 %v1241_v40, %v1240_v25 }
 0x246   : > { %1336 = vst [vmem:[#allocation2 + $0xa0] sm:$0xff] %v1332_v19 }
 0x247   : > { %1417 = vst [vmem:[#allocation2 + $0xe8] sm:$0xff] %v1413_v39 }
 0x248   : > { %1250 = vst [vmem:[#allocation2 + $0x50] sm:$0xff] %v1246_v63  ;;  %v1263_v1 = vpop.permute.xlu1 %1262  ;;  %v1313_v0 = vpop.permute.xlu2 %1312 }
 0x249   : > { %v1269_v27 = vsel %vm4050_vm4, %v3509_v18, %v1263_v1  ;;  %v1273_v56 = vsel %vm4051_vm6, %v1263_v1, %v3509_v18  ;;  %v1183_v32 = vpop.permute.xlu0 %1182  ;;  %v1318_v6 = vsel %vm577_vm11, %v3574_v47, %v1313_v0  ;;  %v1322_v37 = vsel %vm577_vm11, %v1313_v0, %v3574_v47 }
 0x24a   : > { %v1278_v61 = vmul.f32 %v2896_v3, %v1273_v56  ;;  %v1279_v53 = vmul.f32 %v2899_v4, %v1269_v27  ;;  %v1189_v34 = vsel %vm450_vm5, %v3548_v33, %v1183_v32  ;;  %v1193_v18 = vsel %vm450_vm5, %v1183_v32, %v3548_v33 }
 0x24b   : > { %v1198_v10 = vmul.f32 %v3014_v20, %v1193_v18  ;;  %v1199_v12 = vmul.f32 %v3017_v21, %v1189_v34  ;;  %v1328_v13 = vmul.f32 %v3297_v48, %v1318_v6  ;;  %v1329_v47 = vmul.f32 %v3330_v60, %v1322_v37 }
 0x24c   : > { %v1285_v14 = vpack.c.bf16 %v1279_v53, %v1278_v61 }
 0x24d   : > { %v1205_v49 = vpack.c.bf16 %v1199_v12, %v1198_v10  ;;  %v1334_v23 = vpack.c.bf16 %v1329_v47, %v1328_v13 }
 0x24e   : > { %1289 = vst [vmem:[#allocation2 + $0x68] sm:$0xff] %v1285_v14  ;;  %v2298_v17 = vld [vmem:[#allocation2 + $0xe8] sm:$0xf0] }
 0x24f   : > { %1209 = vst [vmem:[#allocation2 + $0x28] sm:$0xff] %v1205_v49 }
 0x250   : > { %1338 = vst [vmem:[#allocation2 + $0xb0] sm:$0xff] %v1334_v23  ;;  %v1351_v36 = vpop.permute.xlu1 %1350  ;;  %v1267_v24 = vpop.permute.xlu2 %1266 }
 0x251   : > { %v1357_v33 = vsel %vm618_vm15, %v3517_v58, %v1351_v36  ;;  %v1361_v50 = vsel %vm618_vm15, %v1351_v36, %v3517_v58  ;;  %v1393_v54 = vpop.permute.xlu0 %1392  ;;  %v1271_v35 = vsel %vm4052_vm7, %v3584_v52, %v1267_v24  ;;  %v1275_v55 = vsel %vm4053_vm8, %v1267_v24, %v3584_v52 }
 0x252   : > { %v1366_v15 = vmul.f32 %v3271_v59, %v1357_v33  ;;  %v1367_v16 = vmul.f32 %v3284_v51, %v1361_v50  ;;  %v1398_v28 = vsel %vm659_vm13, %v3560_v38, %v1393_v54  ;;  %v1402_v58 = vsel %vm659_vm13, %v1393_v54, %v3560_v38 }
 0x253   : > { %v1408_v42 = vmul.f32 %v3170_v5, %v1398_v28  ;;  %v1409_v25 = vmul.f32 %v3175_v57, %v1402_v58  ;;  %v1282_v40 = vmul.f32 %v2896_v3, %v1275_v55  ;;  %v1283_v52 = vmul.f32 %v2899_v4, %v1271_v35 }
 0x254   : > { %v1373_v19 = vpack.c.bf16 %v1367_v16, %v1366_v15 }
 0x255   : > { %v1414_v39 = vpack.c.bf16 %v1409_v25, %v1408_v42  ;;  %v1287_v63 = vpack.c.bf16 %v1283_v52, %v1282_v40  ;;  %v2393_v58 = vld [vmem:[#allocation2 + $0x64] sm:$0xf0]  ;;  %v2234_v42 = vld [vmem:[#allocation2 + $0x68] sm:$0xf0]  ;;  %v2232_v40 = vld [vmem:[#allocation2 + $0x60] sm:$0xf] }
 0x256   : > { %1377 = vst [vmem:[#allocation2 + $0xc8] sm:$0xff] %v1373_v19  ;;  %v2392_v52 = vld [vmem:[#allocation2 + $0x64] sm:$0xf] }
 0x257   : > { %1418 = vst [vmem:[#allocation2 + $0xf0] sm:$0xff] %v1414_v39 }
 0x258   : > { %1291 = vst [vmem:[#allocation2 + $0x78] sm:$0xff] %v1287_v63  ;;  %v1265_v1 = vpop.permute.xlu1 %1264  ;;  %v1355_v0 = vpop.permute.xlu2 %1354 }
 0x259   : > { %v1270_v38 = vsel %vm4045_vm0, %v3527_v22, %v1265_v1  ;;  %v1274_v27 = vsel %vm4054_vm14, %v1265_v1, %v3527_v22  ;;  %v1185_v56 = vpop.permute.xlu0 %1184  ;;  %v1359_v32 = vsel %vm618_vm15, %v3602_v8, %v1355_v0  ;;  %v1363_v6 = vsel %vm618_vm15, %v1355_v0, %v3602_v8 }
 0x25a   : > { %v1280_v37 = vmul.f32 %v2896_v3, %v1274_v27  ;;  %v1281_v61 = vmul.f32 %v2899_v4, %v1270_v38  ;;  %v1190_v53 = vsel %vm450_vm5, %v3572_v46, %v1185_v56  ;;  %v1194_v22 = vsel %vm450_vm5, %v1185_v56, %v3572_v46 }
 0x25b   : > { %v1200_v34 = vmul.f32 %v3014_v20, %v1194_v22  ;;  %v1201_v18 = vmul.f32 %v3017_v21, %v1190_v53  ;;  %v1370_v10 = vmul.f32 %v3271_v59, %v1359_v32  ;;  %v1371_v8 = vmul.f32 %v3284_v51, %v1363_v6 }
 0x25c   : > { %v1286_v12 = vpack.c.bf16 %v1281_v61, %v1280_v37  ;;  %v2233_v1 = vor.u32 %v2393_v58, %v2232_v40  ;;  %v3777_v0 = vor.u32 %v2392_v52, %v2234_v42  ;;  %v2388_v40 = vld [vmem:[#allocation2 + $0x44] sm:$0xf] }
 0x25d   : > { %v1206_v3 = vpack.c.bf16 %v1201_v18, %v1200_v34  ;;  %v1375_v13 = vpack.c.bf16 %v1371_v8, %v1370_v10  ;;  %v2405_v58 = vld [vmem:[#allocation2 + $0xc4] sm:$0xf0] }
 0x25e   : > { %1290 = vst [vmem:[#allocation2 + $0x70] sm:$0xff] %v1286_v12 }
 0x25f   : > { %1210 = vst [vmem:[#allocation2 + $0x30] sm:$0xff] %v1206_v3  ;;  %v2395_v55 = vld [vmem:[#allocation2 + $0x74] sm:$0xf0] }
 0x260   : > { %1379 = vst [vmem:[#allocation2 + $0xd8] sm:$0xff] %v1375_v13  ;;  %v1353_v4 = vpop.permute.xlu1 %1352  ;;  %v1133_v47 = vpop.permute.xlu2 %1132 }
 0x261   : > { %v1358_v46 = vsel %vm618_vm15, %v3537_v26, %v1353_v4  ;;  %v1362_v14 = vsel %vm618_vm15, %v1353_v4, %v3537_v26  ;;  %v1145_v49 = vpop.permute.xlu0 %1144  ;;  %vm4056_vm15 = vmmov %vm4047_vm3 }
 0x262   : > { %v1368_v23 = vmul.f32 %v3271_v59, %v1358_v46  ;;  %v1369_v36 = vmul.f32 %v3284_v51, %v1362_v14  ;;  %v1150_v24 = vsel %vm409_vm1, %v3582_v43, %v1145_v49  ;;  %v1154_v33 = vsel %vm409_vm1, %v1145_v49, %v3582_v43  ;;  %v2242_v59 = vld [vmem:[#allocation2 + $0x78] sm:$0xf0]  ;;  %v2409_v49 = vld [vmem:[#allocation2 + $0xe4] sm:$0xf0] }
 0x263   : > { %v1160_v50 = vmul.f32 %v3109_v62, %v1154_v33  ;;  %v1161_v54 = vmul.f32 %v3114_v2, %v1150_v24  ;;  %v2296_v24 = vld [vmem:[#allocation2 + $0xe0] sm:$0xf] }
 0x264   : > { %v1374_v35 = vpack.c.bf16 %v1369_v36, %v1368_v23 }
 0x265   : > { %v1166_v26 = vpack.c.bf16 %v1161_v54, %v1160_v50  ;;  %v2240_v15 = vld [vmem:[#allocation2 + $0x70] sm:$0xf]  ;;  %v2394_v16 = vld [vmem:[#allocation2 + $0x74] sm:$0xf] }
 0x266   : > { %1378 = vst [vmem:[#allocation2 + $0xd0] sm:$0xff] %v1374_v35  ;;  %v2241_v51 = vor.u32 %v2395_v55, %v2240_v15  ;;  %v3768_v28 = vor.u32 %v2394_v16, %v2242_v59  ;;  %v2224_v55 = vld [vmem:[#allocation2 + $0x50] sm:$0xf]  ;;  %v2390_v15 = vld [vmem:[#allocation2 + $0x54] sm:$0xf] }
 0x267   : > { %1170 = vst [vmem:[#allocation2 + $0x10] sm:$0xff] %v1166_v26  ;;  %v2407_v26 = vld [vmem:[#allocation2 + $0xd4] sm:$0xf0] }
 0x268   : > { %v1395_v25 = vpop.permute.xlu1 %1394  ;;  %1744 = vmatpush.bf16.msrb.mxu1 %v2241_v51  ;;  %1801 = vmatpush.bf16.msra.mxu0 %v3768_v28  ;;  %v1143_v43 = vpop.permute.xlu2 %1142 }
 0x269   : > { %v1399_v19 = vsel %vm659_vm13, %v3546_v29, %v1395_v25  ;;  %v1403_v39 = vsel %vm659_vm13, %v1395_v25, %v3546_v29  ;;  %v1135_v63 = vpop.permute.xlu0 %1134  ;;  %vm4055_vm13 = vmmov %vm4047_vm3 }
 0x26a   : > { %v1410_v38 = vmul.f32 %v3170_v5, %v1399_v19  ;;  %v1411_v27 = vmul.f32 %v3175_v57, %v1403_v39  ;;  %v1149_v56 = vsel %vm409_vm1, %v1135_v63, %v1143_v43  ;;  %v1153_v32 = vsel %vm409_vm1, %v1143_v43, %v1135_v63  ;;  %v2216_v43 = vld [vmem:[#allocation2 + $0x40] sm:$0xf] }
 0x26b   : > { %v1158_v6 = vmul.f32 %v3109_v62, %v1153_v32  ;;  %v1159_v37 = vmul.f32 %v3114_v2, %v1149_v56  ;;  %v2389_v32 = vld [vmem:[#allocation2 + $0x44] sm:$0xf0] }
 0x26c   : > { %v1415_v61 = vpack.c.bf16 %v1411_v27, %v1410_v38  ;;  %1745 = vmatpush.bf16.msrb.mxu1 %v2233_v1  ;;  %1802 = vmatpush.bf16.msra.mxu0 %v3777_v0 }
 0x26d   : > { %v1165_v29 = vpack.c.bf16 %v1159_v37, %v1158_v6  ;;  %v2288_v54 = vld [vmem:[#allocation2 + $0xd0] sm:$0xf]  ;;  %v2218_v6 = vld [vmem:[#allocation2 + $0x48] sm:$0xf0] }
 0x26e   : > { %1419 = vst [vmem:[#allocation2 + $0xf8] sm:$0xff] %v1415_v61  ;;  %v2289_v59 = vor.u32 %v2407_v26, %v2288_v54  ;;  %v2217_v61 = vor.u32 %v2389_v32, %v2216_v43  ;;  %v2385_v54 = vld [vmem:[#allocation2 + $0x24] sm:$0xf0] }
 0x26f   : > { %1169 = vst [vmem:[#allocation2 + $0x8] sm:$0xff] %v1165_v29  ;;  %v3829_v29 = vor.u32 %v2388_v40, %v2218_v6  ;;  %v2397_v26 = vld [vmem:[#allocation2 + $0x84] sm:$0xf0] }
 0x270   : > { %v1141_v5 = vpop.permute.xlu1 %1140 }
 0x271   : > { %v1148_v57 = vsel %vm409_vm1, %v1133_v47, %v1141_v5  ;;  %v1152_v53 = vsel %vm409_vm1, %v1141_v5, %v1133_v47  ;;  %v1227_v22 = vpop.permute.xlu0 %1226  ;;  %v2304_v47 = vld [vmem:[#allocation2 + $0xf0] sm:$0xf] }
 0x272   : > { %v1156_v34 = vmul.f32 %v3109_v62, %v1152_v53  ;;  %v1157_v18 = vmul.f32 %v3114_v2, %v1148_v57  ;;  %v1231_v10 = vsel %vm4055_vm13, %v3600_v31, %v1227_v22  ;;  %v1235_v8 = vsel %vm4056_vm15, %v1227_v22, %v3600_v31 }
 0x273   : > { %v1242_v12 = vmul.f32 %v2839_v44, %v1235_v8  ;;  %v1243_v3 = vmul.f32 %v2842_v45, %v1231_v10  ;;  %v2297_v45 = vor.u32 %v2409_v49, %v2296_v24  ;;  %v2399_v24 = vld [vmem:[#allocation2 + $0x94] sm:$0xf0] }
 0x274   : > { %v1164_v13 = vpack.c.bf16 %v1157_v18, %v1156_v34  ;;  %v2264_v34 = vld [vmem:[#allocation2 + $0xa0] sm:$0xf] }
 0x275   : > { %v1247_v4 = vpack.c.bf16 %v1243_v3, %v1242_v12  ;;  %v2411_v46 = vld [vmem:[#allocation2 + $0xf4] sm:$0xf0] }
 0x276   : > { %1168 = vst [vmem:[#allocation2] sm:$0xff] %v1164_v13  ;;  %v2305_v14 = vor.u32 %v2411_v46, %v2304_v47  ;;  %v2401_v47 = vld [vmem:[#allocation2 + $0xa4] sm:$0xf0] }
 0x277   : > { %1251 = vst [vmem:[#allocation2 + $0x58] sm:$0xff] %v1247_v4 }
 0x278   : > { %v3802_v23 = vpop.permute.xlu1 %1426  ;;  %1763 = vmatpush.bf16.msrb.mxu3 %v2305_v14 }
 0x279   : > { %v1315_v36 = vpop.permute.xlu0 %1314 }
 0x27a   : > { %v1319_v31 = vsel %vm577_vm11, %v3616_v9, %v1315_v36  ;;  %v1323_v44 = vsel %vm577_vm11, %v1315_v36, %v3616_v9  ;;  %v2208_v36 = vld [vmem:[#allocation2 + $0x30] sm:$0xf] }
 0x27b   : > { %v1330_v33 = vmul.f32 %v3297_v48, %v1319_v31  ;;  %v1331_v50 = vmul.f32 %v3330_v60, %v1323_v44  ;;  %v2280_v48 = vld [vmem:[#allocation2 + $0xc0] sm:$0xf]  ;;  %v1433_v60 = vpop.permute.xlu2 %1432  ;;  %v2386_v31 = vld [vmem:[#allocation2 + $0x34] sm:$0xf] }
 0x27c   : > { %1764 = vmatpush.bf16.msrb.mxu3 %v2297_v45  ;;  %v2281_v63 = vor.u32 %v2405_v58, %v2280_v48 }
 0x27d   : > { %v1335_v35 = vpack.c.bf16 %v1331_v50, %v1330_v33  ;;  %v2256_v33 = vld [vmem:[#allocation2 + $0x90] sm:$0xf] }
 0x27e   : > { %v2391_v16 = vld [vmem:[#allocation2 + $0x54] sm:$0xf0]  ;;  %v2226_v51 = vld [vmem:[#allocation2 + $0x58] sm:$0xf0] }
 0x27f   : > { %1339 = vst [vmem:[#allocation2 + $0xb8] sm:$0xff] %v1335_v35  ;;  %v2225_v42 = vor.u32 %v2391_v16, %v2224_v55  ;;  %v3812_v25 = vor.u32 %v2390_v15, %v2226_v51  ;;  %v2202_v35 = vld [vmem:[#allocation2 + $0x28] sm:$0xf0]  ;;  %v2200_v16 = vld [vmem:[#allocation2 + $0x20] sm:$0xf] }
 0x280   : > { %v1187_v9 = vpop.permute.xlu1 %1186  ;;  %1765 = vmatpush.bf16.msrb.mxu3 %v2289_v59  ;;  %v2384_v59 = vld [vmem:[#allocation2 + $0x24] sm:$0xf] }
 0x281   : > { %v1191_v52 = vsel %vm450_vm5, %v3558_v7, %v1187_v9  ;;  %v1195_v19 = vsel %vm450_vm5, %v1187_v9, %v3558_v7  ;;  %v1425_v39 = vpop.permute.xlu0 %1424  ;;  %1746 = vmatpush.bf16.msrb.mxu1 %v2225_v42  ;;  %1803 = vmatpush.bf16.msra.mxu0 %v3812_v25  ;;  %v2201_v42 = vor.u32 %v2385_v54, %v2200_v16  ;;  %v2248_v9 = vld [vmem:[#allocation2 + $0x80] sm:$0xf] }
 0x282   : > { %v1202_v1 = vmul.f32 %v3014_v20, %v1195_v19  ;;  %v1203_v38 = vmul.f32 %v3017_v21, %v1191_v52  ;;  %v1438_v27 = vsel %vm700_vm2, %v1425_v39, %v1433_v60  ;;  %v1442_v56 = vsel %vm700_vm2, %v1433_v60, %v1425_v39  ;;  %v2272_v21 = vld [vmem:[#allocation2 + $0xb0] sm:$0xf]  ;;  %v2374_v52 = vld [vmem:[%s3955_s2 + $0x4] sm:$0xf] }
 0x283   : > { %v1448_v37 = vmul.f32 %v3022_v11, %v1438_v27  ;;  %v1449_v7 = vmul.f32 %v3027_v30, %v1442_v56  ;;  %v3855_v43 = vor.u32 %v2384_v59, %v2202_v35  ;;  %v2249_v60 = vor.u32 %v2397_v26, %v2248_v9  ;;  %v2162_v19 = vld [vmem:[%s3955_s2 + $0xc] sm:$0xf0]  ;;  %v2168_v35 = vld [vmem:[%s3955_s2 + $0x8] sm:$0xf] }
 0x284   : > { %v1207_v5 = vpack.c.bf16 %v1203_v38, %v1202_v1  ;;  %1766 = vmatpush.bf16.msrb.mxu3 %v2281_v63  ;;  %v2192_v39 = vld [vmem:[#allocation2 + $0x10] sm:$0xf]  ;;  %v2382_v63 = vld [vmem:[#allocation2 + $0x14] sm:$0xf] }
 0x285   : > { %v1454_v20 = vpack.c.bf16 %v1449_v7, %v1448_v37  ;;  %1747 = vmatpush.bf16.msrb.mxu1 %v2217_v61  ;;  %1804 = vmatpush.bf16.msra.mxu0 %v3829_v29 }
 0x286   : > { %1211 = vst [vmem:[#allocation2 + $0x38] sm:$0xff] %v1207_v5  ;;  %v2403_v57 = vld [vmem:[#allocation2 + $0xb4] sm:$0xf0]  ;;  %v3868_v5 = vor.u32 %v2374_v52, %v2162_v19  ;;  %v2378_v52 = vld [vmem:[%s3955_s2 + $0x20] sm:$0xf0] }
 0x287   : > { %1458 = vst [vmem:[#allocation2 + $0x110] sm:$0xff] %v1454_v20  ;;  %v2273_v53 = vor.u32 %v2403_v57, %v2272_v21  ;;  %v2184_v57 = vld [vmem:[#allocation2] sm:$0xf]  ;;  %v2402_v19 = vld [vmem:[#allocation2 + $0xb4] sm:$0xf] }
 0x288   : > { %v1147_v22 = vpop.permute.xlu1 %1146 }
 0x289   : > { %v1151_v18 = vsel %vm409_vm1, %v3570_v41, %v1147_v22  ;;  %v1155_v10 = vsel %vm409_vm1, %v1147_v22, %v3570_v41  ;;  %v1435_v8 = vpop.permute.xlu0 %1434  ;;  %1767 = vmatpush.bf16.msrb.mxu3 %v2273_v53  ;;  %v2265_v41 = vor.u32 %v2401_v47, %v2264_v34  ;;  %v2380_v53 = vld [vmem:[#allocation2 + $0x4] sm:$0xf]  ;;  %v1423_v22 = vpop.permute.xlu2 %1422 }
 0x28a   : > { %v1162_v12 = vmul.f32 %v3109_v62, %v1155_v10  ;;  %v1163_v3 = vmul.f32 %v3114_v2, %v1151_v18  ;;  %v1439_v13 = vsel %vm700_vm2, %v3802_v23, %v1435_v8  ;;  %v1443_v4 = vsel %vm700_vm2, %v1435_v8, %v3802_v23  ;;  %v2306_v18 = vld [vmem:[#allocation2 + $0xf8] sm:$0xf0]  ;;  %v2160_v10 = vld [vmem:[%s3955_s2] sm:$0xf]  ;;  %v2375_v8 = vld [vmem:[%s3955_s2 + $0x8] sm:$0xf0] }
 0x28b   : > { %v1450_v46 = vmul.f32 %v3022_v11, %v1439_v13  ;;  %v1451_v14 = vmul.f32 %v3027_v30, %v1443_v4  ;;  %v2257_v23 = vor.u32 %v2399_v24, %v2256_v33  ;;  %v2381_v13 = vld [vmem:[#allocation2 + $0x4] sm:$0xf0]  ;;  %v2186_v4 = vld [vmem:[#allocation2 + $0x8] sm:$0xf0]  ;;  %v2161_v24 = vor.u32 %v2375_v8, %v2160_v10  ;;  %v2377_v33 = vld [vmem:[%s3955_s2 + $0x1c] sm:$0xf] }
 0x28c   : > { %v1167_v49 = vpack.c.bf16 %v1163_v3, %v1162_v12 }
 0x28d   : > { %v1455_v62 = vpack.c.bf16 %v1451_v14, %v1450_v46  ;;  %1768 = vmatpush.bf16.msrb.mxu3 %v2265_v41  ;;  %v2387_v2 = vld [vmem:[#allocation2 + $0x34] sm:$0xf0]  ;;  %v2210_v44 = vld [vmem:[#allocation2 + $0x38] sm:$0xf0]  ;;  %v2185_v14 = vor.u32 %v2381_v13, %v2184_v57  ;;  %v3884_v41 = vor.u32 %v2380_v53, %v2186_v4 }
 0x28e   : > { %1171 = vst [vmem:[#allocation2 + $0x18] sm:$0xff] %v1167_v49  ;;  %v2209_v45 = vor.u32 %v2387_v2, %v2208_v36  ;;  %v3848_v50 = vor.u32 %v2386_v31, %v2210_v44  ;;  %v2320_v27 = vld [vmem:[#allocation2 + $0x110] sm:$0xf]  ;;  %v2414_v7 = vld [vmem:[#allocation2 + $0x114] sm:$0xf] }
 0x28f   : > { %1459 = vst [vmem:[#allocation2 + $0x118] sm:$0xff] %v1455_v62  ;;  %v2410_v49 = vld [vmem:[#allocation2 + $0xf4] sm:$0xf]  ;;  %v2408_v2 = vld [vmem:[#allocation2 + $0xe4] sm:$0xf] }
 0x290   : > { %v1421_v55 = vpop.permute.xlu1 %1420  ;;  %1748 = vmatpush.bf16.msrb.mxu1 %v2209_v45  ;;  %1805 = vmatpush.bf16.msra.mxu0 %v3848_v50  ;;  %v2309_v36 = vor.u32 %v2410_v49, %v2306_v18  ;;  %v2290_v31 = vld [vmem:[#allocation2 + $0xd8] sm:$0xf0]  ;;  %v2282_v45 = vld [vmem:[#allocation2 + $0xc8] sm:$0xf0] }
 0x291   : > { %v1429_v15 = vpop.permute.xlu0 %1428  ;;  %1769 = vmatpush.bf16.msrb.mxu3 %v2257_v23  ;;  %v2174_v23 = vld [vmem:[%s3955_s2 + $0x24] sm:$0xf0]  ;;  %v1511_v53 = vpop.permute.xlu2 %1510 }
 0x292   : > { %v1436_v51 = vsel %vm700_vm2, %v1421_v55, %v1429_v15  ;;  %v1440_v58 = vsel %vm700_vm2, %v1429_v15, %v1421_v55  ;;  %v2376_v55 = vld [vmem:[%s3955_s2 + $0x10] sm:$0xf0] }
 0x293   : > { %v1444_v48 = vmul.f32 %v3022_v11, %v1436_v51  ;;  %v1445_v40 = vmul.f32 %v3027_v30, %v1440_v58  ;;  %v2404_v58 = vld [vmem:[#allocation2 + $0xc4] sm:$0xf] }
 0x294   : > { %1749 = vmatpush.bf16.msrb.mxu1 %v2201_v42  ;;  %1806 = vmatpush.bf16.msra.mxu0 %v3855_v43  ;;  %v2177_v42 = vor.u32 %v2377_v33, %v2174_v23  ;;  %v2285_v9 = vor.u32 %v2404_v58, %v2282_v45 }
 0x295   : > { %v1452_v1 = vpack.c.bf16 %v1445_v40, %v1444_v48  ;;  %1770 = vmatpush.bf16.msrb.mxu3 %v2249_v60  ;;  %v2383_v38 = vld [vmem:[#allocation2 + $0x14] sm:$0xf0]  ;;  %v2194_v56 = vld [vmem:[#allocation2 + $0x18] sm:$0xf0]  ;;  %v2169_v48 = vor.u32 %v2376_v55, %v2168_v35 }
 0x296   : > { %v2193_v32 = vor.u32 %v2383_v38, %v2192_v39  ;;  %v2415_v6 = vld [vmem:[#allocation2 + $0x114] sm:$0xf0]  ;;  %v3866_v37 = vor.u32 %v2382_v63, %v2194_v56  ;;  %v2322_v61 = vld [vmem:[#allocation2 + $0x118] sm:$0xf0]  ;;  %v2266_v38 = vld [vmem:[#allocation2 + $0xa8] sm:$0xf0] }
 0x297   : > { %1456 = vst [vmem:[#allocation2 + $0x100] sm:$0xff] %v1452_v1  ;;  %v2321_v20 = vor.u32 %v2415_v6, %v2320_v27  ;;  %v2325_v21 = vor.u32 %v2414_v7, %v2322_v61  ;;  %v2274_v40 = vld [vmem:[#allocation2 + $0xb8] sm:$0xf0]  ;;  %v2172_v60 = vld [vmem:[%s3955_s2 + $0x18] sm:$0xf] }
 0x298   : > { %v1431_v34 = vpop.permute.xlu1 %1430  ;;  %1750 = vmatpush.bf16.msrb.mxu1 %v2193_v32  ;;  %1807 = vmatpush.bf16.msra.mxu0 %v3866_v37  ;;  %v2277_v39 = vor.u32 %v2402_v19, %v2274_v40  ;;  %v2173_v63 = vor.u32 %v2378_v52, %v2172_v60  ;;  %v2400_v1 = vld [vmem:[#allocation2 + $0xa4] sm:$0xf]  ;;  %v2258_v56 = vld [vmem:[#allocation2 + $0x98] sm:$0xf0]  ;;  %v2398_v32 = vld [vmem:[#allocation2 + $0x94] sm:$0xf] }
 0x299   : > { %v1437_v12 = vsel %vm700_vm2, %v1423_v22, %v1431_v34  ;;  %v1441_v3 = vsel %vm700_vm2, %v1431_v34, %v1423_v22  ;;  %1788 = vmatpush.bf16.msra.mxu2 %v2321_v20  ;;  %1845 = vmatpush.bf16.msra.mxu3 %v2325_v21  ;;  %v2269_v27 = vor.u32 %v2400_v1, %v2266_v38  ;;  %v2250_v6 = vld [vmem:[#allocation2 + $0x88] sm:$0xf0]  ;;  %v2180_v7 = vld [vmem:[%s3955_s2 + $0x20] sm:$0xf]  ;;  %v1516_v10 = vpop.permute.xlu0 %1515 }
 0x29a   : > { %v1446_v47 = vmul.f32 %v3022_v11, %v1437_v12  ;;  %v1447_v46 = vmul.f32 %v3027_v30, %v1441_v3  ;;  %1771 = vmatmul.bf16.vlgmr.msrb.gmra.mxu3 %v3868_v5  ;;  %v2301_v11 = vor.u32 %v2408_v2, %v2298_v17  ;;  %v2406_v30 = vld [vmem:[#allocation2 + $0xd4] sm:$0xf]  ;;  %v2379_v61 = vld [vmem:[%s3955_s2 + $0x28] sm:$0xf0] }
 0x29b   : > { %v2293_v44 = vor.u32 %v2406_v30, %v2290_v31  ;;  %v2181_v21 = vor.u32 %v2379_v61, %v2180_v7  ;;  %v1526_v31 = vpop.permute.xlu2 %1525 }
 0x29c   : > { %v1453_v62 = vpack.c.bf16 %v1447_v46, %v1446_v47  ;;  %1751 = vmatpush.bf16.msrb.mxu1 %v2185_v14  ;;  %1808 = vmatpush.bf16.msra.mxu0 %v3884_v41 }
 0x29e   : > { %1457 = vst [vmem:[#allocation2 + $0x108] sm:$0xff] %v1453_v62  ;;  %v2312_v54 = vld [vmem:[#allocation2 + $0x100] sm:$0xf]  ;;  %v2412_v15 = vld [vmem:[#allocation2 + $0x104] sm:$0xf] }
 0x29f   : > { %1752 = vmatmul.bf16.vlgmr.msrb.gmra.mxu1 %v2161_v24  ;;  %1809 = vmatmul.bf16.vlgmr.msra.gmra.mxu0 %v2161_v24 }
 0x2a0   : > { %1820 = vmatpush.bf16.msra.mxu1 %v2309_v36  ;;  %v1521_v14 = vpop.permute.xlu1 %1520 }
 0x2a4   : > { %1821 = vmatpush.bf16.msra.mxu1 %v2301_v11 }
 0x2a5   : > { %v2413_v26 = vld [vmem:[#allocation2 + $0x104] sm:$0xf0]  ;;  %v2314_v16 = vld [vmem:[#allocation2 + $0x108] sm:$0xf0] }
 0x2a6   : > { %v2313_v59 = vor.u32 %v2413_v26, %v2312_v54  ;;  %v2317_v51 = vor.u32 %v2412_v15, %v2314_v16 }
 0x2a8   : > { %1822 = vmatpush.bf16.msra.mxu1 %v2293_v44  ;;  %1789 = vmatpush.bf16.msra.mxu2 %v2313_v59 }
 0x2a9   : > { %1846 = vmatpush.bf16.msra.mxu3 %v2317_v51 }
 0x2aa   : > { %1776 = vmatmul.bf16.gmra.mxu3 %v2177_v42 }
 0x2ab   : > { %2326 = vmatmul.msk.bf16.vlgmr.msra.gmra.mxu2 %vm1003_vm10, %v2169_v48 }
 0x2ac   : > { %2416 = vmatpush.bf16.msrb.mxu2 %v3768_v28  ;;  %1823 = vmatpush.bf16.msra.mxu1 %v2285_v9  ;;  %v2261_v28 = vor.u32 %v2398_v32, %v2258_v56 }
 0x2af   : > { %1757 = vmatmul.bf16.gmra.mxu1 %v2173_v63 }
 0x2b0   : > { %2417 = vmatpush.bf16.msrb.mxu2 %v3777_v0  ;;  %1824 = vmatpush.bf16.msra.mxu1 %v2277_v39  ;;  %v2396_v0 = vld [vmem:[#allocation2 + $0x84] sm:$0xf] }
 0x2b1   : > { %v2253_v20 = vor.u32 %v2396_v0, %v2250_v6 }
 0x2b4   : > { %2418 = vmatpush.bf16.msrb.mxu2 %v3812_v25  ;;  %1825 = vmatpush.bf16.msra.mxu1 %v2269_v27 }
 0x2b8   : > { %2419 = vmatpush.bf16.msrb.mxu2 %v3829_v29  ;;  %1826 = vmatpush.bf16.msra.mxu1 %v2261_v28 }
 0x2ba   : > { %2328 = vmatmul.msk.bf16.vlgmr.msra.gmra.mxu3 %vm1003_vm10, %v2169_v48 }
 0x2bb   : > { %2327 = vmatmul.msk.bf16.gmra.mxu2 %vm1003_vm10, %v2181_v21 }
 0x2bc   : > { %2420 = vmatpush.bf16.msrb.mxu2 %v3848_v50  ;;  %1827 = vmatpush.bf16.msra.mxu1 %v2253_v20 }
 0x2bf   : > { %1828 = vmatmul.bf16.vlgmr.msra.gmra.mxu1 %v3868_v5 }
 0x2c0   : > { %2421 = vmatpush.bf16.msrb.mxu2 %v3855_v43 }
 0x2c4   : > { %2422 = vmatpush.bf16.msrb.mxu2 %v3866_v37 }
 0x2c8   : > { %2423 = vmatpush.bf16.msrb.mxu2 %v3884_v41 }
 0x2ca   : > { %2329 = vmatmul.msk.bf16.gmra.mxu3 %vm1003_vm10, %v2181_v21 }
 0x2cb   : > { %1814 = vmatmul.bf16.vlgmr.msrb.gmra.mxu2 %v2173_v63 }
 0x2cf   : > { %1833 = vmatmul.bf16.gmra.mxu1 %v2177_v42 }
 0x31c   : > { %v1753_v25 = vpop.f32.mrf.mxu1  ;;  %v1810_v4 = vpop.f32.mrf.mxu0 }
 0x31d   : > { %v1772_v29 = vpop.f32.mrf.mxu3  ;;  %v1754_v22 = vadd.f32 %v1753_v25, %v1511_v53  ;;  %v1811_v49 = vadd.f32 %v1810_v4, %v1511_v53 }
 0x31f   : > { %v1773_v18 = vadd.f32 %v1772_v29, %v1754_v22 }
 0x324   : > { %v1755_v50 = vpop.f32.mrf.mxu1  ;;  %v1812_v44 = vpop.f32.mrf.mxu0 }
 0x325   : > { %v1774_v57 = vpop.f32.mrf.mxu3  ;;  %v1756_v8 = vadd.f32 %v1755_v50, %v1516_v10  ;;  %v1813_v33 = vadd.f32 %v1812_v44, %v1516_v10 }
 0x327   : > { %v1775_v3 = vadd.f32 %v1774_v57, %v1756_v8 }
 0x32c   : > { %v1758_v34 = vpop.f32.mrf.mxu1 }
 0x32d   : > { %v1777_v43 = vpop.f32.mrf.mxu3  ;;  %v1759_v41 = vadd.f32 %v1758_v34, %v1521_v14 }
 0x32e   : > { %v1791_v37 = vpop.f32.mrf.mxu2 }
 0x32f   : > { %v1792_v5 = vadd.f32 %v1791_v37, %v1773_v18  ;;  %v1778_v24 = vadd.f32 %v1777_v43, %v1759_v41 }
 0x331   : > { %1858 = vst [vmem:[%s3928_s28] sm:$0xff] %v1792_v5 }
 0x334   : > { %v1760_v12 = vpop.f32.mrf.mxu1 }
 0x335   : > { %v1779_v13 = vpop.f32.mrf.mxu3  ;;  %v1761_v45 = vadd.f32 %v1760_v12, %v1526_v31 }
 0x336   : > { %v1793_v47 = vpop.f32.mrf.mxu2 }
 0x337   : > { %v1794_v46 = vadd.f32 %v1793_v47, %v1775_v3  ;;  %v1780_v54 = vadd.f32 %v1779_v13, %v1761_v45 }
 0x339   : > { %1860 = vst [vmem:[%s3928_s28 + $0x10] sm:$0xff] %v1794_v46 }
 0x33c   : > { %v1829_v36 = vpop.f32.mrf.mxu1 }
 0x33d   : > { %v1830_v62 = vadd.f32 %v1829_v36, %v1811_v49  ;;  %v1848_v17 = vpop.f32.mrf.mxu3 }
 0x33e   : > { %v1796_v2 = vpop.f32.mrf.mxu2 }
 0x33f   : > { %v1797_v11 = vadd.f32 %v1796_v2, %v1778_v24  ;;  %v1849_v30 = vadd.f32 %v1848_v17, %v1830_v62 }
 0x341   : > { %1862 = vst [vmem:[%s3928_s28 + $0x20] sm:$0xff] %v1797_v11 }
 0x342   : > { %1859 = vst [vmem:[%s3928_s28 + $0x8] sm:$0xff] %v1849_v30 }
 0x344   : > { %v1831_v23 = vpop.f32.mrf.mxu1 }
 0x345   : > { %v1832_v35 = vadd.f32 %v1831_v23, %v1813_v33  ;;  %v1850_v26 = vpop.f32.mrf.mxu3 }
 0x346   : > { %v1798_v55 = vpop.f32.mrf.mxu2 }
 0x347   : > { %v1799_v15 = vadd.f32 %v1798_v55, %v1780_v54  ;;  %v1851_v16 = vadd.f32 %v1850_v26, %v1832_v35 }
 0x349   : > { %1864 = vst [vmem:[%s3928_s28 + $0x30] sm:$0xff] %v1799_v15 }
 0x34a   : > { %1861 = vst [vmem:[%s3928_s28 + $0x18] sm:$0xff] %v1851_v16 }
 0x34c   : > { %v1834_v51 = vpop.f32.mrf.mxu1 }
 0x34d   : > { %v1853_v42 = vpop.f32.mrf.mxu3 }
 0x34e   : > { %v1815_v59 = vpop.f32.mrf.mxu2 }
 0x34f   : > { %v1816_v58 = vadd.f32 %v1815_v59, %v1521_v14 }
 0x351   : > { %v1835_v9 = vadd.f32 %v1834_v51, %v1816_v58 }
 0x353   : > { %v1854_v48 = vadd.f32 %v1853_v42, %v1835_v9 }
 0x354   : > { %v1836_v52 = vpop.f32.mrf.mxu1 }
 0x355   : > { %1863 = vst [vmem:[%s3928_s28 + $0x28] sm:$0xff] %v1854_v48  ;;  %v1855_v39 = vpop.f32.mrf.mxu3 }
 0x356   : > { %v1817_v40 = vpop.f32.mrf.mxu2 }
 0x357   : > { %v1818_v60 = vadd.f32 %v1817_v40, %v1526_v31 }
 0x359   : > { %v1837_v19 = vadd.f32 %v1836_v52, %v1818_v60 }
 0x35b   : > { %v1856_v63 = vadd.f32 %v1855_v39, %v1837_v19 }
 0x35d   : > { %1865 = vst [vmem:[%s3928_s28 + $0x38] sm:$0xff] %v1856_v63 }
 0x35e PF: > { %s15_s22 = sadd.s32 1, %s2680_s22   ;;  %s4057_s18 = smov %s2672_s20 }
 0x35f   : > { %p12_p7 = scmp.ge.s32.totalorder %s15_s22, 8   ;;  %s4058_s19 = smov %s2676_s21 }
 0x360   : > { %s4059_s20 = smov %s4062_s23  ;;  %s4060_s21 = smov %s4066_s24 }
 0x361   :  { %14 = sbr.rel (!%p12_p7) target bundleno = 3 (0x3), region = 70 }

// kernel: spatial_gru_forward.2
= control target key start
LH: loop header
LB: loop body
LE: loop exit
PB: predicated region body
PF: predicated region fallthrough
CT: control target
= control target key end

     0   :  { %s7101_s30 = smov 0   ;;  %s7103_s10 = smov 0   ;;  %s10717_s0 = inlined_call_operand.vmem [shape: bf16[2,3,16,256], index: 0, kind: input, shape index: {}]   ;;  %s10718_s1 = inlined_call_operand.vmem [shape: f32[2,32,256], index: 1, kind: input, shape index: {}]   ;;  %s10719_s2 = inlined_call_operand.vmem [shape: bf16[96,432], index: 2, kind: input, shape index: {}]   ;;  %s10720_s3 = inlined_call_operand.vmem [shape: bf16[64,576], index: 3, kind: input, shape index: {}]   ;;  %s10721_s4 = inlined_call_operand.vmem [shape: bf16[32,288], index: 4, kind: input, shape index: {}]   ;;  %s10722_s5 = inlined_call_operand.vmem [shape: bf16[32,288], index: 5, kind: input, shape index: {}]   ;;  %s10723_s6 = inlined_call_operand.vmem [shape: f32[96,1], index: 6, kind: input, shape index: {}]   ;;  %s10724_s7 = inlined_call_operand.vmem [shape: f32[64,1], index: 7, kind: input, shape index: {}]   ;;  %s10725_s8 = inlined_call_operand.vmem [shape: f32[32,1], index: 8, kind: input, shape index: {}]   ;;  %s10726_s9 = inlined_call_operand.vmem [shape: bf16[2,3,32,256], index: 9, kind: output, shape index: {}]  }
   0x1   :  { %s7105_s11 = smov 0   ;;  %s7107_s12 = smov 0  }
   0x2   :  { %s7109_s13 = smov 0  }
   0x3 LB: > { %10765 = sst [smem:[#allocation4_spill]] %s7031_s11  ;;  %s28_s14 = sadd.s32 1, %s7031_s11  ;;  %s7039_s13 = sphi %s7109_s13, %s19_s13   ;;  %s7035_s12 = sphi %s7107_s12, %s11033_s12   ;;  %s7031_s11 = sphi %s7105_s11, %s11032_s11   ;;  %s7027_s10 = sphi %s7103_s10, %s11031_s10   ;;  %s7023_s30 = sphi %s7101_s30, %s11030_s30  }
   0x4   : > { %10766 = sst [smem:[#allocation5_spill]] %s7035_s12  ;;  %s31_s15 = sadd.s32 1, %s7035_s12 }
   0x5   : > { %10767 = sst [smem:[#allocation6_spill]] %s7039_s13  ;;  %p29_p0 = scmp.ge.s32.totalorder %s28_s14, 3 }
   0x6   : > { %p5425_p1 = scmp.ge.s32.totalorder %s7039_s13, 1  ;;  %p317_p2 = scmp.lt.s32.totalorder %s7039_s13, 7 }
   0x7   : > { %s11035_s14 = smov (%p29_p0, %s28_s14), 0  ;;  %s11037_s15 = smov (!%p29_p0, %s31_s15), %s7035_s12 }
   0x8   : > { %10768 = sst [smem:[#allocation7_spill]] %s11035_s14  ;;  %p318_p3 = pnand %p5425_p1, %p317_p2 }
   0x9   : > { %p33_p4 = scmp.ge.s32.totalorder %s11037_s15, 2 }
   0xa   : > { %321 = sbr.rel (%p318_p3) target bundleno = 2113 (0x841), region = 56 }
   0xb   : > { %s11039_s15 = smov (%p33_p4, %s11037_s15), 0 }
   0xc   : > { %10769 = sst [smem:[#allocation8_spill]] %s11039_s15 }
   0xf   : > { %p366_p5 = scmp.lt.s32.totalorder %s7027_s10, 1  ;;  %p368_p6 = scmp.lt.s32.totalorder %s7023_s30, 2 }
  0x10   : > { %p5432_p7 = scmp.ne.s32.totalorder %s7023_s30, 0 }
  0x11   : > { %s11041_s10 = smov (!%p366_p5, %s7027_s10), 1 }
  0x12   : > { %s369_s16 = scalar_select %p368_p6, %s7023_s30, 2 }
  0x13   : > { %s6774_s17 = smul.u32 12, %s11041_s10  ;;  %s6511_s18 = sshll.u32 %s11041_s10, 6 }
  0x14   : > { %s5426_s19 = sshll.u32 %s369_s16, 2  ;;  %s379_s22 = scalar_lea.vmem %s10718_s1, %s6511_s18 }
  0x15   : > { %s372_s23 = sadd.s32 %s6774_s17, %s5426_s19  ;;  %s5430_s24 = sshll.u32 %s369_s16, 3 }
  0x16   : > { %s5427_s25 = sshll.u32 %s372_s23, 2  ;;  %s6775_s26 = smul.u32 24, %s11041_s10 }
  0x17   : > { %s374_s29 = scalar_lea.vmem %s10717_s0, %s5427_s25  ;;  %393 = sbr.rel (%p5432_p7) target bundleno = 37 (0x25), region = 60 }
  0x18   : > { %s386_s15 = sadd.s32 %s6775_s26, %s5430_s24 }
  0x19   : > { %s5431_s14 = sshll.u32 %s386_s15, 2 }
  0x1a   : > { %s7144_s13 = scalar_lea.vmem %s10726_s9, %s5431_s14 }
  0x1c   : > { %v394_v0 = vld [vmem:[%s379_s22] sm:$0xff]  ;;  %v395_v1 = vld [vmem:[%s379_s22 + $0x8] sm:$0xff]  ;;  %v396_v2 = vld [vmem:[%s379_s22 + $0x10] sm:$0xff] }
  0x1d   : > { %402 = vst [vmem:[#allocation2 + $0x30] sm:$0xff] %v394_v0  ;;  %v397_v3 = vld [vmem:[%s379_s22 + $0x18] sm:$0xff]  ;;  %v398_v4 = vld [vmem:[%s379_s22 + $0x20] sm:$0xff]  ;;  %v399_v5 = vld [vmem:[%s379_s22 + $0x28] sm:$0xff] }
  0x1e   : > { %403 = vst [vmem:[#allocation2] sm:$0xff] %v395_v1  ;;  %v400_v6 = vld [vmem:[%s379_s22 + $0x30] sm:$0xff]  ;;  %v401_v7 = vld [vmem:[%s379_s22 + $0x38] sm:$0xff] }
  0x1f   : > { %404 = vst [vmem:[#allocation2 + $0x18] sm:$0xff] %v396_v2 }
  0x20   : > { %405 = vst [vmem:[#allocation2 + $0x10] sm:$0xff] %v397_v3 }
  0x21   : > { %406 = vst [vmem:[#allocation2 + $0x8] sm:$0xff] %v398_v4 }
  0x22   : > { %407 = vst [vmem:[#allocation2 + $0x20] sm:$0xff] %v399_v5 }
  0x23   : > { %408 = vst [vmem:[#allocation2 + $0x28] sm:$0xff] %v400_v6 }
  0x24   : > { %409 = vst [vmem:[#allocation2 + $0x38] sm:$0xff] %v401_v7 }
  0x25 PF: > { %v7147_v8 = vld [vmem:[#allocation2] sm:$0xff]  ;;  %v7149_v9 = vld [vmem:[#allocation2 + $0x30] sm:$0xff]  ;;  %s7041_s30 = smov 112   ;;  %v530_v11 = vld [vmem:[%s374_s29 + $0x8] sm:$0xff]  ;;  %s7042_s10 = smov 1   ;;  %v410_v24 = vlaneseq  ;;  %v7048_v51 = vmov 0.0  }
  0x26   : > { %969 = vrot.lane.b32.xlu1 %v7147_v8, %s7041_s30  ;;  %961 = vrot.lane.b32.xlu0 %v7149_v9, %s7041_s30  ;;  %v529_v10 = vld [vmem:[%s374_s29] sm:$0xff]  ;;  %v533_v13 = vunpack.c.l.bf16 %v530_v11  ;;  %628 = vst [vmem:[#allocation3 + $0x48] sm:$0xff] %v530_v11  ;;  %v7159_v16 = vld [vmem:[#allocation2 + $0x18] sm:$0xff]  ;;  %v534_v18 = vunpack.c.h.bf16 %v530_v11  ;;  %s7043_s11 = smov 113   ;;  %s7044_s12 = smov 15  }
  0x27   : > { %v531_v12 = vunpack.c.l.bf16 %v529_v10  ;;  %627 = vst [vmem:[#allocation3 + $0x40] sm:$0xff] %v529_v10  ;;  %v7157_v15 = vld [vmem:[#allocation2 + $0x10] sm:$0xff]  ;;  %v532_v17 = vunpack.c.h.bf16 %v529_v10  ;;  %v7215_v25 = vand.u32 127, %v410_v24  ;;  %s7045_s14 = smov 127   ;;  %s7046_s15 = smov 111  }
  0x28   : > { %v7175_v20 = vld [vmem:[#allocation2 + $0x8] sm:$0xff]  ;;  %s7047_s16 = smov 16   ;;  %s7049_s17 = smov 17  }
  0x29   : > { %v7155_v14 = vpack.i.bf16 %v533_v13, %v531_v12  ;;  %v7167_v19 = vpack.i.bf16 %v534_v18, %v532_v17  ;;  %v7187_v23 = vld [vmem:[#allocation2 + $0x20] sm:$0xff]  ;;  %v412_v26 = vadd.s32 128, %v7215_v25  ;;  %v413_v27 = vcvt.s32.f32 %v7215_v25 }
  0x2a   : > { %v7183_v21 = vld [vmem:[#allocation2 + $0x28] sm:$0xff]  ;;  %vm10730_vm14 = vcmp.lt.s32.totalorder %v7215_v25, 112 }
  0x2b   : > { %6831 = vrot.lane.b32.xlu2 %v7155_v14, %s7041_s30  ;;  %v7185_v22 = vld [vmem:[#allocation2 + $0x38] sm:$0xff]  ;;  %v414_v28 = vcvt.s32.f32 %v412_v26  ;;  %v415_v29 = vadd.f32 0.5, %v413_v27 }
  0x2d   : > { %v416_v30 = vadd.f32 0.5, %v414_v28  ;;  %v417_v31 = vmul.f32 0.0625, %v415_v29 }
  0x2e   : > { %971 = vrot.lane.b32.xlu1 %v7157_v15, %s7041_s30  ;;  %963 = vrot.lane.b32.xlu0 %v7159_v16, %s7041_s30 }
  0x2f   : > { %v418_v32 = vmul.f32 0.0625, %v416_v30  ;;  %v419_v33 = vfloor.f32 %v417_v31 }
  0x31   : > { %v420_v34 = vfloor.f32 %v418_v32  ;;  %v7235_v35 = vcvt.f32.s32 %v419_v33 }
  0x33   : > { %6836 = vrot.lane.b32.xlu2 %v7167_v19, %s7041_s30  ;;  %v7237_v36 = vcvt.f32.s32 %v420_v34  ;;  %v423_v37 = vmul.u32 16, %v7235_v35  ;;  %v497_v39 = vadd.s32 1, %v7235_v35  ;;  %vm475_vm15 = vcmp.ge.s32.totalorder %v7235_v35, 0 }
  0x35   : > { %v424_v38 = vmul.u32 16, %v7237_v36  ;;  %v498_v40 = vadd.s32 1, %v7237_v36  ;;  %v7250_v41 = vsub.s32 %v7215_v25, %v423_v37  ;;  %vm499_vm0 = vcmp.ge.s32.totalorder %v497_v39, 0 }
  0x36   : > { %835 = vrot.lane.b32.xlu1 %v7159_v16, %s7042_s10  ;;  %833 = vrot.lane.b32.xlu0 %v7149_v9, %s7042_s10  ;;  %vm501_vm1 = vcmp.lt.s32.totalorder %v497_v39, 16 }
  0x37   : > { %v7252_v42 = vsub.s32 %v412_v26, %v424_v38  ;;  %vm500_vm2 = vcmp.ge.s32.totalorder %v498_v40, 0  ;;  %vm502_vm3 = vcmp.lt.s32.totalorder %v498_v40, 16  ;;  %vm10739_vm4 = vcmp.ge.s32.totalorder %v7250_v41, 0  ;;  %vm7257_vm5 = vmand %vm499_vm0, %vm501_vm1 }
  0x38   : > { %vm7266_vm7 = vmand %vm500_vm2, %vm502_vm3  ;;  %vm10737_vm8 = vcmp.lt.s32.totalorder %v7250_v41, 16  ;;  %v7320_v5 = vadd.s32 4294967295, %v7250_v41  ;;  %vm477_vm0 = vcmp.lt.s32.totalorder %v7235_v35, 16  ;;  %vm476_vm1 = vcmp.ge.s32.totalorder %v7237_v36, 0 }
  0x39   : > { %vm10738_vm6 = vcmp.ge.s32.totalorder %v7252_v42, 0  ;;  %vm513_vm9 = vmand %vm7257_vm5, %vm10739_vm4  ;;  %vm10731_vm10 = vcmp.lt.s32.totalorder %v7252_v42, 16  ;;  %v7323_v6 = vadd.s32 4294967295, %v7252_v42  ;;  %vm478_vm2 = vcmp.lt.s32.totalorder %v7237_v36, 16 }
  0x3a   : > { %vm514_vm11 = vmand %vm7266_vm7, %vm10738_vm6  ;;  %vm10735_vm3 = vcmp.ge.s32.totalorder %v7320_v5, 0  ;;  %vm593_vm4 = vcmp.lt.s32.totalorder %v7215_v25, 15 }
  0x3b   : > { %841 = vrot.lane.b32.xlu2 %v7147_v8, %s7042_s10  ;;  %vm515_vm12 = vmand %vm513_vm9, %vm10737_vm8 }
  0x3c   : > { %vm516_vm13 = vmand %vm514_vm11, %vm10731_vm10  ;;  %v7291_v52 = vsel %vm515_vm12, 1.0, %v7048_v51  ;;  %vm10732_vm11 = vcmp.ge.s32.totalorder %v7323_v6, 0  ;;  %vm10736_vm10 = vcmp.lt.s32.totalorder %v7215_v25, 1 }
  0x3d   : > { %v7294_v53 = vsel %vm516_vm13, 1.0, %v7048_v51  ;;  %vm7334_vm9 = vmand %vm475_vm15, %vm477_vm0  ;;  %vm10734_vm13 = vcmp.lt.s32.totalorder %v7320_v5, 16  ;;  %vm10733_vm0 = vcmp.lt.s32.totalorder %v7323_v6, 16 }
  0x3e   : > { %925 = vrot.lane.b32.xlu1 %v7175_v20, %s7043_s11  ;;  %843 = vrot.lane.b32.xlu0 %v7157_v15, %s7042_s10  ;;  %vm7345_vm12 = vmand %vm476_vm1, %vm478_vm2 }
  0x3f   : > { %vm481_vm15 = vmand %vm7334_vm9, %vm10735_vm3 }
  0x40   : > { %vm482_vm1 = vmand %vm7345_vm12, %vm10732_vm11 }
  0x41   : > { %vm483_vm2 = vmand %vm481_vm15, %vm10734_vm13 }
  0x42   : > { %v7379_v37 = vsel %vm483_vm2, 1.0, %v7048_v51  ;;  %vm506_vm15 = vmand %vm7266_vm7, %vm10732_vm11  ;;  %vm658_vm11 = vcmp.lt.s32.totalorder %v7215_v25, 113 }
  0x43   : > { %927 = vrot.lane.b32.xlu2 %v7183_v21, %s7043_s11  ;;  %vm508_vm2 = vmand %vm506_vm15, %vm10733_vm0 }
  0x46   : > { %935 = vrot.lane.b32.xlu1 %v7185_v22, %s7043_s11  ;;  %933 = vrot.lane.b32.xlu0 %v7187_v23, %s7043_s11 }
  0x4b   : > { %6841 = vrot.lane.b32.xlu2 %v7155_v14, %s7043_s11 }
  0x4e   : > { %797 = vrot.lane.b32.xlu1 %v7175_v20, %s7044_s12  ;;  %6846 = vrot.lane.b32.xlu0 %v7167_v19, %s7043_s11 }
  0x53   : > { %799 = vrot.lane.b32.xlu2 %v7183_v21, %s7044_s12 }
  0x56   : > { %807 = vrot.lane.b32.xlu1 %v7185_v22, %s7044_s12  ;;  %805 = vrot.lane.b32.xlu0 %v7187_v23, %s7044_s12 }
  0x5b   : > { %921 = vrot.lane.b32.xlu2 %v7149_v9, %s7043_s11 }
  0x5e   : > { %929 = vrot.lane.b32.xlu1 %v7147_v8, %s7043_s11  ;;  %923 = vrot.lane.b32.xlu0 %v7159_v16, %s7043_s11 }
  0x63   : > { %931 = vrot.lane.b32.xlu2 %v7157_v15, %s7043_s11 }
  0x66   : > { %6856 = vrot.lane.b32.xlu1 %v7167_v19, %s7045_s14  ;;  %6851 = vrot.lane.b32.xlu0 %v7155_v14, %s7045_s14 }
  0x6b   : > { %793 = vrot.lane.b32.xlu2 %v7149_v9, %s7044_s12 }
  0x6e   : > { %801 = vrot.lane.b32.xlu1 %v7147_v8, %s7044_s12  ;;  %795 = vrot.lane.b32.xlu0 %v7159_v16, %s7044_s12 }
  0x73   : > { %803 = vrot.lane.b32.xlu2 %v7157_v15, %s7044_s12 }
  0x76   : > { %887 = vrot.lane.b32.xlu1 %v7183_v21, %s7045_s14  ;;  %885 = vrot.lane.b32.xlu0 %v7175_v20, %s7045_s14 }
  0x7b   : > { %893 = vrot.lane.b32.xlu2 %v7187_v23, %s7045_s14 }
  0x7e   : > { %1005 = vrot.lane.b32.xlu1 %v7175_v20, %s7046_s15  ;;  %895 = vrot.lane.b32.xlu0 %v7185_v22, %s7045_s14 }
  0x83   : > { %1007 = vrot.lane.b32.xlu2 %v7183_v21, %s7046_s15 }
  0x85   : > { %v6832_v43 = vpop.permute.xlu2 %6831 }
  0x86   : > { %1015 = vrot.lane.b32.xlu1 %v7185_v22, %s7046_s15  ;;  %1013 = vrot.lane.b32.xlu0 %v7187_v23, %s7046_s15  ;;  %v6834_v46 = vunpack.i.h.bf16 %v6832_v43  ;;  %v6833_v47 = vunpack.i.l.bf16 %v6832_v43 }
  0x8b   : > { %757 = vrot.lane.b32.xlu2 %v7175_v20, %s7047_s16 }
  0x8d   : > { %v6837_v48 = vpop.permute.xlu2 %6836 }
  0x8e   : > { %765 = vrot.lane.b32.xlu1 %v7187_v23, %s7047_s16  ;;  %759 = vrot.lane.b32.xlu0 %v7183_v21, %s7047_s16  ;;  %v6839_v49 = vunpack.i.h.bf16 %v6837_v48  ;;  %v6838_v50 = vunpack.i.l.bf16 %v6837_v48 }
  0x90   : > { %v680_v54 = vsel %vm10730_vm14, %v6833_v47, %v6838_v50  ;;  %v681_v55 = vsel %vm10730_vm14, %v6834_v46, %v6839_v49  ;;  %v682_v56 = vsel %vm10730_vm14, %v6838_v50, %v6833_v47  ;;  %v683_v57 = vsel %vm10730_vm14, %v6839_v49, %v6834_v46 }
  0x91   : > { %v684_v58 = vmul.f32 %v7291_v52, %v680_v54  ;;  %v685_v59 = vmul.f32 %v7294_v53, %v682_v56  ;;  %v686_v60 = vmul.f32 %v7291_v52, %v681_v55  ;;  %v687_v61 = vmul.f32 %v7294_v53, %v683_v57 }
  0x93   : > { %v688_v62 = vpack.c.bf16 %v685_v59, %v684_v58  ;;  %v689_v63 = vpack.c.bf16 %v687_v61, %v686_v60  ;;  %767 = vrot.lane.b32.xlu2 %v7185_v22, %s7047_s16 }
  0x95   : > { %690 = vst [vmem:[#allocation3 + $0x70] sm:$0xff] %v688_v62  ;;  %v842_v0 = vpop.permute.xlu2 %841 }
  0x96   : > { %883 = vrot.lane.b32.xlu1 %v7159_v16, %s7045_s14  ;;  %881 = vrot.lane.b32.xlu0 %v7149_v9, %s7045_s14  ;;  %691 = vst [vmem:[#allocation3 + $0x78] sm:$0xff] %v689_v63 }
  0x98   : > { %v970_v1 = vpop.permute.xlu1 %969  ;;  %v962_v2 = vpop.permute.xlu0 %961 }
  0x99   : > { %v977_v3 = vsel %vm10730_vm14, %v962_v2, %v970_v1  ;;  %v981_v4 = vsel %vm10730_vm14, %v970_v1, %v962_v2 }
  0x9a   : > { %v985_v7 = vmul.f32 %v7291_v52, %v977_v3  ;;  %v986_v10 = vmul.f32 %v7294_v53, %v981_v4  ;;  %v7430_v3 = vsel %vm508_vm2, 1.0, %v7048_v51  ;;  %v428_v4 = vadd.s32 4294967295, %v7237_v36 }
  0x9b   : > { %889 = vrot.lane.b32.xlu2 %v7147_v8, %s7045_s14  ;;  %10779 = vst [vmem:[#allocation10_spill] sm:$0xff] %v7430_v3 }
  0x9c   : > { %v993_v11 = vpack.c.bf16 %v986_v10, %v985_v7  ;;  %v5603_v12 = vld [vmem:[#allocation3 + $0x70] sm:$0xf]  ;;  %v7434_v10 = vadd.s32 1, %v7250_v41  ;;  %vm432_vm2 = vcmp.lt.s32.totalorder %v428_v4, 16 }
  0x9d   : > { %v7338_v17 = vpop.permute.xlu2 %927  ;;  %v6551_v18 = vld [vmem:[#allocation3 + $0x74] sm:$0xf0] }
  0x9e   : > { %997 = vst [vmem:[#allocation3 + $0x170] sm:$0xff] %v993_v11  ;;  %6861 = vrot.lane.b32.xlu1 %v7155_v14, %s7042_s10  ;;  %891 = vrot.lane.b32.xlu0 %v7157_v15, %s7045_s14  ;;  %v5604_v26 = vor.u32 %v6551_v18, %v5603_v12  ;;  %v7437_v11 = vadd.s32 1, %v7252_v42 }
  0xa0   : > { %v972_v27 = vpop.permute.xlu1 %971  ;;  %v964_v28 = vpop.permute.xlu0 %963  ;;  %1594 = vmatpush.bf16.msra.mxu0 %v5604_v26 }
  0xa1   : > { %v978_v29 = vsel %vm10730_vm14, %v964_v28, %v972_v27  ;;  %v982_v30 = vsel %vm10730_vm14, %v972_v27, %v964_v28  ;;  %vm484_vm14 = vmand %vm482_vm1, %vm10733_vm0 }
  0xa2   : > { %v987_v31 = vmul.f32 %v7291_v52, %v978_v29  ;;  %v988_v32 = vmul.f32 %v7294_v53, %v982_v30  ;;  %v7382_v38 = vsel %vm484_vm14, 1.0, %v7048_v51  ;;  %vm505_vm14 = vmand %vm7257_vm5, %vm10735_vm3 }
  0xa3   : > { %6866 = vrot.lane.b32.xlu2 %v7167_v19, %s7042_s10  ;;  %vm507_vm1 = vmand %vm505_vm14, %vm10734_vm13  ;;  %vm463_vm13 = vcmp.ge.s32.totalorder %v7434_v10, 0 }
  0xa4   : > { %v994_v33 = vpack.c.bf16 %v988_v32, %v987_v31  ;;  %v7427_v2 = vsel %vm507_vm1, 1.0, %v7048_v51  ;;  %vm430_vm1 = vcmp.ge.s32.totalorder %v428_v4, 0 }
  0xa5   : > { %v7371_v34 = vpop.permute.xlu2 %6841  ;;  %v5731_v50 = vld [vmem:[#allocation3 + $0x170] sm:$0xf]  ;;  %10778 = vst [vmem:[#allocation9_spill] sm:$0xff] %v7427_v2  ;;  %vm7468_vm3 = vmand %vm430_vm1, %vm432_vm2  ;;  %vm468_vm2 = vcmp.lt.s32.totalorder %v7437_v11, 16 }
  0xa6   : > { %998 = vst [vmem:[#allocation3 + $0x178] sm:$0xff] %v994_v33  ;;  %1003 = vrot.lane.b32.xlu1 %v7159_v16, %s7046_s15  ;;  %1001 = vrot.lane.b32.xlu0 %v7149_v9, %s7046_s15 }
  0xa8   : > { %v836_v39 = vpop.permute.xlu1 %835  ;;  %v834_v40 = vpop.permute.xlu0 %833 }
  0xa9   : > { %v849_v43 = vsel %vm10736_vm10, %v834_v40, %v842_v0  ;;  %v853_v46 = vsel %vm10736_vm10, %v842_v0, %v834_v40  ;;  %v427_v0 = vadd.s32 4294967295, %v7235_v35 }
  0xaa   : > { %v857_v47 = vmul.f32 %v7379_v37, %v853_v46  ;;  %v858_v48 = vmul.f32 %v7382_v38, %v849_v43 }
  0xab   : > { %1009 = vrot.lane.b32.xlu2 %v7147_v8, %s7046_s15  ;;  %vm429_vm14 = vcmp.ge.s32.totalorder %v427_v0, 0  ;;  %vm431_vm15 = vcmp.lt.s32.totalorder %v427_v0, 16 }
  0xac   : > { %v865_v49 = vpack.c.bf16 %v858_v48, %v857_v47  ;;  %vm7457_vm0 = vmand %vm429_vm14, %vm431_vm15  ;;  %vm464_vm14 = vcmp.ge.s32.totalorder %v7437_v11, 0  ;;  %v6844_v47 = vunpack.i.h.bf16 %v7371_v34 }
  0xad   : > { %v6583_v54 = vld [vmem:[#allocation3 + $0x174] sm:$0xf0]  ;;  %v7392_v55 = vpop.permute.xlu2 %799  ;;  %vm465_vm15 = vmand %vm7457_vm0, %vm463_vm13 }
  0xae   : > { %869 = vst [vmem:[#allocation3 + $0xf0] sm:$0xff] %v865_v49  ;;  %753 = vrot.lane.b32.xlu1 %v7149_v9, %s7047_s16  ;;  %1011 = vrot.lane.b32.xlu0 %v7157_v15, %s7046_s15  ;;  %v5732_v56 = vor.u32 %v6583_v54, %v5731_v50  ;;  %v6843_v50 = vunpack.i.l.bf16 %v7371_v34  ;;  %vm466_vm1 = vmand %vm7468_vm3, %vm464_vm14 }
  0xaf   : > { %vm470_vm6 = vmand %vm466_vm1, %vm468_vm2 }
  0xb0   : > { %v926_v57 = vpop.permute.xlu1 %925  ;;  %v844_v58 = vpop.permute.xlu0 %843  ;;  %1672 = vmatpush.bf16.msra.mxu2 %v5732_v56  ;;  %vm521_vm1 = vmand %vm7257_vm5, %vm463_vm13 }
  0xb1   : > { %v850_v59 = vsel %vm10736_vm10, %v836_v39, %v844_v58  ;;  %v854_v60 = vsel %vm10736_vm10, %v844_v58, %v836_v39  ;;  %vm467_vm10 = vcmp.lt.s32.totalorder %v7434_v10, 16 }
  0xb2   : > { %v859_v61 = vmul.f32 %v7379_v37, %v854_v60  ;;  %v860_v62 = vmul.f32 %v7382_v38, %v850_v59  ;;  %vm469_vm8 = vmand %vm465_vm15, %vm467_vm10 }
  0xb3   : > { %755 = vrot.lane.b32.xlu2 %v7159_v16, %s7047_s16 }
  0xb4   : > { %v866_v63 = vpack.c.bf16 %v860_v62, %v859_v61 }
  0xb5   : > { %v7419_v1 = vpop.permute.xlu2 %921  ;;  %v5667_v32 = vld [vmem:[#allocation3 + $0xf0] sm:$0xf] }
  0xb6   : > { %870 = vst [vmem:[#allocation3 + $0xf8] sm:$0xff] %v866_v63  ;;  %763 = vrot.lane.b32.xlu1 %v7157_v15, %s7047_s16  ;;  %761 = vrot.lane.b32.xlu0 %v7147_v8, %s7047_s16 }
  0xb8   : > { %v936_v35 = vpop.permute.xlu1 %935  ;;  %v934_v7 = vpop.permute.xlu0 %933 }
  0xb9   : > { %v940_v12 = vsel %vm658_vm11, %v7338_v17, %v936_v35  ;;  %v944_v18 = vsel %vm658_vm11, %v936_v35, %v7338_v17  ;;  %v939_v36 = vsel %vm658_vm11, %v926_v57, %v934_v7  ;;  %v943_v26 = vsel %vm658_vm11, %v934_v7, %v926_v57 }
  0xba   : > { %v951_v27 = vmul.f32 %v7427_v2, %v940_v12  ;;  %v952_v28 = vmul.f32 %v7430_v3, %v944_v18  ;;  %v949_v29 = vmul.f32 %v7427_v2, %v939_v36  ;;  %v950_v30 = vmul.f32 %v7430_v3, %v943_v26 }
  0xbb   : > { %6871 = vrot.lane.b32.xlu2 %v7155_v14, %s7044_s12  ;;  %v7511_v18 = vsel %vm469_vm8, 1.0, %v7048_v51  ;;  %v7514_v36 = vsel %vm470_vm6, 1.0, %v7048_v51  ;;  %vm489_vm6 = vmand %vm7334_vm9, %vm463_vm13  ;;  %vm700_vm13 = vcmp.lt.s32.totalorder %v7215_v25, 111 }
  0xbc   : > { %v956_v17 = vpack.c.bf16 %v952_v28, %v951_v27  ;;  %v955_v31 = vpack.c.bf16 %v950_v30, %v949_v29  ;;  %vm490_vm8 = vmand %vm7345_vm12, %vm464_vm14  ;;  %vm637_vm12 = vcmp.lt.s32.totalorder %v7215_v25, 127 }
  0xbd   : > { %v6567_v33 = vld [vmem:[#allocation3 + $0xf4] sm:$0xf0]  ;;  %v7462_v40 = vpop.permute.xlu2 %931  ;;  %vm491_vm9 = vmand %vm489_vm6, %vm467_vm10 }
  0xbe   : > { %960 = vst [vmem:[#allocation3 + $0x168] sm:$0xff] %v956_v17  ;;  %965 = vrot.lane.b32.xlu1 %v7175_v20, %s7041_s30  ;;  %6876 = vrot.lane.b32.xlu0 %v7167_v19, %s7044_s12  ;;  %v5668_v43 = vor.u32 %v6567_v33, %v5667_v32  ;;  %vm492_vm15 = vmand %vm490_vm8, %vm468_vm2 }
  0xbf   : > { %959 = vst [vmem:[#allocation3 + $0x160] sm:$0xff] %v955_v31  ;;  %vm522_vm6 = vmand %vm7266_vm7, %vm464_vm14  ;;  %vm10786_vm7 = vcmp.ge.s32.totalorder %v7250_v41, 0  ;;  %vm10787_vm14 = vcmp.ge.s32.totalorder %v7252_v42, 0 }
  0xc0   : > { %v798_v48 = vpop.permute.xlu1 %797  ;;  %v6847_v49 = vpop.permute.xlu0 %6846  ;;  %1633 = vmatpush.bf16.msra.mxu1 %v5668_v43  ;;  %vm523_vm8 = vmand %vm521_vm1, %vm467_vm10  ;;  %vm10789_vm1 = vcmp.lt.s32.totalorder %v7252_v42, 16 }
  0xc1   : > { %v6849_v54 = vunpack.i.h.bf16 %v6847_v49  ;;  %v6848_v56 = vunpack.i.l.bf16 %v6847_v49  ;;  %vm524_vm5 = vmand %vm522_vm6, %vm468_vm2  ;;  %v7661_v45 = vsel %vm523_vm8, 1.0, %v7048_v51  ;;  %vm572_vm8 = vcmp.lt.s32.totalorder %v7215_v25, 16 }
  0xc2   : > { %10784 = vst [vmem:[#allocation11_spill] sm:$0xff] %v7661_v45  ;;  %v7664_v10 = vsel %vm524_vm5, 1.0, %v7048_v51  ;;  %vm451_vm10 = vmand %vm7457_vm0, %vm10786_vm7  ;;  %vm10790_vm5 = vcmp.lt.s32.totalorder %v7215_v25, 1 }
  0xc3   : > { %v659_v57 = vsel %vm658_vm11, %v6843_v50, %v6848_v56  ;;  %v660_v58 = vsel %vm658_vm11, %v6844_v47, %v6849_v54  ;;  %v661_v59 = vsel %vm658_vm11, %v6848_v56, %v6843_v50  ;;  %v662_v34 = vsel %vm658_vm11, %v6849_v54, %v6844_v47  ;;  %967 = vrot.lane.b32.xlu2 %v7183_v21, %s7041_s30  ;;  %vm452_vm2 = vmand %vm7468_vm3, %vm10787_vm14 }
  0xc4   : > { %v663_v60 = vmul.f32 %v7427_v2, %v659_v57  ;;  %v664_v61 = vmul.f32 %v7430_v3, %v661_v59  ;;  %v665_v62 = vmul.f32 %v7427_v2, %v660_v58  ;;  %v666_v63 = vmul.f32 %v7430_v3, %v662_v34  ;;  %10785 = vst [vmem:[#allocation12_spill] sm:$0xff] %v7664_v10  ;;  %vm456_vm6 = vmand %vm452_vm2, %vm10789_vm1 }
  0xc5   : > { %v6581_v0 = vld [vmem:[#allocation3 + $0x164] sm:$0xf0]  ;;  %v7503_v4 = vpop.permute.xlu2 %793  ;;  %vm10791_vm7 = vmmov %vm10790_vm5  ;;  %vm10794_vm2 = vcmp.ge.s32.totalorder %v7320_v5, 0 }
  0xc6   : > { %v667_v35 = vpack.c.bf16 %v664_v61, %v663_v60  ;;  %v668_v7 = vpack.c.bf16 %v666_v63, %v665_v62  ;;  %975 = vrot.lane.b32.xlu1 %v7185_v22, %s7041_s30  ;;  %973 = vrot.lane.b32.xlu0 %v7187_v23, %s7041_s30  ;;  %v5723_v12 = vld [vmem:[#allocation3 + $0x160] sm:$0xf]  ;;  %vm10793_vm14 = vmmov %vm10790_vm5 }
  0xc7   : > { %v5724_v26 = vor.u32 %v6581_v0, %v5723_v12 }
  0xc8   : > { %669 = vst [vmem:[#allocation3 + $0x60] sm:$0xff] %v667_v35  ;;  %v808_v27 = vpop.permute.xlu1 %807  ;;  %v806_v28 = vpop.permute.xlu0 %805 }
  0xc9   : > { %670 = vst [vmem:[#allocation3 + $0x68] sm:$0xff] %v668_v7  ;;  %v812_v29 = vsel %vm593_vm4, %v7392_v55, %v808_v27  ;;  %v816_v30 = vsel %vm593_vm4, %v808_v27, %v7392_v55  ;;  %v811_v17 = vsel %vm593_vm4, %v798_v48, %v806_v28  ;;  %v815_v31 = vsel %vm593_vm4, %v806_v28, %v798_v48 }
  0xca   : > { %v823_v32 = vmul.f32 %v7511_v18, %v816_v30  ;;  %v824_v33 = vmul.f32 %v7514_v36, %v812_v29  ;;  %v821_v43 = vmul.f32 %v7511_v18, %v815_v31  ;;  %v822_v47 = vmul.f32 %v7514_v36, %v811_v17  ;;  %1673 = vmatpush.bf16.msra.mxu2 %v5724_v26 }
  0xcb   : > { %717 = vrot.lane.b32.xlu2 %v7175_v20, %s7049_s17  ;;  %v7574_v28 = vsel %vm491_vm9, 1.0, %v7048_v51  ;;  %v7577_v29 = vsel %vm492_vm15, 1.0, %v7048_v51  ;;  %vm10788_vm9 = vcmp.lt.s32.totalorder %v7250_v41, 16  ;;  %v7697_v41 = vsel %vm456_vm6, 1.0, %v7048_v51 }
  0xcc   : > { %v828_v55 = vpack.c.bf16 %v824_v33, %v823_v32  ;;  %v827_v49 = vpack.c.bf16 %v822_v47, %v821_v43  ;;  %vm455_vm15 = vmand %vm451_vm10, %vm10788_vm9 }
  0xcd   : > { %v7532_v50 = vpop.permute.xlu2 %803  ;;  %vm10792_vm10 = vmmov %vm10790_vm5 }
  0xce   : > { %832 = vst [vmem:[#allocation3 + $0xe8] sm:$0xff] %v828_v55  ;;  %725 = vrot.lane.b32.xlu1 %v7187_v23, %s7049_s17  ;;  %719 = vrot.lane.b32.xlu0 %v7183_v21, %s7049_s17  ;;  %vm439_vm9 = vmand %vm7457_vm0, %vm10794_vm2  ;;  %vm10800_vm0 = vcmp.lt.s32.totalorder %v7320_v5, 16  ;;  %vm10801_vm2 = vcmp.lt.s32.totalorder %v7323_v6, 16  ;;  %v6978_v5 = vld [vmem:[#allocation2 + $0x20] sm:$0xff] }
  0xcf   : > { %831 = vst [vmem:[#allocation3 + $0xe0] sm:$0xff] %v827_v49  ;;  %v5595_v56 = vld [vmem:[#allocation3 + $0x60] sm:$0xf] }
  0xd0   : > { %v930_v48 = vpop.permute.xlu1 %929  ;;  %v924_v54 = vpop.permute.xlu0 %923  ;;  %v6549_v57 = vld [vmem:[#allocation3 + $0x64] sm:$0xf0] }
  0xd1   : > { %v937_v58 = vsel %vm658_vm11, %v7419_v1, %v930_v48  ;;  %v941_v59 = vsel %vm658_vm11, %v930_v48, %v7419_v1  ;;  %v938_v34 = vsel %vm658_vm11, %v924_v54, %v7462_v40  ;;  %v942_v60 = vsel %vm658_vm11, %v7462_v40, %v924_v54 }
  0xd2   : > { %v945_v61 = vmul.f32 %v7427_v2, %v937_v58  ;;  %v946_v62 = vmul.f32 %v7430_v3, %v941_v59  ;;  %v947_v63 = vmul.f32 %v7427_v2, %v938_v34  ;;  %v948_v1 = vmul.f32 %v7430_v3, %v942_v60 }
  0xd3   : > { %v5596_v0 = vor.u32 %v6549_v57, %v5595_v56  ;;  %727 = vrot.lane.b32.xlu2 %v7185_v22, %s7049_s17 }
  0xd4   : > { %v953_v40 = vpack.c.bf16 %v946_v62, %v945_v61  ;;  %v954_v13 = vpack.c.bf16 %v948_v1, %v947_v63 }
  0xd5   : > { %1595 = vmatpush.bf16.msra.mxu0 %v5596_v0  ;;  %v6565_v35 = vld [vmem:[#allocation3 + $0xe4] sm:$0xf0]  ;;  %v894_v7 = vpop.permute.xlu2 %893 }
  0xd6   : > { %957 = vst [vmem:[#allocation3 + $0x150] sm:$0xff] %v953_v40  ;;  %6886 = vrot.lane.b32.xlu1 %v7167_v19, %s7047_s16  ;;  %6881 = vrot.lane.b32.xlu0 %v7155_v14, %s7047_s16  ;;  %v5659_v24 = vld [vmem:[#allocation3 + $0xe0] sm:$0xf] }
  0xd7   : > { %958 = vst [vmem:[#allocation3 + $0x158] sm:$0xff] %v954_v13  ;;  %v5660_v12 = vor.u32 %v6565_v35, %v5659_v24 }
  0xd8   : > { %v6857_v26 = vpop.permute.xlu1 %6856  ;;  %v6852_v27 = vpop.permute.xlu0 %6851 }
  0xd9   : > { %v6859_v30 = vunpack.i.h.bf16 %v6857_v26  ;;  %v6858_v17 = vunpack.i.l.bf16 %v6857_v26  ;;  %v6854_v31 = vunpack.i.h.bf16 %v6852_v27  ;;  %v6853_v32 = vunpack.i.l.bf16 %v6852_v27  ;;  %1634 = vmatpush.bf16.msra.mxu1 %v5660_v12 }
  0xdb   : > { %v638_v33 = vsel %vm637_vm12, %v6853_v32, %v6858_v17  ;;  %v639_v43 = vsel %vm637_vm12, %v6854_v31, %v6859_v30  ;;  %v640_v47 = vsel %vm637_vm12, %v6858_v17, %v6853_v32  ;;  %v641_v55 = vsel %vm637_vm12, %v6859_v30, %v6854_v31  ;;  %713 = vrot.lane.b32.xlu2 %v7149_v9, %s7049_s17 }
  0xdc   : > { %v642_v49 = vmul.f32 %v7574_v28, %v638_v33  ;;  %v643_v48 = vmul.f32 %v7577_v29, %v640_v47  ;;  %v644_v54 = vmul.f32 %v7574_v28, %v639_v43  ;;  %v645_v56 = vmul.f32 %v7577_v29, %v641_v55 }
  0xdd   : > { %v5715_v57 = vld [vmem:[#allocation3 + $0x150] sm:$0xf]  ;;  %v7593_v58 = vpop.permute.xlu2 %1007 }
  0xde   : > { %v646_v59 = vpack.c.bf16 %v643_v48, %v642_v49  ;;  %v647_v34 = vpack.c.bf16 %v645_v56, %v644_v54  ;;  %721 = vrot.lane.b32.xlu1 %v7147_v8, %s7049_s17  ;;  %715 = vrot.lane.b32.xlu0 %v7159_v16, %s7049_s17  ;;  %v6579_v9 = vld [vmem:[#allocation3 + $0x154] sm:$0xf0] }
  0xdf   : > { %v5716_v60 = vor.u32 %v6579_v9, %v5715_v57 }
  0xe0   : > { %648 = vst [vmem:[#allocation3 + $0x50] sm:$0xff] %v646_v59  ;;  %v802_v61 = vpop.permute.xlu1 %801  ;;  %v796_v62 = vpop.permute.xlu0 %795 }
  0xe1   : > { %649 = vst [vmem:[#allocation3 + $0x58] sm:$0xff] %v647_v34  ;;  %v809_v63 = vsel %vm593_vm4, %v7503_v4, %v802_v61  ;;  %v813_v1 = vsel %vm593_vm4, %v802_v61, %v7503_v4  ;;  %v810_v8 = vsel %vm593_vm4, %v796_v62, %v7532_v50  ;;  %v814_v16 = vsel %vm593_vm4, %v7532_v50, %v796_v62 }
  0xe2   : > { %v817_v0 = vmul.f32 %v7511_v18, %v813_v1  ;;  %v818_v40 = vmul.f32 %v7514_v36, %v809_v63  ;;  %v819_v13 = vmul.f32 %v7511_v18, %v814_v16  ;;  %v820_v35 = vmul.f32 %v7514_v36, %v810_v8  ;;  %1674 = vmatpush.bf16.msra.mxu2 %v5716_v60 }
  0xe3   : > { %723 = vrot.lane.b32.xlu2 %v7157_v15, %s7049_s17 }
  0xe4   : > { %v825_v4 = vpack.c.bf16 %v818_v40, %v817_v0  ;;  %v826_v24 = vpack.c.bf16 %v820_v35, %v819_v13  ;;  %v5579_v40 = vld [vmem:[#allocation3 + $0x40] sm:$0xf]  ;;  %v6545_v13 = vld [vmem:[#allocation3 + $0x44] sm:$0xf0]  ;;  %v7694_v35 = vsel %vm455_vm15, 1.0, %v7048_v51  ;;  %vm10795_vm15 = vcmp.lt.s32.totalorder %v7215_v25, 112 }
  0xe5   : > { %v7617_v12 = vpop.permute.xlu2 %757  ;;  %vm10796_vm1 = vmmov %vm10795_vm15 }
  0xe6   : > { %829 = vst [vmem:[#allocation3 + $0xd0] sm:$0xff] %v825_v4  ;;  %839 = vrot.lane.b32.xlu1 %v7183_v21, %s7042_s10  ;;  %837 = vrot.lane.b32.xlu0 %v7175_v20, %s7042_s10  ;;  %v5580_v4 = vor.u32 %v6545_v13, %v5579_v40  ;;  %vm10797_vm6 = vmmov %vm10796_vm1 }
  0xe7   : > { %830 = vst [vmem:[#allocation3 + $0xd8] sm:$0xff] %v826_v24  ;;  %v5587_v50 = vld [vmem:[#allocation3 + $0x50] sm:$0xf] }
  0xe8   : > { %v888_v26 = vpop.permute.xlu1 %887  ;;  %v886_v27 = vpop.permute.xlu0 %885  ;;  %v6547_v30 = vld [vmem:[#allocation3 + $0x54] sm:$0xf0] }
  0xe9   : > { %v899_v17 = vsel %vm637_vm12, %v886_v27, %v894_v7  ;;  %v903_v15 = vsel %vm637_vm12, %v894_v7, %v886_v27  ;;  %v5588_v31 = vor.u32 %v6547_v30, %v5587_v50 }
  0xea   : > { %v909_v32 = vmul.f32 %v7574_v28, %v899_v17  ;;  %v910_v33 = vmul.f32 %v7577_v29, %v903_v15 }
  0xeb   : > { %1596 = vmatpush.bf16.msra.mxu0 %v5588_v31  ;;  %845 = vrot.lane.b32.xlu2 %v7187_v23, %s7042_s10 }
  0xec   : > { %v915_v20 = vpack.c.bf16 %v910_v33, %v909_v32 }
  0xed   : > { %v5651_v21 = vld [vmem:[#allocation3 + $0xd0] sm:$0xf]  ;;  %v768_v43 = vpop.permute.xlu2 %767 }
  0xee   : > { %919 = vst [vmem:[#allocation3 + $0x140] sm:$0xff] %v915_v20  ;;  %6891 = vrot.lane.b32.xlu1 %v7155_v14, %s7049_s17  ;;  %847 = vrot.lane.b32.xlu0 %v7185_v22, %s7042_s10  ;;  %v6563_v7 = vld [vmem:[#allocation3 + $0xd4] sm:$0xf0] }
  0xef   : > { %v5652_v47 = vor.u32 %v6563_v7, %v5651_v21  ;;  %1597 = vmatpush.bf16.msra.mxu0 %v5580_v4 }
  0xf0   : > { %v1006_v55 = vpop.permute.xlu1 %1005  ;;  %v896_v49 = vpop.permute.xlu0 %895 }
  0xf1   : > { %v900_v23 = vsel %vm637_vm12, %v888_v26, %v896_v49  ;;  %v904_v48 = vsel %vm637_vm12, %v896_v49, %v888_v26  ;;  %1635 = vmatpush.bf16.msra.mxu1 %v5652_v47 }
  0xf2   : > { %v911_v22 = vmul.f32 %v7574_v28, %v900_v23  ;;  %v912_v54 = vmul.f32 %v7577_v29, %v904_v48 }
  0xf3   : > { %6896 = vrot.lane.b32.xlu2 %v7167_v19, %s7049_s17 }
  0xf4   : > { %v916_v44 = vpack.c.bf16 %v912_v54, %v911_v22 }
  0xf5   : > { %v890_v56 = vpop.permute.xlu2 %889  ;;  %v5707_v1 = vld [vmem:[#allocation3 + $0x140] sm:$0xf] }
  0xf6   : > { %920 = vst [vmem:[#allocation3 + $0x148] sm:$0xff] %v916_v44  ;;  %6906 = vrot.lane.b32.xlu1 %v7167_v19, %s7046_s15  ;;  %6901 = vrot.lane.b32.xlu0 %v7155_v14, %s7046_s15 }
  0xf8   : > { %v1016_v57 = vpop.permute.xlu1 %1015  ;;  %v1014_v59 = vpop.permute.xlu0 %1013 }
  0xf9   : > { %v1020_v19 = vsel %vm700_vm13, %v7593_v58, %v1016_v57  ;;  %v1024_v14 = vsel %vm700_vm13, %v1016_v57, %v7593_v58  ;;  %v1019_v11 = vsel %vm700_vm13, %v1006_v55, %v1014_v59  ;;  %v1023_v34 = vsel %vm700_vm13, %v1014_v59, %v1006_v55 }
  0xfa   : > { %v1031_v9 = vmul.f32 %v7661_v45, %v1020_v19  ;;  %v1032_v60 = vmul.f32 %v7664_v10, %v1024_v14  ;;  %v1029_v61 = vmul.f32 %v7661_v45, %v1019_v11  ;;  %v1030_v62 = vmul.f32 %v7664_v10, %v1023_v34 }
  0xfc   : > { %v1036_v58 = vpack.c.bf16 %v1032_v60, %v1031_v9  ;;  %v1035_v63 = vpack.c.bf16 %v1030_v62, %v1029_v61 }
  0xfd   : > { %v6577_v8 = vld [vmem:[#allocation3 + $0x144] sm:$0xf0]  ;;  %v6867_v16 = vpop.permute.xlu2 %6866 }
  0xfe   : > { %1040 = vst [vmem:[#allocation3 + $0x1a8] sm:$0xff] %v1036_v58  ;;  %v5708_v0 = vor.u32 %v6577_v8, %v5707_v1  ;;  %v6869_v19 = vunpack.i.h.bf16 %v6867_v16  ;;  %v6868_v14 = vunpack.i.l.bf16 %v6867_v16 }
  0xff   : > { %1039 = vst [vmem:[#allocation3 + $0x1a0] sm:$0xff] %v1035_v63 }
 0x100   : > { %v766_v24 = vpop.permute.xlu1 %765  ;;  %v760_v42 = vpop.permute.xlu0 %759  ;;  %1675 = vmatpush.bf16.msra.mxu2 %v5708_v0 }
 0x101   : > { %v771_v50 = vsel %vm572_vm8, %v7617_v12, %v766_v24  ;;  %v775_v26 = vsel %vm572_vm8, %v766_v24, %v7617_v12  ;;  %v772_v27 = vsel %vm572_vm8, %v760_v42, %v768_v43  ;;  %v776_v30 = vsel %vm572_vm8, %v768_v43, %v760_v42 }
 0x102   : > { %v781_v17 = vmul.f32 %v7694_v35, %v775_v26  ;;  %v782_v15 = vmul.f32 %v7697_v41, %v771_v50  ;;  %v783_v31 = vmul.f32 %v7694_v35, %v776_v30  ;;  %v784_v32 = vmul.f32 %v7697_v41, %v772_v27 }
 0x104   : > { %v787_v33 = vpack.c.bf16 %v782_v15, %v781_v17  ;;  %v788_v20 = vpack.c.bf16 %v784_v32, %v783_v31 }
 0x105   : > { %v6589_v21 = vld [vmem:[#allocation3 + $0x1a4] sm:$0xf0]  ;;  %v1010_v7 = vpop.permute.xlu2 %1009 }
 0x106   : > { %791 = vst [vmem:[#allocation3 + $0xc0] sm:$0xff] %v787_v33  ;;  %v5755_v12 = vld [vmem:[#allocation3 + $0x1a0] sm:$0xf] }
 0x107   : > { %792 = vst [vmem:[#allocation3 + $0xc8] sm:$0xff] %v788_v20  ;;  %v5756_v47 = vor.u32 %v6589_v21, %v5755_v12 }
 0x108   : > { %v884_v55 = vpop.permute.xlu1 %883  ;;  %v882_v49 = vpop.permute.xlu0 %881 }
 0x109   : > { %v897_v43 = vsel %vm637_vm12, %v882_v49, %v890_v56  ;;  %v901_v23 = vsel %vm637_vm12, %v890_v56, %v882_v49  ;;  %1716 = vmatpush.bf16.msra.mxu3 %v5756_v47 }
 0x10a   : > { %v905_v48 = vmul.f32 %v7574_v28, %v897_v43  ;;  %v906_v22 = vmul.f32 %v7577_v29, %v901_v23 }
 0x10c   : > { %v913_v54 = vpack.c.bf16 %v906_v22, %v905_v48 }
 0x10d   : > { %v5643_v44 = vld [vmem:[#allocation3 + $0xc0] sm:$0xf]  ;;  %v756_v57 = vpop.permute.xlu2 %755 }
 0x10e   : > { %917 = vst [vmem:[#allocation3 + $0x130] sm:$0xff] %v913_v54  ;;  %v6561_v59 = vld [vmem:[#allocation3 + $0xc4] sm:$0xf0] }
 0x10f   : > { %v5644_v11 = vor.u32 %v6561_v59, %v5643_v44 }
 0x110   : > { %v6862_v34 = vpop.permute.xlu1 %6861  ;;  %v892_v9 = vpop.permute.xlu0 %891 }
 0x111   : > { %v6864_v60 = vunpack.i.h.bf16 %v6862_v34  ;;  %v6863_v61 = vunpack.i.l.bf16 %v6862_v34  ;;  %v898_v56 = vsel %vm637_vm12, %v884_v55, %v892_v9  ;;  %v902_v62 = vsel %vm637_vm12, %v892_v9, %v884_v55  ;;  %1636 = vmatpush.bf16.msra.mxu1 %v5644_v11 }
 0x112   : > { %v907_v58 = vmul.f32 %v7574_v28, %v898_v56  ;;  %v908_v63 = vmul.f32 %v7577_v29, %v902_v62 }
 0x113   : > { %v615_v1 = vsel %vm10790_vm5, %v6863_v61, %v6868_v14  ;;  %v616_v8 = vsel %vm10791_vm7, %v6864_v60, %v6869_v19  ;;  %v617_v16 = vsel %vm10792_vm10, %v6868_v14, %v6863_v61  ;;  %v618_v0 = vsel %vm10793_vm14, %v6869_v19, %v6864_v60  ;;  %vm10798_vm5 = vmmov %vm10796_vm1 }
 0x114   : > { %v914_v40 = vpack.c.bf16 %v908_v63, %v907_v58  ;;  %v619_v13 = vmul.f32 %v7379_v37, %v617_v16  ;;  %v620_v4 = vmul.f32 %v7382_v38, %v615_v1  ;;  %v621_v24 = vmul.f32 %v7379_v37, %v618_v0  ;;  %vm443_vm14 = vmand %vm439_vm9, %vm10800_vm0 }
 0x115   : > { %v622_v42 = vmul.f32 %v7382_v38, %v616_v8  ;;  %v6872_v50 = vpop.permute.xlu2 %6871  ;;  %v5699_v21 = vld [vmem:[#allocation3 + $0x130] sm:$0xf]  ;;  %vm10799_vm7 = vcmp.ge.s32.totalorder %v7323_v6, 0  ;;  %v7803_v46 = vsel %vm443_vm14, 1.0, %v7048_v51  ;;  %vm1575_vm9 = vcmask 392192  }
 0x116   : > { %918 = vst [vmem:[#allocation3 + $0x138] sm:$0xff] %v914_v40  ;;  %v623_v26 = vpack.c.bf16 %v620_v4, %v619_v13  ;;  %vm440_vm10 = vmand %vm7468_vm3, %vm10799_vm7  ;;  %vm551_vm3 = vcmp.lt.s32.totalorder %v7215_v25, 17 }
 0x117   : > { %v624_v27 = vpack.c.bf16 %v622_v42, %v621_v24  ;;  %v6874_v24 = vunpack.i.h.bf16 %v6872_v50  ;;  %v6873_v42 = vunpack.i.l.bf16 %v6872_v50 }
 0x118   : > { %625 = vst [vmem:[#allocation3 + $0x30] sm:$0xff] %v623_v26  ;;  %v1004_v30 = vpop.permute.xlu1 %1003  ;;  %v1002_v17 = vpop.permute.xlu0 %1001 }
 0x119   : > { %626 = vst [vmem:[#allocation3 + $0x38] sm:$0xff] %v624_v27  ;;  %v1017_v15 = vsel %vm700_vm13, %v1002_v17, %v1010_v7  ;;  %v1021_v31 = vsel %vm700_vm13, %v1010_v7, %v1002_v17 }
 0x11a   : > { %v1025_v32 = vmul.f32 %v7661_v45, %v1017_v15  ;;  %v1026_v33 = vmul.f32 %v7664_v10, %v1021_v31 }
 0x11c   : > { %v1033_v20 = vpack.c.bf16 %v1026_v33, %v1025_v32 }
 0x11d   : > { %v6575_v12 = vld [vmem:[#allocation3 + $0x134] sm:$0xf0]  ;;  %v968_v49 = vpop.permute.xlu2 %967 }
 0x11e   : > { %1037 = vst [vmem:[#allocation3 + $0x190] sm:$0xff] %v1033_v20  ;;  %v5700_v47 = vor.u32 %v6575_v12, %v5699_v21 }
 0x11f   : > { %v5571_v55 = vld [vmem:[#allocation3 + $0x30] sm:$0xf] }
 0x120   : > { %v754_v43 = vpop.permute.xlu1 %753  ;;  %v1012_v23 = vpop.permute.xlu0 %1011  ;;  %1676 = vmatpush.bf16.msra.mxu2 %v5700_v47  ;;  %v6543_v48 = vld [vmem:[#allocation3 + $0x34] sm:$0xf0] }
 0x121   : > { %v1018_v22 = vsel %vm700_vm13, %v1004_v30, %v1012_v23  ;;  %v1022_v7 = vsel %vm700_vm13, %v1012_v23, %v1004_v30  ;;  %v5572_v54 = vor.u32 %v6543_v48, %v5571_v55 }
 0x122   : > { %v1027_v44 = vmul.f32 %v7661_v45, %v1018_v22  ;;  %v1028_v59 = vmul.f32 %v7664_v10, %v1022_v7 }
 0x123   : > { %1598 = vmatpush.bf16.msra.mxu0 %v5572_v54 }
 0x124   : > { %v1034_v19 = vpack.c.bf16 %v1028_v59, %v1027_v44 }
 0x125   : > { %v7757_v56 = vpop.permute.xlu2 %717  ;;  %v5747_v0 = vld [vmem:[#allocation3 + $0x190] sm:$0xf] }
 0x126   : > { %1038 = vst [vmem:[#allocation3 + $0x198] sm:$0xff] %v1034_v19 }
 0x128   : > { %v764_v14 = vpop.permute.xlu1 %763  ;;  %v762_v11 = vpop.permute.xlu0 %761 }
 0x129   : > { %v770_v34 = vsel %vm572_vm8, %v756_v57, %v764_v14  ;;  %v774_v9 = vsel %vm572_vm8, %v764_v14, %v756_v57  ;;  %v769_v60 = vsel %vm572_vm8, %v754_v43, %v762_v11  ;;  %v773_v61 = vsel %vm572_vm8, %v762_v11, %v754_v43 }
 0x12a   : > { %v779_v62 = vmul.f32 %v7694_v35, %v774_v9  ;;  %v780_v58 = vmul.f32 %v7697_v41, %v770_v34  ;;  %v777_v63 = vmul.f32 %v7694_v35, %v773_v61  ;;  %v778_v1 = vmul.f32 %v7697_v41, %v769_v60  ;;  %v6977_v61 = vld [vmem:[#allocation2 + $0x8] sm:$0xff] }
 0x12c   : > { %v786_v8 = vpack.c.bf16 %v780_v58, %v779_v62  ;;  %v785_v16 = vpack.c.bf16 %v778_v1, %v777_v63  ;;  %v875_v62 = vpack.c.bf16 %v6978_v5, %v6977_v61  ;;  %v6979_v58 = vld [vmem:[#allocation2 + $0x28] sm:$0xff]  ;;  %v6980_v63 = vld [vmem:[#allocation2 + $0x38] sm:$0xff] }
 0x12d   : > { %v6587_v57 = vld [vmem:[#allocation3 + $0x194] sm:$0xf0]  ;;  %v728_v32 = vpop.permute.xlu2 %727  ;;  %v876_v1 = vpack.c.bf16 %v6980_v63, %v6979_v58 }
 0x12e   : > { %790 = vst [vmem:[#allocation3 + $0xb8] sm:$0xff] %v786_v8  ;;  %v5748_v40 = vor.u32 %v6587_v57, %v5747_v0 }
 0x12f   : > { %789 = vst [vmem:[#allocation3 + $0xb0] sm:$0xff] %v785_v16 }
 0x130   : > { %v966_v13 = vpop.permute.xlu1 %965  ;;  %v6877_v4 = vpop.permute.xlu0 %6876  ;;  %1717 = vmatpush.bf16.msra.mxu3 %v5748_v40  ;;  %879 = vst [vmem:[#allocation3 + $0x120] sm:$0xff] %v875_v62 }
 0x131   : > { %v6879_v26 = vunpack.i.h.bf16 %v6877_v4  ;;  %v6878_v27 = vunpack.i.l.bf16 %v6877_v4  ;;  %880 = vst [vmem:[#allocation3 + $0x128] sm:$0xff] %v876_v1 }
 0x133   : > { %v594_v30 = vsel %vm593_vm4, %v6873_v42, %v6878_v27  ;;  %v595_v17 = vsel %vm593_vm4, %v6874_v24, %v6879_v26  ;;  %v596_v15 = vsel %vm593_vm4, %v6878_v27, %v6873_v42  ;;  %v597_v31 = vsel %vm593_vm4, %v6879_v26, %v6874_v24 }
 0x134   : > { %v598_v33 = vmul.f32 %v7511_v18, %v596_v15  ;;  %v599_v20 = vmul.f32 %v7514_v36, %v594_v30  ;;  %v600_v50 = vmul.f32 %v7511_v18, %v597_v31  ;;  %v601_v21 = vmul.f32 %v7514_v36, %v595_v17  ;;  %v6981_v30 = vld [vmem:[#allocation2] sm:$0xff]  ;;  %v6982_v17 = vld [vmem:[#allocation2 + $0x30] sm:$0xff] }
 0x135   : > { %v6559_v12 = vld [vmem:[#allocation3 + $0xb4] sm:$0xf0]  ;;  %v7799_v9 = vpop.permute.xlu2 %713 }
 0x136   : > { %v602_v47 = vpack.c.bf16 %v599_v20, %v598_v33  ;;  %v603_v55 = vpack.c.bf16 %v601_v21, %v600_v50  ;;  %v5635_v43 = vld [vmem:[#allocation3 + $0xb0] sm:$0xf]  ;;  %v6550_v33 = vld [vmem:[#allocation3 + $0x74] sm:$0xf]  ;;  %v5605_v20 = vld [vmem:[#allocation3 + $0x78] sm:$0xf0] }
 0x137   : > { %v5636_v23 = vor.u32 %v6559_v12, %v5635_v43  ;;  %v6983_v50 = vld [vmem:[#allocation2 + $0x10] sm:$0xff]  ;;  %v6984_v21 = vld [vmem:[#allocation2 + $0x18] sm:$0xff] }
 0x138   : > { %604 = vst [vmem:[#allocation3 + $0x20] sm:$0xff] %v602_v47  ;;  %v976_v48 = vpop.permute.xlu1 %975  ;;  %v974_v22 = vpop.permute.xlu0 %973  ;;  %v874_v12 = vpack.c.bf16 %v6983_v50, %v6984_v21  ;;  %v6573_v61 = vld [vmem:[#allocation3 + $0x124] sm:$0xf0] }
 0x139   : > { %605 = vst [vmem:[#allocation3 + $0x28] sm:$0xff] %v603_v55  ;;  %v980_v7 = vsel %vm10795_vm15, %v968_v49, %v976_v48  ;;  %v984_v54 = vsel %vm10796_vm1, %v976_v48, %v968_v49  ;;  %v979_v44 = vsel %vm10797_vm6, %v966_v13, %v974_v22  ;;  %v983_v59 = vsel %vm10798_vm5, %v974_v22, %v966_v13  ;;  %vm444_vm15 = vmand %vm440_vm10, %vm10801_vm2  ;;  %v5461_v55 = vld [vmem:[%s10719_s2 + $0x18] sm:$0xf0]  ;;  %v6548_v48 = vld [vmem:[#allocation3 + $0x64] sm:$0xf] }
 0x13a   : > { %v991_v39 = vmul.f32 %v7291_v52, %v980_v7  ;;  %v992_v19 = vmul.f32 %v7294_v53, %v984_v54  ;;  %v989_v14 = vmul.f32 %v7291_v52, %v979_v44  ;;  %v990_v11 = vmul.f32 %v7294_v53, %v983_v59  ;;  %1637 = vmatpush.bf16.msra.mxu1 %v5636_v23  ;;  %v5597_v22 = vld [vmem:[#allocation3 + $0x68] sm:$0xf0] }
 0x13b   : > { %v7806_v60 = vsel %vm444_vm15, 1.0, %v7048_v51  ;;  %v5608_v59 = vor.u32 %v6550_v33, %v5605_v20  ;;  %878 = vst [vmem:[#allocation3 + $0x118] sm:$0xff] %v874_v12  ;;  %v5600_v5 = vor.u32 %v6548_v48, %v5597_v22  ;;  %v5581_v33 = vld [vmem:[#allocation3 + $0x48] sm:$0xf0]  ;;  %vm10802_vm1 = vcmp.lt.s32.totalorder %v7215_v25, 1 }
 0x13c   : > { %v996_v49 = vpack.c.bf16 %v992_v19, %v991_v39  ;;  %v995_v34 = vpack.c.bf16 %v990_v11, %v989_v14  ;;  %v5691_v19 = vld [vmem:[#allocation3 + $0x120] sm:$0xf]  ;;  %vm10803_vm6 = vmmov %vm10802_vm1 }
 0x13d   : > { %v724_v7 = vpop.permute.xlu2 %723  ;;  %v5692_v62 = vor.u32 %v6573_v61, %v5691_v19  ;;  %v5477_v19 = vld [vmem:[%s10719_s2 + $0x38] sm:$0xf0]  ;;  %vm10804_vm5 = vmmov %vm10802_vm1 }
 0x13e   : > { %1000 = vst [vmem:[#allocation3 + $0x188] sm:$0xff] %v996_v49  ;;  %vm10805_vm7 = vmmov %vm10802_vm1 }
 0x13f   : > { %999 = vst [vmem:[#allocation3 + $0x180] sm:$0xff] %v995_v34  ;;  %v5563_v16 = vld [vmem:[#allocation3 + $0x20] sm:$0xf]  ;;  %1677 = vmatpush.bf16.msra.mxu2 %v5692_v62  ;;  %vm10835_vm10 = vmmov %vm10802_vm1 }
 0x140   : > { %v726_v6 = vpop.permute.xlu1 %725  ;;  %v720_v8 = vpop.permute.xlu0 %719  ;;  %v6541_v0 = vld [vmem:[#allocation3 + $0x24] sm:$0xf0]  ;;  %vm10836_vm0 = vmmov %vm10802_vm1 }
 0x141   : > { %v731_v57 = vsel %vm551_vm3, %v7757_v56, %v726_v6  ;;  %v735_v40 = vsel %vm551_vm3, %v726_v6, %v7757_v56  ;;  %v732_v51 = vsel %vm551_vm3, %v720_v8, %v728_v32  ;;  %v736_v13 = vsel %vm551_vm3, %v728_v32, %v720_v8  ;;  %v6513_v32 = vld [vmem:[%s10719_s2 + $0xc] sm:$0xf]  ;;  %vm10840_vm14 = vmmov %vm10836_vm0 }
 0x142   : > { %v741_v4 = vmul.f32 %v7803_v46, %v735_v40  ;;  %v742_v24 = vmul.f32 %v7806_v60, %v731_v57  ;;  %v743_v42 = vmul.f32 %v7803_v46, %v736_v13  ;;  %v744_v26 = vmul.f32 %v7806_v60, %v732_v51  ;;  %v6546_v40 = vld [vmem:[#allocation3 + $0x54] sm:$0xf]  ;;  %v5589_v13 = vld [vmem:[#allocation3 + $0x58] sm:$0xf0]  ;;  %vm10841_vm2 = vmmov %vm10836_vm0 }
 0x143   : > { %v5564_v27 = vor.u32 %v6541_v0, %v5563_v16  ;;  %v873_v56 = vpack.c.bf16 %v6981_v30, %v6982_v17  ;;  %v7828_v39 = vor.u32 %v6513_v32, %v5461_v55  ;;  %v6571_v30 = vld [vmem:[#allocation3 + $0x114] sm:$0xf0]  ;;  %v7050_v32 = vmov 0   ;;  %v1123_v55 = vld [vmem:[%s10723_s6 + $0x20] sm:$0xff]  ;;  %vm10842_vm15 = vmmov %vm10836_vm0 }
 0x144   : > { %v747_v15 = vpack.c.bf16 %v742_v24, %v741_v4  ;;  %v748_v31 = vpack.c.bf16 %v744_v26, %v743_v42  ;;  %6912 = vset.pattern.permute.xlu1 %v7050_v32  ;;  %6911 = vset.pattern.permute.xlu0 %v7050_v32 }
 0x145   : > { %1599 = vmatpush.bf16.msra.mxu0 %v5564_v27  ;;  %v6585_v47 = vld [vmem:[#allocation3 + $0x184] sm:$0xf0]  ;;  %877 = vst [vmem:[#allocation3 + $0x110] sm:$0xff] %v873_v56  ;;  %1153 = vperm.xlu1 %6912, %v1123_v55  }
 0x146   : > { %751 = vst [vmem:[#allocation3 + $0xa0] sm:$0xff] %v747_v15  ;;  %v5739_v43 = vld [vmem:[#allocation3 + $0x180] sm:$0xf]  ;;  %v5592_v15 = vor.u32 %v6546_v40, %v5589_v13  ;;  %6910 = vset.pattern.permute.xlu2 %v7050_v32  ;;  %v6540_v40 = vld [vmem:[#allocation3 + $0x24] sm:$0xf]  ;;  %v1120_v55 = vld [vmem:[%s10723_s6 + $0x8] sm:$0xff] }
 0x147   : > { %752 = vst [vmem:[#allocation3 + $0xa8] sm:$0xff] %v748_v31  ;;  %v5740_v23 = vor.u32 %v6585_v47, %v5739_v43  ;;  %v6544_v31 = vld [vmem:[#allocation3 + $0x44] sm:$0xf] }
 0x148   : > { %v6887_v54 = vpop.permute.xlu1 %6886  ;;  %v6882_v44 = vpop.permute.xlu0 %6881 }
 0x149   : > { %v6889_v14 = vunpack.i.h.bf16 %v6887_v54  ;;  %v6888_v11 = vunpack.i.l.bf16 %v6887_v54  ;;  %v6884_v49 = vunpack.i.h.bf16 %v6882_v44  ;;  %v6883_v34 = vunpack.i.l.bf16 %v6882_v44  ;;  %1718 = vmatpush.bf16.msra.mxu3 %v5740_v23 }
 0x14a   : > { %v5584_v54 = vor.u32 %v6544_v31, %v5581_v33 }
 0x14b   : > { %v573_v58 = vsel %vm572_vm8, %v6883_v34, %v6888_v11  ;;  %v574_v63 = vsel %vm572_vm8, %v6884_v49, %v6889_v14  ;;  %v575_v1 = vsel %vm572_vm8, %v6888_v11, %v6883_v34  ;;  %v576_v6 = vsel %vm572_vm8, %v6889_v14, %v6884_v49  ;;  %v6542_v14 = vld [vmem:[#allocation3 + $0x34] sm:$0xf]  ;;  %v5573_v11 = vld [vmem:[#allocation3 + $0x38] sm:$0xf0] }
 0x14c   : > { %v577_v8 = vmul.f32 %v7694_v35, %v575_v1  ;;  %v578_v16 = vmul.f32 %v7697_v41, %v573_v58  ;;  %v579_v0 = vmul.f32 %v7694_v35, %v576_v6  ;;  %v580_v57 = vmul.f32 %v7697_v41, %v574_v63  ;;  %5761 = vmatmul.msk.bf16.vlgmr.msra.gmra.mxu3 %vm1575_vm9, %v7828_v39  ;;  %v5683_v4 = vld [vmem:[#allocation3 + $0x110] sm:$0xf]  ;;  %v1126_v49 = vld [vmem:[%s10723_s6 + $0x38] sm:$0xff] }
 0x14d   : > { %1750 = vmatpush.bf16.msrb.mxu3 %v5608_v59  ;;  %v5627_v51 = vld [vmem:[#allocation3 + $0xa0] sm:$0xf]  ;;  %v5684_v20 = vor.u32 %v6571_v30, %v5683_v4  ;;  %1168 = vperm.xlu0 %6911, %v1126_v49   ;;  %v5576_v6 = vor.u32 %v6542_v14, %v5573_v11  ;;  %v6521_v11 = vld [vmem:[%s10719_s2 + $0x4c] sm:$0xf]  ;;  %v5493_v49 = vld [vmem:[%s10719_s2 + $0x58] sm:$0xf0] }
 0x14e   : > { %v581_v24 = vpack.c.bf16 %v578_v16, %v577_v8  ;;  %v582_v42 = vpack.c.bf16 %v580_v57, %v579_v0  ;;  %v6557_v26 = vld [vmem:[#allocation3 + $0xa4] sm:$0xf0]  ;;  %v1121_v16 = vld [vmem:[%s10723_s6 + $0x10] sm:$0xff] }
 0x14f   : > { %v5628_v27 = vor.u32 %v6557_v26, %v5627_v51  ;;  %1678 = vmatpush.bf16.msra.mxu2 %v5684_v20  ;;  %v5565_v51 = vld [vmem:[#allocation3 + $0x28] sm:$0xf0]  ;;  %1143 = vperm.xlu1 %6912, %v1121_v16  }
 0x150   : > { %583 = vst [vmem:[#allocation3 + $0x10] sm:$0xff] %v581_v24  ;;  %v722_v17 = vpop.permute.xlu1 %721  ;;  %v716_v56 = vpop.permute.xlu0 %715  ;;  %v5568_v24 = vor.u32 %v6540_v40, %v5565_v51 }
 0x151   : > { %1751 = vmatpush.bf16.msrb.mxu3 %v5600_v5  ;;  %584 = vst [vmem:[#allocation3 + $0x18] sm:$0xff] %v582_v42  ;;  %v729_v50 = vsel %vm551_vm3, %v7799_v9, %v722_v17  ;;  %v733_v21 = vsel %vm551_vm3, %v722_v17, %v7799_v9  ;;  %v730_v12 = vsel %vm551_vm3, %v716_v56, %v724_v7  ;;  %v846_v9 = vpop.permute.xlu2 %845  ;;  %v1119_v17 = vld [vmem:[%s10723_s6] sm:$0xff] }
 0x152   : > { %v734_v47 = vsel %vm551_vm3, %v724_v7, %v716_v56  ;;  %v737_v43 = vmul.f32 %v7803_v46, %v733_v21  ;;  %v738_v23 = vmul.f32 %v7806_v60, %v729_v50  ;;  %v740_v22 = vmul.f32 %v7806_v60, %v730_v12  ;;  %1638 = vmatpush.bf16.msra.mxu1 %v5628_v27  ;;  %v6517_v7 = vld [vmem:[%s10719_s2 + $0x2c] sm:$0xf] }
 0x153   : > { %v739_v48 = vmul.f32 %v7803_v46, %v734_v47  ;;  %v7870_v58 = vor.u32 %v6517_v7, %v5477_v19 }
 0x154   : > { %v745_v44 = vpack.c.bf16 %v738_v23, %v737_v43 }
 0x155   : > { %1752 = vmatpush.bf16.msrb.mxu3 %v5592_v15  ;;  %v746_v59 = vpack.c.bf16 %v740_v22, %v739_v48  ;;  %1133 = vperm.xlu0 %6911, %v1119_v17  }
 0x156   : > { %749 = vst [vmem:[#allocation3 + $0x90] sm:$0xff] %v745_v44 }
 0x157   : > { %750 = vst [vmem:[#allocation3 + $0x98] sm:$0xff] %v746_v59  ;;  %v5555_v34 = vld [vmem:[#allocation3 + $0x10] sm:$0xf]  ;;  %v6538_v26 = vld [vmem:[#allocation3 + $0x14] sm:$0xf]  ;;  %1138 = vperm.xlu1 %6912, %v1120_v55  }
 0x158   : > { %v840_v61 = vpop.permute.xlu1 %839  ;;  %v838_v5 = vpop.permute.xlu0 %837  ;;  %v6539_v62 = vld [vmem:[#allocation3 + $0x14] sm:$0xf0]  ;;  %v5557_v27 = vld [vmem:[#allocation3 + $0x18] sm:$0xf0] }
 0x159   : > { %1753 = vmatpush.bf16.msrb.mxu3 %v5584_v54  ;;  %v851_v63 = vsel %vm10802_vm1, %v838_v5, %v846_v9  ;;  %v855_v1 = vsel %vm10803_vm6, %v846_v9, %v838_v5  ;;  %v5556_v8 = vor.u32 %v6539_v62, %v5555_v34  ;;  %v6897_v4 = vpop.permute.xlu2 %6896  ;;  %v5560_v32 = vor.u32 %v6538_v26, %v5557_v27  ;;  %v6588_v26 = vld [vmem:[#allocation3 + $0x1a4] sm:$0xf]  ;;  %v5757_v27 = vld [vmem:[#allocation3 + $0x1a8] sm:$0xf0]  ;;  %vm10844_vm1 = vmmov %vm10836_vm0 }
 0x15a   : > { %v861_v0 = vmul.f32 %v7379_v37, %v855_v1  ;;  %v862_v57 = vmul.f32 %v7382_v38, %v851_v63  ;;  %v6899_v56 = vunpack.i.h.bf16 %v6897_v4  ;;  %v6898_v15 = vunpack.i.l.bf16 %v6897_v4  ;;  %vm10845_vm6 = vmmov %vm10836_vm0 }
 0x15b   : > { %1600 = vmatpush.bf16.msra.mxu0 %v5556_v8  ;;  %v7913_v63 = vor.u32 %v6521_v11, %v5493_v49  ;;  %v6564_v11 = vld [vmem:[#allocation3 + $0xe4] sm:$0xf]  ;;  %v5661_v49 = vld [vmem:[#allocation3 + $0xe8] sm:$0xf0] }
 0x15c   : > { %v867_v13 = vpack.c.bf16 %v862_v57, %v861_v0  ;;  %5762 = vmatmul.msk.bf16.gmra.mxu3 %vm1575_vm9, %v7870_v58 }
 0x15d   : > { %1754 = vmatpush.bf16.msrb.mxu3 %v5576_v6  ;;  %v5619_v42 = vld [vmem:[#allocation3 + $0x90] sm:$0xf] }
 0x15e   : > { %871 = vst [vmem:[#allocation3 + $0x100] sm:$0xff] %v867_v13  ;;  %v6555_v30 = vld [vmem:[#allocation3 + $0x94] sm:$0xf0] }
 0x15f   : > { %v5620_v31 = vor.u32 %v6555_v30, %v5619_v42  ;;  %v5459_v30 = vld [vmem:[%s10719_s2 + $0x8] sm:$0xf] }
 0x160   : > { %v6892_v33 = vpop.permute.xlu1 %6891  ;;  %v848_v20 = vpop.permute.xlu0 %847 }
 0x161   : > { %1755 = vmatpush.bf16.msrb.mxu3 %v5568_v24  ;;  %v6894_v50 = vunpack.i.h.bf16 %v6892_v33  ;;  %v6893_v21 = vunpack.i.l.bf16 %v6892_v33  ;;  %v852_v12 = vsel %vm10804_vm5, %v840_v61, %v848_v20  ;;  %v856_v47 = vsel %vm10805_vm7, %v848_v20, %v840_v61  ;;  %1639 = vmatpush.bf16.msra.mxu1 %v5620_v31  ;;  %vm10846_vm5 = vmmov %vm10836_vm0 }
 0x162   : > { %v863_v43 = vmul.f32 %v7379_v37, %v856_v47  ;;  %v864_v23 = vmul.f32 %v7382_v38, %v852_v12  ;;  %v5760_v12 = vor.u32 %v6588_v26, %v5757_v27  ;;  %v6582_v26 = vld [vmem:[#allocation3 + $0x174] sm:$0xf]  ;;  %vm10847_vm7 = vmmov %vm10836_vm0 }
 0x163   : > { %v552_v48 = vsel %vm551_vm3, %v6893_v21, %v6898_v15  ;;  %v553_v22 = vsel %vm551_vm3, %v6894_v50, %v6899_v56  ;;  %v554_v9 = vsel %vm551_vm3, %v6898_v15, %v6893_v21  ;;  %v555_v54 = vsel %vm551_vm3, %v6899_v56, %v6894_v50  ;;  %v6515_v15 = vld [vmem:[%s10719_s2 + $0x14] sm:$0xf0]  ;;  %v5451_v50 = vld [vmem:[%s10719_s2] sm:$0xf]  ;;  %v5749_v21 = vld [vmem:[#allocation3 + $0x198] sm:$0xf0] }
 0x164   : > { %v868_v44 = vpack.c.bf16 %v864_v23, %v863_v43  ;;  %v556_v59 = vmul.f32 %v7803_v46, %v554_v9  ;;  %v557_v7 = vmul.f32 %v7806_v60, %v552_v48  ;;  %v558_v19 = vmul.f32 %v7803_v46, %v555_v54  ;;  %v6514_v43 = vld [vmem:[%s10719_s2 + $0xc] sm:$0xf0] }
 0x165   : > { %1756 = vmatpush.bf16.msrb.mxu3 %v5560_v32  ;;  %v559_v14 = vmul.f32 %v7806_v60, %v553_v22  ;;  %v5675_v17 = vld [vmem:[#allocation3 + $0x100] sm:$0xf]  ;;  %v5669_v32 = vld [vmem:[#allocation3 + $0xf8] sm:$0xf0]  ;;  %v7941_v22 = vor.u32 %v6515_v15, %v5459_v30  ;;  %v6580_v15 = vld [vmem:[#allocation3 + $0x164] sm:$0xf] }
 0x166   : > { %872 = vst [vmem:[#allocation3 + $0x108] sm:$0xff] %v868_v44  ;;  %v560_v34 = vpack.c.bf16 %v557_v7, %v556_v59  ;;  %v6566_v44 = vld [vmem:[#allocation3 + $0xf4] sm:$0xf]  ;;  %v7943_v7 = vor.u32 %v6514_v43, %v5451_v50  ;;  %v6518_v43 = vld [vmem:[%s10719_s2 + $0x2c] sm:$0xf0] }
 0x167   : > { %v561_v61 = vpack.c.bf16 %v559_v14, %v558_v19  ;;  %v5672_v59 = vor.u32 %v6566_v44, %v5669_v32  ;;  %v6586_v19 = vld [vmem:[#allocation3 + $0x194] sm:$0xf] }
 0x168   : > { %562 = vst [vmem:[#allocation3] sm:$0xff] %v560_v34  ;;  %v6907_v5 = vpop.permute.xlu1 %6906  ;;  %v6902_v62 = vpop.permute.xlu0 %6901  ;;  %v5752_v14 = vor.u32 %v6586_v19, %v5749_v21  ;;  %v6584_v34 = vld [vmem:[#allocation3 + $0x184] sm:$0xf]  ;;  %v6558_v50 = vld [vmem:[#allocation3 + $0xb4] sm:$0xf] }
 0x169   : > { %563 = vst [vmem:[#allocation3 + $0x8] sm:$0xff] %v561_v61  ;;  %v6909_v1 = vunpack.i.h.bf16 %v6907_v5  ;;  %v6908_v6 = vunpack.i.l.bf16 %v6907_v5  ;;  %v6904_v8 = vunpack.i.h.bf16 %v6902_v62  ;;  %v6903_v16 = vunpack.i.l.bf16 %v6902_v62  ;;  %v5741_v61 = vld [vmem:[#allocation3 + $0x188] sm:$0xf0]  ;;  %v5509_v62 = vld [vmem:[%s10719_s2 + $0x78] sm:$0xf0]  ;;  %v1125_v21 = vld [vmem:[%s10723_s6 + $0x30] sm:$0xff] }
 0x16a   : > { %v6525_v5 = vld [vmem:[%s10719_s2 + $0x6c] sm:$0xf]  ;;  %1163 = vperm.xlu2 %6910, %v1125_v21   ;;  %v6556_v19 = vld [vmem:[#allocation3 + $0xa4] sm:$0xf]  ;;  %v1122_v21 = vld [vmem:[%s10723_s6 + $0x18] sm:$0xff] }
 0x16b   : > { %v701_v0 = vsel %vm700_vm13, %v6903_v16, %v6908_v6  ;;  %v702_v57 = vsel %vm700_vm13, %v6904_v8, %v6909_v1  ;;  %v703_v40 = vsel %vm700_vm13, %v6908_v6, %v6903_v16  ;;  %v704_v51 = vsel %vm700_vm13, %v6909_v1, %v6904_v8  ;;  %v6562_v6 = vld [vmem:[#allocation3 + $0xd4] sm:$0xf]  ;;  %v5653_v8 = vld [vmem:[#allocation3 + $0xd8] sm:$0xf0] }
 0x16c   : > { %v705_v13 = vmul.f32 %v7661_v45, %v701_v0  ;;  %v706_v4 = vmul.f32 %v7664_v10, %v703_v40  ;;  %v707_v24 = vmul.f32 %v7661_v45, %v702_v57  ;;  %v708_v42 = vmul.f32 %v7664_v10, %v704_v51  ;;  %5763 = vmatmul.msk.bf16.gmra.mxu3 %vm1575_vm9, %v7913_v63  ;;  %v6512_v57 = vld [vmem:[%s10719_s2 + $0x4] sm:$0xf]  ;;  %v5453_v40 = vld [vmem:[%s10719_s2 + $0x10] sm:$0xf0] }
 0x16d   : > { %v6569_v56 = vld [vmem:[#allocation3 + $0x104] sm:$0xf0]  ;;  %v5664_v1 = vor.u32 %v6564_v11, %v5661_v49  ;;  %v5744_v16 = vor.u32 %v6584_v34, %v5741_v61  ;;  %v7961_v27 = vor.u32 %v6512_v57, %v5453_v40  ;;  %v5709_v11 = vld [vmem:[#allocation3 + $0x148] sm:$0xf0]  ;;  %v5525_v34 = vld [vmem:[%s10719_s2 + $0x98] sm:$0xf0] }
 0x16e   : > { %v709_v31 = vpack.c.bf16 %v706_v4, %v705_v13  ;;  %v710_v33 = vpack.c.bf16 %v708_v42, %v707_v24  ;;  %v5676_v20 = vor.u32 %v6569_v56, %v5675_v17  ;;  %v7959_v13 = vor.u32 %v6525_v5, %v5509_v62  ;;  %v5733_v4 = vld [vmem:[#allocation3 + $0x178] sm:$0xf0]  ;;  %v6560_v17 = vld [vmem:[#allocation3 + $0xc4] sm:$0xf]  ;;  %v5645_v56 = vld [vmem:[#allocation3 + $0xc8] sm:$0xf0] }
 0x16f   : > { %v5547_v47 = vld [vmem:[#allocation3] sm:$0xf]  ;;  %v6536_v55 = vld [vmem:[#allocation3 + $0x4] sm:$0xf]  ;;  %v5656_v42 = vor.u32 %v6562_v6, %v5653_v8  ;;  %v5736_v30 = vor.u32 %v6582_v26, %v5733_v4  ;;  %v5648_v32 = vor.u32 %v6560_v17, %v5645_v56  ;;  %v6529_v49 = vld [vmem:[%s10719_s2 + $0x8c] sm:$0xf] }
 0x170   : > { %711 = vst [vmem:[#allocation3 + $0x80] sm:$0xff] %v709_v31  ;;  %1679 = vmatpush.bf16.msra.mxu2 %v5676_v20  ;;  %v6537_v23 = vld [vmem:[#allocation3 + $0x4] sm:$0xf0]  ;;  %v5549_v48 = vld [vmem:[#allocation3 + $0x8] sm:$0xf0]  ;;  %v8002_v57 = vor.u32 %v6529_v49, %v5525_v34 }
 0x171   : > { %712 = vst [vmem:[#allocation3 + $0x88] sm:$0xff] %v710_v33  ;;  %v5548_v9 = vor.u32 %v6537_v23, %v5547_v47  ;;  %v5552_v54 = vor.u32 %v6536_v55, %v5549_v48  ;;  %v5725_v31 = vld [vmem:[#allocation3 + $0x168] sm:$0xf0]  ;;  %v5475_v33 = vld [vmem:[%s10719_s2 + $0x28] sm:$0xf] }
 0x172   : > { %v6519_v20 = vld [vmem:[%s10719_s2 + $0x34] sm:$0xf0]  ;;  %v5637_v47 = vld [vmem:[#allocation3 + $0xb8] sm:$0xf0]  ;;  %v5467_v55 = vld [vmem:[%s10719_s2 + $0x20] sm:$0xf] }
 0x173   : > { %1601 = vmatpush.bf16.msra.mxu0 %v5548_v9  ;;  %1757 = vmatpush.bf16.msrb.mxu3 %v5552_v54  ;;  %v7981_v23 = vor.u32 %v6519_v20, %v5475_v33  ;;  %v6578_v48 = vld [vmem:[#allocation3 + $0x154] sm:$0xf]  ;;  %v5717_v9 = vld [vmem:[#allocation3 + $0x158] sm:$0xf0]  ;;  %v5640_v54 = vor.u32 %v6558_v50, %v5637_v47  ;;  %v7983_v44 = vor.u32 %v6518_v43, %v5467_v55  ;;  %v6576_v5 = vld [vmem:[#allocation3 + $0x144] sm:$0xf] }
 0x174   : > { %1872 = vmatpush.bf16.msrb.mxu2 %v5760_v12  ;;  %v5728_v12 = vor.u32 %v6580_v15, %v5725_v31  ;;  %v6554_v62 = vld [vmem:[#allocation3 + $0x94] sm:$0xf]  ;;  %v5712_v6 = vor.u32 %v6576_v5, %v5709_v11  ;;  %v5621_v8 = vld [vmem:[#allocation3 + $0x98] sm:$0xf0]  ;;  %v5693_v26 = vld [vmem:[#allocation3 + $0x128] sm:$0xf0] }
 0x175   : > { %1680 = vmatmul.bf16.vlgmr.msra.gmra.mxu2 %v7941_v22  ;;  %v5701_v40 = vld [vmem:[#allocation3 + $0x138] sm:$0xf0]  ;;  %v6574_v4 = vld [vmem:[#allocation3 + $0x134] sm:$0xf]  ;;  %v5491_v31 = vld [vmem:[%s10719_s2 + $0x48] sm:$0xf] }
 0x176   : > { %1602 = vmatmul.bf16.vlgmr.msra.gmra.mxu0 %v7943_v7  ;;  %v6523_v33 = vld [vmem:[%s10719_s2 + $0x54] sm:$0xf0]  ;;  %v5685_v50 = vld [vmem:[#allocation3 + $0x118] sm:$0xf0]  ;;  %v6522_v47 = vld [vmem:[%s10719_s2 + $0x4c] sm:$0xf0] }
 0x177   : > { %1789 = vmatpush.bf16.msrb.mxu0 %v5672_v59  ;;  %v5611_v0 = vld [vmem:[#allocation3 + $0x80] sm:$0xf]  ;;  %v5720_v59 = vor.u32 %v6578_v48, %v5717_v9  ;;  %v6552_v17 = vld [vmem:[#allocation3 + $0x84] sm:$0xf]  ;;  %v8024_v55 = vor.u32 %v6523_v33, %v5491_v31  ;;  %v5677_v9 = vld [vmem:[#allocation3 + $0x108] sm:$0xf0] }
 0x178   : > { %1873 = vmatpush.bf16.msrb.mxu2 %v5752_v14  ;;  %v6553_v51 = vld [vmem:[#allocation3 + $0x84] sm:$0xf0]  ;;  %v5629_v14 = vld [vmem:[#allocation3 + $0xa8] sm:$0xf0]  ;;  %v6520_v11 = vld [vmem:[%s10719_s2 + $0x44] sm:$0xf] }
 0x179   : > { %v5612_v24 = vor.u32 %v6553_v51, %v5611_v0  ;;  %v5632_v61 = vor.u32 %v6556_v19, %v5629_v14  ;;  %v5469_v0 = vld [vmem:[%s10719_s2 + $0x30] sm:$0xf0]  ;;  %v5624_v51 = vor.u32 %v6554_v62, %v5621_v8  ;;  %v5613_v56 = vld [vmem:[#allocation3 + $0x88] sm:$0xf0]  ;;  %v6568_v19 = vld [vmem:[#allocation3 + $0x104] sm:$0xf] }
 0x17a   : > { %v5616_v20 = vor.u32 %v6552_v17, %v5613_v56  ;;  %v5680_v14 = vor.u32 %v6568_v19, %v5677_v9  ;;  %v5485_v49 = vld [vmem:[%s10719_s2 + $0x50] sm:$0xf0]  ;;  %v5507_v5 = vld [vmem:[%s10719_s2 + $0x68] sm:$0xf]  ;;  %v6527_v62 = vld [vmem:[%s10719_s2 + $0x74] sm:$0xf0] }
 0x17b   : > { %1790 = vmatpush.bf16.msrb.mxu0 %v5664_v1  ;;  %1640 = vmatpush.bf16.msra.mxu1 %v5612_v24  ;;  %v1124_v1 = vld [vmem:[%s10723_s6 + $0x28] sm:$0xff]  ;;  %v8055_v8 = vor.u32 %v6527_v62, %v5507_v5  ;;  %v6528_v56 = vld [vmem:[%s10719_s2 + $0x84] sm:$0xf] }
 0x17c   : > { %1874 = vmatpush.bf16.msrb.mxu2 %v5744_v16  ;;  %5764 = vmatmul.msk.bf16.gmra.mxu3 %vm1575_vm9, %v7959_v13  ;;  %v6516_v16 = vld [vmem:[%s10719_s2 + $0x24] sm:$0xf]  ;;  %v5539_v33 = vld [vmem:[%s10719_s2 + $0xa8] sm:$0xf] }
 0x17d   : > { %1158 = vperm.xlu2 %6910, %v1124_v1   ;;  %v8004_v24 = vor.u32 %v6516_v16, %v5469_v0  ;;  %v5499_v1 = vld [vmem:[%s10719_s2 + $0x60] sm:$0xf]  ;;  %v6524_v0 = vld [vmem:[%s10719_s2 + $0x64] sm:$0xf] }
 0x17e   : > { %1641 = vmatmul.bf16.vlgmr.msra.gmra.mxu1 %v7961_v27 }
 0x17f   : > { %1791 = vmatpush.bf16.msrb.mxu0 %v5656_v42  ;;  %1828 = vmatpush.bf16.msrb.mxu1 %v5736_v30  ;;  %v6572_v42 = vld [vmem:[#allocation3 + $0x124] sm:$0xf]  ;;  %v5704_v30 = vor.u32 %v6574_v4, %v5701_v40  ;;  %v5501_v40 = vld [vmem:[%s10719_s2 + $0x70] sm:$0xf0]  ;;  %v5523_v4 = vld [vmem:[%s10719_s2 + $0x88] sm:$0xf] }
 0x180   : > { %v5696_v15 = vor.u32 %v6572_v42, %v5693_v26  ;;  %v6531_v42 = vld [vmem:[%s10719_s2 + $0x94] sm:$0xf0]  ;;  %v5515_v26 = vld [vmem:[%s10719_s2 + $0x80] sm:$0xf] }
 0x181   : > { %v8080_v17 = vor.u32 %v6531_v42, %v5523_v4 }
 0x183   : > { %1792 = vmatpush.bf16.msrb.mxu0 %v5648_v32  ;;  %1829 = vmatpush.bf16.msrb.mxu1 %v5728_v12  ;;  %v6570_v32 = vld [vmem:[#allocation3 + $0x114] sm:$0xf]  ;;  %v5483_v12 = vld [vmem:[%s10719_s2 + $0x40] sm:$0xf] }
 0x184   : > { %v5688_v43 = vor.u32 %v6570_v32, %v5685_v50  ;;  %v5484_v48 = vor.u32 %v6522_v47, %v5483_v12  ;;  %v5531_v32 = vld [vmem:[%s10719_s2 + $0xa0] sm:$0xf]  ;;  %v6534_v50 = vld [vmem:[%s10719_s2 + $0xac] sm:$0xf0]  ;;  %v6532_v12 = vld [vmem:[%s10719_s2 + $0xa4] sm:$0xf] }
 0x185   : > { %1685 = vmatmul.bf16.gmra.mxu2 %v7981_v23  ;;  %1148 = vperm.xlu2 %6910, %v1122_v21   ;;  %v5533_v47 = vld [vmem:[%s10719_s2 + $0xb0] sm:$0xf0] }
 0x186   : > { %1607 = vmatmul.bf16.gmra.mxu0 %v7983_v44 }
 0x187   : > { %1793 = vmatpush.bf16.msrb.mxu0 %v5640_v54  ;;  %1830 = vmatpush.bf16.msrb.mxu1 %v5720_v59  ;;  %v6533_v54 = vld [vmem:[%s10719_s2 + $0xac] sm:$0xf]  ;;  %v5541_v59 = vld [vmem:[%s10719_s2 + $0xb8] sm:$0xf0] }
 0x188   : > { %v8039_v34 = vor.u32 %v6533_v54, %v5541_v59 }
 0x18b   : > { %1794 = vmatpush.bf16.msrb.mxu0 %v5632_v61  ;;  %1831 = vmatpush.bf16.msrb.mxu1 %v5712_v6  ;;  %v5488_v61 = vor.u32 %v6520_v11, %v5485_v49  ;;  %v6526_v6 = vld [vmem:[%s10719_s2 + $0x6c] sm:$0xf0] }
 0x18c   : > { %5765 = vmatmul.msk.bf16.gmra.mxu3 %vm1575_vm9, %v8002_v57  ;;  %v5500_v16 = vor.u32 %v6526_v6, %v5499_v1 }
 0x18e   : > { %1646 = vmatmul.bf16.gmra.mxu1 %v8004_v24 }
 0x18f   : > { %1795 = vmatpush.bf16.msrb.mxu0 %v5624_v51  ;;  %1832 = vmatpush.bf16.msrb.mxu1 %v5704_v30  ;;  %v8064_v51 = vor.u32 %v6524_v0, %v5501_v40  ;;  %v6530_v30 = vld [vmem:[%s10719_s2 + $0x8c] sm:$0xf0] }
 0x193   : > { %1796 = vmatpush.bf16.msrb.mxu0 %v5616_v20  ;;  %1833 = vmatpush.bf16.msrb.mxu1 %v5696_v15  ;;  %v5517_v15 = vld [vmem:[%s10719_s2 + $0x90] sm:$0xf0]  ;;  %v6535_v20 = vld [vmem:[%s10719_s2 + $0xb4] sm:$0xf0] }
 0x194   : > { %v8089_v31 = vor.u32 %v6528_v56, %v5517_v15  ;;  %v8105_v21 = vor.u32 %v6535_v20, %v5539_v33 }
 0x195   : > { %1690 = vmatmul.bf16.gmra.mxu2 %v8024_v55 }
 0x196   : > { %1612 = vmatmul.bf16.gmra.mxu0 %v5484_v48 }
 0x197   : > { %1834 = vmatpush.bf16.msrb.mxu1 %v5688_v43  ;;  %v8114_v43 = vor.u32 %v6532_v12, %v5533_v47 }
 0x19b   : > { %1835 = vmatpush.bf16.msrb.mxu1 %v5680_v14 }
 0x19c   : > { %5766 = vmatmul.msk.bf16.gmra.mxu3 %vm1575_vm9, %v8039_v34 }
 0x19e   : > { %1651 = vmatmul.bf16.gmra.mxu1 %v5488_v61 }
 0x1a5   : > { %1695 = vmatmul.bf16.gmra.mxu2 %v8055_v8 }
 0x1a6   : > { %1617 = vmatmul.bf16.gmra.mxu0 %v5500_v16 }
 0x1ac   : > { %1758 = vmatmul.bf16.vlgmr.msrb.gmra.mxu3 %v7943_v7  ;;  %v5516_v7 = vor.u32 %v6530_v30, %v5515_v26 }
 0x1ae   : > { %1656 = vmatmul.bf16.gmra.mxu1 %v8064_v51 }
 0x1b5   : > { %1700 = vmatmul.bf16.gmra.mxu2 %v8080_v17 }
 0x1b6   : > { %1622 = vmatmul.bf16.gmra.mxu0 %v5516_v7 }
 0x1bc   : > { %1763 = vmatmul.bf16.gmra.mxu3 %v7983_v44  ;;  %v5532_v44 = vor.u32 %v6534_v50, %v5531_v32 }
 0x1be   : > { %1661 = vmatmul.bf16.gmra.mxu1 %v8089_v31 }
 0x1c4   : > { %v8140_v49 = vpop.permute.xlu2 %1163 }
 0x1c5   : > { %1705 = vmatmul.bf16.gmra.mxu2 %v8105_v21 }
 0x1c6   : > { %1627 = vmatmul.bf16.gmra.mxu0 %v5532_v44 }
 0x1cc   : > { %1768 = vmatmul.bf16.gmra.mxu3 %v5484_v48  ;;  %v8126_v48 = vpop.permute.xlu1 %1153 }
 0x1ce   : > { %1666 = vmatmul.bf16.gmra.mxu1 %v8114_v43 }
 0x1cf   : > { %v1720_v9 = vpop.f32.mrf.mxu3 }
 0x1d4   : > { %v8135_v14 = vpop.permute.xlu1 %1143 }
 0x1d5   : > { %5767 = vmatmul.msk.bf16.vlgmr.msrb.gmra.mxu2 %vm1575_vm9, %v7828_v39  ;;  %v8129_v39 = vpop.permute.xlu0 %1168 }
 0x1d6   : > { %1797 = vmatmul.bf16.vlgmr.msrb.gmra.mxu0 %v7961_v27 }
 0x1d7   : > { %v1722_v54 = vpop.f32.mrf.mxu3 }
 0x1dc   : > { %1773 = vmatmul.bf16.gmra.mxu3 %v5500_v16  ;;  %v8145_v16 = vpop.permute.xlu1 %1138 }
 0x1de   : > { %1836 = vmatmul.bf16.vlgmr.msrb.gmra.mxu1 %v7941_v22 }
 0x1df   : > { %v1725_v59 = vpop.f32.mrf.mxu3 }
 0x1e5   : > { %5768 = vmatmul.msk.bf16.gmra.mxu2 %vm1575_vm9, %v7870_v58 }
 0x1e6   : > { %1802 = vmatmul.bf16.gmra.mxu0 %v8004_v24  ;;  %v8137_v24 = vpop.permute.xlu0 %1133 }
 0x1e7   : > { %v8124_v19 = vpop.f32.mrf.mxu3 }
 0x1ec   : > { %1778 = vmatmul.bf16.gmra.mxu3 %v5516_v7 }
 0x1ee   : > { %1841 = vmatmul.bf16.gmra.mxu1 %v7981_v23 }
 0x1ef   : > { %v8133_v22 = vpop.f32.mrf.mxu3 }
 0x1f3   : > { %v1603_v27 = vpop.f32.mrf.mxu0 }
 0x1f4   : > { %v1604_v11 = vadd.f32 %v1603_v27, %v8137_v24 }
 0x1f5   : > { %5769 = vmatmul.msk.bf16.gmra.mxu2 %vm1575_vm9, %v7913_v63 }
 0x1f6   : > { %1807 = vmatmul.bf16.gmra.mxu0 %v5488_v61 }
 0x1f7   : > { %v8143_v6 = vpop.f32.mrf.mxu3 }
 0x1f8   : > { %v1681_v58 = vpop.f32.mrf.mxu2 }
 0x1fb   : > { %v1605_v5 = vpop.f32.mrf.mxu0  ;;  %v1642_v23 = vpop.f32.mrf.mxu1 }
 0x1fc   : > { %v1643_v62 = vadd.f32 %v1642_v23, %v1604_v11  ;;  %1783 = vmatmul.bf16.gmra.mxu3 %v5532_v44  ;;  %v1606_v0 = vadd.f32 %v1605_v5, %v8145_v16 }
 0x1fe   : > { %v1682_v1 = vadd.f32 %v1681_v58, %v1643_v62  ;;  %1846 = vmatmul.bf16.gmra.mxu1 %v8024_v55  ;;  %v8154_v55 = vpop.permute.xlu2 %1158 }
 0x1ff   : > { %v8159_v15 = vpop.f32.mrf.mxu3 }
 0x200   : > { %v1683_v63 = vpop.f32.mrf.mxu2  ;;  %v1721_v61 = vadd.f32 %v1720_v9, %v1682_v1 }
 0x202   : > { %v8148_v40 = vmax.f32 %v1721_v61, 0.0 }
 0x203   : > { %v1608_v4 = vpop.f32.mrf.mxu0  ;;  %v1644_v42 = vpop.f32.mrf.mxu1 }
 0x204   : > { %v1645_v26 = vadd.f32 %v1644_v42, %v1606_v0  ;;  %2162 = vrot.lane.b32.xlu2 %v8148_v40, %s7042_s10  ;;  %2002 = vrot.lane.b32.xlu0 %v8148_v40, %s7047_s16  ;;  %v1609_v33 = vadd.f32 %v1608_v4, %v8135_v14 }
 0x205   : > { %5770 = vmatmul.msk.bf16.gmra.mxu2 %vm1575_vm9, %v7959_v13 }
 0x206   : > { %v1684_v30 = vadd.f32 %v1683_v63, %v1645_v26  ;;  %1812 = vmatmul.bf16.gmra.mxu0 %v8064_v51  ;;  %v8171_v51 = vpop.permute.xlu2 %1148 }
 0x207   : > { %v8176_v11 = vpop.f32.mrf.mxu3 }
 0x208   : > { %v1686_v7 = vpop.f32.mrf.mxu2  ;;  %v1723_v56 = vadd.f32 %v1722_v54, %v1684_v30 }
 0x20a   : > { %v8162_v20 = vmax.f32 %v1723_v56, 0.0 }
 0x20b   : > { %v1610_v32 = vpop.f32.mrf.mxu0  ;;  %v1647_v50 = vpop.f32.mrf.mxu1 }
 0x20c   : > { %v1648_v44 = vadd.f32 %v1647_v50, %v1609_v33  ;;  %2004 = vrot.lane.b32.xlu1 %v8162_v20, %s7047_s16  ;;  %1922 = vrot.lane.b32.xlu2 %v8148_v40, %s7049_s17  ;;  %v1611_v9 = vadd.f32 %v1610_v32, %v8171_v51 }
 0x20d   : > { %2164 = vrot.lane.b32.xlu0 %v8162_v20, %s7042_s10 }
 0x20e   : > { %v1687_v13 = vadd.f32 %v1686_v7, %v1648_v44  ;;  %1851 = vmatmul.bf16.gmra.mxu1 %v8055_v8 }
 0x210   : > { %v1688_v12 = vpop.f32.mrf.mxu2  ;;  %v1726_v47 = vadd.f32 %v1725_v59, %v1687_v13 }
 0x212   : > { %v8174_v54 = vmax.f32 %v1726_v47, 0.0 }
 0x213   : > { %v1613_v27 = vpop.f32.mrf.mxu0  ;;  %v1649_v58 = vpop.f32.mrf.mxu1 }
 0x214   : > { %v1650_v5 = vadd.f32 %v1649_v58, %v1611_v9  ;;  %2006 = vrot.lane.b32.xlu1 %v8174_v54, %s7047_s16  ;;  %2082 = vrot.lane.b32.xlu2 %v8148_v40, %s7044_s12  ;;  %v1614_v0 = vadd.f32 %v1613_v27, %v8126_v48 }
 0x215   : > { %1924 = vrot.lane.b32.xlu0 %v8162_v20, %s7049_s17  ;;  %5771 = vmatmul.msk.bf16.gmra.mxu2 %vm1575_vm9, %v8002_v57  ;;  %v8196_v57 = vpop.f32.mrf.mxu3 }
 0x216   : > { %v1689_v8 = vadd.f32 %v1688_v12, %v1650_v5  ;;  %1817 = vmatmul.bf16.gmra.mxu0 %v8089_v31  ;;  %10807 = vst [vmem:[#allocation14_spill] sm:$0xff] %v8196_v57 }
 0x218   : > { %v1691_v59 = vpop.f32.mrf.mxu2  ;;  %v1728_v23 = vadd.f32 %v8124_v19, %v1689_v8 }
 0x21a   : > { %v8188_v62 = vmax.f32 %v1728_v23, 0.0 }
 0x21b   : > { %v1615_v1 = vpop.f32.mrf.mxu0  ;;  %v1652_v63 = vpop.f32.mrf.mxu1 }
 0x21c   : > { %10806 = vst [vmem:[#allocation13_spill] sm:$0xff] %v8188_v62  ;;  %2086 = vrot.lane.b32.xlu1 %v8174_v54, %s7044_s12  ;;  %2008 = vrot.lane.b32.xlu2 %v8188_v62, %s7047_s16  ;;  %v1653_v4 = vadd.f32 %v1652_v63, %v1614_v0  ;;  %v1616_v56 = vadd.f32 %v1615_v1, %v8154_v55 }
 0x21d   : > { %2084 = vrot.lane.b32.xlu0 %v8162_v20, %s7044_s12  ;;  %v8209_v42 = vpop.f32.mrf.mxu3 }
 0x21e   : > { %1856 = vmatmul.bf16.gmra.mxu1 %v8080_v17  ;;  %10808 = vst [vmem:[#allocation15_spill] sm:$0xff] %v8209_v42  ;;  %v1692_v26 = vadd.f32 %v1691_v59, %v1653_v4 }
 0x220   : > { %v1693_v31 = vpop.f32.mrf.mxu2 }
 0x223   : > { %v1618_v61 = vpop.f32.mrf.mxu0  ;;  %v1654_v19 = vpop.f32.mrf.mxu1 }
 0x224   : > { %2422 = vrot.lane.b32.xlu1 %v8174_v54, %s7041_s30  ;;  %2088 = vrot.lane.b32.xlu2 %v8188_v62, %s7044_s12  ;;  %v1619_v58 = vadd.f32 %v1618_v61, %v8140_v49 }
 0x225   : > { %2166 = vrot.lane.b32.xlu0 %v8174_v54, %s7042_s10  ;;  %5772 = vmatmul.msk.bf16.gmra.mxu2 %vm1575_vm9, %v8039_v34  ;;  %v1731_v34 = vadd.f32 %v8133_v22, %v1692_v26  ;;  %v8222_v50 = vpop.f32.mrf.mxu3  ;;  %vm10843_vm9 = vmmov %vm10836_vm0 }
 0x226   : > { %1822 = vmatmul.bf16.gmra.mxu0 %v8114_v43  ;;  %v1655_v43 = vadd.f32 %v1654_v19, %v1616_v56  ;;  %10809 = vst [vmem:[#allocation16_spill] sm:$0xff] %v8222_v50 }
 0x227   : > { %v8220_v32 = vmax.f32 %v1731_v34, 0.0 }
 0x228   : > { %v1696_v17 = vpop.f32.mrf.mxu2  ;;  %v1694_v44 = vadd.f32 %v1693_v31, %v1655_v43 }
 0x22b   : > { %v1620_v30 = vpop.f32.mrf.mxu0  ;;  %v1657_v7 = vpop.f32.mrf.mxu1 }
 0x22c   : > { %2168 = vrot.lane.b32.xlu1 %v8188_v62, %s7042_s10  ;;  %2424 = vrot.lane.b32.xlu2 %v8188_v62, %s7041_s30 }
 0x22d   : > { %1926 = vrot.lane.b32.xlu0 %v8174_v54, %s7049_s17  ;;  %v8242_v5 = vpop.f32.mrf.mxu3 }
 0x22e   : > { %1861 = vmatmul.bf16.gmra.mxu1 %v8105_v21  ;;  %v1733_v21 = vadd.f32 %v8143_v6, %v1694_v44  ;;  %10814 = vst [vmem:[#allocation21_spill] sm:$0xff] %v8242_v5  ;;  %v1658_v6 = vadd.f32 %v1657_v7, %v1619_v58 }
 0x230   : > { %v1698_v33 = vpop.f32.mrf.mxu2  ;;  %v8235_v47 = vmax.f32 %v1733_v21, 0.0  ;;  %v1697_v59 = vadd.f32 %v1696_v17, %v1658_v6  ;;  %v1621_v17 = vadd.f32 %v1620_v30, %v8129_v39 }
 0x232   : > { %v1736_v63 = vadd.f32 %v8159_v15, %v1697_v59 }
 0x233   : > { %v8224_v13 = vpop.f32.mrf.mxu0  ;;  %v1659_v12 = vpop.f32.mrf.mxu1 }
 0x234   : > { %10810 = vst [vmem:[#allocation17_spill] sm:$0xff] %v8224_v13  ;;  %1928 = vrot.lane.b32.xlu1 %v8188_v62, %s7049_s17  ;;  %2426 = vrot.lane.b32.xlu2 %v8220_v32, %s7041_s30  ;;  %v8265_v19 = vmax.f32 %v1736_v63, 0.0  ;;  %v1660_v15 = vadd.f32 %v1659_v12, %v1621_v17 }
 0x235   : > { %2010 = vrot.lane.b32.xlu0 %v8220_v32, %s7047_s16  ;;  %v1759_v31 = vpop.f32.mrf.mxu3 }
 0x236   : > { %v1699_v56 = vadd.f32 %v1698_v33, %v1660_v15  ;;  %v1760_v12 = vadd.f32 %v1759_v31, %v8137_v24 }
 0x238   : > { %v8233_v22 = vpop.f32.mrf.mxu2  ;;  %v1738_v30 = vadd.f32 %v8176_v11, %v1699_v56 }
 0x239   : > { %10811 = vst [vmem:[#allocation18_spill] sm:$0xff] %v8233_v22 }
 0x23a   : > { %v8290_v33 = vmax.f32 %v1738_v30, 0.0 }
 0x23b   : > { %v8237_v9 = vpop.f32.mrf.mxu0  ;;  %v8239_v27 = vpop.f32.mrf.mxu1 }
 0x23c   : > { %10812 = vst [vmem:[#allocation19_spill] sm:$0xff] %v8237_v9  ;;  %2170 = vrot.lane.b32.xlu1 %v8220_v32, %s7042_s10  ;;  %2172 = vrot.lane.b32.xlu2 %v8235_v47, %s7042_s10 }
 0x23d   : > { %10813 = vst [vmem:[#allocation20_spill] sm:$0xff] %v8239_v27  ;;  %2090 = vrot.lane.b32.xlu0 %v8220_v32, %s7044_s12  ;;  %v1761_v7 = vpop.f32.mrf.mxu3 }
 0x23e   : > { %v1762_v31 = vadd.f32 %v1761_v7, %v8145_v16 }
 0x240   : > { %v8250_v8 = vpop.f32.mrf.mxu2 }
 0x241   : > { %10815 = vst [vmem:[#allocation22_spill] sm:$0xff] %v8250_v8 }
 0x243   : > { %v8252_v23 = vpop.f32.mrf.mxu0  ;;  %v8254_v1 = vpop.f32.mrf.mxu1 }
 0x244   : > { %10816 = vst [vmem:[#allocation23_spill] sm:$0xff] %v8252_v23  ;;  %1930 = vrot.lane.b32.xlu1 %v8220_v32, %s7049_s17  ;;  %1932 = vrot.lane.b32.xlu2 %v8235_v47, %s7049_s17 }
 0x245   : > { %10817 = vst [vmem:[#allocation24_spill] sm:$0xff] %v8254_v1  ;;  %2266 = vrot.lane.b32.xlu0 %v8220_v32, %s7045_s14  ;;  %v1764_v21 = vpop.f32.mrf.mxu3 }
 0x248   : > { %v8263_v61 = vpop.f32.mrf.mxu2 }
 0x249   : > { %10818 = vst [vmem:[#allocation25_spill] sm:$0xff] %v8263_v61 }
 0x24b   : > { %v8267_v0 = vpop.f32.mrf.mxu0  ;;  %v8269_v4 = vpop.f32.mrf.mxu1 }
 0x24c   : > { %10819 = vst [vmem:[#allocation26_spill] sm:$0xff] %v8267_v0  ;;  %2012 = vrot.lane.b32.xlu1 %v8235_v47, %s7047_s16  ;;  %2014 = vrot.lane.b32.xlu2 %v8265_v19, %s7047_s16 }
 0x24d   : > { %10820 = vst [vmem:[#allocation27_spill] sm:$0xff] %v8269_v4  ;;  %2428 = vrot.lane.b32.xlu0 %v8235_v47, %s7041_s30 }
 0x250   : > { %v8278_v26 = vpop.f32.mrf.mxu2 }
 0x251   : > { %10821 = vst [vmem:[#allocation28_spill] sm:$0xff] %v8278_v26 }
 0x253   : > { %v8280_v34 = vpop.f32.mrf.mxu1  ;;  %v1798_v43 = vpop.f32.mrf.mxu0 }
 0x254   : > { %10822 = vst [vmem:[#allocation29_spill] sm:$0xff] %v8280_v34  ;;  %2092 = vrot.lane.b32.xlu1 %v8235_v47, %s7044_s12  ;;  %2174 = vrot.lane.b32.xlu2 %v8265_v19, %s7042_s10  ;;  %v1799_v58 = vadd.f32 %v1798_v43, %v1760_v12 }
 0x255   : > { %2430 = vrot.lane.b32.xlu0 %v8265_v19, %s7041_s30 }
 0x258   : > { %v1876_v44 = vpop.f32.mrf.mxu2 }
 0x25b   : > { %v1800_v6 = vpop.f32.mrf.mxu0  ;;  %v1837_v59 = vpop.f32.mrf.mxu1 }
 0x25c   : > { %v1838_v63 = vadd.f32 %v1837_v59, %v1799_v58  ;;  %2268 = vrot.lane.b32.xlu1 %v8235_v47, %s7045_s14  ;;  %1934 = vrot.lane.b32.xlu2 %v8265_v19, %s7049_s17  ;;  %v1801_v56 = vadd.f32 %v1800_v6, %v1762_v31  ;;  %v1765_v59 = vadd.f32 %v1764_v21, %v8135_v14 }
 0x25d   : > { %2016 = vrot.lane.b32.xlu0 %v8290_v33, %s7047_s16 }
 0x25e   : > { %v1877_v11 = vadd.f32 %v1876_v44, %v1838_v63  ;;  %v8298_v17 = vpop.permute.xlu2 %2162  ;;  %v1766_v44 = vpop.f32.mrf.mxu3 }
 0x260   : > { %v1878_v24 = vpop.f32.mrf.mxu2  ;;  %v8301_v15 = vmax.f32 %v1877_v11, 0.0 }
 0x262   : > { %v2242_v43 = vpack.c.bf16 %v8301_v15, %v8148_v40 }
 0x263   : > { %v1803_v30 = vpop.f32.mrf.mxu0  ;;  %v1839_v12 = vpop.f32.mrf.mxu1 }
 0x264   : > { %2250 = vst [vmem:[#allocation3 + $0x100] sm:$0xff] %v2242_v43  ;;  %v1840_v58 = vadd.f32 %v1839_v12, %v1801_v56  ;;  %2094 = vrot.lane.b32.xlu1 %v8265_v19, %s7044_s12  ;;  %2096 = vrot.lane.b32.xlu2 %v8290_v33, %s7044_s12  ;;  %v1804_v11 = vadd.f32 %v1803_v30, %v1765_v59 }
 0x265   : > { %2176 = vrot.lane.b32.xlu0 %v8290_v33, %s7042_s10 }
 0x266   : > { %v1879_v16 = vadd.f32 %v1878_v24, %v1840_v58  ;;  %v8311_v7 = vpop.permute.xlu2 %1922  ;;  %v1769_v24 = vpop.f32.mrf.mxu3  ;;  %v1767_v58 = vadd.f32 %v1766_v44, %v8171_v51 }
 0x268   : > { %v1881_v6 = vpop.f32.mrf.mxu2  ;;  %v8314_v63 = vmax.f32 %v1879_v16, 0.0 }
 0x26a   : > { %v2243_v31 = vpack.c.bf16 %v8314_v63, %v8162_v20 }
 0x26b   : > { %v1805_v56 = vpop.f32.mrf.mxu0  ;;  %v1842_v43 = vpop.f32.mrf.mxu1 }
 0x26c   : > { %2251 = vst [vmem:[#allocation3 + $0x108] sm:$0xff] %v2243_v31  ;;  %v1843_v12 = vadd.f32 %v1842_v43, %v1804_v11  ;;  %2270 = vrot.lane.b32.xlu1 %v8265_v19, %s7045_s14  ;;  %2272 = vrot.lane.b32.xlu2 %v8290_v33, %s7045_s14  ;;  %v1806_v59 = vadd.f32 %v1805_v56, %v1767_v58 }
 0x26d   : > { %1936 = vrot.lane.b32.xlu0 %v8290_v33, %s7049_s17 }
 0x26e   : > { %v1882_v14 = vadd.f32 %v1881_v6, %v1843_v12  ;;  %v8324_v21 = vpop.permute.xlu2 %2082  ;;  %v1770_v12 = vadd.f32 %v1769_v24, %v8126_v48  ;;  %v1771_v58 = vpop.f32.mrf.mxu3 }
 0x270   : > { %v1883_v30 = vpop.f32.mrf.mxu2  ;;  %v8327_v16 = vmax.f32 %v1882_v14, 0.0 }
 0x272   : > { %v2244_v11 = vpack.c.bf16 %v8327_v16, %v8174_v54 }
 0x273   : > { %v1808_v31 = vpop.f32.mrf.mxu0  ;;  %v1844_v43 = vpop.f32.mrf.mxu1 }
 0x274   : > { %2252 = vst [vmem:[#allocation3 + $0x110] sm:$0xff] %v2244_v11  ;;  %v1845_v5 = vadd.f32 %v1844_v43, %v1806_v59  ;;  %2432 = vrot.lane.b32.xlu1 %v8290_v33, %s7041_s30  ;;  %2018 = vrot.lane.b32.xlu2 %v8301_v15, %s7047_s16  ;;  %v1809_v59 = vadd.f32 %v1808_v31, %v1770_v12 }
 0x275   : > { %2020 = vrot.lane.b32.xlu0 %v8314_v63, %s7047_s16 }
 0x276   : > { %v1884_v51 = vadd.f32 %v1883_v30, %v1845_v5  ;;  %v8337_v44 = vpop.permute.xlu2 %2008  ;;  %v8339_v6 = vpop.permute.xlu0 %2002 }
 0x278   : > { %v1886_v56 = vpop.f32.mrf.mxu2  ;;  %v8342_v14 = vmax.f32 %v1884_v51, 0.0  ;;  %v1772_v51 = vadd.f32 %v1771_v58, %v8154_v55 }
 0x27a   : > { %v2245_v11 = vpack.c.bf16 %v8342_v14, %v8188_v62 }
 0x27b   : > { %v1810_v43 = vpop.f32.mrf.mxu0  ;;  %v1847_v26 = vpop.f32.mrf.mxu1 }
 0x27c   : > { %2253 = vst [vmem:[#allocation3 + $0x118] sm:$0xff] %v2245_v11  ;;  %v1848_v50 = vadd.f32 %v1847_v26, %v1809_v59  ;;  %2178 = vrot.lane.b32.xlu1 %v8301_v15, %s7042_s10  ;;  %2180 = vrot.lane.b32.xlu2 %v8314_v63, %s7042_s10  ;;  %v1811_v12 = vadd.f32 %v1810_v43, %v1772_v51  ;;  %v1774_v11 = vpop.f32.mrf.mxu3 }
 0x27d   : > { %2022 = vrot.lane.b32.xlu0 %v8327_v16, %s7047_s16 }
 0x27e   : > { %v1887_v48 = vadd.f32 %v1886_v56, %v1848_v50  ;;  %v8352_v5 = vpop.permute.xlu1 %2004  ;;  %v8354_v24 = vpop.permute.xlu2 %2088 }
 0x27f   : > { %v8356_v30 = vpop.permute.xlu0 %2164 }
 0x280   : > { %v1888_v31 = vpop.f32.mrf.mxu2  ;;  %v8359_v26 = vmax.f32 %v1887_v48, 0.0  ;;  %v1775_v48 = vadd.f32 %v1774_v11, %v8140_v49 }
 0x282   : > { %v2246_v59 = vpack.c.bf16 %v8359_v26, %v8220_v32 }
 0x283   : > { %v1849_v34 = vpop.f32.mrf.mxu1  ;;  %v1813_v50 = vpop.f32.mrf.mxu0 }
 0x284   : > { %2254 = vst [vmem:[#allocation3 + $0x120] sm:$0xff] %v2246_v59  ;;  %v1850_v0 = vadd.f32 %v1849_v34, %v1811_v12  ;;  %1938 = vrot.lane.b32.xlu1 %v8301_v15, %s7049_s17  ;;  %1940 = vrot.lane.b32.xlu2 %v8314_v63, %s7049_s17  ;;  %v1814_v12 = vadd.f32 %v1813_v50, %v1775_v48 }
 0x285   : > { %2102 = vrot.lane.b32.xlu0 %v8327_v16, %s7044_s12 }
 0x286   : > { %v1889_v55 = vadd.f32 %v1888_v31, %v1850_v0  ;;  %v8369_v56 = vpop.permute.xlu1 %2006  ;;  %v8371_v58 = vpop.permute.xlu2 %2424 }
 0x287   : > { %10823 = vst [vmem:[#allocation30_spill] sm:$0xff] %v8371_v58  ;;  %v8373_v43 = vpop.permute.xlu0 %1924  ;;  %v1776_v0 = vpop.f32.mrf.mxu3 }
 0x288   : > { %v8376_v34 = vmax.f32 %v1889_v55, 0.0  ;;  %v1891_v51 = vpop.f32.mrf.mxu2 }
 0x28a   : > { %v2247_v59 = vpack.c.bf16 %v8376_v34, %v8235_v47 }
 0x28b   : > { %v1852_v61 = vpop.f32.mrf.mxu1  ;;  %v1815_v50 = vpop.f32.mrf.mxu0 }
 0x28c   : > { %2255 = vst [vmem:[#allocation3 + $0x128] sm:$0xff] %v2247_v59  ;;  %v1853_v42 = vadd.f32 %v1852_v61, %v1814_v12  ;;  %2098 = vrot.lane.b32.xlu1 %v8301_v15, %s7044_s12  ;;  %2100 = vrot.lane.b32.xlu2 %v8314_v63, %s7044_s12  ;;  %v1777_v61 = vadd.f32 %v1776_v0, %v8129_v39 }
 0x28d   : > { %2184 = vrot.lane.b32.xlu0 %v8342_v14, %s7042_s10 }
 0x28e   : > { %v1892_v49 = vadd.f32 %v1891_v51, %v1853_v42  ;;  %v8386_v31 = vpop.permute.xlu1 %2086  ;;  %v8388_v11 = vpop.permute.xlu2 %2426  ;;  %v1816_v12 = vadd.f32 %v1815_v50, %v1777_v61 }
 0x28f   : > { %v8390_v55 = vpop.permute.xlu0 %2084 }
 0x290   : > { %v8393_v48 = vmax.f32 %v1892_v49, 0.0  ;;  %v1893_v8 = vpop.f32.mrf.mxu2 }
 0x292   : > { %v2248_v59 = vpack.c.bf16 %v8393_v48, %v8265_v19 }
 0x293   : > { %v1854_v4 = vpop.f32.mrf.mxu1 }
 0x294   : > { %2256 = vst [vmem:[#allocation3 + $0x130] sm:$0xff] %v2248_v59  ;;  %v1855_v23 = vadd.f32 %v1854_v4, %v1816_v12  ;;  %2024 = vrot.lane.b32.xlu1 %v8342_v14, %s7047_s16  ;;  %2182 = vrot.lane.b32.xlu2 %v8327_v16, %s7042_s10 }
 0x295   : > { %1944 = vrot.lane.b32.xlu0 %v8342_v14, %s7049_s17 }
 0x296   : > { %v1894_v39 = vadd.f32 %v1893_v8, %v1855_v23  ;;  %v8403_v42 = vpop.permute.xlu1 %2422  ;;  %v8405_v51 = vpop.permute.xlu2 %2172 }
 0x297   : > { %10824 = vst [vmem:[#allocation31_spill] sm:$0xff] %v8403_v42  ;;  %v8407_v0 = vpop.permute.xlu0 %2166 }
 0x298   : > { %v8409_v49 = vmax.f32 %v1894_v39, 0.0 }
 0x29a   : > { %v2249_v4 = vpack.c.bf16 %v8409_v49, %v8290_v33 }
 0x29c   : > { %2257 = vst [vmem:[#allocation3 + $0x138] sm:$0xff] %v2249_v4  ;;  %2104 = vrot.lane.b32.xlu1 %v8342_v14, %s7044_s12  ;;  %1942 = vrot.lane.b32.xlu2 %v8327_v16, %s7049_s17 }
 0x29d   : > { %2186 = vrot.lane.b32.xlu0 %v8359_v26, %s7042_s10 }
 0x29e   : > { %v8419_v8 = vpop.permute.xlu1 %2168  ;;  %v8421_v23 = vpop.permute.xlu2 %1932 }
 0x29f   : > { %10825 = vst [vmem:[#allocation32_spill] sm:$0xff] %v8421_v23  ;;  %v8423_v50 = vpop.permute.xlu0 %1926 }
 0x2a4   : > { %2442 = vrot.lane.b32.xlu1 %v8359_v26, %s7041_s30  ;;  %2026 = vrot.lane.b32.xlu2 %v8359_v26, %s7047_s16 }
 0x2a5   : > { %1946 = vrot.lane.b32.xlu0 %v8359_v26, %s7049_s17 }
 0x2a6   : > { %v8431_v61 = vpop.permute.xlu1 %1928  ;;  %v8433_v12 = vpop.permute.xlu2 %2014 }
 0x2a7   : > { %10826 = vst [vmem:[#allocation33_spill] sm:$0xff] %v8433_v12  ;;  %v8435_v59 = vpop.permute.xlu0 %2010 }
 0x2ac   : > { %2188 = vrot.lane.b32.xlu1 %v8376_v34, %s7042_s10  ;;  %2106 = vrot.lane.b32.xlu2 %v8359_v26, %s7044_s12 }
 0x2ad   : > { %2028 = vrot.lane.b32.xlu0 %v8376_v34, %s7047_s16 }
 0x2ae   : > { %v8443_v39 = vpop.permute.xlu1 %2170  ;;  %v8445_v4 = vpop.permute.xlu2 %2174 }
 0x2af   : > { %10827 = vst [vmem:[#allocation34_spill] sm:$0xff] %v8445_v4  ;;  %v8447_v57 = vpop.permute.xlu0 %2090 }
 0x2b4   : > { %1948 = vrot.lane.b32.xlu1 %v8376_v34, %s7049_s17  ;;  %2282 = vrot.lane.b32.xlu2 %v8359_v26, %s7045_s14 }
 0x2b5   : > { %2108 = vrot.lane.b32.xlu0 %v8376_v34, %s7044_s12 }
 0x2b6   : > { %v8455_v1 = vpop.permute.xlu1 %1930  ;;  %v8457_v9 = vpop.permute.xlu2 %1934 }
 0x2b7   : > { %10828 = vst [vmem:[#allocation35_spill] sm:$0xff] %v8457_v9  ;;  %v8459_v22 = vpop.permute.xlu0 %2266 }
 0x2bc   : > { %2030 = vrot.lane.b32.xlu1 %v8393_v48, %s7047_s16  ;;  %2444 = vrot.lane.b32.xlu2 %v8376_v34, %s7041_s30 }
 0x2bd   : > { %2284 = vrot.lane.b32.xlu0 %v8376_v34, %s7045_s14 }
 0x2be   : > { %v8467_v27 = vpop.permute.xlu1 %2012  ;;  %v8469_v13 = vpop.permute.xlu2 %2096 }
 0x2bf   : > { %10829 = vst [vmem:[#allocation36_spill] sm:$0xff] %v8469_v13  ;;  %v8471_v10 = vpop.permute.xlu0 %2428 }
 0x2c4   : > { %2190 = vrot.lane.b32.xlu1 %v8393_v48, %s7042_s10  ;;  %2446 = vrot.lane.b32.xlu2 %v8393_v48, %s7041_s30 }
 0x2c5   : > { %2110 = vrot.lane.b32.xlu0 %v8393_v48, %s7044_s12 }
 0x2c6   : > { %v8479_v45 = vpop.permute.xlu1 %2092  ;;  %v8481_v3 = vpop.permute.xlu2 %2272 }
 0x2c7   : > { %10830 = vst [vmem:[#allocation37_spill] sm:$0xff] %v8479_v45  ;;  %v8483_v2 = vpop.permute.xlu0 %2430 }
 0x2c8   : > { %10831 = vst [vmem:[#allocation38_spill] sm:$0xff] %v8481_v3 }
 0x2cc   : > { %1950 = vrot.lane.b32.xlu1 %v8393_v48, %s7049_s17  ;;  %2032 = vrot.lane.b32.xlu2 %v8409_v49, %s7047_s16 }
 0x2cd   : > { %2286 = vrot.lane.b32.xlu0 %v8393_v48, %s7045_s14 }
 0x2ce   : > { %v8491_v58 = vpop.permute.xlu1 %2268  ;;  %v2019_v42 = vpop.permute.xlu2 %2018 }
 0x2cf   : > { %10832 = vst [vmem:[#allocation39_spill] sm:$0xff] %v8491_v58  ;;  %v8493_v13 = vpop.permute.xlu0 %2016  ;;  %v2034_v3 = vsel %vm572_vm8, %v8339_v6, %v2019_v42  ;;  %v2042_v9 = vsel %vm572_vm8, %v2019_v42, %v8339_v6 }
 0x2d0   : > { %10833 = vst [vmem:[#allocation40_spill] sm:$0xff] %v8493_v13  ;;  %v2050_v4 = vmul.f32 %v7694_v35, %v2042_v9  ;;  %v2051_v12 = vmul.f32 %v7697_v41, %v2034_v3 }
 0x2d2   : > { %v2066_v45 = vpack.c.bf16 %v2051_v12, %v2050_v4 }
 0x2d4   : > { %2074 = vst [vmem:[#allocation3 + $0x40] sm:$0xff] %v2066_v45  ;;  %2112 = vrot.lane.b32.xlu1 %v8409_v49, %s7044_s12  ;;  %2192 = vrot.lane.b32.xlu2 %v8409_v49, %s7042_s10 }
 0x2d5   : > { %2448 = vrot.lane.b32.xlu0 %v8409_v49, %s7041_s30 }
 0x2d6   : > { %v8509_v58 = vpop.permute.xlu1 %2094  ;;  %v2181_v13 = vpop.permute.xlu2 %2180 }
 0x2d7   : > { %10834 = vst [vmem:[#allocation41_spill] sm:$0xff] %v8509_v58  ;;  %v8511_v23 = vpop.permute.xlu0 %2176  ;;  %v2195_v3 = vsel %vm10835_vm10, %v8356_v30, %v2181_v13  ;;  %v2203_v45 = vsel %vm10836_vm0, %v2181_v13, %v8356_v30  ;;  %vm10848_vm10 = vcmp.lt.s32.totalorder %v7215_v25, 112 }
 0x2d8   : > { %v2212_v9 = vmul.f32 %v7379_v37, %v2203_v45  ;;  %v2213_v6 = vmul.f32 %v7382_v38, %v2195_v3  ;;  %vm10849_vm0 = vmmov %vm10848_vm10 }
 0x2da   : > { %v2227_v42 = vpack.c.bf16 %v2213_v6, %v2212_v9 }
 0x2dc   : > { %2235 = vst [vmem:[#allocation3 + $0xc8] sm:$0xff] %v2227_v42  ;;  %2288 = vrot.lane.b32.xlu1 %v8409_v49, %s7045_s14  ;;  %1952 = vrot.lane.b32.xlu2 %v8409_v49, %s7049_s17 }
 0x2dd   : > { %2438 = vrot.lane.b32.xlu0 %v8327_v16, %s7041_s30 }
 0x2de   : > { %v8527_v12 = vpop.permute.xlu1 %2270  ;;  %v1941_v4 = vpop.permute.xlu2 %1940 }
 0x2df   : > { %10837 = vst [vmem:[#allocation42_spill] sm:$0xff] %v8527_v12  ;;  %v8529_v58 = vpop.permute.xlu0 %1936  ;;  %v1955_v13 = vsel %vm551_vm3, %v8373_v43, %v1941_v4  ;;  %v1963_v30 = vsel %vm551_vm3, %v1941_v4, %v8373_v43 }
 0x2e0   : > { %10838 = vst [vmem:[#allocation43_spill] sm:$0xff] %v8529_v58  ;;  %v1972_v3 = vmul.f32 %v7803_v46, %v1963_v30  ;;  %v1973_v45 = vmul.f32 %v7806_v60, %v1955_v13 }
 0x2e2   : > { %v1987_v9 = vpack.c.bf16 %v1973_v45, %v1972_v3 }
 0x2e4   : > { %1995 = vst [vmem:[#allocation3 + $0x8] sm:$0xff] %v1987_v9  ;;  %2440 = vrot.lane.b32.xlu1 %v8342_v14, %s7041_s30  ;;  %2262 = vrot.lane.b32.xlu2 %v8174_v54, %s7045_s14 }
 0x2e5   : > { %2264 = vrot.lane.b32.xlu0 %v8188_v62, %s7045_s14 }
 0x2e6   : > { %v8545_v6 = vpop.permute.xlu1 %2432  ;;  %v2101_v42 = vpop.permute.xlu2 %2100 }
 0x2e7   : > { %10839 = vst [vmem:[#allocation44_spill] sm:$0xff] %v8545_v6  ;;  %v2021_v12 = vpop.permute.xlu0 %2020  ;;  %v2115_v43 = vsel %vm593_vm4, %v8390_v55, %v2101_v42  ;;  %v2123_v4 = vsel %vm593_vm4, %v2101_v42, %v8390_v55 }
 0x2e8   : > { %v2035_v13 = vsel %vm572_vm8, %v8352_v5, %v2021_v12  ;;  %v2043_v30 = vsel %vm572_vm8, %v2021_v12, %v8352_v5  ;;  %v2132_v3 = vmul.f32 %v7511_v18, %v2123_v4  ;;  %v2133_v45 = vmul.f32 %v7514_v36, %v2115_v43 }
 0x2e9   : > { %v2052_v9 = vmul.f32 %v7694_v35, %v2043_v30  ;;  %v2053_v6 = vmul.f32 %v7697_v41, %v2035_v13 }
 0x2ea   : > { %v2147_v58 = vpack.c.bf16 %v2133_v45, %v2132_v3 }
 0x2eb   : > { %v2067_v62 = vpack.c.bf16 %v2053_v6, %v2052_v9 }
 0x2ec   : > { %2155 = vst [vmem:[#allocation3 + $0x88] sm:$0xff] %v2147_v58  ;;  %2278 = vrot.lane.b32.xlu1 %v8327_v16, %s7045_s14  ;;  %2280 = vrot.lane.b32.xlu2 %v8342_v14, %s7045_s14 }
 0x2ed   : > { %2075 = vst [vmem:[#allocation3 + $0x48] sm:$0xff] %v2067_v62  ;;  %2418 = vrot.lane.b32.xlu0 %v8148_v40, %s7041_s30 }
 0x2ee   : > { %v2179_v5 = vpop.permute.xlu1 %2178  ;;  %v2183_v55 = vpop.permute.xlu2 %2182 }
 0x2ef   : > { %v2023_v12 = vpop.permute.xlu0 %2022  ;;  %v2194_v42 = vsel %vm10840_vm14, %v8298_v17, %v2179_v5  ;;  %v2202_v58 = vsel %vm10841_vm2, %v2179_v5, %v8298_v17  ;;  %v2196_v6 = vsel %vm10842_vm15, %v8407_v0, %v2183_v55  ;;  %v2204_v62 = vsel %vm10843_vm9, %v2183_v55, %v8407_v0  ;;  %vm10850_vm14 = vmmov %vm10849_vm0 }
 0x2f0   : > { %v2036_v43 = vsel %vm572_vm8, %v8369_v56, %v2023_v12  ;;  %v2044_v4 = vsel %vm572_vm8, %v2023_v12, %v8369_v56  ;;  %v2210_v13 = vmul.f32 %v7379_v37, %v2202_v58  ;;  %v2211_v17 = vmul.f32 %v7382_v38, %v2194_v42  ;;  %vm10851_vm2 = vmmov %vm10849_vm0 }
 0x2f1   : > { %v2054_v30 = vmul.f32 %v7694_v35, %v2044_v4  ;;  %v2055_v3 = vmul.f32 %v7697_v41, %v2036_v43  ;;  %v2214_v45 = vmul.f32 %v7379_v37, %v2204_v62  ;;  %v2215_v0 = vmul.f32 %v7382_v38, %v2196_v6  ;;  %vm10852_vm15 = vmmov %vm10844_vm1 }
 0x2f2   : > { %v2226_v9 = vpack.c.bf16 %v2211_v17, %v2210_v13  ;;  %vm10853_vm9 = vmmov %vm10844_vm1 }
 0x2f3   : > { %v2068_v5 = vpack.c.bf16 %v2055_v3, %v2054_v30  ;;  %v2228_v55 = vpack.c.bf16 %v2215_v0, %v2214_v45 }
 0x2f4   : > { %2234 = vst [vmem:[#allocation3 + $0xc0] sm:$0xff] %v2226_v9  ;;  %2420 = vrot.lane.b32.xlu1 %v8162_v20, %s7041_s30  ;;  %2434 = vrot.lane.b32.xlu2 %v8301_v15, %s7041_s30 }
 0x2f5   : > { %2076 = vst [vmem:[#allocation3 + $0x50] sm:$0xff] %v2068_v5  ;;  %2436 = vrot.lane.b32.xlu0 %v8314_v63, %s7041_s30 }
 0x2f6   : > { %2236 = vst [vmem:[#allocation3 + $0xd0] sm:$0xff] %v2228_v55  ;;  %v1939_v56 = vpop.permute.xlu1 %1938  ;;  %v1943_v12 = vpop.permute.xlu2 %1942 }
 0x2f7   : > { %v2103_v42 = vpop.permute.xlu0 %2102  ;;  %v1954_v58 = vsel %vm551_vm3, %v8311_v7, %v1939_v56  ;;  %v1962_v6 = vsel %vm551_vm3, %v1939_v56, %v8311_v7  ;;  %v1956_v62 = vsel %vm551_vm3, %v8423_v50, %v1943_v12  ;;  %v1964_v43 = vsel %vm551_vm3, %v1943_v12, %v8423_v50 }
 0x2f8   : > { %v2116_v4 = vsel %vm593_vm4, %v8386_v31, %v2103_v42  ;;  %v2124_v13 = vsel %vm593_vm4, %v2103_v42, %v8386_v31  ;;  %v1970_v17 = vmul.f32 %v7803_v46, %v1962_v6  ;;  %v1971_v7 = vmul.f32 %v7806_v60, %v1954_v58 }
 0x2f9   : > { %v2134_v30 = vmul.f32 %v7511_v18, %v2124_v13  ;;  %v2135_v3 = vmul.f32 %v7514_v36, %v2116_v4  ;;  %v1974_v45 = vmul.f32 %v7803_v46, %v1964_v43  ;;  %v1975_v50 = vmul.f32 %v7806_v60, %v1956_v62 }
 0x2fa   : > { %v1986_v0 = vpack.c.bf16 %v1971_v7, %v1970_v17 }
 0x2fb   : > { %v2148_v9 = vpack.c.bf16 %v2135_v3, %v2134_v30  ;;  %v1988_v5 = vpack.c.bf16 %v1975_v50, %v1974_v45 }
 0x2fc   : > { %1994 = vst [vmem:[#allocation3] sm:$0xff] %v1986_v0  ;;  %2258 = vrot.lane.b32.xlu1 %v8148_v40, %s7045_s14  ;;  %2260 = vrot.lane.b32.xlu2 %v8162_v20, %s7045_s14 }
 0x2fd   : > { %2156 = vst [vmem:[#allocation3 + $0x90] sm:$0xff] %v2148_v9  ;;  %2274 = vrot.lane.b32.xlu0 %v8301_v15, %s7045_s14 }
 0x2fe   : > { %1996 = vst [vmem:[#allocation3 + $0x10] sm:$0xff] %v1988_v5  ;;  %v2099_v31 = vpop.permute.xlu1 %2098  ;;  %v2027_v55 = vpop.permute.xlu2 %2026 }
 0x2ff   : > { %v2185_v56 = vpop.permute.xlu0 %2184  ;;  %v2114_v12 = vsel %vm593_vm4, %v8324_v21, %v2099_v31  ;;  %v2122_v42 = vsel %vm593_vm4, %v2099_v31, %v8324_v21  ;;  %v2038_v58 = vsel %vm572_vm8, %v8435_v59, %v2027_v55  ;;  %v2046_v6 = vsel %vm572_vm8, %v2027_v55, %v8435_v59 }
 0x300   : > { %v2197_v62 = vsel %vm10844_vm1, %v8419_v8, %v2185_v56  ;;  %v2205_v43 = vsel %vm10845_vm6, %v2185_v56, %v8419_v8  ;;  %v2130_v4 = vmul.f32 %v7511_v18, %v2122_v42  ;;  %v2131_v21 = vmul.f32 %v7514_v36, %v2114_v12  ;;  %vm10854_vm1 = vmmov %vm10849_vm0 }
 0x301   : > { %v2216_v13 = vmul.f32 %v7379_v37, %v2205_v43  ;;  %v2217_v17 = vmul.f32 %v7382_v38, %v2197_v62  ;;  %v2058_v7 = vmul.f32 %v7694_v35, %v2046_v6  ;;  %v2059_v59 = vmul.f32 %v7697_v41, %v2038_v58  ;;  %vm10855_vm6 = vmmov %vm10849_vm0 }
 0x302   : > { %v2146_v30 = vpack.c.bf16 %v2131_v21, %v2130_v4 }
 0x303   : > { %v2229_v3 = vpack.c.bf16 %v2217_v17, %v2216_v13  ;;  %v2070_v45 = vpack.c.bf16 %v2059_v59, %v2058_v7 }
 0x304   : > { %2154 = vst [vmem:[#allocation3 + $0x80] sm:$0xff] %v2146_v30  ;;  %2276 = vrot.lane.b32.xlu1 %v8314_v63, %s7045_s14  ;;  %2350 = vrot.lane.b32.xlu2 %v8265_v19, %s7043_s11 }
 0x305   : > { %2237 = vst [vmem:[#allocation3 + $0xd8] sm:$0xff] %v2229_v3  ;;  %2352 = vrot.lane.b32.xlu0 %v8290_v33, %s7043_s11 }
 0x306   : > { %2078 = vst [vmem:[#allocation3 + $0x60] sm:$0xff] %v2070_v45  ;;  %v2025_v8 = vpop.permute.xlu1 %2024  ;;  %v2107_v50 = vpop.permute.xlu2 %2106 }
 0x307   : > { %v1945_v0 = vpop.permute.xlu0 %1944  ;;  %v2037_v9 = vsel %vm572_vm8, %v8337_v44, %v2025_v8  ;;  %v2045_v5 = vsel %vm572_vm8, %v2025_v8, %v8337_v44  ;;  %v2118_v31 = vsel %vm593_vm4, %v8447_v57, %v2107_v50  ;;  %v2126_v55 = vsel %vm593_vm4, %v2107_v50, %v8447_v57 }
 0x308   : > { %v1957_v56 = vsel %vm551_vm3, %v8431_v61, %v1945_v0  ;;  %v1965_v12 = vsel %vm551_vm3, %v1945_v0, %v8431_v61  ;;  %v2056_v42 = vmul.f32 %v7694_v35, %v2045_v5  ;;  %v2057_v44 = vmul.f32 %v7697_v41, %v2037_v9 }
 0x309   : > { %v1976_v58 = vmul.f32 %v7803_v46, %v1965_v12  ;;  %v1977_v6 = vmul.f32 %v7806_v60, %v1957_v56  ;;  %v2138_v62 = vmul.f32 %v7511_v18, %v2126_v55  ;;  %v2139_v57 = vmul.f32 %v7514_v36, %v2118_v31 }
 0x30a   : > { %v2069_v43 = vpack.c.bf16 %v2057_v44, %v2056_v42 }
 0x30b   : > { %v1989_v4 = vpack.c.bf16 %v1977_v6, %v1976_v58  ;;  %v2150_v21 = vpack.c.bf16 %v2139_v57, %v2138_v62 }
 0x30c   : > { %2077 = vst [vmem:[#allocation3 + $0x58] sm:$0xff] %v2069_v43  ;;  %2366 = vrot.lane.b32.xlu1 %v8393_v48, %s7043_s11  ;;  %2368 = vrot.lane.b32.xlu2 %v8409_v49, %s7043_s11 }
 0x30d   : > { %1997 = vst [vmem:[#allocation3 + $0x18] sm:$0xff] %v1989_v4  ;;  %2510 = vrot.lane.b32.xlu0 %v8265_v19, %s7046_s15 }
 0x30e   : > { %2158 = vst [vmem:[#allocation3 + $0xa0] sm:$0xff] %v2150_v21  ;;  %v2105_v61 = vpop.permute.xlu1 %2104  ;;  %v2283_v13 = vpop.permute.xlu2 %2282 }
 0x30f   : > { %v2187_v17 = vpop.permute.xlu0 %2186  ;;  %v2117_v7 = vsel %vm593_vm4, %v8354_v24, %v2105_v61  ;;  %v2125_v59 = vsel %vm593_vm4, %v2105_v61, %v8354_v24  ;;  %v2294_v30 = vsel %vm637_vm12, %v8459_v22, %v2283_v13  ;;  %v2302_v19 = vsel %vm637_vm12, %v2283_v13, %v8459_v22 }
 0x310   : > { %v2198_v3 = vsel %vm10846_vm5, %v8443_v39, %v2187_v17  ;;  %v2206_v45 = vsel %vm10847_vm7, %v2187_v17, %v8443_v39  ;;  %v2136_v8 = vmul.f32 %v7511_v18, %v2125_v59  ;;  %v2137_v24 = vmul.f32 %v7514_v36, %v2117_v7  ;;  %vm10860_vm7 = vmmov %vm10846_vm5 }
 0x311   : > { %v2218_v50 = vmul.f32 %v7379_v37, %v2206_v45  ;;  %v2219_v0 = vmul.f32 %v7382_v38, %v2198_v3  ;;  %v2314_v9 = vmul.f32 %v7574_v28, %v2294_v30  ;;  %v2315_v22 = vmul.f32 %v7577_v29, %v2302_v19 }
 0x312   : > { %v2149_v5 = vpack.c.bf16 %v2137_v24, %v2136_v8 }
 0x313   : > { %v2230_v31 = vpack.c.bf16 %v2219_v0, %v2218_v50  ;;  %v2326_v55 = vpack.c.bf16 %v2315_v22, %v2314_v9 }
 0x314   : > { %2157 = vst [vmem:[#allocation3 + $0x98] sm:$0xff] %v2149_v5  ;;  %2512 = vrot.lane.b32.xlu1 %v8290_v33, %s7046_s15  ;;  %2526 = vrot.lane.b32.xlu2 %v8393_v48, %s7046_s15 }
 0x315   : > { %2238 = vst [vmem:[#allocation3 + $0xe0] sm:$0xff] %v2230_v31  ;;  %2528 = vrot.lane.b32.xlu0 %v8409_v49, %s7046_s15 }
 0x316   : > { %2334 = vst [vmem:[#allocation3 + $0x160] sm:$0xff] %v2326_v55  ;;  %v2443_v39 = vpop.permute.xlu1 %2442  ;;  %v2445_v56 = vpop.permute.xlu2 %2444 }
 0x317   : > { %v1947_v12 = vpop.permute.xlu0 %1946  ;;  %v2454_v42 = vsel %vm10848_vm10, %v8388_v11, %v2443_v39  ;;  %v2462_v44 = vsel %vm10849_vm0, %v2443_v39, %v8388_v11  ;;  %v2455_v33 = vsel %vm10850_vm14, %v8471_v10, %v2445_v56  ;;  %v2463_v48 = vsel %vm10851_vm2, %v2445_v56, %v8471_v10  ;;  %v10856_v39 = vld [vmem:[#allocation32_spill] sm:$0xff]  ;;  %vm10864_vm10 = vmmov %vm10846_vm5 }
 0x318   : > { %v1958_v49 = vsel %vm551_vm3, %v8455_v1, %v1947_v12  ;;  %v1966_v58 = vsel %vm551_vm3, %v1947_v12, %v8455_v1  ;;  %v2474_v6 = vmul.f32 %v7291_v52, %v2454_v42  ;;  %v2475_v11 = vmul.f32 %v7294_v53, %v2462_v44  ;;  %v10857_v42 = vld [vmem:[#allocation40_spill] sm:$0xff]  ;;  %v10858_v44 = vld [vmem:[#allocation37_spill] sm:$0xff]  ;;  %vm10865_vm0 = vmmov %vm10846_vm5 }
 0x319   : > { %v1978_v62 = vmul.f32 %v7803_v46, %v1966_v58  ;;  %v1979_v57 = vmul.f32 %v7806_v60, %v1958_v49  ;;  %v2476_v43 = vmul.f32 %v7291_v52, %v2455_v33  ;;  %v2477_v10 = vmul.f32 %v7294_v53, %v2463_v48  ;;  %vm10872_vm14 = vmmov %vm10854_vm1 }
 0x31a   : > { %v2486_v4 = vpack.c.bf16 %v2475_v11, %v2474_v6  ;;  %vm10873_vm2 = vmmov %vm10854_vm1 }
 0x31b   : > { %v1990_v21 = vpack.c.bf16 %v1979_v57, %v1978_v62  ;;  %v2487_v61 = vpack.c.bf16 %v2477_v10, %v2476_v43 }
 0x31c   : > { %2494 = vst [vmem:[#allocation3 + $0x1e0] sm:$0xff] %v2486_v4  ;;  %2346 = vrot.lane.b32.xlu1 %v8220_v32, %s7043_s11  ;;  %2348 = vrot.lane.b32.xlu2 %v8235_v47, %s7043_s11 }
 0x31d   : > { %1998 = vst [vmem:[#allocation3 + $0x20] sm:$0xff] %v1990_v21  ;;  %2362 = vrot.lane.b32.xlu0 %v8359_v26, %s7043_s11 }
 0x31e   : > { %2495 = vst [vmem:[#allocation3 + $0x1e8] sm:$0xff] %v2487_v61  ;;  %v2189_v1 = vpop.permute.xlu1 %2188  ;;  %v2447_v13 = vpop.permute.xlu2 %2446 }
 0x31f   : > { %v2029_v17 = vpop.permute.xlu0 %2028  ;;  %v2199_v7 = vsel %vm10852_vm15, %v8405_v51, %v2189_v1  ;;  %v2207_v59 = vsel %vm10853_vm9, %v2189_v1, %v8405_v51  ;;  %v2456_v30 = vsel %vm10854_vm1, %v8483_v2, %v2447_v13  ;;  %v2464_v19 = vsel %vm10855_vm6, %v2447_v13, %v8483_v2  ;;  %v10859_v13 = vld [vmem:[#allocation33_spill] sm:$0xff]  ;;  %vm10876_vm15 = vmmov %vm10854_vm1 }
 0x320   : > { %v2039_v3 = vsel %vm572_vm8, %v8467_v27, %v2029_v17  ;;  %v2047_v45 = vsel %vm572_vm8, %v2029_v17, %v8467_v27  ;;  %v2220_v8 = vmul.f32 %v7379_v37, %v2207_v59  ;;  %v2221_v51 = vmul.f32 %v7382_v38, %v2199_v7  ;;  %v10861_v59 = vld [vmem:[#allocation39_spill] sm:$0xff]  ;;  %vm10877_vm9 = vmmov %vm10854_vm1 }
 0x321   : > { %v2060_v24 = vmul.f32 %v7694_v35, %v2047_v45  ;;  %v2061_v50 = vmul.f32 %v7697_v41, %v2039_v3  ;;  %v2478_v0 = vmul.f32 %v7291_v52, %v2456_v30  ;;  %v2479_v2 = vmul.f32 %v7294_v53, %v2464_v19  ;;  %vm10879_vm6 = vmmov %vm10854_vm1 }
 0x322   : > { %v2231_v9 = vpack.c.bf16 %v2221_v51, %v2220_v8 }
 0x323   : > { %v2071_v22 = vpack.c.bf16 %v2061_v50, %v2060_v24  ;;  %v2488_v5 = vpack.c.bf16 %v2479_v2, %v2478_v0 }
 0x324   : > { %2239 = vst [vmem:[#allocation3 + $0xe8] sm:$0xff] %v2231_v9  ;;  %2364 = vrot.lane.b32.xlu1 %v8376_v34, %s7043_s11  ;;  %2506 = vrot.lane.b32.xlu2 %v8220_v32, %s7046_s15  ;;  %v10862_v9 = vld [vmem:[#allocation13_spill] sm:$0xff] }
 0x325   : > { %2079 = vst [vmem:[#allocation3 + $0x68] sm:$0xff] %v2071_v22  ;;  %2508 = vrot.lane.b32.xlu0 %v8235_v47, %s7046_s15 }
 0x326   : > { %2496 = vst [vmem:[#allocation3 + $0x1f0] sm:$0xff] %v2488_v5  ;;  %v1949_v27 = vpop.permute.xlu1 %1948  ;;  %v2033_v31 = vpop.permute.xlu2 %2032 }
 0x327   : > { %v2109_v55 = vpop.permute.xlu0 %2108  ;;  %v1959_v56 = vsel %vm551_vm3, %v10856_v39, %v1949_v27  ;;  %v1967_v12 = vsel %vm551_vm3, %v1949_v27, %v10856_v39  ;;  %v2041_v32 = vsel %vm572_vm8, %v10857_v42, %v2033_v31  ;;  %v2049_v47 = vsel %vm572_vm8, %v2033_v31, %v10857_v42  ;;  %v10863_v31 = vld [vmem:[#allocation34_spill] sm:$0xff] }
 0x328   : > { %v2119_v33 = vsel %vm593_vm4, %v10858_v44, %v2109_v55  ;;  %v2127_v48 = vsel %vm593_vm4, %v2109_v55, %v10858_v44  ;;  %v1980_v49 = vmul.f32 %v7803_v46, %v1967_v12  ;;  %v1981_v58 = vmul.f32 %v7806_v60, %v1959_v56  ;;  %v10866_v56 = vld [vmem:[#allocation43_spill] sm:$0xff] }
 0x329   : > { %v2140_v6 = vmul.f32 %v7511_v18, %v2127_v48  ;;  %v2141_v11 = vmul.f32 %v7514_v36, %v2119_v33  ;;  %v2064_v62 = vmul.f32 %v7694_v35, %v2049_v47  ;;  %v2065_v57 = vmul.f32 %v7697_v41, %v2041_v32  ;;  %v10867_v32 = vld [vmem:[#allocation41_spill] sm:$0xff] }
 0x32a   : > { %v1991_v43 = vpack.c.bf16 %v1981_v58, %v1980_v49 }
 0x32b   : > { %v2151_v10 = vpack.c.bf16 %v2141_v11, %v2140_v6  ;;  %v2073_v4 = vpack.c.bf16 %v2065_v57, %v2064_v62 }
 0x32c   : > { %1999 = vst [vmem:[#allocation3 + $0x28] sm:$0xff] %v1991_v43  ;;  %2522 = vrot.lane.b32.xlu1 %v8359_v26, %s7046_s15  ;;  %2524 = vrot.lane.b32.xlu2 %v8376_v34, %s7046_s15 }
 0x32d   : > { %2159 = vst [vmem:[#allocation3 + $0xa8] sm:$0xff] %v2151_v10  ;;  %2342 = vrot.lane.b32.xlu0 %v8174_v54, %s7043_s11 }
 0x32e   : > { %2081 = vst [vmem:[#allocation3 + $0x78] sm:$0xff] %v2073_v4  ;;  %v2031_v21 = vpop.permute.xlu1 %2030  ;;  %v2193_v61 = vpop.permute.xlu2 %2192 }
 0x32f   : > { %v2285_v1 = vpop.permute.xlu0 %2284  ;;  %v2040_v17 = vsel %vm572_vm8, %v10859_v13, %v2031_v21  ;;  %v2048_v7 = vsel %vm572_vm8, %v2031_v21, %v10859_v13  ;;  %v2201_v26 = vsel %vm10846_vm5, %v8511_v23, %v2193_v61  ;;  %v2209_v34 = vsel %vm10860_vm7, %v2193_v61, %v8511_v23  ;;  %v6623_v61 = vld [vmem:[#allocation3 + $0x64] sm:$0xf0]  ;;  %vm10880_vm5 = vmmov %vm10854_vm1 }
 0x330   : > { %v2295_v30 = vsel %vm637_vm12, %v10861_v59, %v2285_v1  ;;  %v2303_v19 = vsel %vm637_vm12, %v2285_v1, %v10861_v59  ;;  %v2062_v3 = vmul.f32 %v7694_v35, %v2048_v7  ;;  %v2063_v45 = vmul.f32 %v7697_v41, %v2040_v17  ;;  %v5903_v17 = vld [vmem:[#allocation3 + $0x60] sm:$0xf]  ;;  %vm10881_vm7 = vmmov %vm10854_vm1 }
 0x331   : > { %v2316_v8 = vmul.f32 %v7574_v28, %v2295_v30  ;;  %v2317_v51 = vmul.f32 %v7577_v29, %v2303_v19  ;;  %v2224_v24 = vmul.f32 %v7379_v37, %v2209_v34  ;;  %v2225_v23 = vmul.f32 %v7382_v38, %v2201_v26  ;;  %v10868_v26 = vld [vmem:[#allocation35_spill] sm:$0xff]  ;;  %v10869_v30 = vld [vmem:[#allocation42_spill] sm:$0xff] }
 0x332   : > { %v2072_v50 = vpack.c.bf16 %v2063_v45, %v2062_v3  ;;  %v5904_v59 = vor.u32 %v6623_v61, %v5903_v17 }
 0x333   : > { %v2327_v0 = vpack.c.bf16 %v2317_v51, %v2316_v8  ;;  %v2233_v2 = vpack.c.bf16 %v2225_v23, %v2224_v24  ;;  %v6621_v24 = vld [vmem:[#allocation3 + $0x54] sm:$0xf0] }
 0x334   : > { %2080 = vst [vmem:[#allocation3 + $0x70] sm:$0xff] %v2072_v50  ;;  %2344 = vrot.lane.b32.xlu1 %v10862_v9, %s7043_s11  ;;  %2358 = vrot.lane.b32.xlu2 %v8327_v16, %s7043_s11 }
 0x335   : > { %2335 = vst [vmem:[#allocation3 + $0x168] sm:$0xff] %v2327_v0  ;;  %2360 = vrot.lane.b32.xlu0 %v8342_v14, %s7043_s11  ;;  %v6625_v4 = vld [vmem:[#allocation3 + $0x74] sm:$0xf0]  ;;  %v5895_v0 = vld [vmem:[#allocation3 + $0x50] sm:$0xf] }
 0x336   : > { %2241 = vst [vmem:[#allocation3 + $0xf8] sm:$0xff] %v2233_v2  ;;  %v2191_v22 = vpop.permute.xlu1 %2190  ;;  %v1953_v5 = vpop.permute.xlu2 %1952 }
 0x337   : > { %v2111_v27 = vpop.permute.xlu0 %2110  ;;  %v2200_v55 = vsel %vm10864_vm10, %v10863_v31, %v2191_v22  ;;  %v2208_v39 = vsel %vm10865_vm0, %v2191_v22, %v10863_v31  ;;  %v1961_v12 = vsel %vm551_vm3, %v10866_v56, %v1953_v5  ;;  %v1969_v42 = vsel %vm551_vm3, %v1953_v5, %v10866_v56  ;;  %v6639_v31 = vld [vmem:[#allocation3 + $0xe4] sm:$0xf0]  ;;  %v5887_v56 = vld [vmem:[#allocation3 + $0x40] sm:$0xf]  ;;  %vm10882_vm10 = vmmov %vm10854_vm1 }
 0x338   : > { %v2120_v47 = vsel %vm593_vm4, %v10867_v32, %v2111_v27  ;;  %v2128_v44 = vsel %vm593_vm4, %v2111_v27, %v10867_v32  ;;  %v2222_v33 = vmul.f32 %v7379_v37, %v2208_v39  ;;  %v2223_v48 = vmul.f32 %v7382_v38, %v2200_v55  ;;  %v6619_v27 = vld [vmem:[#allocation3 + $0x44] sm:$0xf0]  ;;  %vm10883_vm0 = vmmov %vm10854_vm1 }
 0x339   : > { %v2142_v49 = vmul.f32 %v7511_v18, %v2128_v44  ;;  %v2143_v58 = vmul.f32 %v7514_v36, %v2120_v47  ;;  %v1984_v6 = vmul.f32 %v7803_v46, %v1969_v42  ;;  %v1985_v11 = vmul.f32 %v7806_v60, %v1961_v12  ;;  %v5967_v12 = vld [vmem:[#allocation3 + $0xe0] sm:$0xf] }
 0x33a   : > { %v2232_v62 = vpack.c.bf16 %v2223_v48, %v2222_v33  ;;  %v5896_v22 = vor.u32 %v6621_v24, %v5895_v0  ;;  %v5888_v44 = vor.u32 %v6619_v27, %v5887_v56  ;;  %v5968_v33 = vor.u32 %v6639_v31, %v5967_v12  ;;  %v10871_v48 = vld [vmem:[#allocation44_spill] sm:$0xff]  ;;  %v5863_v31 = vld [vmem:[#allocation3 + $0x10] sm:$0xf] }
 0x33b   : > { %v2152_v57 = vpack.c.bf16 %v2143_v58, %v2142_v49  ;;  %v1993_v43 = vpack.c.bf16 %v1985_v11, %v1984_v6  ;;  %v5911_v10 = vld [vmem:[#allocation3 + $0x70] sm:$0xf] }
 0x33c   : > { %2240 = vst [vmem:[#allocation3 + $0xf0] sm:$0xff] %v2232_v62  ;;  %2502 = vrot.lane.b32.xlu1 %v8174_v54, %s7046_s15  ;;  %2504 = vrot.lane.b32.xlu2 %v10862_v9, %s7046_s15  ;;  %v5912_v21 = vor.u32 %v6625_v4, %v5911_v10 }
 0x33d   : > { %2160 = vst [vmem:[#allocation3 + $0xb0] sm:$0xff] %v2152_v57  ;;  %2518 = vrot.lane.b32.xlu0 %v8327_v16, %s7046_s15  ;;  %v6641_v9 = vld [vmem:[#allocation3 + $0xf4] sm:$0xf0] }
 0x33e   : > { %2001 = vst [vmem:[#allocation3 + $0x38] sm:$0xff] %v1993_v43  ;;  %v1951_v1 = vpop.permute.xlu1 %1950  ;;  %3195 = vmatpush.bf16.msra.mxu3 %v5912_v21  ;;  %v8869_v13 = vpop.permute.xlu2 %2262  ;;  %v6637_v43 = vld [vmem:[#allocation3 + $0xd4] sm:$0xf0] }
 0x33f   : > { %v2287_v7 = vpop.permute.xlu0 %2286  ;;  %v1960_v54 = vsel %vm551_vm3, %v10868_v26, %v1951_v1  ;;  %v1968_v34 = vsel %vm551_vm3, %v1951_v1, %v10868_v26  ;;  %v5959_v1 = vld [vmem:[#allocation3 + $0xd0] sm:$0xf]  ;;  %v6615_v26 = vld [vmem:[#allocation3 + $0x24] sm:$0xf0] }
 0x340   : > { %v2296_v16 = vsel %vm637_vm12, %v10869_v30, %v2287_v7  ;;  %v2304_v19 = vsel %vm637_vm12, %v2287_v7, %v10869_v30  ;;  %v1982_v3 = vmul.f32 %v7803_v46, %v1968_v34  ;;  %v1983_v45 = vmul.f32 %v7806_v60, %v1960_v54  ;;  %v5951_v54 = vld [vmem:[#allocation3 + $0xc0] sm:$0xf] }
 0x341   : > { %v2318_v8 = vmul.f32 %v7574_v28, %v2296_v16  ;;  %v2319_v51 = vmul.f32 %v7577_v29, %v2304_v19  ;;  %v5960_v7 = vor.u32 %v6637_v43, %v5959_v1  ;;  %v5871_v30 = vld [vmem:[#allocation3 + $0x20] sm:$0xf]  ;;  %v6635_v16 = vld [vmem:[#allocation3 + $0xc4] sm:$0xf0] }
 0x342   : > { %v1992_v23 = vpack.c.bf16 %v1983_v45, %v1982_v3  ;;  %3196 = vmatpush.bf16.msra.mxu3 %v5904_v59  ;;  %v10874_v3 = vld [vmem:[#allocation38_spill] sm:$0xff]  ;;  %v5952_v24 = vor.u32 %v6635_v16, %v5951_v54  ;;  %v2680_v16 = vld [vmem:[%s10724_s7 + $0x30] sm:$0xff] }
 0x343   : > { %v2328_v50 = vpack.c.bf16 %v2319_v51, %v2318_v8  ;;  %v5975_v2 = vld [vmem:[#allocation3 + $0xf0] sm:$0xf]  ;;  %v5872_v51 = vor.u32 %v6615_v26, %v5871_v30 }
 0x344   : > { %2000 = vst [vmem:[#allocation3 + $0x30] sm:$0xff] %v1992_v23  ;;  %2520 = vrot.lane.b32.xlu1 %v8342_v14, %s7046_s15  ;;  %2338 = vrot.lane.b32.xlu2 %v8148_v40, %s7043_s11  ;;  %v5976_v5 = vor.u32 %v6641_v9, %v5975_v2  ;;  %v10870_v14 = vld [vmem:[#allocation36_spill] sm:$0xff]  ;;  %v10875_v23 = vld [vmem:[#allocation31_spill] sm:$0xff] }
 0x345   : > { %2336 = vst [vmem:[#allocation3 + $0x170] sm:$0xff] %v2328_v50  ;;  %2340 = vrot.lane.b32.xlu0 %v8162_v20, %s7043_s11  ;;  %v6617_v61 = vld [vmem:[#allocation3 + $0x34] sm:$0xf0]  ;;  %v5943_v12 = vld [vmem:[#allocation3 + $0xb0] sm:$0xf] }
 0x346   : > { %v2113_v55 = vpop.permute.xlu1 %2112  ;;  %3197 = vmatpush.bf16.msra.mxu3 %v5896_v22  ;;  %3224 = vmatpush.bf16.msra.mxu0 %v5976_v5  ;;  %v8893_v39 = vpop.permute.xlu2 %2280  ;;  %v6613_v5 = vld [vmem:[#allocation3 + $0x14] sm:$0xf0] }
 0x347   : > { %v2449_v42 = vpop.permute.xlu0 %2448  ;;  %v2121_v32 = vsel %vm593_vm4, %v10870_v14, %v2113_v55  ;;  %v2129_v47 = vsel %vm593_vm4, %v2113_v55, %v10870_v14  ;;  %v5855_v55 = vld [vmem:[#allocation3] sm:$0xf]  ;;  %v6103_v14 = vld [vmem:[#allocation3 + $0x1f0] sm:$0xf] }
 0x348   : > { %v2457_v49 = vsel %vm10872_vm14, %v10871_v48, %v2449_v42  ;;  %v2465_v58 = vsel %vm10873_vm2, %v2449_v42, %v10871_v48  ;;  %v2144_v6 = vmul.f32 %v7511_v18, %v2129_v47  ;;  %v2145_v11 = vmul.f32 %v7514_v36, %v2121_v32  ;;  %v6631_v48 = vld [vmem:[#allocation3 + $0xa4] sm:$0xf0] }
 0x349   : > { %v2480_v62 = vmul.f32 %v7291_v52, %v2457_v49  ;;  %v2481_v57 = vmul.f32 %v7294_v53, %v2465_v58  ;;  %v5864_v32 = vor.u32 %v6613_v5, %v5863_v31  ;;  %v5935_v58 = vld [vmem:[#allocation3 + $0xa0] sm:$0xf]  ;;  %vm3182_vm14 = vcmask 523264  }
 0x34a   : > { %v2153_v10 = vpack.c.bf16 %v2145_v11, %v2144_v6  ;;  %3198 = vmatpush.bf16.msra.mxu3 %v5888_v44  ;;  %3225 = vmatpush.bf16.msra.mxu0 %v5968_v33  ;;  %v6611_v33 = vld [vmem:[#allocation3 + $0x4] sm:$0xf0]  ;;  %v6095_v6 = vld [vmem:[#allocation3 + $0x1e0] sm:$0xf] }
 0x34b   : > { %v2489_v4 = vpack.c.bf16 %v2481_v57, %v2480_v62  ;;  %v5879_v21 = vld [vmem:[#allocation3 + $0x30] sm:$0xf]  ;;  %v6592_v57 = vld [vmem:[%s10720_s3 + $0x10] sm:$0xf0]  ;;  %v6031_v5 = vld [vmem:[#allocation3 + $0x160] sm:$0xf] }
 0x34c   : > { %2161 = vst [vmem:[#allocation3 + $0xb8] sm:$0xff] %v2153_v10  ;;  %2354 = vrot.lane.b32.xlu1 %v8301_v15, %s7043_s11  ;;  %2356 = vrot.lane.b32.xlu2 %v8314_v63, %s7043_s11  ;;  %v5880_v17 = vor.u32 %v6617_v61, %v5879_v21  ;;  %v10878_v10 = vld [vmem:[#allocation30_spill] sm:$0xff]  ;;  %v5856_v21 = vor.u32 %v6611_v33, %v5855_v55  ;;  %v6624_v55 = vld [vmem:[#allocation3 + $0x74] sm:$0xf] }
 0x34d   : > { %2497 = vst [vmem:[#allocation3 + $0x1f8] sm:$0xff] %v2489_v4  ;;  %2498 = vrot.lane.b32.xlu0 %v8148_v40, %s7046_s15  ;;  %v5936_v61 = vor.u32 %v6631_v48, %v5935_v58 }
 0x34e   : > { %v2289_v34 = vpop.permute.xlu1 %2288  ;;  %3199 = vmatpush.bf16.msra.mxu3 %v5880_v17  ;;  %3226 = vmatpush.bf16.msra.mxu0 %v5960_v7  ;;  %v8917_v59 = vpop.permute.xlu2 %2434 }
 0x34f   : > { %v2439_v19 = vpop.permute.xlu0 %2438  ;;  %v2297_v45 = vsel %vm637_vm12, %v10874_v3, %v2289_v34  ;;  %v2305_v8 = vsel %vm637_vm12, %v2289_v34, %v10874_v3 }
 0x350   : > { %v2452_v40 = vsel %vm10876_vm15, %v10875_v23, %v2439_v19  ;;  %v2460_v50 = vsel %vm10877_vm9, %v2439_v19, %v10875_v23  ;;  %v2320_v0 = vmul.f32 %v7574_v28, %v2297_v45  ;;  %v2321_v2 = vmul.f32 %v7577_v29, %v2305_v8  ;;  %v2681_v19 = vld [vmem:[%s10724_s7 + $0x38] sm:$0xff]  ;;  %v2678_v8 = vld [vmem:[%s10724_s7 + $0x20] sm:$0xff] }
 0x351   : > { %v2470_v9 = vmul.f32 %v7291_v52, %v2452_v40  ;;  %v2471_v22 = vmul.f32 %v7294_v53, %v2460_v50  ;;  %v5927_v40 = vld [vmem:[#allocation3 + $0x90] sm:$0xf] }
 0x352   : > { %v2329_v27 = vpack.c.bf16 %v2321_v2, %v2320_v0  ;;  %3200 = vmatpush.bf16.msra.mxu3 %v5872_v51  ;;  %3227 = vmatpush.bf16.msra.mxu0 %v5952_v24  ;;  %v6039_v24 = vld [vmem:[#allocation3 + $0x170] sm:$0xf]  ;;  %v5919_v2 = vld [vmem:[#allocation3 + $0x80] sm:$0xf] }
 0x353   : > { %v2484_v56 = vpack.c.bf16 %v2471_v22, %v2470_v9  ;;  %v6633_v42 = vld [vmem:[#allocation3 + $0xb4] sm:$0xf0]  ;;  %v6655_v9 = vld [vmem:[#allocation3 + $0x164] sm:$0xf0] }
 0x354   : > { %2337 = vst [vmem:[#allocation3 + $0x178] sm:$0xff] %v2329_v27  ;;  %2500 = vrot.lane.b32.xlu1 %v8162_v20, %s7046_s15  ;;  %2514 = vrot.lane.b32.xlu2 %v8301_v15, %s7046_s15  ;;  %v5944_v47 = vor.u32 %v6633_v42, %v5943_v12  ;;  %v6673_v44 = vld [vmem:[#allocation3 + $0x1f4] sm:$0xf0]  ;;  %v6671_v20 = vld [vmem:[#allocation3 + $0x1e4] sm:$0xf0] }
 0x355   : > { %2492 = vst [vmem:[#allocation3 + $0x1d0] sm:$0xff] %v2484_v56  ;;  %2516 = vrot.lane.b32.xlu0 %v8314_v63, %s7046_s15  ;;  %v6104_v49 = vor.u32 %v6673_v44, %v6103_v14  ;;  %v5775_v15 = vld [vmem:[%s10720_s3] sm:$0xf]  ;;  %v6096_v30 = vor.u32 %v6671_v20, %v6095_v6  ;;  %v6627_v22 = vld [vmem:[#allocation3 + $0x84] sm:$0xf0]  ;;  %v6032_v44 = vor.u32 %v6655_v9, %v6031_v5 }
 0x356   : > { %v2441_v11 = vpop.permute.xlu1 %2440  ;;  %3201 = vmatpush.bf16.msra.mxu3 %v5864_v32  ;;  %3228 = vmatpush.bf16.msra.mxu0 %v5944_v47  ;;  %v8941_v62 = vpop.permute.xlu2 %2260  ;;  %v8971_v3 = vor.u32 %v6592_v57, %v5775_v15  ;;  %v6590_v56 = vld [vmem:[%s10720_s3 + $0x4] sm:$0xf]  ;;  %v5777_v12 = vld [vmem:[%s10720_s3 + $0x14] sm:$0xf0]  ;;  %v5920_v47 = vor.u32 %v6627_v22, %v5919_v2  ;;  %v5913_v6 = vld [vmem:[#allocation3 + $0x78] sm:$0xf0] }
 0x357   : > { %v2265_v43 = vpop.permute.xlu0 %2264  ;;  %v2453_v63 = vsel %vm10854_vm1, %v10878_v10, %v2441_v11  ;;  %v2461_v4 = vsel %vm10879_vm6, %v2441_v11, %v10878_v10  ;;  %3282 = vmatpush.bf16.msra.mxu2 %v6104_v49  ;;  %v2679_v15 = vld [vmem:[%s10724_s7 + $0x28] sm:$0xff]  ;;  %v9004_v57 = vor.u32 %v6590_v56, %v5777_v12  ;;  %v6618_v9 = vld [vmem:[#allocation3 + $0x44] sm:$0xf]  ;;  %v5797_v56 = vld [vmem:[%s10720_s3 + $0x3c] sm:$0xf0] }
 0x358   : > { %v2293_v1 = vsel %vm637_vm12, %v2265_v43, %v8893_v39  ;;  %v2301_v17 = vsel %vm637_vm12, %v8893_v39, %v2265_v43  ;;  %v2472_v7 = vmul.f32 %v7291_v52, %v2453_v63  ;;  %v2473_v26 = vmul.f32 %v7294_v53, %v2461_v4  ;;  %v6629_v39 = vld [vmem:[#allocation3 + $0x94] sm:$0xf0] }
 0x359   : > { %v2312_v54 = vmul.f32 %v7574_v28, %v2293_v1  ;;  %v2313_v34 = vmul.f32 %v7577_v29, %v2301_v17  ;;  %v5928_v0 = vor.u32 %v6629_v39, %v5927_v40  ;;  %v6620_v39 = vld [vmem:[#allocation3 + $0x54] sm:$0xf] }
 0x35a   : > { %v2485_v45 = vpack.c.bf16 %v2473_v26, %v2472_v7  ;;  %3202 = vmatpush.bf16.msra.mxu3 %v5856_v21  ;;  %3229 = vmatpush.bf16.msra.mxu0 %v5936_v61  ;;  %v6622_v61 = vld [vmem:[#allocation3 + $0x64] sm:$0xf]  ;;  %v5897_v26 = vld [vmem:[#allocation3 + $0x58] sm:$0xf0] }
 0x35b   : > { %v2325_v51 = vpack.c.bf16 %v2313_v34, %v2312_v54  ;;  %3283 = vmatpush.bf16.msra.mxu2 %v6096_v30  ;;  %v6657_v23 = vld [vmem:[#allocation3 + $0x174] sm:$0xf0]  ;;  %v5795_v54 = vld [vmem:[%s10720_s3 + $0x28] sm:$0xf]  ;;  %v6597_v34 = vld [vmem:[%s10720_s3 + $0x38] sm:$0xf0] }
 0x35c   : > { %2493 = vst [vmem:[#allocation3 + $0x1d8] sm:$0xff] %v2485_v45  ;;  %2714 = vperm.xlu1 %6912, %v2680_v16   ;;  %2719 = vperm.xlu2 %6910, %v2681_v19   ;;  %v6040_v50 = vor.u32 %v6657_v23, %v6039_v24  ;;  %v6087_v63 = vld [vmem:[#allocation3 + $0x1d0] sm:$0xf]  ;;  %v9019_v24 = vor.u32 %v6597_v34, %v5795_v54  ;;  %v5889_v23 = vld [vmem:[#allocation3 + $0x48] sm:$0xf0] }
 0x35d   : > { %2333 = vst [vmem:[#allocation3 + $0x158] sm:$0xff] %v2325_v51  ;;  %2704 = vperm.xlu0 %6911, %v2678_v8   ;;  %3203 = vmatmul.bf16.vlgmr.msra.gmra.mxu3 %v8971_v3  ;;  %v5900_v51 = vor.u32 %v6620_v39, %v5897_v26  ;;  %v5892_v22 = vor.u32 %v6618_v9, %v5889_v23  ;;  %v10885_v39 = vld [vmem:[#allocation10_spill] sm:$0xff]  ;;  %v6600_v9 = vld [vmem:[%s10720_s3 + $0x54] sm:$0xf] }
 0x35e   : > { %3253 = vmatpush.bf16.msra.mxu1 %v6040_v50  ;;  %v2279_v27 = vpop.permute.xlu1 %2278  ;;  %3230 = vmatpush.bf16.msra.mxu0 %v5928_v0  ;;  %v8977_v31 = vpop.permute.xlu2 %2350 }
 0x35f   : > { %v2419_v42 = vpop.permute.xlu0 %2418  ;;  %v2292_v14 = vsel %vm637_vm12, %v8869_v13, %v2279_v27  ;;  %v2300_v32 = vsel %vm637_vm12, %v2279_v27, %v8869_v13  ;;  %v5916_v13 = vor.u32 %v6624_v55, %v5913_v6  ;;  %v6616_v27 = vld [vmem:[#allocation3 + $0x34] sm:$0xf]  ;;  %v6595_v55 = vld [vmem:[%s10720_s3 + $0x2c] sm:$0xf] }
 0x360   : > { %v2450_v33 = vsel %vm10880_vm5, %v2419_v42, %v8917_v59  ;;  %v2458_v48 = vsel %vm10881_vm7, %v8917_v59, %v2419_v42  ;;  %v2310_v49 = vmul.f32 %v7574_v28, %v2292_v14  ;;  %v2311_v58 = vmul.f32 %v7577_v29, %v2300_v32  ;;  %v5905_v59 = vld [vmem:[#allocation3 + $0x68] sm:$0xf0] }
 0x361   : > { %v2466_v11 = vmul.f32 %v7291_v52, %v2450_v33  ;;  %v2467_v20 = vmul.f32 %v7294_v53, %v2458_v48  ;;  %v5908_v1 = vor.u32 %v6622_v61, %v5905_v59 }
 0x362   : > { %v2324_v43 = vpack.c.bf16 %v2311_v58, %v2310_v49  ;;  %3231 = vmatpush.bf16.msra.mxu0 %v5920_v47  ;;  %3254 = vmatpush.bf16.msra.mxu1 %v6032_v44  ;;  %v5881_v47 = vld [vmem:[#allocation3 + $0x38] sm:$0xf0]  ;;  %v9034_v49 = vor.u32 %v6595_v55, %v5797_v56  ;;  %v5873_v58 = vld [vmem:[#allocation3 + $0x28] sm:$0xf0] }
 0x363   : > { %v2482_v10 = vpack.c.bf16 %v2467_v20, %v2466_v11  ;;  %v6669_v4 = vld [vmem:[#allocation3 + $0x1d4] sm:$0xf0]  ;;  %v5884_v48 = vor.u32 %v6616_v27, %v5881_v47  ;;  %v10886_v47 = vld [vmem:[#allocation11_spill] sm:$0xff] }
 0x364   : > { %2332 = vst [vmem:[#allocation3 + $0x150] sm:$0xff] %v2324_v43  ;;  %2709 = vperm.xlu1 %6912, %v2679_v15   ;;  %v6088_v21 = vor.u32 %v6669_v4, %v6087_v63  ;;  %v6653_v0 = vld [vmem:[#allocation3 + $0x154] sm:$0xf0]  ;;  %v5815_v63 = vld [vmem:[%s10720_s3 + $0x50] sm:$0xf] }
 0x365   : > { %2490 = vst [vmem:[#allocation3 + $0x1c0] sm:$0xff] %v2482_v10  ;;  %3232 = vmatmul.bf16.vlgmr.msra.gmra.mxu0 %v9004_v57  ;;  %v5865_v10 = vld [vmem:[#allocation3 + $0x18] sm:$0xf0]  ;;  %v6602_v4 = vld [vmem:[%s10720_s3 + $0x60] sm:$0xf0] }
 0x366   : > { %3340 = vmatpush.bf16.msrb.mxu0 %v5916_v13  ;;  %v2421_v17 = vpop.permute.xlu1 %2420  ;;  %3284 = vmatpush.bf16.msra.mxu2 %v6088_v21  ;;  %v2369_v7 = vpop.permute.xlu2 %2368  ;;  %v6614_v13 = vld [vmem:[#allocation3 + $0x24] sm:$0xf] }
 0x367   : > { %v2437_v30 = vpop.permute.xlu0 %2436  ;;  %v5876_v43 = vor.u32 %v6614_v13, %v5873_v58 }
 0x368   : > { %v2451_v16 = vsel %vm10882_vm10, %v2421_v17, %v2437_v30  ;;  %v2459_v19 = vsel %vm10883_vm0, %v2437_v30, %v2421_v17  ;;  %v6612_v30 = vld [vmem:[#allocation3 + $0x14] sm:$0xf] }
 0x369   : > { %v2468_v45 = vmul.f32 %v7291_v52, %v2451_v16  ;;  %v2469_v8 = vmul.f32 %v7294_v53, %v2459_v19  ;;  %v10884_v16 = vld [vmem:[#allocation9_spill] sm:$0xff] }
 0x36a   : > { %3341 = vmatpush.bf16.msrb.mxu0 %v5908_v1 }
 0x36b   : > { %v2483_v40 = vpack.c.bf16 %v2469_v8, %v2468_v45  ;;  %v6023_v50 = vld [vmem:[#allocation3 + $0x150] sm:$0xf] }
 0x36c   : > { %v6024_v2 = vor.u32 %v6653_v0, %v6023_v50  ;;  %v6079_v11 = vld [vmem:[#allocation3 + $0x1c0] sm:$0xf] }
 0x36d   : > { %2491 = vst [vmem:[#allocation3 + $0x1c8] sm:$0xff] %v2483_v40  ;;  %3208 = vmatmul.bf16.gmra.mxu3 %v9019_v24  ;;  %v6610_v40 = vld [vmem:[#allocation3 + $0x4] sm:$0xf] }
 0x36e   : > { %3342 = vmatpush.bf16.msrb.mxu0 %v5900_v51  ;;  %v2259_v5 = vpop.permute.xlu1 %2258  ;;  %3255 = vmatpush.bf16.msra.mxu1 %v6024_v2  ;;  %v2527_v42 = vpop.permute.xlu2 %2526  ;;  %v9059_v51 = vor.u32 %v6602_v4, %v5815_v63  ;;  %v6007_v4 = vld [vmem:[#allocation3 + $0x130] sm:$0xf] }
 0x36f   : > { %v2275_v12 = vpop.permute.xlu0 %2274 }
 0x370   : > { %v2290_v14 = vsel %vm637_vm12, %v2259_v5, %v2275_v12  ;;  %v2298_v32 = vsel %vm637_vm12, %v2275_v12, %v2259_v5 }
 0x371   : > { %v2306_v44 = vmul.f32 %v7574_v28, %v2290_v14  ;;  %v2307_v33 = vmul.f32 %v7577_v29, %v2298_v32 }
 0x372   : > { %3343 = vmatpush.bf16.msrb.mxu0 %v5892_v22  ;;  %v5817_v22 = vld [vmem:[%s10720_s3 + $0x64] sm:$0xf0] }
 0x373   : > { %v2322_v6 = vpack.c.bf16 %v2307_v33, %v2306_v44  ;;  %v10887_v33 = vld [vmem:[#allocation12_spill] sm:$0xff]  ;;  %v9082_v58 = vor.u32 %v6600_v9, %v5817_v22  ;;  %v5837_v9 = vld [vmem:[%s10720_s3 + $0x8c] sm:$0xf0] }
 0x374   : > { %v6667_v20 = vld [vmem:[#allocation3 + $0x1c4] sm:$0xf0] }
 0x375   : > { %2330 = vst [vmem:[#allocation3 + $0x140] sm:$0xff] %v2322_v6  ;;  %3237 = vmatmul.bf16.gmra.mxu0 %v9034_v49  ;;  %v6080_v15 = vor.u32 %v6667_v20, %v6079_v11 }
 0x376   : > { %3344 = vmatpush.bf16.msrb.mxu0 %v5884_v48  ;;  %v2277_v59 = vpop.permute.xlu1 %2276  ;;  %v9057_v8 = vpop.permute.xlu2 %2348 }
 0x377   : > { %v2353_v21 = vpop.permute.xlu0 %2352  ;;  %v2291_v61 = vsel %vm637_vm12, %v8941_v62, %v2277_v59  ;;  %v2299_v1 = vsel %vm637_vm12, %v2277_v59, %v8941_v62  ;;  %3285 = vmatpush.bf16.msra.mxu2 %v6080_v15  ;;  %v5868_v62 = vor.u32 %v6612_v30, %v5865_v10  ;;  %v5835_v59 = vld [vmem:[%s10720_s3 + $0x78] sm:$0xf]  ;;  %v6607_v10 = vld [vmem:[%s10720_s3 + $0x88] sm:$0xf0] }
 0x378   : > { %v2377_v17 = vsel %vm658_vm11, %v2353_v21, %v2369_v7  ;;  %v2385_v26 = vsel %vm658_vm11, %v2369_v7, %v2353_v21  ;;  %v2308_v54 = vmul.f32 %v7574_v28, %v2291_v61  ;;  %v2309_v34 = vmul.f32 %v7577_v29, %v2299_v1  ;;  %v5857_v7 = vld [vmem:[#allocation3 + $0x8] sm:$0xf0] }
 0x379   : > { %v2400_v19 = vmul.f32 %v10884_v16, %v2377_v17  ;;  %v2401_v45 = vmul.f32 %v10885_v39, %v2385_v26  ;;  %v5860_v0 = vor.u32 %v6610_v40, %v5857_v7  ;;  %v6645_v7 = vld [vmem:[#allocation3 + $0x114] sm:$0xf0] }
 0x37a   : > { %3345 = vmatpush.bf16.msrb.mxu0 %v5876_v43  ;;  %v2323_v23 = vpack.c.bf16 %v2309_v34, %v2308_v54  ;;  %v9099_v54 = vor.u32 %v6607_v10, %v5835_v59  ;;  %v6647_v34 = vld [vmem:[#allocation3 + $0x124] sm:$0xf0] }
 0x37b   : > { %v2409_v50 = vpack.c.bf16 %v2401_v45, %v2400_v19  ;;  %v5999_v19 = vld [vmem:[#allocation3 + $0x120] sm:$0xf] }
 0x37c   : > { %2331 = vst [vmem:[#allocation3 + $0x148] sm:$0xff] %v2323_v23  ;;  %v6015_v20 = vld [vmem:[#allocation3 + $0x140] sm:$0xf]  ;;  %v6000_v23 = vor.u32 %v6647_v34, %v5999_v19 }
 0x37d   : > { %2417 = vst [vmem:[#allocation3 + $0x1b8] sm:$0xff] %v2409_v50  ;;  %3213 = vmatmul.bf16.gmra.mxu3 %v9059_v51 }
 0x37e   : > { %3346 = vmatpush.bf16.msrb.mxu0 %v5868_v62  ;;  %v2367_v2 = vpop.permute.xlu1 %2366 }
 0x37f   : > { %v2511_v5 = vpop.permute.xlu0 %2510  ;;  %v2376_v27 = vsel %vm658_vm11, %v8977_v31, %v2367_v2  ;;  %v2384_v55 = vsel %vm658_vm11, %v2367_v2, %v8977_v31  ;;  %v9084_v31 = vpop.permute.xlu2 %2506  ;;  %v6605_v2 = vld [vmem:[%s10720_s3 + $0x7c] sm:$0xf] }
 0x380   : > { %v2536_v56 = vsel %vm700_vm13, %v2511_v5, %v2527_v42  ;;  %v2544_v12 = vsel %vm700_vm13, %v2527_v42, %v2511_v5  ;;  %v2398_v14 = vmul.f32 %v10884_v16, %v2376_v27  ;;  %v2399_v32 = vmul.f32 %v10885_v39, %v2384_v55  ;;  %v6649_v42 = vld [vmem:[#allocation3 + $0x134] sm:$0xf0]  ;;  %v5991_v5 = vld [vmem:[#allocation3 + $0x110] sm:$0xf] }
 0x381   : > { %v2558_v44 = vmul.f32 %v10886_v47, %v2536_v56  ;;  %v2559_v48 = vmul.f32 %v10887_v33, %v2544_v12  ;;  %v6008_v1 = vor.u32 %v6649_v42, %v6007_v4  ;;  %v5992_v56 = vor.u32 %v6645_v7, %v5991_v5 }
 0x382   : > { %3347 = vmatpush.bf16.msrb.mxu0 %v5860_v0  ;;  %v2408_v6 = vpack.c.bf16 %v2399_v32, %v2398_v14  ;;  %v9114_v32 = vor.u32 %v6605_v2, %v5837_v9 }
 0x383   : > { %v2568_v11 = vpack.c.bf16 %v2559_v48, %v2558_v44  ;;  %v6651_v13 = vld [vmem:[#allocation3 + $0x144] sm:$0xf0] }
 0x384   : > { %2416 = vst [vmem:[#allocation3 + $0x1b0] sm:$0xff] %v2408_v6  ;;  %v6016_v15 = vor.u32 %v6651_v13, %v6015_v20  ;;  %v6665_v62 = vld [vmem:[#allocation3 + $0x1b4] sm:$0xf0]  ;;  %v6643_v44 = vld [vmem:[#allocation3 + $0x104] sm:$0xf0] }
 0x385   : > { %2576 = vst [vmem:[#allocation3 + $0x230] sm:$0xff] %v2568_v11  ;;  %3242 = vmatmul.bf16.gmra.mxu0 %v9082_v58  ;;  %v5783_v48 = vld [vmem:[%s10720_s3 + $0x8] sm:$0xf]  ;;  %v6593_v6 = vld [vmem:[%s10720_s3 + $0x18] sm:$0xf0] }
 0x386   : > { %v2513_v43 = vpop.permute.xlu1 %2512  ;;  %3256 = vmatpush.bf16.msra.mxu1 %v6016_v15  ;;  %v5983_v13 = vld [vmem:[#allocation3 + $0x100] sm:$0xf]  ;;  %v6640_v15 = vld [vmem:[#allocation3 + $0xf4] sm:$0xf] }
 0x387   : > { %v2529_v63 = vpop.permute.xlu0 %2528  ;;  %v2525_v50 = vpop.permute.xlu2 %2524  ;;  %v5984_v10 = vor.u32 %v6643_v44, %v5983_v13 }
 0x388   : > { %v2537_v21 = vsel %vm700_vm13, %v2513_v43, %v2529_v63  ;;  %v2545_v61 = vsel %vm700_vm13, %v2529_v63, %v2513_v43 }
 0x389   : > { %v2560_v17 = vmul.f32 %v10886_v47, %v2537_v21  ;;  %v2561_v26 = vmul.f32 %v10887_v33, %v2545_v61  ;;  %v5977_v21 = vld [vmem:[#allocation3 + $0xf8] sm:$0xf0]  ;;  %v9123_v61 = vor.u32 %v6593_v6, %v5783_v48  ;;  %v6634_v48 = vld [vmem:[#allocation3 + $0xc4] sm:$0xf] }
 0x38a   : > { %3257 = vmatpush.bf16.msra.mxu1 %v6008_v1 }
 0x38b   : > { %v2569_v30 = vpack.c.bf16 %v2561_v26, %v2560_v17  ;;  %v6071_v45 = vld [vmem:[#allocation3 + $0x1b0] sm:$0xf]  ;;  %v5980_v17 = vor.u32 %v6640_v15, %v5977_v21 }
 0x38c   : > { %v6072_v40 = vor.u32 %v6665_v62, %v6071_v45  ;;  %v6135_v20 = vld [vmem:[#allocation3 + $0x230] sm:$0xf]  ;;  %v6680_v43 = vld [vmem:[#allocation3 + $0x234] sm:$0xf]  ;;  %v5969_v45 = vld [vmem:[#allocation3 + $0xe8] sm:$0xf0] }
 0x38d   : > { %2577 = vst [vmem:[#allocation3 + $0x238] sm:$0xff] %v2569_v30  ;;  %3218 = vmatmul.bf16.gmra.mxu3 %v9099_v54 }
 0x38e   : > { %v2347_v0 = vpop.permute.xlu1 %2346  ;;  %3258 = vmatpush.bf16.msra.mxu1 %v6000_v23  ;;  %3286 = vmatpush.bf16.msra.mxu2 %v6072_v40 }
 0x38f   : > { %v2363_v22 = vpop.permute.xlu0 %2362  ;;  %v2359_v26 = vpop.permute.xlu2 %2358 }
 0x390   : > { %v2374_v27 = vsel %vm658_vm11, %v2347_v0, %v2363_v22  ;;  %v2382_v55 = vsel %vm658_vm11, %v2363_v22, %v2347_v0 }
 0x391   : > { %v2394_v12 = vmul.f32 %v10884_v16, %v2374_v27  ;;  %v2395_v14 = vmul.f32 %v10885_v39, %v2382_v55  ;;  %v5961_v27 = vld [vmem:[#allocation3 + $0xd8] sm:$0xf0] }
 0x392   : > { %3259 = vmatpush.bf16.msra.mxu1 %v5992_v56 }
 0x393   : > { %v2406_v11 = vpack.c.bf16 %v2395_v14, %v2394_v12 }
 0x394   : > { %v6681_v42 = vld [vmem:[#allocation3 + $0x234] sm:$0xf0]  ;;  %v6137_v59 = vld [vmem:[#allocation3 + $0x238] sm:$0xf0] }
 0x395   : > { %2414 = vst [vmem:[#allocation3 + $0x1a0] sm:$0xff] %v2406_v11  ;;  %3247 = vmatmul.bf16.gmra.mxu0 %v9114_v32  ;;  %v6136_v63 = vor.u32 %v6681_v42, %v6135_v20  ;;  %v6140_v4 = vor.u32 %v6680_v43, %v6137_v59  ;;  %v5953_v59 = vld [vmem:[#allocation3 + $0xc8] sm:$0xf0] }
 0x396   : > { %v2365_v1 = vpop.permute.xlu1 %2364  ;;  %3260 = vmatpush.bf16.msra.mxu1 %v5984_v10  ;;  %v5956_v10 = vor.u32 %v6634_v48, %v5953_v59  ;;  %v6628_v48 = vld [vmem:[#allocation3 + $0x94] sm:$0xf] }
 0x397   : > { %v2509_v34 = vpop.permute.xlu0 %2508  ;;  %v2375_v30 = vsel %vm658_vm11, %v9057_v8, %v2365_v1  ;;  %v2383_v19 = vsel %vm658_vm11, %v2365_v1, %v9057_v8  ;;  %3315 = vmatpush.bf16.msrb.mxu3 %v6136_v63  ;;  %3460 = vmatpush.bf16.msra.mxu0 %v6140_v4  ;;  %v6638_v8 = vld [vmem:[#allocation3 + $0xe4] sm:$0xf]  ;;  %v9152_v15 = vpop.permute.xlu2 %2504  ;;  %v5803_v63 = vld [vmem:[%s10720_s3 + $0x30] sm:$0xf] }
 0x398   : > { %v2535_v62 = vsel %vm700_vm13, %v2509_v34, %v2525_v50  ;;  %v2543_v23 = vsel %vm700_vm13, %v2525_v50, %v2509_v34  ;;  %v2396_v40 = vmul.f32 %v10884_v16, %v2375_v30  ;;  %v2397_v7 = vmul.f32 %v10885_v39, %v2383_v19  ;;  %v6636_v50 = vld [vmem:[#allocation3 + $0xd4] sm:$0xf]  ;;  %v6598_v4 = vld [vmem:[%s10720_s3 + $0x40] sm:$0xf0] }
 0x399   : > { %v2556_v0 = vmul.f32 %v10886_v47, %v2535_v62  ;;  %v2557_v2 = vmul.f32 %v10887_v33, %v2543_v23  ;;  %3261 = vmatmul.bf16.vlgmr.msra.gmra.mxu1 %v9123_v61  ;;  %v5972_v22 = vor.u32 %v6638_v8, %v5969_v45  ;;  %v5964_v56 = vor.u32 %v6636_v50, %v5961_v27  ;;  %v6632_v30 = vld [vmem:[#allocation3 + $0xb4] sm:$0xf] }
 0x39a   : > { %3369 = vmatpush.bf16.msrb.mxu1 %v5980_v17  ;;  %v2407_v9 = vpack.c.bf16 %v2397_v7, %v2396_v40  ;;  %v9163_v19 = vor.u32 %v6598_v4, %v5803_v63  ;;  %v5937_v40 = vld [vmem:[#allocation3 + $0xa8] sm:$0xf0]  ;;  %v5823_v4 = vld [vmem:[%s10720_s3 + $0x58] sm:$0xf] }
 0x39b   : > { %v2567_v5 = vpack.c.bf16 %v2557_v2, %v2556_v0 }
 0x39c   : > { %2415 = vst [vmem:[#allocation3 + $0x1a8] sm:$0xff] %v2407_v9  ;;  %v6063_v1 = vld [vmem:[#allocation3 + $0x1a0] sm:$0xf] }
 0x39d   : > { %2575 = vst [vmem:[#allocation3 + $0x228] sm:$0xff] %v2567_v5  ;;  %v5929_v5 = vld [vmem:[#allocation3 + $0x98] sm:$0xf0] }
 0x39e   : > { %3370 = vmatpush.bf16.msrb.mxu1 %v5972_v22  ;;  %v2523_v55 = vpop.permute.xlu1 %2522 }
 0x39f   : > { %v2343_v12 = vpop.permute.xlu0 %2342  ;;  %v2534_v14 = vsel %vm700_vm13, %v9084_v31, %v2523_v55  ;;  %v2542_v44 = vsel %vm700_vm13, %v2523_v55, %v9084_v31  ;;  %v2339_v27 = vpop.permute.xlu2 %2338 }
 0x3a0   : > { %v2372_v6 = vsel %vm658_vm11, %v2343_v12, %v2359_v26  ;;  %v2380_v11 = vsel %vm658_vm11, %v2359_v26, %v2343_v12  ;;  %v2554_v20 = vmul.f32 %v10886_v47, %v2534_v14  ;;  %v2555_v13 = vmul.f32 %v10887_v33, %v2542_v44  ;;  %v5945_v26 = vld [vmem:[#allocation3 + $0xb8] sm:$0xf0] }
 0x3a1   : > { %v2390_v42 = vmul.f32 %v10884_v16, %v2372_v6  ;;  %v2391_v43 = vmul.f32 %v10885_v39, %v2380_v11  ;;  %v5948_v62 = vor.u32 %v6632_v30, %v5945_v26  ;;  %v5932_v11 = vor.u32 %v6628_v48, %v5929_v5  ;;  %v9204_v5 = vpop.f32.mrf.mxu0 }
 0x3a2   : > { %3371 = vmatpush.bf16.msrb.mxu1 %v5964_v56  ;;  %v2566_v31 = vpack.c.bf16 %v2555_v13, %v2554_v20  ;;  %v6626_v13 = vld [vmem:[#allocation3 + $0x84] sm:$0xf] }
 0x3a3   : > { %v2404_v21 = vpack.c.bf16 %v2391_v43, %v2390_v42  ;;  %v6663_v17 = vld [vmem:[#allocation3 + $0x1a4] sm:$0xf0] }
 0x3a4   : > { %2574 = vst [vmem:[#allocation3 + $0x220] sm:$0xff] %v2566_v31  ;;  %v6064_v34 = vor.u32 %v6663_v17, %v6063_v1  ;;  %v6679_v22 = vld [vmem:[#allocation3 + $0x224] sm:$0xf0]  ;;  %v6129_v12 = vld [vmem:[#allocation3 + $0x228] sm:$0xf0] }
 0x3a5   : > { %2412 = vst [vmem:[#allocation3 + $0x190] sm:$0xff] %v2404_v21  ;;  %3348 = vmatmul.bf16.vlgmr.msrb.gmra.mxu0 %v8971_v3  ;;  %v6630_v3 = vld [vmem:[#allocation3 + $0xa4] sm:$0xf]  ;;  %v6603_v21 = vld [vmem:[%s10720_s3 + $0x68] sm:$0xf0] }
 0x3a6   : > { %3372 = vmatpush.bf16.msrb.mxu1 %v5956_v10  ;;  %v2345_v45 = vpop.permute.xlu1 %2344  ;;  %3287 = vmatpush.bf16.msra.mxu2 %v6064_v34  ;;  %v5940_v9 = vor.u32 %v6630_v3, %v5937_v40  ;;  %v5921_v10 = vld [vmem:[#allocation3 + $0x88] sm:$0xf0]  ;;  %v9199_v3 = vpop.f32.mrf.mxu3 }
 0x3a7   : > { %v2361_v23 = vpop.permute.xlu0 %2360  ;;  %v5924_v63 = vor.u32 %v6626_v13, %v5921_v10  ;;  %v2357_v34 = vpop.permute.xlu2 %2356  ;;  %v6608_v10 = vld [vmem:[%s10720_s3 + $0x90] sm:$0xf0] }
 0x3a8   : > { %v2373_v7 = vsel %vm658_vm11, %v2345_v45, %v2361_v23  ;;  %v2381_v0 = vsel %vm658_vm11, %v2361_v23, %v2345_v45  ;;  %v9185_v45 = vor.u32 %v6603_v21, %v5823_v4 }
 0x3a9   : > { %v2392_v2 = vmul.f32 %v10884_v16, %v2373_v7  ;;  %v2393_v8 = vmul.f32 %v10885_v39, %v2381_v0  ;;  %3266 = vmatmul.bf16.gmra.mxu1 %v9163_v19 }
 0x3aa   : > { %3373 = vmatpush.bf16.msrb.mxu1 %v5948_v62 }
 0x3ab   : > { %v2405_v50 = vpack.c.bf16 %v2393_v8, %v2392_v2  ;;  %v6127_v55 = vld [vmem:[#allocation3 + $0x220] sm:$0xf]  ;;  %v6678_v56 = vld [vmem:[#allocation3 + $0x224] sm:$0xf] }
 0x3ac   : > { %v6128_v14 = vor.u32 %v6679_v22, %v6127_v55  ;;  %v6132_v44 = vor.u32 %v6678_v56, %v6129_v12  ;;  %v6055_v17 = vld [vmem:[#allocation3 + $0x190] sm:$0xf] }
 0x3ad   : > { %2413 = vst [vmem:[#allocation3 + $0x198] sm:$0xff] %v2405_v50 }
 0x3ae   : > { %3374 = vmatpush.bf16.msrb.mxu1 %v5940_v9  ;;  %v2503_v6 = vpop.permute.xlu1 %2502  ;;  %3316 = vmatpush.bf16.msrb.mxu3 %v6128_v14 }
 0x3af   : > { %3461 = vmatpush.bf16.msra.mxu0 %v6132_v44  ;;  %v2519_v20 = vpop.permute.xlu0 %2518  ;;  %v2515_v56 = vpop.permute.xlu2 %2514 }
 0x3b0   : > { %v2532_v42 = vsel %vm700_vm13, %v2503_v6, %v2519_v20  ;;  %v2540_v43 = vsel %vm700_vm13, %v2519_v20, %v2503_v6 }
 0x3b1   : > { %v2550_v59 = vmul.f32 %v10886_v47, %v2532_v42  ;;  %v2551_v31 = vmul.f32 %v10887_v33, %v2540_v43 }
 0x3b2   : > { %3375 = vmatpush.bf16.msrb.mxu1 %v5932_v11 }
 0x3b3   : > { %v2564_v1 = vpack.c.bf16 %v2551_v31, %v2550_v59  ;;  %v9218_v31 = vpop.f32.mrf.mxu3 }
 0x3b4   : > { %v6661_v26 = vld [vmem:[#allocation3 + $0x194] sm:$0xf0] }
 0x3b5   : > { %2572 = vst [vmem:[#allocation3 + $0x210] sm:$0xff] %v2564_v1  ;;  %3353 = vmatmul.bf16.gmra.mxu0 %v9019_v24  ;;  %v6056_v30 = vor.u32 %v6661_v26, %v6055_v17 }
 0x3b6   : > { %3376 = vmatpush.bf16.msrb.mxu1 %v5924_v63  ;;  %v2521_v62 = vpop.permute.xlu1 %2520 }
 0x3b7   : > { %v2341_v23 = vpop.permute.xlu0 %2340  ;;  %v2533_v40 = vsel %vm700_vm13, %v9152_v15, %v2521_v62  ;;  %v2541_v7 = vsel %vm700_vm13, %v2521_v62, %v9152_v15  ;;  %3288 = vmatpush.bf16.msra.mxu2 %v6056_v30 }
 0x3b8   : > { %v2371_v0 = vsel %vm658_vm11, %v2341_v23, %v2357_v34  ;;  %v2379_v24 = vsel %vm658_vm11, %v2357_v34, %v2341_v23  ;;  %v2552_v2 = vmul.f32 %v10886_v47, %v2533_v40  ;;  %v2553_v8 = vmul.f32 %v10887_v33, %v2541_v7  ;;  %v9226_v34 = vpop.f32.mrf.mxu0 }
 0x3b9   : > { %v2388_v9 = vmul.f32 %v10884_v16, %v2371_v0  ;;  %v2389_v22 = vmul.f32 %v10885_v39, %v2379_v24  ;;  %3271 = vmatmul.bf16.gmra.mxu1 %v9185_v45 }
 0x3ba   : > { %v2565_v15 = vpack.c.bf16 %v2553_v8, %v2552_v2  ;;  %v6041_v2 = vld [vmem:[#allocation3 + $0x178] sm:$0xf0]  ;;  %v5785_v8 = vld [vmem:[%s10720_s3 + $0x1c] sm:$0xf0] }
 0x3bb   : > { %v2403_v50 = vpack.c.bf16 %v2389_v22, %v2388_v9 }
 0x3bc   : > { %2573 = vst [vmem:[#allocation3 + $0x218] sm:$0xff] %v2565_v15  ;;  %v6119_v59 = vld [vmem:[#allocation3 + $0x210] sm:$0xf]  ;;  %v6676_v21 = vld [vmem:[#allocation3 + $0x214] sm:$0xf] }
 0x3bd   : > { %2411 = vst [vmem:[#allocation3 + $0x188] sm:$0xff] %v2403_v50 }
 0x3be   : > { %v2355_v55 = vpop.permute.xlu1 %2354 }
 0x3bf   : > { %v2499_v12 = vpop.permute.xlu0 %2498  ;;  %v2370_v14 = vsel %vm658_vm11, %v2339_v27, %v2355_v55  ;;  %v2378_v44 = vsel %vm658_vm11, %v2355_v55, %v2339_v27  ;;  %v5843_v27 = vld [vmem:[%s10720_s3 + $0x80] sm:$0xf]  ;;  %v6656_v55 = vld [vmem:[#allocation3 + $0x174] sm:$0xf] }
 0x3c0   : > { %v2530_v48 = vsel %vm700_vm13, %v2499_v12, %v2515_v56  ;;  %v2538_v6 = vsel %vm700_vm13, %v2515_v56, %v2499_v12  ;;  %v2386_v11 = vmul.f32 %v10884_v16, %v2370_v14  ;;  %v2387_v20 = vmul.f32 %v10885_v39, %v2378_v44  ;;  %v9244_v56 = vpop.f32.mrf.mxu3  ;;  %v9248_v44 = vpop.f32.mrf.mxu0 }
 0x3c1   : > { %v2546_v13 = vmul.f32 %v10886_v47, %v2530_v48  ;;  %v2547_v42 = vmul.f32 %v10887_v33, %v2538_v6  ;;  %v9229_v30 = vor.u32 %v6608_v10, %v5843_v27  ;;  %v6044_v12 = vor.u32 %v6656_v55, %v6041_v2  ;;  %v6033_v48 = vld [vmem:[#allocation3 + $0x168] sm:$0xf0]  ;;  %v6654_v6 = vld [vmem:[#allocation3 + $0x164] sm:$0xf]  ;;  %v6648_v55 = vld [vmem:[#allocation3 + $0x134] sm:$0xf] }
 0x3c2   : > { %v2402_v43 = vpack.c.bf16 %v2387_v20, %v2386_v11  ;;  %v6036_v11 = vor.u32 %v6654_v6, %v6033_v48  ;;  %v6652_v20 = vld [vmem:[#allocation3 + $0x154] sm:$0xf] }
 0x3c3   : > { %v2562_v63 = vpack.c.bf16 %v2547_v42, %v2546_v13  ;;  %v6677_v4 = vld [vmem:[#allocation3 + $0x214] sm:$0xf0]  ;;  %v6121_v1 = vld [vmem:[#allocation3 + $0x218] sm:$0xf0] }
 0x3c4   : > { %2410 = vst [vmem:[#allocation3 + $0x180] sm:$0xff] %v2402_v43  ;;  %v6120_v17 = vor.u32 %v6677_v4, %v6119_v59  ;;  %v6124_v26 = vor.u32 %v6676_v21, %v6121_v1  ;;  %v6659_v15 = vld [vmem:[#allocation3 + $0x184] sm:$0xf0]  ;;  %v6105_v13 = vld [vmem:[#allocation3 + $0x1f8] sm:$0xf0] }
 0x3c5   : > { %2570 = vst [vmem:[#allocation3 + $0x200] sm:$0xff] %v2562_v63  ;;  %3358 = vmatmul.bf16.gmra.mxu0 %v9059_v51  ;;  %v6591_v51 = vld [vmem:[%s10720_s3 + $0xc] sm:$0xf]  ;;  %v5791_v43 = vld [vmem:[%s10720_s3 + $0x10] sm:$0xf] }
 0x3c6   : > { %v2501_v62 = vpop.permute.xlu1 %2500  ;;  %3317 = vmatpush.bf16.msrb.mxu3 %v6120_v17  ;;  %3462 = vmatpush.bf16.msra.mxu0 %v6124_v26  ;;  %v9246_v14 = vor.u32 %v6591_v51, %v5785_v8  ;;  %v6594_v59 = vld [vmem:[%s10720_s3 + $0x20] sm:$0xf0]  ;;  %v6025_v1 = vld [vmem:[#allocation3 + $0x158] sm:$0xf0]  ;;  %v6672_v17 = vld [vmem:[#allocation3 + $0x1f4] sm:$0xf] }
 0x3c7   : > { %v2517_v23 = vpop.permute.xlu0 %2516  ;;  %v6028_v26 = vor.u32 %v6652_v20, %v6025_v1  ;;  %v6081_v20 = vld [vmem:[#allocation3 + $0x1c8] sm:$0xf0] }
 0x3c8   : > { %v2531_v40 = vsel %vm700_vm13, %v2501_v62, %v2517_v23  ;;  %v2539_v7 = vsel %vm700_vm13, %v2517_v23, %v2501_v62  ;;  %v6108_v62 = vor.u32 %v6672_v17, %v6105_v13  ;;  %v9258_v23 = vpop.f32.mrf.mxu3  ;;  %v9260_v2 = vpop.f32.mrf.mxu0  ;;  %v6599_v1 = vld [vmem:[%s10720_s3 + $0x48] sm:$0xf0]  ;;  %v6644_v17 = vld [vmem:[#allocation3 + $0x114] sm:$0xf] }
 0x3c9   : > { %v2548_v0 = vmul.f32 %v10886_v47, %v2531_v40  ;;  %v2549_v24 = vmul.f32 %v10887_v33, %v2539_v7  ;;  %3276 = vmatmul.bf16.gmra.mxu1 %v9229_v30  ;;  %v5792_v40 = vor.u32 %v6594_v59, %v5791_v43  ;;  %v6670_v7 = vld [vmem:[#allocation3 + $0x1e4] sm:$0xf] }
 0x3ca   : > { %v6666_v43 = vld [vmem:[#allocation3 + $0x1c4] sm:$0xf] }
 0x3cb   : > { %v2563_v9 = vpack.c.bf16 %v2549_v24, %v2548_v0  ;;  %v6047_v22 = vld [vmem:[#allocation3 + $0x180] sm:$0xf]  ;;  %v6017_v0 = vld [vmem:[#allocation3 + $0x148] sm:$0xf0] }
 0x3cc   : > { %v6048_v50 = vor.u32 %v6659_v15, %v6047_v22  ;;  %v6111_v42 = vld [vmem:[#allocation3 + $0x200] sm:$0xf]  ;;  %v6674_v10 = vld [vmem:[#allocation3 + $0x204] sm:$0xf]  ;;  %v6097_v24 = vld [vmem:[#allocation3 + $0x1e8] sm:$0xf0] }
 0x3cd   : > { %2571 = vst [vmem:[#allocation3 + $0x208] sm:$0xff] %v2563_v9  ;;  %v6100_v8 = vor.u32 %v6670_v7, %v6097_v24  ;;  %v6596_v9 = vld [vmem:[%s10720_s3 + $0x34] sm:$0xf]  ;;  %v5805_v22 = vld [vmem:[%s10720_s3 + $0x44] sm:$0xf0] }
 0x3ce   : > { %3289 = vmatpush.bf16.msra.mxu2 %v6048_v50  ;;  %v6009_v15 = vld [vmem:[#allocation3 + $0x138] sm:$0xf0]  ;;  %v5985_v24 = vld [vmem:[#allocation3 + $0x108] sm:$0xf0] }
 0x3cf   : > { %v6089_v50 = vld [vmem:[#allocation3 + $0x1d8] sm:$0xf0]  ;;  %v6012_v48 = vor.u32 %v6648_v55, %v6009_v15  ;;  %v5825_v55 = vld [vmem:[%s10720_s3 + $0x6c] sm:$0xf0] }
 0x3d1   : > { %3290 = vmatmul.bf16.vlgmr.msra.gmra.mxu2 %v9246_v14 }
 0x3d2   : > { %3398 = vmatpush.bf16.msrb.mxu2 %v6044_v12  ;;  %v6668_v12 = vld [vmem:[#allocation3 + $0x1d4] sm:$0xf] }
 0x3d3   : > { %v6092_v6 = vor.u32 %v6668_v12, %v6089_v50  ;;  %v6057_v12 = vld [vmem:[#allocation3 + $0x198] sm:$0xf0] }
 0x3d4   : > { %v6675_v27 = vld [vmem:[#allocation3 + $0x204] sm:$0xf0]  ;;  %v6113_v63 = vld [vmem:[#allocation3 + $0x208] sm:$0xf0] }
 0x3d5   : > { %3363 = vmatmul.bf16.gmra.mxu0 %v9099_v54  ;;  %v6112_v4 = vor.u32 %v6675_v27, %v6111_v42  ;;  %v6116_v21 = vor.u32 %v6674_v10, %v6113_v63  ;;  %v6650_v54 = vld [vmem:[#allocation3 + $0x144] sm:$0xf]  ;;  %v6084_v10 = vor.u32 %v6666_v43, %v6081_v20  ;;  %v5993_v63 = vld [vmem:[#allocation3 + $0x118] sm:$0xf0] }
 0x3d6   : > { %3399 = vmatpush.bf16.msrb.mxu2 %v6036_v11  ;;  %v6020_v51 = vor.u32 %v6650_v54, %v6017_v0  ;;  %v6001_v11 = vld [vmem:[#allocation3 + $0x128] sm:$0xf0]  ;;  %v6646_v42 = vld [vmem:[#allocation3 + $0x124] sm:$0xf] }
 0x3d7   : > { %3318 = vmatpush.bf16.msrb.mxu3 %v6112_v4  ;;  %3463 = vmatpush.bf16.msra.mxu0 %v6116_v21  ;;  %v6004_v27 = vor.u32 %v6646_v42, %v6001_v11  ;;  %v6664_v4 = vld [vmem:[#allocation3 + $0x1b4] sm:$0xf]  ;;  %v5811_v21 = vld [vmem:[%s10720_s3 + $0x38] sm:$0xf]  ;;  %v6065_v54 = vld [vmem:[#allocation3 + $0x1a8] sm:$0xf0] }
 0x3d8   : > { %v5812_v0 = vor.u32 %v6599_v1, %v5811_v21  ;;  %v6658_v11 = vld [vmem:[#allocation3 + $0x184] sm:$0xf]  ;;  %v6049_v42 = vld [vmem:[#allocation3 + $0x188] sm:$0xf0] }
 0x3d9   : > { %3377 = vmatmul.bf16.vlgmr.msrb.gmra.mxu1 %v9004_v57  ;;  %v9270_v57 = vor.u32 %v6596_v9, %v5805_v22  ;;  %v6662_v9 = vld [vmem:[#allocation3 + $0x1a4] sm:$0xf] }
 0x3da   : > { %3400 = vmatpush.bf16.msrb.mxu2 %v6028_v26  ;;  %6141 = vmatmul.msk.bf16.vlgmr.msrb.gmra.mxu3 %vm3182_vm14, %v5792_v40  ;;  %v6073_v26 = vld [vmem:[#allocation3 + $0x1b8] sm:$0xf0]  ;;  %v6068_v50 = vor.u32 %v6662_v9, %v6065_v54 }
 0x3db   : > { %3427 = vmatpush.bf16.msra.mxu3 %v6108_v62  ;;  %v5996_v62 = vor.u32 %v6644_v17, %v5993_v63  ;;  %v6076_v7 = vor.u32 %v6664_v4, %v6073_v26  ;;  %v6604_v63 = vld [vmem:[%s10720_s3 + $0x70] sm:$0xf0]  ;;  %v6606_v17 = vld [vmem:[%s10720_s3 + $0x84] sm:$0xf]  ;;  %v5845_v26 = vld [vmem:[%s10720_s3 + $0x94] sm:$0xf0] }
 0x3de   : > { %3401 = vmatpush.bf16.msrb.mxu2 %v6020_v51 }
 0x3df   : > { %3428 = vmatpush.bf16.msra.mxu3 %v6100_v8  ;;  %v6642_v8 = vld [vmem:[#allocation3 + $0x104] sm:$0xf] }
 0x3e0   : > { %v9272_v13 = vpop.f32.mrf.mxu3  ;;  %v5988_v15 = vor.u32 %v6642_v8, %v5985_v24  ;;  %v6609_v24 = vld [vmem:[%s10720_s3 + $0x98] sm:$0xf0] }
 0x3e1   : > { %10888 = vst [vmem:[#allocation32_spill] sm:$0xff] %v9272_v13  ;;  %3295 = vmatmul.bf16.gmra.mxu2 %v9270_v57 }
 0x3e2   : > { %3402 = vmatpush.bf16.msrb.mxu2 %v6012_v48  ;;  %v9275_v59 = vpop.f32.mrf.mxu0 }
 0x3e3   : > { %3429 = vmatpush.bf16.msra.mxu3 %v6092_v6  ;;  %10889 = vst [vmem:[#allocation40_spill] sm:$0xff] %v9275_v59 }
 0x3e5   : > { %6145 = vmatmul.msk.bf16.vlgmr.msra.gmra.mxu0 %vm3182_vm14, %v5792_v40  ;;  %v6601_v40 = vld [vmem:[%s10720_s3 + $0x5c] sm:$0xf] }
 0x3e6   : > { %3403 = vmatpush.bf16.msrb.mxu2 %v6004_v27  ;;  %v5828_v48 = vor.u32 %v6601_v40, %v5825_v55  ;;  %v6052_v27 = vor.u32 %v6658_v11, %v6049_v42  ;;  %v9346_v42 = vpop.f32.mrf.mxu2 }
 0x3e7   : > { %3430 = vmatpush.bf16.msra.mxu3 %v6084_v10  ;;  %v5831_v10 = vld [vmem:[%s10720_s3 + $0x60] sm:$0xf] }
 0x3e8   : > { %v9284_v51 = vpop.f32.mrf.mxu3  ;;  %v5832_v4 = vor.u32 %v6604_v63, %v5831_v10 }
 0x3e9   : > { %10890 = vst [vmem:[#allocation37_spill] sm:$0xff] %v9284_v51  ;;  %3382 = vmatmul.bf16.gmra.mxu1 %v9034_v49  ;;  %v6660_v49 = vld [vmem:[#allocation3 + $0x194] sm:$0xf] }
 0x3ea   : > { %3404 = vmatpush.bf16.msrb.mxu2 %v5996_v62  ;;  %6142 = vmatmul.msk.bf16.gmra.mxu3 %vm3182_vm14, %v5812_v0  ;;  %v9288_v22 = vpop.f32.mrf.mxu0  ;;  %v6060_v6 = vor.u32 %v6660_v49, %v6057_v12  ;;  %v5848_v62 = vor.u32 %v6606_v17, %v5845_v26 }
 0x3eb   : > { %3431 = vmatpush.bf16.msra.mxu3 %v6076_v7  ;;  %10891 = vst [vmem:[#allocation33_spill] sm:$0xff] %v9288_v22 }
 0x3ee   : > { %3405 = vmatpush.bf16.msrb.mxu2 %v5988_v15  ;;  %v9328_v15 = vpop.permute.xlu1 %2714 }
 0x3ef   : > { %3432 = vmatpush.bf16.msra.mxu3 %v6068_v50  ;;  %v9330_v50 = vpop.f32.mrf.mxu1 }
 0x3f0   : > { %v9296_v20 = vpop.f32.mrf.mxu3 }
 0x3f1   : > { %10892 = vst [vmem:[#allocation39_spill] sm:$0xff] %v9296_v20  ;;  %3300 = vmatmul.bf16.gmra.mxu2 %v5828_v48 }
 0x3f2   : > { %v9298_v43 = vpop.f32.mrf.mxu0 }
 0x3f3   : > { %3433 = vmatpush.bf16.msra.mxu3 %v6060_v6  ;;  %10893 = vst [vmem:[#allocation13_spill] sm:$0xff] %v9298_v43 }
 0x3f5   : > { %6146 = vmatmul.msk.bf16.gmra.mxu0 %vm3182_vm14, %v5812_v0 }
 0x3f7   : > { %3434 = vmatpush.bf16.msra.mxu3 %v6052_v27  ;;  %v9337_v6 = vpop.f32.mrf.mxu1  ;;  %v9351_v27 = vpop.f32.mrf.mxu2 }
 0x3f8   : > { %v9307_v21 = vpop.f32.mrf.mxu3 }
 0x3f9   : > { %10894 = vst [vmem:[#allocation34_spill] sm:$0xff] %v9307_v21  ;;  %3387 = vmatmul.bf16.gmra.mxu1 %v9082_v58  ;;  %v5851_v58 = vld [vmem:[%s10720_s3 + $0x88] sm:$0xf] }
 0x3fa   : > { %6143 = vmatmul.msk.bf16.gmra.mxu3 %vm3182_vm14, %v5832_v4  ;;  %v9311_v1 = vpop.f32.mrf.mxu0  ;;  %v5852_v54 = vor.u32 %v6609_v24, %v5851_v58 }
 0x3fb   : > { %10895 = vst [vmem:[#allocation43_spill] sm:$0xff] %v9311_v1 }
 0x400   : > { %v3214_v7 = vpop.f32.mrf.mxu3 }
 0x401   : > { %3305 = vmatmul.bf16.gmra.mxu2 %v5848_v62 }
 0x402   : > { %v3243_v0 = vpop.f32.mrf.mxu0 }
 0x405   : > { %6147 = vmatmul.msk.bf16.gmra.mxu0 %vm3182_vm14, %v5832_v4 }
 0x408   : > { %v3216_v8 = vpop.f32.mrf.mxu3 }
 0x409   : > { %3392 = vmatmul.bf16.gmra.mxu1 %v9114_v32  ;;  %v9341_v32 = vpop.f32.mrf.mxu1 }
 0x40a   : > { %6144 = vmatmul.msk.bf16.gmra.mxu3 %vm3182_vm14, %v5852_v54  ;;  %v3245_v9 = vpop.f32.mrf.mxu0 }
 0x410   : > { %v3219_v40 = vpop.f32.mrf.mxu3 }
 0x411   : > { %v3220_v55 = vadd.f32 %v3219_v40, %v9328_v15  ;;  %3406 = vmatmul.bf16.vlgmr.msrb.gmra.mxu2 %v9123_v61  ;;  %v9344_v11 = vpop.f32.mrf.mxu1 }
 0x412   : > { %v3248_v12 = vpop.f32.mrf.mxu0  ;;  %10896 = vst [vmem:[#allocation41_spill] sm:$0xff] %v9344_v11 }
 0x413   : > { %v9334_v49 = vadd.f32 %v3248_v12, %v3220_v55 }
 0x415   : > { %6148 = vmatmul.msk.bf16.gmra.mxu0 %vm3182_vm14, %v5852_v54 }
 0x418   : > { %v3221_v26 = vpop.f32.mrf.mxu3 }
 0x419   : > { %v9349_v61 = vpop.f32.mrf.mxu1 }
 0x41a   : > { %3435 = vmatmul.bf16.vlgmr.msra.gmra.mxu3 %v9246_v14  ;;  %10897 = vst [vmem:[#allocation35_spill] sm:$0xff] %v9349_v61  ;;  %v9353_v10 = vpop.f32.mrf.mxu0  ;;  %v9358_v14 = vpop.f32.mrf.mxu2 }
 0x421   : > { %3411 = vmatmul.bf16.gmra.mxu2 %v9163_v19  ;;  %v9356_v19 = vpop.f32.mrf.mxu1 }
 0x422   : > { %10898 = vst [vmem:[#allocation42_spill] sm:$0xff] %v9356_v19  ;;  %v9364_v4 = vpop.f32.mrf.mxu2 }
 0x423   : > { %10901 = vst [vmem:[#allocation38_spill] sm:$0xff] %v9364_v4 }
 0x429   : > { %v9362_v63 = vpop.f32.mrf.mxu1 }
 0x42a   : > { %3440 = vmatmul.bf16.gmra.mxu3 %v9270_v57  ;;  %v9360_v57 = vpop.f32.mrf.mxu0  ;;  %10900 = vst [vmem:[#allocation44_spill] sm:$0xff] %v9362_v63 }
 0x42b   : > { %10899 = vst [vmem:[#allocation36_spill] sm:$0xff] %v9360_v57 }
 0x431   : > { %3416 = vmatmul.bf16.gmra.mxu2 %v9185_v45  ;;  %v9370_v58 = vpop.f32.mrf.mxu1 }
 0x432   : > { %v9366_v45 = vpop.f32.mrf.mxu0  ;;  %10904 = vst [vmem:[#allocation9_spill] sm:$0xff] %v9370_v58  ;;  %v9390_v58 = vpop.permute.xlu0 %2704 }
 0x433   : > { %10902 = vst [vmem:[#allocation31_spill] sm:$0xff] %v9366_v45 }
 0x439   : > { %v3272_v54 = vpop.f32.mrf.mxu1 }
 0x43a   : > { %3445 = vmatmul.bf16.gmra.mxu3 %v5828_v48  ;;  %v9372_v48 = vpop.f32.mrf.mxu0 }
 0x43b   : > { %10905 = vst [vmem:[#allocation10_spill] sm:$0xff] %v9372_v48  ;;  %v3215_v48 = vadd.f32 %v3214_v7, %v9390_v58 }
 0x441   : > { %3421 = vmatmul.bf16.gmra.mxu2 %v9229_v30  ;;  %v3274_v12 = vpop.f32.mrf.mxu1 }
 0x442   : > { %v9378_v40 = vpop.f32.mrf.mxu0 }
 0x443   : > { %10908 = vst [vmem:[#allocation45_spill] sm:$0xff] %v9378_v40 }
 0x449   : > { %v3277_v21 = vpop.f32.mrf.mxu1 }
 0x44a   : > { %3450 = vmatmul.bf16.gmra.mxu3 %v5848_v62  ;;  %v9384_v1 = vpop.f32.mrf.mxu0 }
 0x451   : > { %v3279_v22 = vpop.f32.mrf.mxu1 }
 0x454   : > { %v9368_v17 = vpop.f32.mrf.mxu2 }
 0x455   : > { %10903 = vst [vmem:[#allocation30_spill] sm:$0xff] %v9368_v17 }
 0x45c   : > { %v9374_v30 = vpop.f32.mrf.mxu2 }
 0x45d   : > { %10906 = vst [vmem:[#allocation11_spill] sm:$0xff] %v9374_v30  ;;  %v9376_v24 = vpop.f32.mrf.mxu3  ;;  %v9393_v30 = vpop.f32.mrf.mxu0 }
 0x45e   : > { %10907 = vst [vmem:[#allocation12_spill] sm:$0xff] %v9376_v24 }
 0x464   : > { %v9380_v62 = vpop.f32.mrf.mxu2 }
 0x465   : > { %10909 = vst [vmem:[#allocation46_spill] sm:$0xff] %v9380_v62  ;;  %v9382_v55 = vpop.f32.mrf.mxu3  ;;  %v3244_v62 = vadd.f32 %v3243_v0, %v3215_v48  ;;  %v9400_v17 = vpop.f32.mrf.mxu0 }
 0x466   : > { %10910 = vst [vmem:[#allocation47_spill] sm:$0xff] %v9382_v55  ;;  %v9397_v55 = vpop.permute.xlu1 %2709 }
 0x467   : > { %v3273_v57 = vadd.f32 %v3272_v54, %v3244_v62  ;;  %v3217_v20 = vadd.f32 %v3216_v8, %v9397_v55  ;;  %v9402_v62 = vpop.f32.mrf.mxu1 }
 0x468   : > { %10914 = vst [vmem:[#allocation51_spill] sm:$0xff] %v9402_v62 }
 0x469   : > { %v3246_v7 = vadd.f32 %v3245_v9, %v3217_v20 }
 0x46b   : > { %v3275_v61 = vadd.f32 %v3274_v12, %v3246_v7 }
 0x46c   : > { %v9386_v45 = vpop.f32.mrf.mxu2 }
 0x46d   : > { %10911 = vst [vmem:[#allocation48_spill] sm:$0xff] %v9386_v45  ;;  %v9388_v63 = vpop.f32.mrf.mxu3  ;;  %v9404_v8 = vpop.f32.mrf.mxu0 }
 0x46e   : > { %10912 = vst [vmem:[#allocation49_spill] sm:$0xff] %v9388_v63 }
 0x474   : > { %v3301_v43 = vpop.f32.mrf.mxu2 }
 0x475   : > { %v9395_v40 = vpop.f32.mrf.mxu3  ;;  %v3302_v19 = vadd.f32 %v3301_v43, %v3273_v57  ;;  %v9407_v57 = vpop.permute.xlu2 %2719 }
 0x476   : > { %10913 = vst [vmem:[#allocation50_spill] sm:$0xff] %v9395_v40  ;;  %v3222_v20 = vadd.f32 %v3221_v26, %v9407_v57  ;;  %v9411_v7 = vpop.f32.mrf.mxu0 }
 0x477   : > { %10915 = vst [vmem:[#allocation52_spill] sm:$0xff] %v9411_v7 }
 0x47c   : > { %v3303_v45 = vpop.f32.mrf.mxu2 }
 0x47d   : > { %v3330_v24 = vpop.f32.mrf.mxu3  ;;  %v3304_v59 = vadd.f32 %v3303_v45, %v3275_v61  ;;  %v3251_v45 = vadd.f32 %v9353_v10, %v3222_v20 }
 0x47e   : > { %v3331_v63 = vadd.f32 %v3330_v24, %v3302_v19  ;;  %v3278_v19 = vadd.f32 %v3277_v21, %v9334_v49  ;;  %v9413_v49 = vpop.f32.mrf.mxu1 }
 0x47f   : > { %10916 = vst [vmem:[#allocation53_spill] sm:$0xff] %v9413_v49 }
 0x480   : > { %v6157_v51 = vmul.f32 -1.442695, %v3331_v63 }
 0x482   : > { %6913 = vpow2.f32 %v6157_v51 }
 0x484   : > { %v3306_v13 = vpop.f32.mrf.mxu2 }
 0x485   : > { %v3332_v40 = vpop.f32.mrf.mxu3  ;;  %v3307_v51 = vadd.f32 %v3306_v13, %v3278_v19 }
 0x486   : > { %v3333_v0 = vadd.f32 %v3332_v40, %v3304_v59 }
 0x488   : > { %v6914_v48 = vpop.eup %6913  ;;  %v6159_v54 = vmul.f32 -1.442695, %v3333_v0  ;;  %v3280_v0 = vadd.f32 %v3279_v22, %v3251_v45 }
 0x489   : > { %v3557_v43 = vadd.f32 1.0, %v6914_v48 }
 0x48a   : > { %6915 = vpow2.f32 %v6159_v54 }
 0x48b   : > { %6917 = vrcp.f32 %v3557_v43  ;;  %v3696_v54 = vand.u32 2147483648, %v3557_v43  ;;  %v3694_v10 = vand.u32 2147483647, %v3557_v43  ;;  %vm3690_vm15 = vweird.f32 %v3557_v43 }
 0x48c   : > { %v3308_v9 = vpop.f32.mrf.mxu2 }
 0x48d   : > { %v3335_v61 = vpop.f32.mrf.mxu3  ;;  %v3309_v26 = vadd.f32 %v3308_v9, %v3280_v0  ;;  %v3697_v45 = vor.u32 1.1754944e-38, %v3696_v54  ;;  %vm3695_vm1 = vcmp.eq.f32.partialorder %v3694_v10, 8.507059e+37  ;;  %v9417_v0 = vpop.f32.mrf.mxu0 }
 0x48e   : > { %v3336_v63 = vadd.f32 %v3335_v61, %v3307_v51  ;;  %10918 = vst [vmem:[#allocation55_spill] sm:$0xff] %v9417_v0 }
 0x490   : > { %v6916_v59 = vpop.eup %6915  ;;  %v6161_v24 = vmul.f32 -1.442695, %v3336_v63 }
 0x491   : > { %v6918_v40 = vpop.eup %6917  ;;  %v3559_v12 = vadd.f32 1.0, %v6916_v59 }
 0x492   : > { %v3686_v21 = vmul.f32 %v6918_v40, %v3557_v43  ;;  %6919 = vpow2.f32 %v6161_v24  ;;  %vm3691_vm2 = vweird.f32 %v6918_v40 }
 0x493   : > { %6921 = vrcp.f32 %v3559_v12  ;;  %vm3692_vm9 = vmor %vm3690_vm15, %vm3691_vm2  ;;  %v3726_v43 = vand.u32 2147483648, %v3559_v12  ;;  %v3724_v10 = vand.u32 2147483647, %v3559_v12  ;;  %vm3720_vm5 = vweird.f32 %v3559_v12 }
 0x494   : > { %v3687_v48 = vsub.f32 1.0, %v3686_v21  ;;  %v9415_v13 = vpop.f32.mrf.mxu2 }
 0x495   : > { %10917 = vst [vmem:[#allocation54_spill] sm:$0xff] %v9415_v13  ;;  %v3337_v19 = vpop.f32.mrf.mxu3  ;;  %vm3725_vm10 = vcmp.eq.f32.partialorder %v3724_v10, 8.507059e+37 }
 0x496   : > { %v3688_v51 = vmul.f32 %v6918_v40, %v3687_v48  ;;  %v3338_v20 = vadd.f32 %v3337_v19, %v3309_v26  ;;  %v9421_v26 = vpop.f32.mrf.mxu1 }
 0x497   : > { %10920 = vst [vmem:[#allocation57_spill] sm:$0xff] %v9421_v26 }
 0x498   : > { %v6920_v61 = vpop.eup %6919  ;;  %v3689_v63 = vadd.f32 %v6918_v40, %v3688_v51  ;;  %v6163_v59 = vmul.f32 -1.442695, %v3338_v20  ;;  %v6985_v51 = vld [vmem:[#allocation2 + $0x30] sm:$0xff] }
 0x499   : > { %v6922_v22 = vpop.eup %6921  ;;  %v3561_v24 = vadd.f32 1.0, %v6920_v61 }
 0x49a   : > { %v3693_v7 = vsel %vm3692_vm9, %v6918_v40, %v3689_v63  ;;  %v3716_v21 = vmul.f32 %v6922_v22, %v3559_v12  ;;  %6923 = vpow2.f32 %v6163_v59  ;;  %vm3721_vm6 = vweird.f32 %v6922_v22 }
 0x49b   : > { %v3698_v9 = vsel %vm3695_vm1, %v3697_v45, %v3693_v7  ;;  %6925 = vrcp.f32 %v3561_v24  ;;  %vm3722_vm7 = vmor %vm3720_vm5, %vm3721_vm6  ;;  %v3727_v63 = vor.u32 1.1754944e-38, %v3726_v43  ;;  %v6986_v43 = vld [vmem:[#allocation2 + $0x18] sm:$0xff]  ;;  %vm3750_vm14 = vweird.f32 %v3561_v24 }
 0x49c   : > { %v3805_v48 = vsub.f32 1.0, %v3698_v9  ;;  %v3717_v49 = vsub.f32 1.0, %v3716_v21  ;;  %v9419_v13 = vpop.f32.mrf.mxu2 }
 0x49d   : > { %10919 = vst [vmem:[#allocation56_spill] sm:$0xff] %v9419_v13  ;;  %v9423_v19 = vpop.f32.mrf.mxu3 }
 0x49e   : > { %10921 = vst [vmem:[#allocation58_spill] sm:$0xff] %v9423_v19  ;;  %v9425_v54 = vmul.f32 %v6985_v51, %v3805_v48  ;;  %v3718_v40 = vmul.f32 %v6922_v22, %v3717_v49  ;;  %v9444_v26 = vpop.f32.mrf.mxu1 }
 0x49f   : > { %10925 = vst [vmem:[#allocation62_spill] sm:$0xff] %v9444_v26 }
 0x4a0   : > { %v6924_v20 = vpop.eup %6923  ;;  %v3719_v7 = vadd.f32 %v6922_v22, %v3718_v40  ;;  %3989 = vrot.lane.b32.xlu2 %v9425_v54, %s7045_s14  ;;  %4029 = vrot.lane.b32.xlu1 %v9425_v54, %s7043_s11  ;;  %v9440_v40 = vpop.f32.mrf.mxu0 }
 0x4a1   : > { %v6926_v61 = vpop.eup %6925  ;;  %v9431_v59 = vadd.f32 1.0, %v6924_v20  ;;  %4069 = vrot.lane.b32.xlu0 %v9425_v54, %s7041_s30  ;;  %10924 = vst [vmem:[#allocation61_spill] sm:$0xff] %v9440_v40 }
 0x4a2   : > { %v3723_v49 = vsel %vm3722_vm7, %v6922_v22, %v3719_v7  ;;  %v3746_v45 = vmul.f32 %v6926_v61, %v3561_v24  ;;  %vm3751_vm0 = vweird.f32 %v6926_v61  ;;  %v3756_v7 = vand.u32 2147483648, %v3561_v24 }
 0x4a3   : > { %v3728_v21 = vsel %vm3725_vm10, %v3727_v63, %v3723_v49  ;;  %6927 = vrcp.f32 %v9431_v59  ;;  %v3754_v63 = vand.u32 2147483647, %v3561_v24  ;;  %vm3752_vm2 = vmor %vm3750_vm14, %vm3751_vm0  ;;  %vm3780_vm1 = vweird.f32 %v9431_v59 }
 0x4a4   : > { %v3807_v12 = vsub.f32 1.0, %v3728_v21  ;;  %v3747_v9 = vsub.f32 1.0, %v3746_v45  ;;  %v9436_v48 = vpop.f32.mrf.mxu2 }
 0x4a5   : > { %10922 = vst [vmem:[#allocation59_spill] sm:$0xff] %v9436_v48  ;;  %v9438_v51 = vpop.f32.mrf.mxu3  ;;  %vm3755_vm15 = vcmp.eq.f32.partialorder %v3754_v63, 8.507059e+37  ;;  %v6987_v63 = vld [vmem:[#allocation2 + $0x8] sm:$0xff] }
 0x4a6   : > { %10923 = vst [vmem:[#allocation60_spill] sm:$0xff] %v9438_v51  ;;  %v9442_v20 = vmul.f32 %v6986_v43, %v3807_v12  ;;  %v3748_v0 = vmul.f32 %v6926_v61, %v3747_v9  ;;  %v3388_v24 = vpop.f32.mrf.mxu1  ;;  %v3362_v51 = vadd.f32 %v9393_v30, %v9397_v55 }
 0x4a8   : > { %v3749_v22 = vadd.f32 %v6926_v61, %v3748_v0  ;;  %4031 = vrot.lane.b32.xlu2 %v9442_v20, %s7043_s11  ;;  %3901 = vrot.lane.b32.xlu1 %v9425_v54, %s7044_s12  ;;  %v3757_v0 = vor.u32 1.1754944e-38, %v3756_v7  ;;  %v9457_v43 = vpop.f32.mrf.mxu0 }
 0x4a9   : > { %v6928_v10 = vpop.eup %6927  ;;  %3941 = vrot.lane.b32.xlu0 %v9425_v54, %s7042_s10  ;;  %10928 = vst [vmem:[#allocation65_spill] sm:$0xff] %v9457_v43 }
 0x4aa   : > { %v3753_v49 = vsel %vm3752_vm2, %v6926_v61, %v3749_v22  ;;  %v3776_v45 = vmul.f32 %v6928_v10, %v9431_v59  ;;  %vm3781_vm9 = vweird.f32 %v6928_v10 }
 0x4ab   : > { %v3758_v9 = vsel %vm3755_vm15, %v3757_v0, %v3753_v49  ;;  %vm3782_vm6 = vmor %vm3780_vm1, %vm3781_vm9 }
 0x4ac   : > { %v9453_v21 = vpop.f32.mrf.mxu2  ;;  %v3777_v40 = vsub.f32 1.0, %v3776_v45  ;;  %v3809_v61 = vsub.f32 1.0, %v3758_v9  ;;  %v3360_v45 = vadd.f32 %v9384_v1, %v9390_v58  ;;  %v3786_v9 = vand.u32 2147483648, %v9431_v59 }
 0x4ad   : > { %10926 = vst [vmem:[#allocation63_spill] sm:$0xff] %v9453_v21  ;;  %v9455_v12 = vpop.f32.mrf.mxu3 }
 0x4ae   : > { %10927 = vst [vmem:[#allocation64_spill] sm:$0xff] %v9455_v12  ;;  %v3778_v22 = vmul.f32 %v6928_v10, %v3777_v40  ;;  %v9467_v49 = vmul.f32 %v6987_v63, %v3809_v61  ;;  %v3389_v43 = vadd.f32 %v3388_v24, %v3360_v45  ;;  %v3784_v61 = vand.u32 2147483647, %v9431_v59  ;;  %v3390_v1 = vpop.f32.mrf.mxu1 }
 0x4af   : > { %v3787_v63 = vor.u32 1.1754944e-38, %v3786_v9  ;;  %v3391_v59 = vadd.f32 %v3390_v1, %v3362_v51  ;;  %v3365_v9 = vadd.f32 %v9400_v17, %v9328_v15 }
 0x4b0   : > { %3903 = vrot.lane.b32.xlu2 %v9442_v20, %s7044_s12  ;;  %4071 = vrot.lane.b32.xlu1 %v9442_v20, %s7041_s30  ;;  %v3779_v0 = vadd.f32 %v6928_v10, %v3778_v22  ;;  %v3475_v40 = vpop.f32.mrf.mxu0  ;;  %vm3785_vm5 = vcmp.eq.f32.partialorder %v3784_v61, 8.507059e+37 }
 0x4b1   : > { %3991 = vrot.lane.b32.xlu0 %v9442_v20, %s7045_s14 }
 0x4b2   : > { %v3783_v58 = vsel %vm3782_vm6, %v6928_v10, %v3779_v0  ;;  %v6988_v0 = vld [vmem:[#allocation2 + $0x28] sm:$0xff] }
 0x4b3   : > { %v3788_v48 = vsel %vm3785_vm5, %v3787_v63, %v3783_v58 }
 0x4b4   : > { %v3417_v7 = vpop.f32.mrf.mxu2  ;;  %v3811_v10 = vsub.f32 1.0, %v3788_v48 }
 0x4b5   : > { %v9465_v21 = vpop.f32.mrf.mxu3  ;;  %v3418_v22 = vadd.f32 %v3417_v7, %v3389_v43 }
 0x4b6   : > { %10929 = vst [vmem:[#allocation66_spill] sm:$0xff] %v9465_v21  ;;  %v9488_v30 = vmul.f32 %v6988_v0, %v3811_v10 }
 0x4b8   : > { %4073 = vrot.lane.b32.xlu2 %v9467_v49, %s7041_s30  ;;  %3943 = vrot.lane.b32.xlu1 %v9442_v20, %s7042_s10  ;;  %v3477_v24 = vpop.f32.mrf.mxu0 }
 0x4b9   : > { %3993 = vrot.lane.b32.xlu0 %v9467_v49, %s7045_s14 }
 0x4bc   : > { %v3419_v21 = vpop.f32.mrf.mxu2 }
 0x4bd   : > { %v3446_v12 = vpop.f32.mrf.mxu3  ;;  %v3420_v7 = vadd.f32 %v3419_v21, %v3391_v59 }
 0x4be   : > { %v3447_v26 = vadd.f32 %v3446_v12, %v3418_v22  ;;  %v3393_v12 = vpop.f32.mrf.mxu1  ;;  %v3367_v22 = vadd.f32 %v9404_v8, %v9407_v57 }
 0x4bf   : > { %v3394_v48 = vadd.f32 %v3393_v12, %v3365_v9 }
 0x4c0   : > { %v3476_v13 = vadd.f32 %v3475_v40, %v3447_v26  ;;  %4033 = vrot.lane.b32.xlu2 %v9467_v49, %s7043_s11  ;;  %3945 = vrot.lane.b32.xlu1 %v9467_v49, %s7042_s10  ;;  %v3480_v61 = vpop.f32.mrf.mxu0 }
 0x4c1   : > { %3865 = vrot.lane.b32.xlu0 %v9467_v49, %s7047_s16 }
 0x4c2   : > { %v6158_v43 = vmul.f32 -1.442695, %v3476_v13 }
 0x4c4   : > { %6929 = vpow2.f32 %v6158_v43  ;;  %v3422_v26 = vpop.f32.mrf.mxu2 }
 0x4c5   : > { %v3448_v45 = vpop.f32.mrf.mxu3  ;;  %v3423_v1 = vadd.f32 %v3422_v26, %v3394_v48 }
 0x4c6   : > { %v3449_v55 = vadd.f32 %v3448_v45, %v3420_v7  ;;  %v3395_v17 = vpop.f32.mrf.mxu1 }
 0x4c7   : > { %v3396_v43 = vadd.f32 %v3395_v17, %v3367_v22 }
 0x4c8   : > { %v3478_v40 = vadd.f32 %v3477_v24, %v3449_v55  ;;  %3905 = vrot.lane.b32.xlu2 %v9467_v49, %s7044_s12  ;;  %3995 = vrot.lane.b32.xlu1 %v9488_v30, %s7045_s14  ;;  %v3482_v57 = vpop.f32.mrf.mxu0 }
 0x4c9   : > { %4075 = vrot.lane.b32.xlu0 %v9488_v30, %s7041_s30 }
 0x4ca   : > { %v6930_v13 = vpop.eup %6929  ;;  %v6160_v51 = vmul.f32 -1.442695, %v3478_v40 }
 0x4cb   : > { %v3558_v21 = vadd.f32 1.0, %v6930_v13 }
 0x4cc   : > { %6931 = vpow2.f32 %v6160_v51  ;;  %v3424_v59 = vpop.f32.mrf.mxu2 }
 0x4cd   : > { %6933 = vrcp.f32 %v3558_v21  ;;  %v3451_v58 = vpop.f32.mrf.mxu3  ;;  %v3425_v0 = vadd.f32 %v3424_v59, %v3396_v43  ;;  %v3711_v9 = vand.u32 2147483648, %v3558_v21  ;;  %v3709_v13 = vand.u32 2147483647, %v3558_v21 }
 0x4ce   : > { %v3452_v15 = vadd.f32 %v3451_v58, %v3423_v1  ;;  %vm3705_vm10 = vweird.f32 %v3558_v21 }
 0x4cf   : > { %vm3710_vm14 = vcmp.eq.f32.partialorder %v3709_v13, 8.507059e+37 }
 0x4d0   : > { %v3481_v63 = vadd.f32 %v3480_v61, %v3452_v15  ;;  %3947 = vrot.lane.b32.xlu2 %v9488_v30, %s7042_s10  ;;  %3867 = vrot.lane.b32.xlu1 %v9488_v30, %s7047_s16  ;;  %v3712_v15 = vor.u32 1.1754944e-38, %v3711_v9 }
 0x4d1   : > { %4035 = vrot.lane.b32.xlu0 %v9488_v30, %s7043_s11 }
 0x4d2   : > { %v6932_v10 = vpop.eup %6931  ;;  %v6162_v24 = vmul.f32 -1.442695, %v3481_v63 }
 0x4d3   : > { %v6934_v7 = vpop.eup %6933  ;;  %v3560_v12 = vadd.f32 1.0, %v6932_v10 }
 0x4d4   : > { %v3701_v45 = vmul.f32 %v6934_v7, %v3558_v21  ;;  %6935 = vpow2.f32 %v6162_v24  ;;  %vm3706_vm7 = vweird.f32 %v6934_v7 }
 0x4d5   : > { %6937 = vrcp.f32 %v3560_v12  ;;  %v3453_v8 = vpop.f32.mrf.mxu3  ;;  %vm3707_vm0 = vmor %vm3705_vm10, %vm3706_vm7  ;;  %v3741_v24 = vand.u32 2147483648, %v3560_v12  ;;  %v3739_v21 = vand.u32 2147483647, %v3560_v12  ;;  %vm3735_vm15 = vweird.f32 %v3560_v12 }
 0x4d6   : > { %v3702_v55 = vsub.f32 1.0, %v3701_v45  ;;  %v3454_v26 = vadd.f32 %v3453_v8, %v3425_v0  ;;  %v6989_v45 = vld [vmem:[#allocation2] sm:$0xff] }
 0x4d7   : > { %v3742_v9 = vor.u32 1.1754944e-38, %v3741_v24  ;;  %vm3740_vm1 = vcmp.eq.f32.partialorder %v3739_v21, 8.507059e+37 }
 0x4d8   : > { %v3703_v40 = vmul.f32 %v6934_v7, %v3702_v55  ;;  %v3483_v48 = vadd.f32 %v3482_v57, %v3454_v26 }
 0x4d9   : > { %3907 = vrot.lane.b32.xlu0 %v9488_v30, %s7044_s12 }
 0x4da   : > { %v6936_v51 = vpop.eup %6935  ;;  %v3704_v61 = vadd.f32 %v6934_v7, %v3703_v40  ;;  %v6164_v1 = vmul.f32 -1.442695, %v3483_v48 }
 0x4db   : > { %v6938_v58 = vpop.eup %6937  ;;  %v3562_v17 = vadd.f32 1.0, %v6936_v51 }
 0x4dc   : > { %v3708_v22 = vsel %vm3707_vm0, %v6934_v7, %v3704_v61  ;;  %v3731_v63 = vmul.f32 %v6938_v58, %v3560_v12  ;;  %6939 = vpow2.f32 %v6164_v1  ;;  %vm3736_vm2 = vweird.f32 %v6938_v58 }
 0x4dd   : > { %v3713_v59 = vsel %vm3710_vm14, %v3712_v15, %v3708_v22  ;;  %6941 = vrcp.f32 %v3562_v17  ;;  %vm3737_vm9 = vmor %vm3735_vm15, %vm3736_vm2  ;;  %v3771_v1 = vand.u32 2147483648, %v3562_v17  ;;  %v6990_v15 = vld [vmem:[#allocation2 + $0x10] sm:$0xff]  ;;  %vm3765_vm5 = vweird.f32 %v3562_v17 }
 0x4de   : > { %v3806_v10 = vsub.f32 1.0, %v3713_v59  ;;  %v3732_v43 = vsub.f32 1.0, %v3731_v63  ;;  %v3769_v59 = vand.u32 2147483647, %v3562_v17 }
 0x4df   : > { %v3772_v24 = vor.u32 1.1754944e-38, %v3771_v1 }
 0x4e0   : > { %v9508_v0 = vmul.f32 %v6989_v45, %v3806_v10  ;;  %v3733_v8 = vmul.f32 %v6938_v58, %v3732_v43  ;;  %vm3770_vm10 = vcmp.eq.f32.partialorder %v3769_v59, 8.507059e+37 }
 0x4e2   : > { %v6940_v57 = vpop.eup %6939  ;;  %v3734_v55 = vadd.f32 %v6938_v58, %v3733_v8  ;;  %3997 = vrot.lane.b32.xlu1 %v9508_v0, %s7045_s14  ;;  %4037 = vrot.lane.b32.xlu0 %v9508_v0, %s7043_s11  ;;  %v3981_v7 = vpack.c.bf16 %v9508_v0, %v9425_v54 }
 0x4e3   : > { %v6942_v26 = vpop.eup %6941  ;;  %v3564_v40 = vadd.f32 1.0, %v6940_v57  ;;  %4077 = vrot.lane.b32.xlu2 %v9508_v0, %s7041_s30 }
 0x4e4   : > { %v3738_v13 = vsel %vm3737_vm9, %v6938_v58, %v3734_v55  ;;  %v3761_v48 = vmul.f32 %v6942_v26, %v3562_v17  ;;  %3985 = vst [vmem:[#allocation3 + $0x80] sm:$0xff] %v3981_v7  ;;  %vm3766_vm6 = vweird.f32 %v6942_v26  ;;  %v6991_v7 = vld [vmem:[#allocation2 + $0x20] sm:$0xff]  ;;  %vm10930_vm9 = vcmp.lt.s32.totalorder %v7215_v25, 112 }
 0x4e5   : > { %v3743_v12 = vsel %vm3740_vm1, %v3742_v9, %v3738_v13  ;;  %6943 = vrcp.f32 %v3564_v40  ;;  %vm3767_vm7 = vmor %vm3765_vm5, %vm3766_vm6  ;;  %v3801_v55 = vand.u32 2147483648, %v3564_v40  ;;  %vm3795_vm14 = vweird.f32 %v3564_v40 }
 0x4e6   : > { %v3808_v51 = vsub.f32 1.0, %v3743_v12  ;;  %v3762_v61 = vsub.f32 1.0, %v3761_v48  ;;  %v3799_v48 = vand.u32 2147483647, %v3564_v40  ;;  %vm10931_vm1 = vmmov %vm10930_vm9  ;;  %vm10932_vm6 = vcmp.lt.s32.totalorder %v7215_v25, 1 }
 0x4e7   : > { %vm10933_vm5 = vmmov %vm10932_vm6 }
 0x4e8   : > { %v9518_v22 = vmul.f32 %v6990_v15, %v3808_v51  ;;  %v3763_v63 = vmul.f32 %v6942_v26, %v3762_v61  ;;  %v3802_v51 = vor.u32 1.1754944e-38, %v3801_v55  ;;  %vm3800_vm15 = vcmp.eq.f32.partialorder %v3799_v48, 8.507059e+37 }
 0x4ea   : > { %v3764_v10 = vadd.f32 %v6942_v26, %v3763_v63  ;;  %4039 = vrot.lane.b32.xlu1 %v9518_v22, %s7043_s11  ;;  %3909 = vrot.lane.b32.xlu0 %v9508_v0, %s7044_s12  ;;  %v3982_v58 = vpack.c.bf16 %v9518_v22, %v9442_v20  ;;  %v6992_v63 = vld [vmem:[#allocation2 + $0x38] sm:$0xff] }
 0x4eb   : > { %v6944_v43 = vpop.eup %6943  ;;  %3949 = vrot.lane.b32.xlu2 %v9508_v0, %s7042_s10 }
 0x4ec   : > { %v3768_v45 = vsel %vm3767_vm7, %v6942_v26, %v3764_v10  ;;  %v3791_v8 = vmul.f32 %v6944_v43, %v3564_v40  ;;  %3986 = vst [vmem:[#allocation3 + $0x88] sm:$0xff] %v3982_v58  ;;  %vm3796_vm0 = vweird.f32 %v6944_v43  ;;  %vm10934_vm7 = vmmov %vm10931_vm1 }
 0x4ed   : > { %v3773_v17 = vsel %vm3770_vm10, %v3772_v24, %v3768_v45  ;;  %vm3797_vm2 = vmor %vm3795_vm14, %vm3796_vm0 }
 0x4ee   : > { %v3810_v21 = vsub.f32 1.0, %v3773_v17  ;;  %v3792_v57 = vsub.f32 1.0, %v3791_v8  ;;  %vm10935_vm10 = vmmov %vm10931_vm1 }
 0x4ef   : > { %vm10936_vm0 = vmmov %vm10931_vm1 }
 0x4f0   : > { %v3818_v9 = vmul.f32 %v6991_v7, %v3810_v21  ;;  %v3793_v13 = vmul.f32 %v6944_v43, %v3792_v57  ;;  %vm10937_vm14 = vmmov %vm10936_vm0 }
 0x4f2   : > { %v3794_v12 = vadd.f32 %v6944_v43, %v3793_v13  ;;  %3911 = vrot.lane.b32.xlu1 %v9518_v22, %s7044_s12  ;;  %4079 = vrot.lane.b32.xlu0 %v9518_v22, %s7041_s30  ;;  %v3983_v26 = vpack.c.bf16 %v3818_v9, %v9467_v49 }
 0x4f3   : > { %3999 = vrot.lane.b32.xlu2 %v9518_v22, %s7045_s14 }
 0x4f4   : > { %v3798_v61 = vsel %vm3797_vm2, %v6944_v43, %v3794_v12  ;;  %3987 = vst [vmem:[#allocation3 + $0x90] sm:$0xff] %v3983_v26  ;;  %vm10938_vm2 = vmmov %vm10936_vm0 }
 0x4f5   : > { %v3803_v1 = vsel %vm3800_vm15, %v3802_v51, %v3798_v61  ;;  %vm10939_vm15 = vmmov %vm10936_vm0 }
 0x4f6   : > { %v3812_v15 = vsub.f32 1.0, %v3803_v1 }
 0x4f8   : > { %v3820_v40 = vmul.f32 %v6992_v63, %v3812_v15 }
 0x4fa   : > { %v9535_v59 = vpop.permute.xlu2 %3989  ;;  %4081 = vrot.lane.b32.xlu1 %v3818_v9, %s7041_s30  ;;  %3951 = vrot.lane.b32.xlu0 %v9518_v22, %s7042_s10  ;;  %v3984_v10 = vpack.c.bf16 %v3820_v40, %v9488_v30 }
 0x4fb   : > { %4001 = vrot.lane.b32.xlu2 %v3818_v9, %s7045_s14 }
 0x4fc   : > { %3988 = vst [vmem:[#allocation3 + $0x98] sm:$0xff] %v3984_v10 }
 0x502   : > { %4041 = vrot.lane.b32.xlu1 %v3818_v9, %s7043_s11  ;;  %3953 = vrot.lane.b32.xlu0 %v3818_v9, %s7042_s10  ;;  %v9544_v58 = vpop.permute.xlu2 %4031 }
 0x503   : > { %3873 = vrot.lane.b32.xlu2 %v3818_v9, %s7047_s16 }
 0x50a   : > { %3913 = vrot.lane.b32.xlu1 %v3818_v9, %s7044_s12  ;;  %3869 = vrot.lane.b32.xlu0 %v9508_v0, %s7047_s16  ;;  %v9551_v43 = vpop.permute.xlu2 %3903 }
 0x50b   : > { %4083 = vrot.lane.b32.xlu2 %v3820_v40, %s7041_s30 }
 0x512   : > { %v9553_v24 = vpop.permute.xlu1 %4029  ;;  %3955 = vrot.lane.b32.xlu1 %v3820_v40, %s7042_s10  ;;  %3827 = vrot.lane.b32.xlu0 %v9488_v30, %s7049_s17  ;;  %v9560_v8 = vpop.permute.xlu2 %4073 }
 0x513   : > { %v4070_v45 = vpop.permute.xlu0 %4069  ;;  %3863 = vrot.lane.b32.xlu2 %v9442_v20, %s7047_s16 }
 0x51a   : > { %v9562_v17 = vpop.permute.xlu1 %3901  ;;  %3861 = vrot.lane.b32.xlu1 %v9425_v54, %s7047_s16  ;;  %4003 = vrot.lane.b32.xlu0 %v3820_v40, %s7045_s14  ;;  %v9568_v57 = vpop.permute.xlu2 %4033 }
 0x51b   : > { %v3942_v21 = vpop.permute.xlu0 %3941  ;;  %4043 = vrot.lane.b32.xlu2 %v3820_v40, %s7043_s11 }
 0x522   : > { %3871 = vrot.lane.b32.xlu1 %v9518_v22, %s7047_s16  ;;  %3875 = vrot.lane.b32.xlu0 %v3820_v40, %s7047_s16  ;;  %v9574_v7 = vpop.permute.xlu1 %4071  ;;  %v9579_v13 = vpop.permute.xlu2 %3905 }
 0x523   : > { %v3992_v55 = vpop.permute.xlu0 %3991  ;;  %3915 = vrot.lane.b32.xlu2 %v3820_v40, %s7044_s12 }
 0x52a   : > { %3833 = vrot.lane.b32.xlu1 %v3818_v9, %s7049_s17  ;;  %3821 = vrot.lane.b32.xlu0 %v9425_v54, %s7049_s17  ;;  %v9585_v12 = vpop.permute.xlu1 %3943  ;;  %v9594_v51 = vpop.permute.xlu2 %3947 }
 0x52b   : > { %v9581_v48 = vpop.permute.xlu0 %3993  ;;  %3825 = vrot.lane.b32.xlu2 %v9467_v49, %s7049_s17 }
 0x532   : > { %3823 = vrot.lane.b32.xlu1 %v9442_v20, %s7049_s17  ;;  %3831 = vrot.lane.b32.xlu0 %v9518_v22, %s7049_s17  ;;  %v9596_v61 = vpop.permute.xlu1 %3945 }
 0x533   : > { %v9591_v26 = vpop.permute.xlu0 %3865  ;;  %3835 = vrot.lane.b32.xlu2 %v3820_v40, %s7049_s17 }
 0x53a   : > { %4113 = vrot.lane.b32.xlu1 %v9467_v49, %s7046_s15  ;;  %4121 = vrot.lane.b32.xlu0 %v3818_v9, %s7046_s15  ;;  %v9611_v49 = vpop.permute.xlu1 %3995 }
 0x53b   : > { %v9601_v1 = vpop.permute.xlu0 %4075  ;;  %3829 = vrot.lane.b32.xlu2 %v9508_v0, %s7049_s17 }
 0x53d   : > { %v4078_v15 = vpop.permute.xlu2 %4077 }
 0x53e   : > { %v4085_v63 = vsel %vm10930_vm9, %v4070_v45, %v4078_v15  ;;  %v4089_v10 = vsel %vm10931_vm1, %v4078_v15, %v4070_v45  ;;  %vm10940_vm9 = vmmov %vm10933_vm5 }
 0x53f   : > { %v4093_v19 = vmul.f32 %v7291_v52, %v4085_v63  ;;  %v4094_v62 = vmul.f32 %v7294_v53, %v4089_v10  ;;  %vm10941_vm1 = vmmov %vm10933_vm5 }
 0x541   : > { %v4101_v4 = vpack.c.bf16 %v4094_v62, %v4093_v19 }
 0x542   : > { %4123 = vrot.lane.b32.xlu1 %v3820_v40, %s7046_s15  ;;  %4111 = vrot.lane.b32.xlu0 %v9442_v20, %s7046_s15 }
 0x543   : > { %4105 = vst [vmem:[#allocation3 + $0xe0] sm:$0xff] %v4101_v4  ;;  %v9616_v9 = vpop.permute.xlu0 %4035  ;;  %4115 = vrot.lane.b32.xlu2 %v9488_v30, %s7046_s15  ;;  %v1129_v4 = vld [vmem:[%s10723_s6 + $0x50] sm:$0xff]  ;;  %v9633_v30 = vpop.permute.xlu1 %3867 }
 0x545   : > { %v3950_v11 = vpop.permute.xlu2 %3949 }
 0x546   : > { %v3957_v45 = vsel %vm10932_vm6, %v3942_v21, %v3950_v11  ;;  %v3961_v62 = vsel %vm10933_vm5, %v3950_v11, %v3942_v21  ;;  %vm10942_vm6 = vmmov %vm10941_vm1 }
 0x547   : > { %v3965_v19 = vmul.f32 %v7379_v37, %v3961_v62  ;;  %v3966_v40 = vmul.f32 %v7382_v38, %v3957_v45  ;;  %v1130_v45 = vld [vmem:[%s10723_s6 + $0x58] sm:$0xff]  ;;  %vm10943_vm5 = vmmov %vm10941_vm1 }
 0x549   : > { %v3973_v20 = vpack.c.bf16 %v3966_v40, %v3965_v19 }
 0x54a   : > { %4117 = vrot.lane.b32.xlu1 %v9508_v0, %s7046_s15  ;;  %1183 = vperm.xlu0 %6911, %v1129_v4  }
 0x54b   : > { %3977 = vst [vmem:[#allocation3 + $0x60] sm:$0xff] %v3973_v20  ;;  %4109 = vrot.lane.b32.xlu2 %v9425_v54, %s7046_s15  ;;  %v9635_v11 = vpop.permute.xlu0 %3907  ;;  %v1128_v54 = vld [vmem:[%s10723_s6 + $0x48] sm:$0xff] }
 0x54d   : > { %v4000_v21 = vpop.permute.xlu2 %3999 }
 0x54e   : > { %v4006_v15 = vsel %vm637_vm12, %v3992_v55, %v4000_v21  ;;  %v4010_v63 = vsel %vm637_vm12, %v4000_v21, %v3992_v55 }
 0x54f   : > { %v4015_v10 = vmul.f32 %v7574_v28, %v4006_v15  ;;  %v4016_v0 = vmul.f32 %v7577_v29, %v4010_v63 }
 0x551   : > { %v4022_v62 = vpack.c.bf16 %v4016_v0, %v4015_v10 }
 0x552   : > { %1188 = vperm.xlu1 %6912, %v1130_v45   ;;  %1178 = vperm.xlu0 %6911, %v1128_v54  }
 0x553   : > { %4026 = vst [vmem:[#allocation3 + $0xa8] sm:$0xff] %v4022_v62  ;;  %4119 = vrot.lane.b32.xlu2 %v9518_v22, %s7046_s15 }
 0x554   : > { %v3998_v55 = vpop.permute.xlu1 %3997  ;;  %v4038_v19 = vpop.permute.xlu0 %4037 }
 0x555   : > { %v4005_v40 = vsel %vm637_vm12, %v9535_v59, %v3998_v55  ;;  %v4009_v4 = vsel %vm637_vm12, %v3998_v55, %v9535_v59  ;;  %v4045_v20 = vsel %vm658_vm11, %v9553_v24, %v4038_v19  ;;  %v4049_v21 = vsel %vm658_vm11, %v4038_v19, %v9553_v24  ;;  %v4002_v15 = vpop.permute.xlu2 %4001  ;;  %v1127_v19 = vld [vmem:[%s10723_s6 + $0x40] sm:$0xff] }
 0x556   : > { %v4013_v22 = vmul.f32 %v7574_v28, %v4005_v40  ;;  %v4014_v63 = vmul.f32 %v7577_v29, %v4009_v4  ;;  %v4053_v10 = vmul.f32 %v10884_v16, %v4045_v20  ;;  %v4054_v0 = vmul.f32 %v10885_v39, %v4049_v21 }
 0x557   : > { %v4007_v59 = vsel %vm637_vm12, %v9581_v48, %v4002_v15  ;;  %v4011_v45 = vsel %vm637_vm12, %v4002_v15, %v9581_v48 }
 0x558   : > { %v4021_v54 = vpack.c.bf16 %v4014_v63, %v4013_v22  ;;  %v4061_v62 = vpack.c.bf16 %v4054_v0, %v4053_v10  ;;  %v4017_v24 = vmul.f32 %v7574_v28, %v4007_v59  ;;  %v4018_v55 = vmul.f32 %v7577_v29, %v4011_v45 }
 0x55a   : > { %4025 = vst [vmem:[#allocation3 + $0xa0] sm:$0xff] %v4021_v54  ;;  %v4023_v40 = vpack.c.bf16 %v4018_v55, %v4017_v24 }
 0x55b   : > { %4065 = vst [vmem:[#allocation3 + $0xc0] sm:$0xff] %v4061_v62  ;;  %1173 = vperm.xlu2 %6910, %v1127_v19  }
 0x55c   : > { %4027 = vst [vmem:[#allocation3 + $0xb0] sm:$0xff] %v4023_v40  ;;  %v4040_v4 = vpop.permute.xlu1 %4039  ;;  %v3910_v20 = vpop.permute.xlu0 %3909 }
 0x55d   : > { %v4046_v48 = vsel %vm658_vm11, %v9544_v58, %v4040_v4  ;;  %v4050_v21 = vsel %vm658_vm11, %v4040_v4, %v9544_v58  ;;  %v3917_v15 = vsel %vm593_vm4, %v9562_v17, %v3910_v20  ;;  %v3921_v22 = vsel %vm593_vm4, %v3910_v20, %v9562_v17  ;;  %v3874_v63 = vpop.permute.xlu2 %3873 }
 0x55e   : > { %v4055_v10 = vmul.f32 %v10884_v16, %v4046_v48  ;;  %v4056_v0 = vmul.f32 %v10885_v39, %v4050_v21  ;;  %v3925_v59 = vmul.f32 %v7511_v18, %v3921_v22  ;;  %v3926_v45 = vmul.f32 %v7514_v36, %v3917_v15 }
 0x55f   : > { %v3879_v58 = vsel %vm572_vm8, %v9591_v26, %v3874_v63  ;;  %v3883_v54 = vsel %vm572_vm8, %v3874_v63, %v9591_v26 }
 0x560   : > { %v4062_v62 = vpack.c.bf16 %v4056_v0, %v4055_v10  ;;  %v3933_v24 = vpack.c.bf16 %v3926_v45, %v3925_v59  ;;  %v3889_v17 = vmul.f32 %v7694_v35, %v3883_v54  ;;  %v3890_v55 = vmul.f32 %v7697_v41, %v3879_v58 }
 0x562   : > { %4066 = vst [vmem:[#allocation3 + $0xc8] sm:$0xff] %v4062_v62  ;;  %v3895_v19 = vpack.c.bf16 %v3890_v55, %v3889_v17 }
 0x563   : > { %3937 = vst [vmem:[#allocation3 + $0x40] sm:$0xff] %v3933_v24 }
 0x564   : > { %3899 = vst [vmem:[#allocation3 + $0x30] sm:$0xff] %v3895_v19  ;;  %v3912_v40 = vpop.permute.xlu1 %3911  ;;  %v4080_v4 = vpop.permute.xlu0 %4079 }
 0x565   : > { %v3918_v20 = vsel %vm593_vm4, %v9551_v43, %v3912_v40  ;;  %v3922_v26 = vsel %vm593_vm4, %v3912_v40, %v9551_v43  ;;  %v4086_v48 = vsel %vm10934_vm7, %v9574_v7, %v4080_v4  ;;  %v4090_v21 = vsel %vm10935_vm10, %v4080_v4, %v9574_v7  ;;  %v4084_v15 = vpop.permute.xlu2 %4083  ;;  %vm10944_vm7 = vmmov %vm10941_vm1 }
 0x566   : > { %v3927_v22 = vmul.f32 %v7511_v18, %v3922_v26  ;;  %v3928_v63 = vmul.f32 %v7514_v36, %v3918_v20  ;;  %v4095_v10 = vmul.f32 %v7291_v52, %v4086_v48  ;;  %v4096_v0 = vmul.f32 %v7294_v53, %v4090_v21  ;;  %vm10945_vm10 = vmmov %vm10941_vm1 }
 0x567   : > { %v4088_v43 = vsel %vm10936_vm0, %v9601_v1, %v4084_v15  ;;  %v4092_v59 = vsel %vm10937_vm14, %v4084_v15, %v9601_v1  ;;  %vm4403_vm0 = vcmask 261120   ;;  %vm10964_vm14 = vmmov %vm10938_vm2 }
 0x568   : > { %v3934_v45 = vpack.c.bf16 %v3928_v63, %v3927_v22  ;;  %v4102_v58 = vpack.c.bf16 %v4096_v0, %v4095_v10  ;;  %v4099_v7 = vmul.f32 %v7291_v52, %v4088_v43  ;;  %v4100_v54 = vmul.f32 %v7294_v53, %v4092_v59 }
 0x56a   : > { %3938 = vst [vmem:[#allocation3 + $0x48] sm:$0xff] %v3934_v45  ;;  %v4104_v62 = vpack.c.bf16 %v4100_v54, %v4099_v7 }
 0x56b   : > { %4106 = vst [vmem:[#allocation3 + $0xe8] sm:$0xff] %v4102_v58 }
 0x56c   : > { %4108 = vst [vmem:[#allocation3 + $0xf8] sm:$0xff] %v4104_v62  ;;  %v4082_v24 = vpop.permute.xlu1 %4081  ;;  %v3952_v17 = vpop.permute.xlu0 %3951 }
 0x56d   : > { %v4087_v55 = vsel %vm10938_vm2, %v9560_v8, %v4082_v24  ;;  %v4091_v1 = vsel %vm10939_vm15, %v4082_v24, %v9560_v8  ;;  %v3958_v19 = vsel %vm10940_vm9, %v9585_v12, %v3952_v17  ;;  %v3962_v40 = vsel %vm10941_vm1, %v3952_v17, %v9585_v12  ;;  %v9738_v4 = vpop.permute.xlu2 %3863  ;;  %vm10965_vm15 = vmmov %vm10941_vm1 }
 0x56e   : > { %v4097_v20 = vmul.f32 %v7291_v52, %v4087_v55  ;;  %v4098_v26 = vmul.f32 %v7294_v53, %v4091_v1  ;;  %v3967_v48 = vmul.f32 %v7379_v37, %v3962_v40  ;;  %v3968_v21 = vmul.f32 %v7382_v38, %v3958_v19  ;;  %vm10966_vm9 = vmmov %vm10941_vm1 }
 0x56f   : > { %vm10967_vm1 = vmmov %vm10938_vm2 }
 0x570   : > { %v4103_v15 = vpack.c.bf16 %v4098_v26, %v4097_v20  ;;  %v3974_v8 = vpack.c.bf16 %v3968_v21, %v3967_v48 }
 0x572   : > { %4107 = vst [vmem:[#allocation3 + $0xf0] sm:$0xff] %v4103_v15  ;;  %v6717_v15 = vld [vmem:[#allocation3 + $0xe4] sm:$0xf0] }
 0x573   : > { %3978 = vst [vmem:[#allocation3 + $0x68] sm:$0xff] %v3974_v8  ;;  %v6719_v1 = vld [vmem:[#allocation3 + $0xf4] sm:$0xf0]  ;;  %v6313_v20 = vld [vmem:[#allocation3 + $0xf8] sm:$0xf0] }
 0x574   : > { %v4042_v22 = vpop.permute.xlu1 %4041  ;;  %v3954_v63 = vpop.permute.xlu0 %3953  ;;  %v6305_v8 = vld [vmem:[#allocation3 + $0xe8] sm:$0xf0] }
 0x575   : > { %v4047_v12 = vsel %vm658_vm11, %v9568_v57, %v4042_v22  ;;  %v4051_v10 = vsel %vm658_vm11, %v4042_v22, %v9568_v57  ;;  %v3959_v0 = vsel %vm10942_vm6, %v9596_v61, %v3954_v63  ;;  %v3963_v43 = vsel %vm10943_vm5, %v3954_v63, %v9596_v61  ;;  %v4044_v59 = vpop.permute.xlu2 %4043  ;;  %v6303_v63 = vld [vmem:[#allocation3 + $0xe0] sm:$0xf]  ;;  %vm10968_vm6 = vmmov %vm10967_vm1 }
 0x576   : > { %v4057_v45 = vmul.f32 %v10884_v16, %v4047_v12  ;;  %v4058_v58 = vmul.f32 %v10885_v39, %v4051_v10  ;;  %v3969_v7 = vmul.f32 %v7379_v37, %v3963_v43  ;;  %v3970_v54 = vmul.f32 %v7382_v38, %v3959_v0  ;;  %v6716_v12 = vld [vmem:[#allocation3 + $0xe4] sm:$0xf] }
 0x577   : > { %v4048_v57 = vsel %vm658_vm11, %v9616_v9, %v4044_v59  ;;  %v4052_v62 = vsel %vm658_vm11, %v4044_v59, %v9616_v9  ;;  %v6304_v59 = vor.u32 %v6717_v15, %v6303_v63 }
 0x578   : > { %v4063_v24 = vpack.c.bf16 %v4058_v58, %v4057_v45  ;;  %v3975_v17 = vpack.c.bf16 %v3970_v54, %v3969_v7  ;;  %v4059_v61 = vmul.f32 %v10884_v16, %v4048_v57  ;;  %v4060_v55 = vmul.f32 %v10885_v39, %v4052_v62 }
 0x579   : > { %v6311_v19 = vld [vmem:[#allocation3 + $0xf0] sm:$0xf]  ;;  %v6718_v40 = vld [vmem:[#allocation3 + $0xf4] sm:$0xf]  ;;  %v6308_v45 = vor.u32 %v6716_v12, %v6305_v8  ;;  %v6713_v8 = vld [vmem:[#allocation3 + $0xc4] sm:$0xf0] }
 0x57a   : > { %4067 = vst [vmem:[#allocation3 + $0xd0] sm:$0xff] %v4063_v24  ;;  %v4064_v26 = vpack.c.bf16 %v4060_v55, %v4059_v61  ;;  %v6312_v48 = vor.u32 %v6719_v1, %v6311_v19  ;;  %v6316_v21 = vor.u32 %v6718_v40, %v6313_v20 }
 0x57b   : > { %3979 = vst [vmem:[#allocation3 + $0x70] sm:$0xff] %v3975_v17 }
 0x57c   : > { %4068 = vst [vmem:[#allocation3 + $0xd8] sm:$0xff] %v4064_v26  ;;  %v3914_v22 = vpop.permute.xlu1 %3913  ;;  %v3870_v9 = vpop.permute.xlu0 %3869  ;;  %4429 = vmatpush.bf16.msra.mxu2 %v6312_v48  ;;  %4486 = vmatpush.bf16.msrb.mxu3 %v6316_v21 }
 0x57d   : > { %v3919_v10 = vsel %vm593_vm4, %v9579_v13, %v3914_v22  ;;  %v3923_v0 = vsel %vm593_vm4, %v3914_v22, %v9579_v13  ;;  %v3916_v43 = vpop.permute.xlu2 %3915  ;;  %v6289_v22 = vld [vmem:[#allocation3 + $0xc8] sm:$0xf0] }
 0x57e   : > { %v3929_v58 = vmul.f32 %v7511_v18, %v3923_v0  ;;  %v3930_v7 = vmul.f32 %v7514_v36, %v3919_v10  ;;  %v3920_v54 = vsel %vm593_vm4, %v9635_v11, %v3916_v43  ;;  %v3924_v57 = vsel %vm593_vm4, %v3916_v43, %v9635_v11  ;;  %v6287_v10 = vld [vmem:[#allocation3 + $0xc0] sm:$0xf]  ;;  %v6712_v0 = vld [vmem:[#allocation3 + $0xc4] sm:$0xf] }
 0x57f   : > { %v3931_v62 = vmul.f32 %v7511_v18, %v3924_v57  ;;  %v3932_v24 = vmul.f32 %v7514_v36, %v3920_v54 }
 0x580   : > { %v3935_v13 = vpack.c.bf16 %v3930_v7, %v3929_v58  ;;  %4430 = vmatpush.bf16.msra.mxu2 %v6304_v59  ;;  %4487 = vmatpush.bf16.msrb.mxu3 %v6308_v45  ;;  %v6288_v59 = vor.u32 %v6713_v8, %v6287_v10  ;;  %v6292_v45 = vor.u32 %v6712_v0, %v6289_v22 }
 0x581   : > { %v3936_v17 = vpack.c.bf16 %v3932_v24, %v3931_v62  ;;  %v6295_v61 = vld [vmem:[#allocation3 + $0xd0] sm:$0xf]  ;;  %v6714_v55 = vld [vmem:[#allocation3 + $0xd4] sm:$0xf] }
 0x582   : > { %3939 = vst [vmem:[#allocation3 + $0x50] sm:$0xff] %v3935_v13 }
 0x583   : > { %3940 = vst [vmem:[#allocation3 + $0x58] sm:$0xff] %v3936_v17  ;;  %v6715_v1 = vld [vmem:[#allocation3 + $0xd4] sm:$0xf0]  ;;  %v6297_v19 = vld [vmem:[#allocation3 + $0xd8] sm:$0xf0] }
 0x584   : > { %v3956_v40 = vpop.permute.xlu1 %3955  ;;  %v3828_v20 = vpop.permute.xlu0 %3827  ;;  %v6296_v26 = vor.u32 %v6715_v1, %v6295_v61  ;;  %v6300_v48 = vor.u32 %v6714_v55, %v6297_v19 }
 0x585   : > { %v3960_v11 = vsel %vm10944_vm7, %v9594_v51, %v3956_v40  ;;  %v3964_v21 = vsel %vm10945_vm10, %v3956_v40, %v9594_v51  ;;  %v9790_v15 = vpop.permute.xlu2 %3825  ;;  %vm10969_vm7 = vmmov %vm10943_vm5 }
 0x586   : > { %v3971_v63 = vmul.f32 %v7379_v37, %v3964_v21  ;;  %v3972_v12 = vmul.f32 %v7382_v38, %v3960_v11  ;;  %4431 = vmatpush.bf16.msra.mxu2 %v6296_v26  ;;  %4488 = vmatpush.bf16.msrb.mxu3 %v6300_v48  ;;  %v6247_v48 = vld [vmem:[#allocation3 + $0x70] sm:$0xf]  ;;  %v6701_v21 = vld [vmem:[#allocation3 + $0x64] sm:$0xf0]  ;;  %vm10970_vm10 = vmmov %vm10967_vm1 }
 0x588   : > { %v3976_v43 = vpack.c.bf16 %v3972_v12, %v3971_v63  ;;  %v6239_v63 = vld [vmem:[#allocation3 + $0x60] sm:$0xf] }
 0x589   : > { %v6240_v0 = vor.u32 %v6701_v21, %v6239_v63  ;;  %v6271_v21 = vld [vmem:[#allocation3 + $0xa0] sm:$0xf] }
 0x58a   : > { %3980 = vst [vmem:[#allocation3 + $0x78] sm:$0xff] %v3976_v43  ;;  %4432 = vmatpush.bf16.msra.mxu2 %v6288_v59  ;;  %4489 = vmatpush.bf16.msrb.mxu3 %v6292_v45 }
 0x58c   : > { %v3862_v58 = vpop.permute.xlu1 %3861  ;;  %v4004_v51 = vpop.permute.xlu0 %4003 }
 0x58d   : > { %v3877_v7 = vsel %vm572_vm8, %v3862_v58, %v3870_v9  ;;  %v3881_v54 = vsel %vm572_vm8, %v3870_v9, %v3862_v58  ;;  %v4008_v57 = vsel %vm637_vm12, %v9611_v49, %v4004_v51  ;;  %v4012_v62 = vsel %vm637_vm12, %v4004_v51, %v9611_v49  ;;  %v3836_v24 = vpop.permute.xlu2 %3835 }
 0x58e   : > { %v3885_v13 = vmul.f32 %v7694_v35, %v3881_v54  ;;  %v3886_v17 = vmul.f32 %v7697_v41, %v3877_v7  ;;  %v4019_v61 = vmul.f32 %v7574_v28, %v4008_v57  ;;  %v4020_v55 = vmul.f32 %v7577_v29, %v4012_v62  ;;  %v6231_v62 = vld [vmem:[#allocation3 + $0x50] sm:$0xf] }
 0x58f   : > { %v3840_v9 = vsel %vm551_vm3, %v3828_v20, %v3836_v24  ;;  %v3844_v1 = vsel %vm551_vm3, %v3836_v24, %v3828_v20  ;;  %v6699_v24 = vld [vmem:[#allocation3 + $0x54] sm:$0xf0] }
 0x590   : > { %v3893_v19 = vpack.c.bf16 %v3886_v17, %v3885_v13  ;;  %v4024_v40 = vpack.c.bf16 %v4020_v55, %v4019_v61  ;;  %v3851_v26 = vmul.f32 %v7803_v46, %v3844_v1  ;;  %v3852_v49 = vmul.f32 %v7806_v60, %v3840_v9  ;;  %v6279_v17 = vld [vmem:[#allocation3 + $0xb0] sm:$0xf]  ;;  %v6710_v61 = vld [vmem:[#allocation3 + $0xb4] sm:$0xf]  ;;  %v6697_v55 = vld [vmem:[#allocation3 + $0x44] sm:$0xf0] }
 0x591   : > { %v6703_v11 = vld [vmem:[#allocation3 + $0x74] sm:$0xf0]  ;;  %v6232_v9 = vor.u32 %v6699_v24, %v6231_v62  ;;  %v6263_v24 = vld [vmem:[#allocation3 + $0x90] sm:$0xf] }
 0x592   : > { %3897 = vst [vmem:[#allocation3 + $0x20] sm:$0xff] %v3893_v19  ;;  %v3856_v8 = vpack.c.bf16 %v3852_v49, %v3851_v26  ;;  %v6248_v22 = vor.u32 %v6703_v11, %v6247_v48  ;;  %v6223_v26 = vld [vmem:[#allocation3 + $0x40] sm:$0xf]  ;;  %v6707_v62 = vld [vmem:[#allocation3 + $0x94] sm:$0xf0] }
 0x593   : > { %4028 = vst [vmem:[#allocation3 + $0xb8] sm:$0xff] %v4024_v40  ;;  %v6224_v11 = vor.u32 %v6697_v55, %v6223_v26  ;;  %v6264_v55 = vor.u32 %v6707_v62, %v6263_v24  ;;  %v6705_v26 = vld [vmem:[#allocation3 + $0x84] sm:$0xf0] }
 0x594   : > { %3860 = vst [vmem:[#allocation3 + $0x18] sm:$0xff] %v3856_v8  ;;  %v3872_v12 = vpop.permute.xlu1 %3871  ;;  %4410 = vmatpush.bf16.msra.mxu1 %v6248_v22  ;;  %v3876_v10 = vpop.permute.xlu0 %3875 }
 0x595   : > { %v3878_v20 = vsel %vm572_vm8, %v9738_v4, %v3872_v12  ;;  %v3882_v43 = vsel %vm572_vm8, %v3872_v12, %v9738_v4  ;;  %v3880_v59 = vsel %vm572_vm8, %v9633_v30, %v3876_v10  ;;  %v3884_v45 = vsel %vm572_vm8, %v3876_v10, %v9633_v30  ;;  %v3830_v58 = vpop.permute.xlu2 %3829  ;;  %v6708_v10 = vld [vmem:[#allocation3 + $0xa4] sm:$0xf] }
 0x596   : > { %v3887_v51 = vmul.f32 %v7694_v35, %v3882_v43  ;;  %v3888_v7 = vmul.f32 %v7697_v41, %v3878_v20  ;;  %v3891_v54 = vmul.f32 %v7694_v35, %v3884_v45  ;;  %v3892_v57 = vmul.f32 %v7697_v41, %v3880_v59  ;;  %v6709_v45 = vld [vmem:[#allocation3 + $0xa4] sm:$0xf0] }
 0x598   : > { %v3894_v4 = vpack.c.bf16 %v3888_v7, %v3887_v51  ;;  %v3896_v13 = vpack.c.bf16 %v3892_v57, %v3891_v54  ;;  %4411 = vmatpush.bf16.msra.mxu1 %v6240_v0  ;;  %v6273_v7 = vld [vmem:[#allocation3 + $0xa8] sm:$0xf0] }
 0x59a   : > { %3898 = vst [vmem:[#allocation3 + $0x28] sm:$0xff] %v3894_v4  ;;  %v6711_v30 = vld [vmem:[#allocation3 + $0xb4] sm:$0xf0]  ;;  %v6281_v1 = vld [vmem:[#allocation3 + $0xb8] sm:$0xf0] }
 0x59b   : > { %3900 = vst [vmem:[#allocation3 + $0x38] sm:$0xff] %v3896_v13  ;;  %v6280_v19 = vor.u32 %v6711_v30, %v6279_v17  ;;  %v6284_v40 = vor.u32 %v6710_v61, %v6281_v1  ;;  %v6265_v4 = vld [vmem:[#allocation3 + $0x98] sm:$0xf0]  ;;  %v6215_v13 = vld [vmem:[#allocation3 + $0x30] sm:$0xf] }
 0x59c   : > { %v3834_v49 = vpop.permute.xlu1 %3833  ;;  %v3822_v48 = vpop.permute.xlu0 %3821  ;;  %4412 = vmatpush.bf16.msra.mxu1 %v6232_v9  ;;  %v6706_v9 = vld [vmem:[#allocation3 + $0x94] sm:$0xf]  ;;  %v6691_v24 = vld [vmem:[#allocation3 + $0x14] sm:$0xf0] }
 0x59d   : > { %v3839_v8 = vsel %vm551_vm3, %v9790_v15, %v3834_v49  ;;  %v3843_v22 = vsel %vm551_vm3, %v3834_v49, %v9790_v15  ;;  %v3837_v63 = vsel %vm551_vm3, %v3822_v48, %v3830_v58  ;;  %v3841_v12 = vsel %vm551_vm3, %v3830_v58, %v3822_v48  ;;  %4433 = vmatpush.bf16.msra.mxu2 %v6280_v19  ;;  %v9844_v51 = vpop.permute.xlu2 %4115  ;;  %v6257_v49 = vld [vmem:[#allocation3 + $0x88] sm:$0xf0] }
 0x59e   : > { %v3849_v0 = vmul.f32 %v7803_v46, %v3843_v22  ;;  %v3850_v20 = vmul.f32 %v7806_v60, %v3839_v8  ;;  %v3845_v43 = vmul.f32 %v7803_v46, %v3841_v12  ;;  %v3846_v59 = vmul.f32 %v7806_v60, %v3837_v63  ;;  %4490 = vmatpush.bf16.msrb.mxu3 %v6284_v40  ;;  %v6682_v8 = vld [vmem:[%s10721_s4 + $0x4] sm:$0xf]  ;;  %v6169_v22 = vld [vmem:[%s10721_s4 + $0xc] sm:$0xf0] }
 0x59f   : > { %v6272_v15 = vor.u32 %v6709_v45, %v6271_v21  ;;  %v6276_v58 = vor.u32 %v6708_v10, %v6273_v7  ;;  %v6268_v19 = vor.u32 %v6706_v9, %v6265_v4  ;;  %v6249_v21 = vld [vmem:[#allocation3 + $0x78] sm:$0xf0]  ;;  %v6207_v10 = vld [vmem:[#allocation3 + $0x20] sm:$0xf]  ;;  %v6702_v45 = vld [vmem:[#allocation3 + $0x74] sm:$0xf] }
 0x5a0   : > { %v3855_v54 = vpack.c.bf16 %v3850_v20, %v3849_v0  ;;  %v3853_v57 = vpack.c.bf16 %v3846_v59, %v3845_v43  ;;  %4413 = vmatpush.bf16.msra.mxu1 %v6224_v11  ;;  %v6255_v0 = vld [vmem:[#allocation3 + $0x80] sm:$0xf]  ;;  %v6704_v59 = vld [vmem:[#allocation3 + $0x84] sm:$0xf]  ;;  %v6241_v4 = vld [vmem:[#allocation3 + $0x68] sm:$0xf0] }
 0x5a1   : > { %4434 = vmatpush.bf16.msra.mxu2 %v6272_v15  ;;  %v6693_v40 = vld [vmem:[#allocation3 + $0x24] sm:$0xf0]  ;;  %v6256_v43 = vor.u32 %v6705_v26, %v6255_v0  ;;  %v6260_v7 = vor.u32 %v6704_v59, %v6257_v49 }
 0x5a2   : > { %3859 = vst [vmem:[#allocation3 + $0x10] sm:$0xff] %v3855_v54  ;;  %4491 = vmatpush.bf16.msrb.mxu3 %v6276_v58  ;;  %v6695_v17 = vld [vmem:[#allocation3 + $0x34] sm:$0xf0]  ;;  %v6208_v20 = vor.u32 %v6693_v40, %v6207_v10  ;;  %v6252_v54 = vor.u32 %v6702_v45, %v6249_v21  ;;  %v6233_v40 = vld [vmem:[#allocation3 + $0x58] sm:$0xf0] }
 0x5a3   : > { %3857 = vst [vmem:[#allocation3] sm:$0xff] %v3853_v57  ;;  %v6216_v61 = vor.u32 %v6695_v17, %v6215_v13  ;;  %v6172_v57 = vor.u32 %v6682_v8, %v6169_v22  ;;  %v6700_v17 = vld [vmem:[#allocation3 + $0x64] sm:$0xf]  ;;  %v6167_v21 = vld [vmem:[%s10721_s4] sm:$0xf] }
 0x5a4   : > { %v3824_v30 = vpop.permute.xlu1 %3823  ;;  %v3832_v1 = vpop.permute.xlu0 %3831  ;;  %v6244_v9 = vor.u32 %v6700_v17, %v6241_v4  ;;  %v6683_v8 = vld [vmem:[%s10721_s4 + $0x8] sm:$0xf0]  ;;  %v6685_v4 = vld [vmem:[%s10721_s4 + $0x1c] sm:$0xf] }
 0x5a5   : > { %v3838_v48 = vsel %vm551_vm3, %v3824_v30, %v3832_v1  ;;  %v3842_v11 = vsel %vm551_vm3, %v3832_v1, %v3824_v30  ;;  %4414 = vmatpush.bf16.msra.mxu1 %v6216_v61  ;;  %4435 = vmatpush.bf16.msra.mxu2 %v6264_v55  ;;  %v9858_v58 = vpop.permute.xlu2 %4109 }
 0x5a6   : > { %v3847_v63 = vmul.f32 %v7803_v46, %v3842_v11  ;;  %v3848_v12 = vmul.f32 %v7806_v60, %v3838_v48  ;;  %4492 = vmatpush.bf16.msrb.mxu3 %v6268_v19  ;;  %v6698_v19 = vld [vmem:[#allocation3 + $0x54] sm:$0xf] }
 0x5a7   : > { %v6236_v11 = vor.u32 %v6698_v19, %v6233_v40 }
 0x5a8   : > { %v3854_v15 = vpack.c.bf16 %v3848_v12, %v3847_v63  ;;  %v6225_v12 = vld [vmem:[#allocation3 + $0x48] sm:$0xf0] }
 0x5a9   : > { %4415 = vmatpush.bf16.msra.mxu1 %v6208_v20  ;;  %4436 = vmatpush.bf16.msra.mxu2 %v6256_v43  ;;  %v6199_v62 = vld [vmem:[#allocation3 + $0x10] sm:$0xf]  ;;  %v6696_v20 = vld [vmem:[#allocation3 + $0x44] sm:$0xf]  ;;  %v9872_v43 = vor.u32 %v6683_v8, %v6167_v21 }
 0x5aa   : > { %3858 = vst [vmem:[#allocation3 + $0x8] sm:$0xff] %v3854_v15  ;;  %4493 = vmatpush.bf16.msrb.mxu3 %v6260_v7  ;;  %v6200_v13 = vor.u32 %v6691_v24, %v6199_v62  ;;  %v6191_v22 = vld [vmem:[#allocation3] sm:$0xf]  ;;  %v6228_v15 = vor.u32 %v6696_v20, %v6225_v12  ;;  %v6217_v24 = vld [vmem:[#allocation3 + $0x38] sm:$0xf0] }
 0x5ac   : > { %4437 = vmatmul.bf16.vlgmr.msra.gmra.mxu2 %v6172_v57  ;;  %v4114_v61 = vpop.permute.xlu1 %4113  ;;  %v4122_v55 = vpop.permute.xlu0 %4121 }
 0x5ad   : > { %4467 = vmatpush.bf16.msrb.mxu2 %v6252_v54  ;;  %v4127_v30 = vsel %vm700_vm13, %v4114_v61, %v4122_v55  ;;  %v4131_v1 = vsel %vm700_vm13, %v4122_v55, %v4114_v61  ;;  %4416 = vmatpush.bf16.msra.mxu1 %v6200_v13  ;;  %v4120_v0 = vpop.permute.xlu2 %4119  ;;  %v6181_v13 = vld [vmem:[%s10721_s4 + $0x24] sm:$0xf0] }
 0x5ae   : > { %4494 = vmatmul.bf16.vlgmr.msrb.gmra.mxu3 %v6172_v57  ;;  %v4137_v26 = vmul.f32 %v10886_v47, %v4127_v30  ;;  %v4138_v49 = vmul.f32 %v10887_v33, %v4131_v1  ;;  %v6184_v40 = vor.u32 %v6685_v4, %v6181_v13  ;;  %v6688_v4 = vld [vmem:[#allocation3 + $0x4] sm:$0xf] }
 0x5b0   : > { %v4143_v48 = vpack.c.bf16 %v4138_v49, %v4137_v26  ;;  %v6209_v26 = vld [vmem:[#allocation3 + $0x28] sm:$0xf0]  ;;  %v6692_v49 = vld [vmem:[#allocation3 + $0x24] sm:$0xf] }
 0x5b1   : > { %4468 = vmatpush.bf16.msrb.mxu2 %v6244_v9  ;;  %v6689_v63 = vld [vmem:[#allocation3 + $0x4] sm:$0xf0]  ;;  %v6694_v9 = vld [vmem:[#allocation3 + $0x34] sm:$0xf] }
 0x5b2   : > { %4147 = vst [vmem:[#allocation3 + $0x110] sm:$0xff] %v4143_v48  ;;  %v6192_v10 = vor.u32 %v6689_v63, %v6191_v22  ;;  %v6220_v19 = vor.u32 %v6694_v9, %v6217_v24  ;;  %v6690_v22 = vld [vmem:[#allocation3 + $0x14] sm:$0xf] }
 0x5b4   : > { %v4124_v59 = vpop.permute.xlu1 %4123  ;;  %v4112_v45 = vpop.permute.xlu0 %4111  ;;  %4417 = vmatpush.bf16.msra.mxu1 %v6192_v10  ;;  %v6201_v10 = vld [vmem:[#allocation3 + $0x18] sm:$0xf0] }
 0x5b5   : > { %4469 = vmatpush.bf16.msrb.mxu2 %v6236_v11  ;;  %v4128_v7 = vsel %vm700_vm13, %v9844_v51, %v4124_v59  ;;  %v4132_v54 = vsel %vm700_vm13, %v4124_v59, %v9844_v51  ;;  %v4126_v57 = vsel %vm700_vm13, %v4112_v45, %v4120_v0  ;;  %v4130_v62 = vsel %vm700_vm13, %v4120_v0, %v4112_v45  ;;  %v6179_v0 = vld [vmem:[%s10721_s4 + $0x18] sm:$0xf] }
 0x5b6   : > { %v4139_v17 = vmul.f32 %v10886_v47, %v4128_v7  ;;  %v4140_v61 = vmul.f32 %v10887_v33, %v4132_v54  ;;  %v4135_v51 = vmul.f32 %v10886_v47, %v4126_v57  ;;  %v4136_v55 = vmul.f32 %v10887_v33, %v4130_v62 }
 0x5b7   : > { %4418 = vmatmul.bf16.vlgmr.msra.gmra.mxu1 %v9872_v43  ;;  %v6212_v11 = vor.u32 %v6692_v49, %v6209_v26  ;;  %v6204_v59 = vor.u32 %v6690_v22, %v6201_v10  ;;  %v6187_v49 = vld [vmem:[%s10721_s4 + $0x20] sm:$0xf]  ;;  %v1174_v10 = vpop.permute.xlu2 %1173 }
 0x5b8   : > { %v4144_v30 = vpack.c.bf16 %v4140_v61, %v4139_v17  ;;  %v4142_v1 = vpack.c.bf16 %v4136_v55, %v4135_v51  ;;  %v6175_v51 = vld [vmem:[%s10721_s4 + $0x8] sm:$0xf]  ;;  %v6684_v55 = vld [vmem:[%s10721_s4 + $0x10] sm:$0xf0] }
 0x5b9   : > { %4470 = vmatpush.bf16.msrb.mxu2 %v6228_v15  ;;  %v6327_v45 = vld [vmem:[#allocation3 + $0x110] sm:$0xf]  ;;  %v6193_v15 = vld [vmem:[#allocation3 + $0x8] sm:$0xf0]  ;;  %v6722_v54 = vld [vmem:[#allocation3 + $0x114] sm:$0xf]  ;;  %v6176_v26 = vor.u32 %v6684_v55, %v6175_v51 }
 0x5ba   : > { %4148 = vst [vmem:[#allocation3 + $0x118] sm:$0xff] %v4144_v30  ;;  %v6196_v17 = vor.u32 %v6688_v4, %v6193_v15  ;;  %v10946_v15 = vld [vmem:[#allocation17_spill] sm:$0xff] }
 0x5bb   : > { %4146 = vst [vmem:[#allocation3 + $0x108] sm:$0xff] %v4142_v1 }
 0x5bc   : > { %4442 = vmatmul.bf16.gmra.mxu2 %v6184_v40  ;;  %v4118_v48 = vpop.permute.xlu1 %4117 }
 0x5bd   : > { %4471 = vmatpush.bf16.msrb.mxu2 %v6220_v19  ;;  %v4125_v21 = vsel %vm700_vm13, %v9858_v58, %v4118_v48  ;;  %v4129_v8 = vsel %vm700_vm13, %v4118_v48, %v9858_v58  ;;  %v6686_v58 = vld [vmem:[%s10721_s4 + $0x20] sm:$0xf0]  ;;  %v6687_v48 = vld [vmem:[%s10721_s4 + $0x28] sm:$0xf0] }
 0x5be   : > { %4499 = vmatmul.bf16.gmra.mxu3 %v6184_v40  ;;  %v4133_v63 = vmul.f32 %v10886_v47, %v4125_v21  ;;  %v4134_v12 = vmul.f32 %v10887_v33, %v4129_v8  ;;  %v6180_v13 = vor.u32 %v6686_v58, %v6179_v0  ;;  %v1624_v58 = vadd.f32 %v10946_v15, %v1174_v10 }
 0x5c0   : > { %v4141_v20 = vpack.c.bf16 %v4134_v12, %v4133_v63  ;;  %v1184_v12 = vpop.permute.xlu0 %1183 }
 0x5c1   : > { %4472 = vmatpush.bf16.msrb.mxu2 %v6212_v11  ;;  %v6723_v7 = vld [vmem:[#allocation3 + $0x114] sm:$0xf0]  ;;  %v6329_v57 = vld [vmem:[#allocation3 + $0x118] sm:$0xf0]  ;;  %v6188_v11 = vor.u32 %v6687_v48, %v6187_v49 }
 0x5c2   : > { %4145 = vst [vmem:[#allocation3 + $0x100] sm:$0xff] %v4141_v20  ;;  %v6328_v62 = vor.u32 %v6723_v7, %v6327_v45  ;;  %v6332_v24 = vor.u32 %v6722_v54, %v6329_v57  ;;  %v6721_v61 = vld [vmem:[#allocation3 + $0x104] sm:$0xf0]  ;;  %v6321_v1 = vld [vmem:[#allocation3 + $0x108] sm:$0xf0]  ;;  %v1780_v20 = vadd.f32 %v9199_v3, %v1174_v10  ;;  %v10950_v48 = vld [vmem:[#allocation24_spill] sm:$0xff] }
 0x5c3   : > { %v10948_v3 = vld [vmem:[#allocation18_spill] sm:$0xff] }
 0x5c4   : > { %4454 = vmatpush.bf16.msrb.mxu1 %v6328_v62  ;;  %4511 = vmatpush.bf16.msrb.mxu0 %v6332_v24  ;;  %v1819_v7 = vadd.f32 %v9204_v5, %v1780_v20  ;;  %v10947_v62 = vld [vmem:[#allocation20_spill] sm:$0xff] }
 0x5c5   : > { %4473 = vmatpush.bf16.msrb.mxu2 %v6204_v59  ;;  %v1663_v24 = vadd.f32 %v10947_v62, %v1624_v58 }
 0x5c7   : > { %4423 = vmatmul.bf16.gmra.mxu1 %v6180_v13  ;;  %v1702_v55 = vadd.f32 %v10948_v3, %v1663_v24  ;;  %v10952_v24 = vld [vmem:[#allocation23_spill] sm:$0xff] }
 0x5c8   : > { %v1179_v54 = vpop.permute.xlu0 %1178 }
 0x5c9   : > { %4474 = vmatpush.bf16.msrb.mxu2 %v6196_v17  ;;  %v6319_v9 = vld [vmem:[#allocation3 + $0x100] sm:$0xf]  ;;  %v6720_v30 = vld [vmem:[#allocation3 + $0x104] sm:$0xf]  ;;  %v1782_v17 = vadd.f32 %v9218_v31, %v1179_v54 }
 0x5ca   : > { %v6320_v19 = vor.u32 %v6721_v61, %v6319_v9  ;;  %v6324_v40 = vor.u32 %v6720_v30, %v6321_v1  ;;  %v10949_v9 = vld [vmem:[#allocation19_spill] sm:$0xff] }
 0x5cb   : > { %v1626_v30 = vadd.f32 %v10949_v9, %v1179_v54  ;;  %v1821_v5 = vadd.f32 %v9226_v34, %v1782_v17  ;;  %v1629_v34 = vadd.f32 %v10952_v24, %v1184_v12  ;;  %v10960_v24 = vld [vmem:[#allocation41_spill] sm:$0xff] }
 0x5cc   : > { %4475 = vmatmul.bf16.vlgmr.msrb.gmra.mxu2 %v9872_v43  ;;  %4455 = vmatpush.bf16.msrb.mxu1 %v6320_v19 }
 0x5cd   : > { %4512 = vmatpush.bf16.msrb.mxu0 %v6324_v40  ;;  %v1860_v58 = vadd.f32 %v9337_v6, %v1821_v5 }
 0x5cf   : > { %v1899_v6 = vadd.f32 %v9351_v27, %v1860_v58 }
 0x5d0   : > { %6335 = vmatmul.msk.bf16.vlgmr.msrb.gmra.mxu0 %vm4403_vm0, %v6176_v26 }
 0x5d7   : > { %6333 = vmatmul.msk.bf16.vlgmr.msrb.gmra.mxu1 %vm4403_vm0, %v6176_v26 }
 0x5dc   : > { %4480 = vmatmul.bf16.gmra.mxu2 %v6180_v13  ;;  %v1858_v13 = vadd.f32 %v9330_v50, %v1819_v7  ;;  %v10951_v50 = vld [vmem:[#allocation14_spill] sm:$0xff] }
 0x5dd   : > { %v1741_v20 = vadd.f32 %v10951_v50, %v1702_v55 }
 0x5de   : > { %v1897_v26 = vadd.f32 %v9346_v42, %v1858_v13 }
 0x5e0   : > { %6336 = vmatmul.msk.bf16.gmra.mxu0 %vm4403_vm0, %v6188_v11 }
 0x5e7   : > { %6334 = vmatmul.msk.bf16.gmra.mxu1 %vm4403_vm0, %v6188_v11  ;;  %v1665_v11 = vadd.f32 %v10950_v48, %v1626_v30 }
 0x62f   : > { %v4438_v43 = vpop.f32.mrf.mxu2 }
 0x631   : > { %v4495_v45 = vpop.f32.mrf.mxu3 }
 0x634   : > { %v4419_v21 = vpop.f32.mrf.mxu1 }
 0x635   : > { %v4439_v40 = vadd.f32 %v4438_v43, %v4419_v21  ;;  %v10953_v43 = vld [vmem:[#allocation22_spill] sm:$0xff] }
 0x636   : > { %v1704_v21 = vadd.f32 %v10953_v43, %v1665_v11  ;;  %v10957_v11 = vld [vmem:[#allocation26_spill] sm:$0xff] }
 0x637   : > { %v4440_v8 = vpop.f32.mrf.mxu2 }
 0x639   : > { %v4497_v1 = vpop.f32.mrf.mxu3 }
 0x63c   : > { %v4421_v22 = vpop.f32.mrf.mxu1 }
 0x63f   : > { %v9926_v63 = vpop.f32.mrf.mxu2 }
 0x644   : > { %v9928_v0 = vpop.f32.mrf.mxu1 }
 0x647   : > { %v9931_v59 = vpop.f32.mrf.mxu2 }
 0x64c   : > { %v9935_v57 = vpop.f32.mrf.mxu1 }
 0x64d   : > { %v4514_v4 = vpop.f32.mrf.mxu0 }
 0x64f   : > { %v4476_v61 = vpop.f32.mrf.mxu2 }
 0x650   : > { %v4496_v51 = vadd.f32 %v4495_v45, %v4476_v61  ;;  %v1785_v45 = vadd.f32 %v9244_v56, %v1184_v12  ;;  %v4441_v61 = vadd.f32 %v4440_v8, %v4421_v22  ;;  %v4500_v12 = vpop.f32.mrf.mxu3  ;;  %v10955_v22 = vld [vmem:[#allocation15_spill] sm:$0xff] }
 0x651   : > { %v1743_v9 = vadd.f32 %v10955_v22, %v1704_v21 }
 0x652   : > { %v4515_v19 = vadd.f32 %v4514_v4, %v4496_v51  ;;  %v1824_v13 = vadd.f32 %v9248_v44, %v1785_v45  ;;  %v1189_v51 = vpop.permute.xlu1 %1188  ;;  %v10954_v44 = vld [vmem:[#allocation27_spill] sm:$0xff] }
 0x653   : > { %v1668_v55 = vadd.f32 %v10954_v44, %v1629_v34 }
 0x654   : > { %v4457_v49 = vpop.f32.mrf.mxu1  ;;  %v4525_v10 = vadd.f32 %v4515_v19, %v1897_v26  ;;  %v1787_v19 = vadd.f32 %v9258_v23, %v1189_v51 }
 0x655   : > { %v4458_v31 = vadd.f32 %v4457_v49, %v4439_v40  ;;  %v4516_v15 = vpop.f32.mrf.mxu0  ;;  %v10956_v49 = vld [vmem:[#allocation25_spill] sm:$0xff] }
 0x656   : > { %v9950_v42 = vmax.f32 %v4525_v10, 0.0  ;;  %v1707_v48 = vadd.f32 %v10956_v49, %v1668_v55  ;;  %v1631_v10 = vadd.f32 %v10957_v11, %v1189_v51  ;;  %v1826_v45 = vadd.f32 %v9260_v2, %v1787_v19  ;;  %v10962_v55 = vld [vmem:[#allocation38_spill] sm:$0xff] }
 0x657   : > { %v4524_v7 = vadd.f32 %v4458_v31, %v1741_v20  ;;  %v4478_v54 = vpop.f32.mrf.mxu2 }
 0x658   : > { %v4498_v62 = vadd.f32 %v4497_v1, %v4478_v54  ;;  %v1863_v1 = vadd.f32 %v9341_v32, %v1824_v13  ;;  %v4444_v32 = vadd.f32 %v9926_v63, %v9928_v0  ;;  %v10959_v54 = vld [vmem:[#allocation16_spill] sm:$0xff]  ;;  %v4502_v0 = vpop.f32.mrf.mxu3  ;;  %v1865_v34 = vadd.f32 %v10960_v24, %v1826_v45 }
 0x659   : > { %v9952_v4 = vmax.f32 %v4524_v7, 0.0 }
 0x65a   : > { %v4517_v17 = vadd.f32 %v4516_v15, %v4498_v62  ;;  %v1902_v31 = vadd.f32 %v9358_v14, %v1863_v1  ;;  %v10958_v14 = vld [vmem:[#allocation29_spill] sm:$0xff]  ;;  %v1746_v62 = vadd.f32 %v10959_v54, %v1707_v48 }
 0x65b   : > { %v4700_v56 = vpack.c.bf16 %v9950_v42, %v9952_v4  ;;  %4620 = vrot.lane.b32.xlu2 %v9952_v4, %s7044_s12  ;;  %4660 = vrot.lane.b32.xlu1 %v9952_v4, %s7042_s10  ;;  %v1670_v7 = vadd.f32 %v10958_v14, %v1631_v10 }
 0x65c   : > { %4788 = vrot.lane.b32.xlu0 %v9952_v4, %s7041_s30  ;;  %v4459_v3 = vpop.f32.mrf.mxu1  ;;  %v4527_v8 = vadd.f32 %v4517_v17, %v1899_v6 }
 0x65d   : > { %4704 = vst [vmem:[#allocation3 + $0x80] sm:$0xff] %v4700_v56  ;;  %v4460_v30 = vadd.f32 %v4459_v3, %v4441_v61  ;;  %v4519_v27 = vpop.f32.mrf.mxu0  ;;  %v10961_v61 = vld [vmem:[#allocation28_spill] sm:$0xff]  ;;  %v4446_v3 = vadd.f32 %v9931_v59, %v9935_v57 }
 0x65e   : > { %v9970_v50 = vmax.f32 %v4527_v8, 0.0  ;;  %v1709_v56 = vadd.f32 %v10961_v61, %v1670_v7  ;;  %v1904_v8 = vadd.f32 %v10962_v55, %v1865_v34 }
 0x65f   : > { %v4526_v5 = vadd.f32 %v4460_v30, %v1743_v9  ;;  %v4481_v40 = vpop.f32.mrf.mxu2  ;;  %v10963_v30 = vld [vmem:[#allocation21_spill] sm:$0xff] }
 0x660   : > { %v4501_v26 = vadd.f32 %v4500_v12, %v4481_v40 }
 0x661   : > { %v9972_v20 = vmax.f32 %v4526_v5, 0.0 }
 0x662   : > { %v4520_v15 = vadd.f32 %v4519_v27, %v4501_v26  ;;  %v1748_v27 = vadd.f32 %v10963_v30, %v1709_v56 }
 0x663   : > { %v4701_v23 = vpack.c.bf16 %v9970_v50, %v9972_v20  ;;  %4708 = vrot.lane.b32.xlu2 %v9952_v4, %s7045_s14  ;;  %4748 = vrot.lane.b32.xlu1 %v9952_v4, %s7043_s11 }
 0x664   : > { %4580 = vrot.lane.b32.xlu0 %v9952_v4, %s7047_s16  ;;  %v4462_v58 = vpop.f32.mrf.mxu1  ;;  %v4529_v2 = vadd.f32 %v4520_v15, %v1902_v31 }
 0x665   : > { %4705 = vst [vmem:[#allocation3 + $0x88] sm:$0xff] %v4701_v23  ;;  %v4463_v63 = vadd.f32 %v4462_v58, %v4444_v32  ;;  %v4521_v13 = vpop.f32.mrf.mxu0 }
 0x666   : > { %v9990_v6 = vmax.f32 %v4529_v2, 0.0 }
 0x667   : > { %v4528_v43 = vadd.f32 %v4463_v63, %v1746_v62  ;;  %v4483_v21 = vpop.f32.mrf.mxu2 }
 0x668   : > { %v4503_v17 = vadd.f32 %v4502_v0, %v4483_v21 }
 0x669   : > { %v9992_v12 = vmax.f32 %v4528_v43, 0.0 }
 0x66a   : > { %v4522_v51 = vadd.f32 %v4521_v13, %v4503_v17 }
 0x66b   : > { %v4702_v44 = vpack.c.bf16 %v9990_v6, %v9992_v12  ;;  %4790 = vrot.lane.b32.xlu1 %v9972_v20, %s7041_s30  ;;  %4796 = vrot.lane.b32.xlu2 %v9950_v42, %s7041_s30 }
 0x66c   : > { %4668 = vrot.lane.b32.xlu0 %v9950_v42, %s7042_s10  ;;  %v4464_v22 = vpop.f32.mrf.mxu1  ;;  %v4531_v9 = vadd.f32 %v4522_v51, %v1904_v8 }
 0x66d   : > { %4706 = vst [vmem:[#allocation3 + $0x90] sm:$0xff] %v4702_v44  ;;  %v4465_v59 = vadd.f32 %v4464_v22, %v4446_v3 }
 0x66e   : > { %v10006_v1 = vmax.f32 %v4531_v9, 0.0 }
 0x66f   : > { %v4530_v57 = vadd.f32 %v4465_v59, %v1748_v27 }
 0x671   : > { %v10008_v19 = vmax.f32 %v4530_v57, 0.0 }
 0x673   : > { %v4703_v5 = vpack.c.bf16 %v10006_v1, %v10008_v19  ;;  %4628 = vrot.lane.b32.xlu1 %v9950_v42, %s7044_s12  ;;  %4662 = vrot.lane.b32.xlu2 %v9972_v20, %s7042_s10 }
 0x674   : > { %4756 = vrot.lane.b32.xlu0 %v9950_v42, %s7043_s11 }
 0x675   : > { %4707 = vst [vmem:[#allocation3 + $0x98] sm:$0xff] %v4703_v5 }
 0x67b   : > { %4716 = vrot.lane.b32.xlu1 %v9950_v42, %s7045_s14  ;;  %4750 = vrot.lane.b32.xlu2 %v9972_v20, %s7043_s11 }
 0x67c   : > { %4622 = vrot.lane.b32.xlu0 %v9972_v20, %s7044_s12 }
 0x683   : > { %4582 = vrot.lane.b32.xlu1 %v9972_v20, %s7047_s16  ;;  %4588 = vrot.lane.b32.xlu2 %v9950_v42, %s7047_s16 }
 0x684   : > { %4710 = vrot.lane.b32.xlu0 %v9972_v20, %s7045_s14 }
 0x68b   : > { %4792 = vrot.lane.b32.xlu1 %v9992_v12, %s7041_s30  ;;  %4664 = vrot.lane.b32.xlu2 %v9992_v12, %s7042_s10 }
 0x68c   : > { %4798 = vrot.lane.b32.xlu0 %v9970_v50, %s7041_s30 }
 0x693   : > { %4670 = vrot.lane.b32.xlu1 %v9970_v50, %s7042_s10  ;;  %4752 = vrot.lane.b32.xlu2 %v9992_v12, %s7043_s11 }
 0x694   : > { %4624 = vrot.lane.b32.xlu0 %v9992_v12, %s7044_s12 }
 0x69b   : > { %4758 = vrot.lane.b32.xlu1 %v9970_v50, %s7043_s11  ;;  %4630 = vrot.lane.b32.xlu2 %v9970_v50, %s7044_s12 }
 0x69c   : > { %4712 = vrot.lane.b32.xlu0 %v9992_v12, %s7045_s14 }
 0x6a3   : > { %4584 = vrot.lane.b32.xlu1 %v9992_v12, %s7047_s16  ;;  %4718 = vrot.lane.b32.xlu2 %v9970_v50, %s7045_s14 }
 0x6a4   : > { %4590 = vrot.lane.b32.xlu0 %v9970_v50, %s7047_s16 }
 0x6ab   : > { %4544 = vrot.lane.b32.xlu1 %v9992_v12, %s7049_s17  ;;  %4794 = vrot.lane.b32.xlu2 %v10008_v19, %s7041_s30 }
 0x6ac   : > { %4800 = vrot.lane.b32.xlu0 %v9990_v6, %s7041_s30 }
 0x6b3   : > { %4672 = vrot.lane.b32.xlu1 %v9990_v6, %s7042_s10  ;;  %4632 = vrot.lane.b32.xlu2 %v9990_v6, %s7044_s12 }
 0x6b4   : > { %4666 = vrot.lane.b32.xlu0 %v10008_v19, %s7042_s10 }
 0x6b5   : > { %v4621_v40 = vpop.permute.xlu2 %4620 }
 0x6bb   : > { %4760 = vrot.lane.b32.xlu1 %v9990_v6, %s7043_s11  ;;  %4720 = vrot.lane.b32.xlu2 %v9990_v6, %s7045_s14 }
 0x6bc   : > { %4754 = vrot.lane.b32.xlu0 %v10008_v19, %s7043_s11 }
 0x6bd   : > { %v10072_v26 = vpop.permute.xlu2 %4708 }
 0x6c3   : > { %4626 = vrot.lane.b32.xlu1 %v10008_v19, %s7044_s12  ;;  %4586 = vrot.lane.b32.xlu2 %v10008_v19, %s7047_s16 }
 0x6c4   : > { %4592 = vrot.lane.b32.xlu0 %v9990_v6, %s7047_s16 }
 0x6c5   : > { %v4797_v49 = vpop.permute.xlu2 %4796 }
 0x6cb   : > { %4714 = vrot.lane.b32.xlu1 %v10008_v19, %s7045_s14  ;;  %4546 = vrot.lane.b32.xlu2 %v10008_v19, %s7049_s17 }
 0x6cc   : > { %4552 = vrot.lane.b32.xlu0 %v9990_v6, %s7049_s17 }
 0x6cd   : > { %v4661_v48 = vpop.permute.xlu1 %4660  ;;  %v10086_v11 = vpop.permute.xlu2 %4662 }
 0x6ce   : > { %v4789_v10 = vpop.permute.xlu0 %4788 }
 0x6cf   : > { %v4804_v31 = vsel %vm10964_vm14, %v4789_v10, %v4797_v49  ;;  %v4808_v15 = vsel %vm10938_vm2, %v4797_v49, %v4789_v10  ;;  %vm10971_vm14 = vmmov %vm10967_vm1 }
 0x6d0   : > { %v4812_v45 = vmul.f32 %v7291_v52, %v4804_v31  ;;  %v4813_v32 = vmul.f32 %v7294_v53, %v4808_v15  ;;  %vm10972_vm2 = vmmov %vm10943_vm5 }
 0x6d2   : > { %v4820_v23 = vpack.c.bf16 %v4813_v32, %v4812_v45 }
 0x6d3   : > { %4802 = vrot.lane.b32.xlu1 %v10006_v1, %s7041_s30  ;;  %4674 = vrot.lane.b32.xlu2 %v10006_v1, %s7042_s10 }
 0x6d4   : > { %4824 = vst [vmem:[#allocation3 + $0xe0] sm:$0xff] %v4820_v23  ;;  %4542 = vrot.lane.b32.xlu0 %v9972_v20, %s7049_s17 }
 0x6d5   : > { %v4749_v58 = vpop.permute.xlu1 %4748  ;;  %v10100_v14 = vpop.permute.xlu2 %4750 }
 0x6d6   : > { %v4581_v7 = vpop.permute.xlu0 %4580 }
 0x6db   : > { %4548 = vrot.lane.b32.xlu1 %v9950_v42, %s7049_s17  ;;  %4762 = vrot.lane.b32.xlu2 %v10006_v1, %s7043_s11 }
 0x6dc   : > { %4634 = vrot.lane.b32.xlu0 %v10006_v1, %s7044_s12 }
 0x6dd   : > { %v10108_v2 = vpop.permute.xlu1 %4790  ;;  %v4589_v54 = vpop.permute.xlu2 %4588 }
 0x6de   : > { %v4669_v62 = vpop.permute.xlu0 %4668  ;;  %v4596_v63 = vsel %vm572_vm8, %v4581_v7, %v4589_v54  ;;  %v4600_v0 = vsel %vm572_vm8, %v4589_v54, %v4581_v7 }
 0x6df   : > { %v4676_v24 = vsel %vm10965_vm15, %v4661_v48, %v4669_v62  ;;  %v4680_v34 = vsel %vm10966_vm9, %v4669_v62, %v4661_v48  ;;  %v4604_v43 = vmul.f32 %v7694_v35, %v4600_v0  ;;  %v4605_v21 = vmul.f32 %v7697_v41, %v4596_v63  ;;  %vm10973_vm15 = vmmov %vm10972_vm2 }
 0x6e0   : > { %v4684_v13 = vmul.f32 %v7379_v37, %v4680_v34  ;;  %v4685_v17 = vmul.f32 %v7382_v38, %v4676_v24  ;;  %vm10974_vm9 = vmmov %vm10972_vm2 }
 0x6e1   : > { %v4612_v61 = vpack.c.bf16 %v4605_v21, %v4604_v43 }
 0x6e2   : > { %v4692_v56 = vpack.c.bf16 %v4685_v17, %v4684_v13  ;;  %v2674_v17 = vld [vmem:[%s10724_s7] sm:$0xff] }
 0x6e3   : > { %4616 = vst [vmem:[#allocation3 + $0x20] sm:$0xff] %v4612_v61  ;;  %4834 = vrot.lane.b32.xlu1 %v10008_v19, %s7046_s15  ;;  %4540 = vrot.lane.b32.xlu2 %v9952_v4, %s7049_s17 }
 0x6e4   : > { %4696 = vst [vmem:[#allocation3 + $0x60] sm:$0xff] %v4692_v56  ;;  %4722 = vrot.lane.b32.xlu0 %v10006_v1, %s7045_s14  ;;  %v2675_v56 = vld [vmem:[%s10724_s7 + $0x8] sm:$0xff] }
 0x6e5   : > { %v4629_v51 = vpop.permute.xlu1 %4628  ;;  %v10128_v3 = vpop.permute.xlu2 %4664 }
 0x6e6   : > { %v4636_v44 = vsel %vm593_vm4, %v4621_v40, %v4629_v51  ;;  %v4640_v55 = vsel %vm593_vm4, %v4629_v51, %v4621_v40  ;;  %v4757_v8 = vpop.permute.xlu0 %4756 }
 0x6e7   : > { %v4644_v22 = vmul.f32 %v7511_v18, %v4640_v55  ;;  %v4645_v9 = vmul.f32 %v7514_v36, %v4636_v44  ;;  %v4764_v30 = vsel %vm658_vm11, %v4749_v58, %v4757_v8  ;;  %v4768_v27 = vsel %vm658_vm11, %v4757_v8, %v4749_v58 }
 0x6e8   : > { %v4772_v59 = vmul.f32 %v10884_v16, %v4764_v30  ;;  %v4773_v57 = vmul.f32 %v10885_v39, %v4768_v27  ;;  %v2677_v27 = vld [vmem:[%s10724_s7 + $0x18] sm:$0xff] }
 0x6e9   : > { %v4652_v19 = vpack.c.bf16 %v4645_v9, %v4644_v22 }
 0x6ea   : > { %v4780_v5 = vpack.c.bf16 %v4773_v57, %v4772_v59  ;;  %v4912_v57 = vld [vmem:[%s10725_s8] sm:$0xff] }
 0x6eb   : > { %4656 = vst [vmem:[#allocation3 + $0x40] sm:$0xff] %v4652_v19  ;;  %4594 = vrot.lane.b32.xlu1 %v10006_v1, %s7047_s16  ;;  %4550 = vrot.lane.b32.xlu2 %v9970_v50, %s7049_s17 }
 0x6ec   : > { %4784 = vst [vmem:[#allocation3 + $0xc0] sm:$0xff] %v4780_v5  ;;  %4832 = vrot.lane.b32.xlu0 %v9992_v12, %s7046_s15 }
 0x6ed   : > { %v4717_v40 = vpop.permute.xlu1 %4716  ;;  %v10148_v49 = vpop.permute.xlu2 %4752 }
 0x6ee   : > { %v4724_v48 = vsel %vm637_vm12, %v10072_v26, %v4717_v40  ;;  %v4728_v10 = vsel %vm637_vm12, %v4717_v40, %v10072_v26  ;;  %v4623_v31 = vpop.permute.xlu0 %4622 }
 0x6ef   : > { %v4732_v15 = vmul.f32 %v7574_v28, %v4724_v48  ;;  %v4733_v45 = vmul.f32 %v7577_v29, %v4728_v10 }
 0x6f1   : > { %v4740_v32 = vpack.c.bf16 %v4733_v45, %v4732_v15 }
 0x6f3   : > { %4744 = vst [vmem:[#allocation3 + $0xa0] sm:$0xff] %v4740_v32  ;;  %4554 = vrot.lane.b32.xlu1 %v10006_v1, %s7049_s17  ;;  %4840 = vrot.lane.b32.xlu2 %v9990_v6, %s7046_s15 }
 0x6f4   : > { %4842 = vrot.lane.b32.xlu0 %v10006_v1, %s7046_s15 }
 0x6f5   : > { %v10164_v12 = vpop.permute.xlu1 %4582  ;;  %v4631_v23 = vpop.permute.xlu2 %4630 }
 0x6f6   : > { %v4711_v26 = vpop.permute.xlu0 %4710  ;;  %v4637_v58 = vsel %vm593_vm4, %v4623_v31, %v4631_v23  ;;  %v4641_v7 = vsel %vm593_vm4, %v4631_v23, %v4623_v31 }
 0x6f7   : > { %v4646_v54 = vmul.f32 %v7511_v18, %v4641_v7  ;;  %v4647_v62 = vmul.f32 %v7514_v36, %v4637_v58 }
 0x6f9   : > { %v4653_v63 = vpack.c.bf16 %v4647_v62, %v4646_v54  ;;  %v4915_v54 = vld [vmem:[%s10725_s8 + $0x18] sm:$0xff] }
 0x6fb   : > { %4657 = vst [vmem:[#allocation3 + $0x48] sm:$0xff] %v4653_v63  ;;  %4828 = vrot.lane.b32.xlu1 %v9952_v4, %s7046_s15  ;;  %4830 = vrot.lane.b32.xlu2 %v9972_v20, %s7046_s15 }
 0x6fc   : > { %4836 = vrot.lane.b32.xlu0 %v9950_v42, %s7046_s15 }
 0x6fd   : > { %v10178_v6 = vpop.permute.xlu1 %4792  ;;  %v4719_v1 = vpop.permute.xlu2 %4718 }
 0x6fe   : > { %v4799_v0 = vpop.permute.xlu0 %4798  ;;  %v4725_v24 = vsel %vm637_vm12, %v4711_v26, %v4719_v1  ;;  %v4729_v34 = vsel %vm637_vm12, %v4719_v1, %v4711_v26  ;;  %v4913_v26 = vld [vmem:[%s10725_s8 + $0x8] sm:$0xff] }
 0x6ff   : > { %v4805_v4 = vsel %vm10967_vm1, %v10108_v2, %v4799_v0  ;;  %v4809_v20 = vsel %vm10968_vm6, %v4799_v0, %v10108_v2  ;;  %v4734_v42 = vmul.f32 %v7574_v28, %v4725_v24  ;;  %v4735_v43 = vmul.f32 %v7577_v29, %v4729_v34  ;;  %vm10975_vm1 = vmmov %vm10972_vm2 }
 0x700   : > { %v4814_v21 = vmul.f32 %v7291_v52, %v4805_v4  ;;  %v4815_v13 = vmul.f32 %v7294_v53, %v4809_v20 }
 0x701   : > { %v4741_v61 = vpack.c.bf16 %v4735_v43, %v4734_v42 }
 0x702   : > { %v4821_v51 = vpack.c.bf16 %v4815_v13, %v4814_v21 }
 0x703   : > { %4745 = vst [vmem:[#allocation3 + $0xa8] sm:$0xff] %v4741_v61  ;;  %4838 = vrot.lane.b32.xlu1 %v9970_v50, %s7046_s15  ;;  %2684 = vperm.xlu2 %6910, %v2674_v17   ;;  %v2676_v50 = vld [vmem:[%s10724_s7 + $0x10] sm:$0xff] }
 0x704   : > { %4825 = vst [vmem:[#allocation3 + $0xe8] sm:$0xff] %v4821_v51  ;;  %2689 = vperm.xlu0 %6911, %v2675_v56  }
 0x705   : > { %v4671_v2 = vpop.permute.xlu1 %4670  ;;  %v10202_v44 = vpop.permute.xlu2 %4794 }
 0x706   : > { %v4677_v55 = vsel %vm10943_vm5, %v10086_v11, %v4671_v2  ;;  %v4681_v8 = vsel %vm10969_vm7, %v4671_v2, %v10086_v11  ;;  %v4625_v22 = vpop.permute.xlu0 %4624 }
 0x707   : > { %v4686_v9 = vmul.f32 %v7379_v37, %v4681_v8  ;;  %v4687_v30 = vmul.f32 %v7382_v38, %v4677_v55 }
 0x709   : > { %v4693_v59 = vpack.c.bf16 %v4687_v30, %v4686_v9 }
 0x70b   : > { %4697 = vst [vmem:[#allocation3 + $0x68] sm:$0xff] %v4693_v59  ;;  %2694 = vperm.xlu1 %6912, %v2676_v50   ;;  %2699 = vperm.xlu2 %6910, %v2677_v27  }
 0x70c   : > { %4918 = vperm.xlu0 %6911, %v4912_v57  }
 0x70d   : > { %v4759_v11 = vpop.permute.xlu1 %4758  ;;  %v4633_v19 = vpop.permute.xlu2 %4632 }
 0x70e   : > { %v4765_v5 = vsel %vm658_vm11, %v10100_v14, %v4759_v11  ;;  %v4769_v40 = vsel %vm658_vm11, %v4759_v11, %v10100_v14  ;;  %v4713_v48 = vpop.permute.xlu0 %4712  ;;  %v4638_v10 = vsel %vm593_vm4, %v4625_v22, %v4633_v19  ;;  %v4642_v31 = vsel %vm593_vm4, %v4633_v19, %v4625_v22  ;;  %v4914_v14 = vld [vmem:[%s10725_s8 + $0x10] sm:$0xff] }
 0x70f   : > { %v4774_v15 = vmul.f32 %v10884_v16, %v4765_v5  ;;  %v4775_v45 = vmul.f32 %v10885_v39, %v4769_v40  ;;  %v4648_v32 = vmul.f32 %v7511_v18, %v4642_v31  ;;  %v4649_v23 = vmul.f32 %v7514_v36, %v4638_v10 }
 0x711   : > { %v4781_v58 = vpack.c.bf16 %v4775_v45, %v4774_v15  ;;  %v4654_v7 = vpack.c.bf16 %v4649_v23, %v4648_v32 }
 0x713   : > { %4785 = vst [vmem:[#allocation3 + $0xc8] sm:$0xff] %v4781_v58  ;;  %4923 = vperm.xlu1 %6912, %v4913_v26   ;;  %4928 = vperm.xlu2 %6910, %v4914_v14  }
 0x714   : > { %4658 = vst [vmem:[#allocation3 + $0x50] sm:$0xff] %v4654_v7  ;;  %4933 = vperm.xlu0 %6911, %v4915_v54  }
 0x715   : > { %v4585_v62 = vpop.permute.xlu1 %4584  ;;  %v4721_v63 = vpop.permute.xlu2 %4720 }
 0x716   : > { %v4591_v1 = vpop.permute.xlu0 %4590  ;;  %v4726_v0 = vsel %vm637_vm12, %v4713_v48, %v4721_v63  ;;  %v4730_v24 = vsel %vm637_vm12, %v4721_v63, %v4713_v48 }
 0x717   : > { %v4597_v34 = vsel %vm572_vm8, %v10164_v12, %v4591_v1  ;;  %v4601_v4 = vsel %vm572_vm8, %v4591_v1, %v10164_v12  ;;  %v4736_v20 = vmul.f32 %v7574_v28, %v4726_v0  ;;  %v4737_v42 = vmul.f32 %v7577_v29, %v4730_v24 }
 0x718   : > { %v4606_v43 = vmul.f32 %v7694_v35, %v4601_v4  ;;  %v4607_v21 = vmul.f32 %v7697_v41, %v4597_v34 }
 0x719   : > { %v4742_v13 = vpack.c.bf16 %v4737_v42, %v4736_v20 }
 0x71a   : > { %v4613_v17 = vpack.c.bf16 %v4607_v21, %v4606_v43 }
 0x71b   : > { %4746 = vst [vmem:[#allocation3 + $0xb0] sm:$0xff] %v4742_v13 }
 0x71c   : > { %4617 = vst [vmem:[#allocation3 + $0x28] sm:$0xff] %v4613_v17 }
 0x71d   : > { %v10258_v61 = vpop.permute.xlu1 %4544  ;;  %v10260_v56 = vpop.permute.xlu2 %4586 }
 0x71e   : > { %v4801_v51 = vpop.permute.xlu0 %4800 }
 0x71f   : > { %v4806_v12 = vsel %vm10970_vm10, %v10178_v6, %v4801_v51  ;;  %v4810_v2 = vsel %vm10971_vm14, %v4801_v51, %v10178_v6 }
 0x720   : > { %v4816_v55 = vmul.f32 %v7291_v52, %v4806_v12  ;;  %v4817_v8 = vmul.f32 %v7294_v53, %v4810_v2  ;;  %v6413_v2 = vld [vmem:[#allocation3 + $0x68] sm:$0xf0] }
 0x722   : > { %v4822_v22 = vpack.c.bf16 %v4817_v8, %v4816_v55 }
 0x724   : > { %4826 = vst [vmem:[#allocation3 + $0xf0] sm:$0xff] %v4822_v22  ;;  %v6411_v22 = vld [vmem:[#allocation3 + $0x60] sm:$0xf] }
 0x725   : > { %v4673_v9 = vpop.permute.xlu1 %4672  ;;  %v10270_v30 = vpop.permute.xlu2 %4546 }
 0x726   : > { %v4678_v50 = vsel %vm10972_vm2, %v10128_v3, %v4673_v9  ;;  %v4682_v27 = vsel %vm10973_vm15, %v4673_v9, %v10128_v3  ;;  %v4667_v59 = vpop.permute.xlu0 %4666  ;;  %v6742_v9 = vld [vmem:[#allocation3 + $0x64] sm:$0xf] }
 0x727   : > { %v4688_v6 = vmul.f32 %v7379_v37, %v4682_v27  ;;  %v4689_v57 = vmul.f32 %v7382_v38, %v4678_v50 }
 0x729   : > { %v4694_v11 = vpack.c.bf16 %v4689_v57, %v4688_v6  ;;  %v10319_v6 = vor.u32 %v6742_v9, %v6413_v2 }
 0x72b   : > { %4698 = vst [vmem:[#allocation3 + $0x70] sm:$0xff] %v4694_v11 }
 0x72d   : > { %v4761_v19 = vpop.permute.xlu1 %4760  ;;  %v4675_v5 = vpop.permute.xlu2 %4674 }
 0x72e   : > { %v4766_v40 = vsel %vm658_vm11, %v10148_v49, %v4761_v19  ;;  %v4770_v48 = vsel %vm658_vm11, %v4761_v19, %v10148_v49  ;;  %v4755_v10 = vpop.permute.xlu0 %4754  ;;  %v4679_v3 = vsel %vm10974_vm9, %v4667_v59, %v4675_v5  ;;  %v4683_v31 = vsel %vm10975_vm1, %v4675_v5, %v4667_v59 }
 0x72f   : > { %v4776_v15 = vmul.f32 %v10884_v16, %v4766_v40  ;;  %v4777_v45 = vmul.f32 %v10885_v39, %v4770_v48  ;;  %v4690_v32 = vmul.f32 %v7379_v37, %v4683_v31  ;;  %v4691_v23 = vmul.f32 %v7382_v38, %v4679_v3 }
 0x731   : > { %v4782_v26 = vpack.c.bf16 %v4777_v45, %v4776_v15  ;;  %v4695_v14 = vpack.c.bf16 %v4691_v23, %v4690_v32 }
 0x732   : > { %v6419_v42 = vld [vmem:[#allocation3 + $0x70] sm:$0xf]  ;;  %v6744_v43 = vld [vmem:[#allocation3 + $0x74] sm:$0xf] }
 0x733   : > { %4786 = vst [vmem:[#allocation3 + $0xd0] sm:$0xff] %v4782_v26 }
 0x734   : > { %4699 = vst [vmem:[#allocation3 + $0x78] sm:$0xff] %v4695_v14 }
 0x735   : > { %v10294_v49 = vpop.permute.xlu1 %4626  ;;  %v4763_v58 = vpop.permute.xlu2 %4762 }
 0x736   : > { %v4593_v7 = vpop.permute.xlu0 %4592  ;;  %v4767_v54 = vsel %vm658_vm11, %v4755_v10, %v4763_v58  ;;  %v4771_v63 = vsel %vm658_vm11, %v4763_v58, %v4755_v10  ;;  %vm10976_vm11 = vmmov %vm10968_vm6 }
 0x737   : > { %v4598_v1 = vsel %vm572_vm8, %v4585_v62, %v4593_v7  ;;  %v4602_v37 = vsel %vm572_vm8, %v4593_v7, %v4585_v62  ;;  %v4778_v38 = vmul.f32 %v10884_v16, %v4767_v54  ;;  %v4779_v0 = vmul.f32 %v10885_v39, %v4771_v63  ;;  %v6743_v16 = vld [vmem:[#allocation3 + $0x64] sm:$0xf0] }
 0x738   : > { %v4608_v24 = vmul.f32 %v7694_v35, %v4602_v37  ;;  %v4609_v34 = vmul.f32 %v7697_v41, %v4598_v1  ;;  %v6412_v59 = vor.u32 %v6743_v16, %v6411_v22  ;;  %v6403_v16 = vld [vmem:[#allocation3 + $0x50] sm:$0xf]  ;;  %v6740_v22 = vld [vmem:[#allocation3 + $0x54] sm:$0xf] }
 0x739   : > { %v4783_v4 = vpack.c.bf16 %v4779_v0, %v4778_v38  ;;  %v6483_v0 = vld [vmem:[#allocation3 + $0xf0] sm:$0xf] }
 0x73a   : > { %v4614_v20 = vpack.c.bf16 %v4609_v34, %v4608_v24  ;;  %v6467_v2 = vld [vmem:[#allocation3 + $0xd0] sm:$0xf] }
 0x73b   : > { %4787 = vst [vmem:[#allocation3 + $0xd8] sm:$0xff] %v4783_v4  ;;  %v6745_v21 = vld [vmem:[#allocation3 + $0x74] sm:$0xf0]  ;;  %v6421_v13 = vld [vmem:[#allocation3 + $0x78] sm:$0xf0] }
 0x73c   : > { %4618 = vst [vmem:[#allocation3 + $0x30] sm:$0xff] %v4614_v20  ;;  %v6420_v17 = vor.u32 %v6745_v21, %v6419_v42  ;;  %v10308_v51 = vor.u32 %v6744_v43, %v6421_v13  ;;  %v6759_v4 = vld [vmem:[#allocation3 + $0xe4] sm:$0xf0]  ;;  %v6475_v43 = vld [vmem:[#allocation3 + $0xe0] sm:$0xf] }
 0x73d   : > { %v4715_v62 = vpop.permute.xlu1 %4714  ;;  %v4541_v12 = vpop.permute.xlu2 %4540 }
 0x73e   : > { %v4553_v39 = vpop.permute.xlu0 %4552  ;;  %5152 = vmatpush.bf16.msra.mxu1 %v6420_v17  ;;  %5209 = vmatpush.bf16.msra.mxu0 %v10308_v51 }
 0x73f   : > { %v4558_v55 = vsel %vm551_vm3, %v10258_v61, %v4553_v39  ;;  %v4562_v8 = vsel %vm551_vm3, %v4553_v39, %v10258_v61  ;;  %v6755_v39 = vld [vmem:[#allocation3 + $0xc4] sm:$0xf0] }
 0x740   : > { %v4568_v50 = vmul.f32 %v7803_v46, %v4562_v8  ;;  %v4569_v27 = vmul.f32 %v7806_v60, %v4558_v55 }
 0x742   : > { %v4574_v57 = vpack.c.bf16 %v4569_v27, %v4568_v50  ;;  %5153 = vmatpush.bf16.msra.mxu1 %v6412_v59  ;;  %5210 = vmatpush.bf16.msra.mxu0 %v10319_v6  ;;  %v6757_v17 = vld [vmem:[#allocation3 + $0xd4] sm:$0xf0]  ;;  %v6739_v59 = vld [vmem:[#allocation3 + $0x44] sm:$0xf0] }
 0x743   : > { %v6468_v8 = vor.u32 %v6757_v17, %v6467_v2  ;;  %v6735_v17 = vld [vmem:[#allocation3 + $0x24] sm:$0xf0]  ;;  %v6379_v2 = vld [vmem:[#allocation3 + $0x20] sm:$0xf] }
 0x744   : > { %4578 = vst [vmem:[#allocation3 + $0x10] sm:$0xff] %v4574_v57  ;;  %v6397_v57 = vld [vmem:[#allocation3 + $0x48] sm:$0xf0] }
 0x745   : > { %v4803_v11 = vpop.permute.xlu1 %4802  ;;  %v4551_v19 = vpop.permute.xlu2 %4550 }
 0x746   : > { %v4807_v61 = vsel %vm10976_vm11, %v10202_v44, %v4803_v11  ;;  %v4811_v5 = vsel %vm10968_vm6, %v4803_v11, %v10202_v44  ;;  %v4543_v40 = vpop.permute.xlu0 %4542 }
 0x747   : > { %v4818_v48 = vmul.f32 %v7291_v52, %v4807_v61  ;;  %v4819_v10 = vmul.f32 %v7294_v53, %v4811_v5  ;;  %v4557_v3 = vsel %vm551_vm3, %v4543_v40, %v4551_v19  ;;  %v4561_v31 = vsel %vm551_vm3, %v4551_v19, %v4543_v40 }
 0x748   : > { %v4566_v15 = vmul.f32 %v7803_v46, %v4561_v31  ;;  %v4567_v45 = vmul.f32 %v7806_v60, %v4557_v3  ;;  %v6395_v31 = vld [vmem:[#allocation3 + $0x40] sm:$0xf] }
 0x749   : > { %v4823_v32 = vpack.c.bf16 %v4819_v10, %v4818_v48 }
 0x74a   : > { %v4573_v23 = vpack.c.bf16 %v4567_v45, %v4566_v15  ;;  %v6738_v15 = vld [vmem:[#allocation3 + $0x44] sm:$0xf] }
 0x74b   : > { %4827 = vst [vmem:[#allocation3 + $0xf8] sm:$0xff] %v4823_v32  ;;  %v6396_v32 = vor.u32 %v6739_v59, %v6395_v31  ;;  %v6380_v59 = vor.u32 %v6735_v17, %v6379_v2  ;;  %v6732_v31 = vld [vmem:[#allocation3 + $0x14] sm:$0xf] }
 0x74c   : > { %4577 = vst [vmem:[#allocation3 + $0x8] sm:$0xff] %v4573_v23  ;;  %v10375_v23 = vor.u32 %v6738_v15, %v6397_v57 }
 0x74d   : > { %v4549_v44 = vpop.permute.xlu1 %4548 }
 0x74e   : > { %v4556_v52 = vsel %vm551_vm3, %v4541_v12, %v4549_v44  ;;  %v4560_v53 = vsel %vm551_vm3, %v4549_v44, %v4541_v12  ;;  %v4635_v26 = vpop.permute.xlu0 %4634 }
 0x74f   : > { %v4564_v14 = vmul.f32 %v7803_v46, %v4560_v53  ;;  %v4565_v58 = vmul.f32 %v7806_v60, %v4556_v52  ;;  %v4639_v7 = vsel %vm593_vm4, %v10294_v49, %v4635_v26  ;;  %v4643_v54 = vsel %vm593_vm4, %v4635_v26, %v10294_v49 }
 0x750   : > { %v4650_v63 = vmul.f32 %v7511_v18, %v4643_v54  ;;  %v4651_v1 = vmul.f32 %v7514_v36, %v4639_v7  ;;  %v6476_v36 = vor.u32 %v6759_v4, %v6475_v43  ;;  %v6749_v43 = vld [vmem:[#allocation3 + $0x94] sm:$0xf0] }
 0x751   : > { %v4572_v37 = vpack.c.bf16 %v4565_v58, %v4564_v14  ;;  %v6751_v14 = vld [vmem:[#allocation3 + $0xa4] sm:$0xf0] }
 0x752   : > { %v4655_v38 = vpack.c.bf16 %v4651_v1, %v4650_v63  ;;  %v6761_v24 = vld [vmem:[#allocation3 + $0xf4] sm:$0xf0] }
 0x753   : > { %4576 = vst [vmem:[#allocation3] sm:$0xff] %v4572_v37  ;;  %v6484_v34 = vor.u32 %v6761_v24, %v6483_v0  ;;  %v6443_v0 = vld [vmem:[#allocation3 + $0xa0] sm:$0xf]  ;;  %v6731_v25 = vld [vmem:[#allocation3 + $0x4] sm:$0xf0] }
 0x754   : > { %4659 = vst [vmem:[#allocation3 + $0x58] sm:$0xff] %v4655_v38 }
 0x755   : > { %v10350_v20 = vpop.permute.xlu1 %4834  ;;  %5171 = vmatpush.bf16.msra.mxu2 %v6484_v34 }
 0x756   : > { %v4723_v42 = vpop.permute.xlu0 %4722 }
 0x757   : > { %v4727_v49 = vsel %vm637_vm12, %v4715_v62, %v4723_v42  ;;  %v4731_v18 = vsel %vm637_vm12, %v4723_v42, %v4715_v62  ;;  %v6387_v42 = vld [vmem:[#allocation3 + $0x30] sm:$0xf] }
 0x758   : > { %v4738_v21 = vmul.f32 %v7574_v28, %v4727_v49  ;;  %v4739_v13 = vmul.f32 %v7577_v29, %v4731_v18  ;;  %v6459_v28 = vld [vmem:[#allocation3 + $0xc0] sm:$0xf]  ;;  %v4841_v29 = vpop.permute.xlu2 %4840  ;;  %v6736_v49 = vld [vmem:[#allocation3 + $0x34] sm:$0xf] }
 0x759   : > { %5172 = vmatpush.bf16.msra.mxu2 %v6476_v36  ;;  %v6460_v5 = vor.u32 %v6755_v39, %v6459_v28  ;;  %v6747_v39 = vld [vmem:[#allocation3 + $0x84] sm:$0xf0]  ;;  %v6427_v28 = vld [vmem:[#allocation3 + $0x80] sm:$0xf] }
 0x75a   : > { %v4743_v12 = vpack.c.bf16 %v4739_v13, %v4738_v21  ;;  %v6435_v21 = vld [vmem:[#allocation3 + $0x90] sm:$0xf] }
 0x75b   : > { %v6741_v55 = vld [vmem:[#allocation3 + $0x54] sm:$0xf0]  ;;  %v6405_v9 = vld [vmem:[#allocation3 + $0x58] sm:$0xf0] }
 0x75c   : > { %4747 = vst [vmem:[#allocation3 + $0xb8] sm:$0xff] %v4743_v12  ;;  %v6404_v50 = vor.u32 %v6741_v55, %v6403_v16  ;;  %v10358_v27 = vor.u32 %v6740_v22, %v6405_v9  ;;  %v6381_v12 = vld [vmem:[#allocation3 + $0x28] sm:$0xf0]  ;;  %v6724_v22 = vld [vmem:[%s10722_s5 + $0x4] sm:$0xf] }
 0x75d   : > { %v4595_v62 = vpop.permute.xlu1 %4594  ;;  %5173 = vmatpush.bf16.msra.mxu2 %v6468_v8  ;;  %v6734_v8 = vld [vmem:[#allocation3 + $0x24] sm:$0xf]  ;;  %v6341_v9 = vld [vmem:[%s10722_s5 + $0xc] sm:$0xf0] }
 0x75e   : > { %v4599_v11 = vsel %vm572_vm8, %v10260_v56, %v4595_v62  ;;  %v4603_v19 = vsel %vm572_vm8, %v4595_v62, %v10260_v56  ;;  %v4833_v61 = vpop.permute.xlu0 %4832  ;;  %5154 = vmatpush.bf16.msra.mxu1 %v6404_v50  ;;  %5211 = vmatpush.bf16.msra.mxu0 %v10358_v27  ;;  %v10407_v57 = vor.u32 %v6734_v8, %v6381_v12  ;;  %v6347_v12 = vld [vmem:[%s10722_s5 + $0x8] sm:$0xf] }
 0x75f   : > { %v4610_v40 = vmul.f32 %v7694_v35, %v4603_v19  ;;  %v4611_v48 = vmul.f32 %v7697_v41, %v4599_v11  ;;  %v4846_v10 = vsel %vm700_vm13, %v4833_v61, %v4841_v29  ;;  %v4850_v3 = vsel %vm700_vm13, %v4841_v29, %v4833_v61  ;;  %v6451_v41 = vld [vmem:[#allocation3 + $0xb0] sm:$0xf] }
 0x760   : > { %v4856_v45 = vmul.f32 %v10886_v47, %v4846_v10  ;;  %v4857_v56 = vmul.f32 %v10887_v33, %v4850_v3  ;;  %v6428_v19 = vor.u32 %v6747_v39, %v6427_v28  ;;  %v10412_v61 = vor.u32 %v6724_v22, %v6341_v9 }
 0x761   : > { %v4615_v44 = vpack.c.bf16 %v4611_v48, %v4610_v40  ;;  %5174 = vmatpush.bf16.msra.mxu2 %v6460_v5  ;;  %v6371_v40 = vld [vmem:[#allocation3 + $0x10] sm:$0xf] }
 0x762   : > { %v4862_v35 = vpack.c.bf16 %v4857_v56, %v4856_v45  ;;  %5155 = vmatpush.bf16.msra.mxu1 %v6396_v32  ;;  %5212 = vmatpush.bf16.msra.mxu0 %v10375_v23 }
 0x763   : > { %4619 = vst [vmem:[#allocation3 + $0x38] sm:$0xff] %v4615_v44  ;;  %v6753_v52 = vld [vmem:[#allocation3 + $0xb4] sm:$0xf0]  ;;  %v6453_v28 = vld [vmem:[#allocation3 + $0xb8] sm:$0xf0] }
 0x764   : > { %4866 = vst [vmem:[#allocation3 + $0x110] sm:$0xff] %v4862_v35  ;;  %v6452_v53 = vor.u32 %v6753_v52, %v6451_v41  ;;  %v4831_v35 = vpop.permute.xlu2 %4830 }
 0x765   : > { %v4555_v26 = vpop.permute.xlu1 %4554 }
 0x766   : > { %v4559_v58 = vsel %vm551_vm3, %v10270_v30, %v4555_v26  ;;  %v4563_v7 = vsel %vm551_vm3, %v4555_v26, %v10270_v30  ;;  %v4843_v54 = vpop.permute.xlu0 %4842  ;;  %5175 = vmatpush.bf16.msra.mxu2 %v6452_v53  ;;  %v6444_v30 = vor.u32 %v6751_v14, %v6443_v0  ;;  %v6363_v26 = vld [vmem:[#allocation3] sm:$0xf]  ;;  %v6730_v14 = vld [vmem:[#allocation3 + $0x4] sm:$0xf]  ;;  %v6365_v0 = vld [vmem:[#allocation3 + $0x8] sm:$0xf0] }
 0x767   : > { %v4570_v63 = vmul.f32 %v7803_v46, %v4563_v7  ;;  %v4571_v1 = vmul.f32 %v7806_v60, %v4559_v58  ;;  %v4847_v37 = vsel %vm700_vm13, %v10350_v20, %v4843_v54  ;;  %v4851_v38 = vsel %vm700_vm13, %v4843_v54, %v10350_v20  ;;  %v6485_v54 = vld [vmem:[#allocation3 + $0xf8] sm:$0xf0] }
 0x768   : > { %v4858_v24 = vmul.f32 %v10886_v47, %v4847_v37  ;;  %v4859_v34 = vmul.f32 %v10887_v33, %v4851_v38  ;;  %v6436_v20 = vor.u32 %v6749_v43, %v6435_v21  ;;  %v6461_v21 = vld [vmem:[#allocation3 + $0xc8] sm:$0xf0] }
 0x769   : > { %v4575_v4 = vpack.c.bf16 %v4571_v1, %v4570_v63  ;;  %v6339_v63 = vld [vmem:[%s10722_s5] sm:$0xf]  ;;  %v6725_v1 = vld [vmem:[%s10722_s5 + $0x8] sm:$0xf0] }
 0x76a   : > { %v4863_v46 = vpack.c.bf16 %v4859_v34, %v4858_v24  ;;  %5176 = vmatpush.bf16.msra.mxu2 %v6444_v30  ;;  %v6737_v60 = vld [vmem:[#allocation3 + $0x34] sm:$0xf0]  ;;  %v6389_v18 = vld [vmem:[#allocation3 + $0x38] sm:$0xf0]  ;;  %v6364_v24 = vor.u32 %v6731_v25, %v6363_v26  ;;  %v10430_v34 = vor.u32 %v6730_v14, %v6365_v0  ;;  %v6760_v30 = vld [vmem:[#allocation3 + $0xf4] sm:$0xf]  ;;  %v6340_v43 = vor.u32 %v6725_v1, %v6339_v63 }
 0x76b   : > { %4579 = vst [vmem:[#allocation3 + $0x18] sm:$0xff] %v4575_v4  ;;  %v6388_v36 = vor.u32 %v6737_v60, %v6387_v42  ;;  %v10394_v13 = vor.u32 %v6736_v49, %v6389_v18  ;;  %v6499_v3 = vld [vmem:[#allocation3 + $0x110] sm:$0xf]  ;;  %v6764_v15 = vld [vmem:[#allocation3 + $0x114] sm:$0xf]  ;;  %v6488_v42 = vor.u32 %v6760_v30, %v6485_v54  ;;  %v10981_v54 = vld [vmem:[#allocation30_spill] sm:$0xff] }
 0x76c   : > { %4867 = vst [vmem:[#allocation3 + $0x118] sm:$0xff] %v4863_v46  ;;  %v6477_v46 = vld [vmem:[#allocation3 + $0xe8] sm:$0xf0]  ;;  %v6469_v60 = vld [vmem:[#allocation3 + $0xd8] sm:$0xf0]  ;;  %v10979_v14 = vld [vmem:[#allocation35_spill] sm:$0xff] }
 0x76d   : > { %v4829_v16 = vpop.permute.xlu1 %4828  ;;  %5156 = vmatpush.bf16.msra.mxu1 %v6388_v36  ;;  %5213 = vmatpush.bf16.msra.mxu0 %v10394_v13  ;;  %v6727_v49 = vld [vmem:[%s10722_s5 + $0x1c] sm:$0xf]  ;;  %v6353_v18 = vld [vmem:[%s10722_s5 + $0x24] sm:$0xf0]  ;;  %v6756_v36 = vld [vmem:[#allocation3 + $0xd4] sm:$0xf] }
 0x76e   : > { %v4837_v55 = vpop.permute.xlu0 %4836  ;;  %5177 = vmatpush.bf16.msra.mxu2 %v6436_v20  ;;  %v6472_v20 = vor.u32 %v6756_v36, %v6469_v60  ;;  %v6356_v8 = vor.u32 %v6727_v49, %v6353_v18  ;;  %v10982_v63 = vld [vmem:[#allocation33_spill] sm:$0xff]  ;;  %v10984_v25 = vld [vmem:[#allocation42_spill] sm:$0xff]  ;;  %v10986_v30 = vld [vmem:[#allocation36_spill] sm:$0xff] }
 0x76f   : > { %v4844_v50 = vsel %vm700_vm13, %v4829_v16, %v4837_v55  ;;  %v4848_v62 = vsel %vm700_vm13, %v4837_v55, %v4829_v16  ;;  %v6726_v16 = vld [vmem:[%s10722_s5 + $0x10] sm:$0xf0]  ;;  %v10990_v36 = vld [vmem:[#allocation34_spill] sm:$0xff] }
 0x770   : > { %v4852_v29 = vmul.f32 %v10886_v47, %v4844_v50  ;;  %v4853_v11 = vmul.f32 %v10887_v33, %v4848_v62  ;;  %v6754_v50 = vld [vmem:[#allocation3 + $0xc4] sm:$0xf]  ;;  %v6348_v62 = vor.u32 %v6726_v16, %v6347_v12  ;;  %v10989_v60 = vld [vmem:[#allocation51_spill] sm:$0xff]  ;;  %v10992_v12 = vld [vmem:[#allocation44_spill] sm:$0xff] }
 0x771   : > { %5157 = vmatpush.bf16.msra.mxu1 %v6380_v59  ;;  %5214 = vmatpush.bf16.msra.mxu0 %v10407_v57  ;;  %v6464_v59 = vor.u32 %v6754_v50, %v6461_v21 }
 0x772   : > { %v4860_v5 = vpack.c.bf16 %v4853_v11, %v4852_v29  ;;  %5178 = vmatpush.bf16.msra.mxu2 %v6428_v19  ;;  %v6733_v48 = vld [vmem:[#allocation3 + $0x14] sm:$0xf0]  ;;  %v6373_v10 = vld [vmem:[#allocation3 + $0x18] sm:$0xf0]  ;;  %v6728_v11 = vld [vmem:[%s10722_s5 + $0x20] sm:$0xf0] }
 0x773   : > { %v6372_v45 = vor.u32 %v6733_v48, %v6371_v40  ;;  %v6765_v56 = vld [vmem:[#allocation3 + $0x114] sm:$0xf0]  ;;  %v10414_v32 = vor.u32 %v6732_v31, %v6373_v10  ;;  %v6501_v44 = vld [vmem:[#allocation3 + $0x118] sm:$0xf0]  ;;  %v6752_v19 = vld [vmem:[#allocation3 + $0xb4] sm:$0xf] }
 0x774   : > { %4864 = vst [vmem:[#allocation3 + $0x100] sm:$0xff] %v4860_v5  ;;  %v6500_v52 = vor.u32 %v6765_v56, %v6499_v3  ;;  %v6504_v53 = vor.u32 %v6764_v15, %v6501_v44  ;;  %v6351_v29 = vld [vmem:[%s10722_s5 + $0x18] sm:$0xf]  ;;  %v6456_v5 = vor.u32 %v6752_v19, %v6453_v28  ;;  %v6445_v48 = vld [vmem:[#allocation3 + $0xa8] sm:$0xf0] }
 0x775   : > { %v4839_v41 = vpop.permute.xlu1 %4838  ;;  %5179 = vmatmul.bf16.vlgmr.msra.gmra.mxu2 %v10412_v61  ;;  %5158 = vmatpush.bf16.msra.mxu1 %v6372_v45  ;;  %v6352_v40 = vor.u32 %v6728_v11, %v6351_v29  ;;  %v6437_v3 = vld [vmem:[#allocation3 + $0x98] sm:$0xf0]  ;;  %v6748_v31 = vld [vmem:[#allocation3 + $0x94] sm:$0xf]  ;;  %v6359_v45 = vld [vmem:[%s10722_s5 + $0x20] sm:$0xf] }
 0x776   : > { %v4845_v58 = vsel %vm700_vm13, %v4831_v35, %v4839_v41  ;;  %v4849_v7 = vsel %vm700_vm13, %v4839_v41, %v4831_v35  ;;  %5215 = vmatpush.bf16.msra.mxu0 %v10414_v32  ;;  %5196 = vmatpush.bf16.msra.mxu3 %v6500_v52  ;;  %v6440_v15 = vor.u32 %v6748_v31, %v6437_v3  ;;  %v6729_v56 = vld [vmem:[%s10722_s5 + $0x28] sm:$0xf0]  ;;  %v6746_v44 = vld [vmem:[#allocation3 + $0x84] sm:$0xf]  ;;  %v10978_v52 = vld [vmem:[#allocation40_spill] sm:$0xff]  ;;  %v2690_v26 = vpop.permute.xlu0 %2689 }
 0x777   : > { %v4854_v37 = vmul.f32 %v10886_v47, %v4845_v58  ;;  %v4855_v38 = vmul.f32 %v10887_v33, %v4849_v7  ;;  %5253 = vmatpush.bf16.msrb.mxu2 %v6504_v53  ;;  %v6758_v47 = vld [vmem:[#allocation3 + $0xe4] sm:$0xf]  ;;  %v6360_v35 = vor.u32 %v6729_v56, %v6359_v45  ;;  %v10997_v28 = vld [vmem:[#allocation58_spill] sm:$0xff]  ;;  %v11001_v3 = vld [vmem:[#allocation52_spill] sm:$0xff] }
 0x778   : > { %v6480_v33 = vor.u32 %v6758_v47, %v6477_v46  ;;  %v10980_v7 = vld [vmem:[#allocation37_spill] sm:$0xff]  ;;  %v11002_v45 = vld [vmem:[#allocation56_spill] sm:$0xff] }
 0x779   : > { %v4861_v4 = vpack.c.bf16 %v4855_v38, %v4854_v37  ;;  %5159 = vmatpush.bf16.msra.mxu1 %v6364_v24  ;;  %v10983_v37 = vld [vmem:[#allocation12_spill] sm:$0xff]  ;;  %v10985_v24 = vld [vmem:[#allocation39_spill] sm:$0xff]  ;;  %v10988_v47 = vld [vmem:[#allocation13_spill] sm:$0xff] }
 0x77a   : > { %5216 = vmatpush.bf16.msra.mxu0 %v10430_v34  ;;  %v10998_v11 = vld [vmem:[#allocation53_spill] sm:$0xff] }
 0x77b   : > { %4865 = vst [vmem:[#allocation3 + $0x108] sm:$0xff] %v4861_v4  ;;  %v6491_v17 = vld [vmem:[#allocation3 + $0x100] sm:$0xf]  ;;  %v6762_v39 = vld [vmem:[#allocation3 + $0x104] sm:$0xf] }
 0x77c   : > { %5160 = vmatmul.bf16.vlgmr.msra.gmra.mxu1 %v6340_v43 }
 0x77d   : > { %5228 = vmatpush.bf16.msrb.mxu1 %v6488_v42  ;;  %5217 = vmatmul.bf16.vlgmr.msra.gmra.mxu0 %v6340_v43  ;;  %v2695_v1 = vpop.permute.xlu1 %2694  ;;  %v10987_v43 = vld [vmem:[#allocation11_spill] sm:$0xff] }
 0x781   : > { %5229 = vmatpush.bf16.msrb.mxu1 %v6480_v33 }
 0x782   : > { %v6763_v2 = vld [vmem:[#allocation3 + $0x104] sm:$0xf0]  ;;  %v6493_v55 = vld [vmem:[#allocation3 + $0x108] sm:$0xf0] }
 0x783   : > { %v6492_v22 = vor.u32 %v6763_v2, %v6491_v17  ;;  %v6496_v9 = vor.u32 %v6762_v39, %v6493_v55  ;;  %v10993_v2 = vld [vmem:[#allocation54_spill] sm:$0xff]  ;;  %v10994_v55 = vld [vmem:[#allocation31_spill] sm:$0xff] }
 0x785   : > { %5230 = vmatpush.bf16.msrb.mxu1 %v6472_v20  ;;  %5197 = vmatpush.bf16.msra.mxu3 %v6492_v22  ;;  %v10991_v20 = vld [vmem:[#allocation47_spill] sm:$0xff] }
 0x786   : > { %5254 = vmatpush.bf16.msrb.mxu2 %v6496_v9  ;;  %v10995_v22 = vld [vmem:[#allocation43_spill] sm:$0xff] }
 0x787   : > { %5184 = vmatmul.bf16.gmra.mxu2 %v6356_v8 }
 0x788   : > { %6505 = vmatmul.msk.bf16.vlgmr.msra.gmra.mxu3 %vm4403_vm0, %v6348_v62 }
 0x789   : > { %6766 = vmatpush.bf16.msrb.mxu3 %v10308_v51  ;;  %5231 = vmatpush.bf16.msrb.mxu1 %v6464_v59  ;;  %v6750_v51 = vld [vmem:[#allocation3 + $0xa4] sm:$0xf] }
 0x78a   : > { %v6448_v10 = vor.u32 %v6750_v51, %v6445_v48  ;;  %v11000_v51 = vld [vmem:[#allocation49_spill] sm:$0xff] }
 0x78c   : > { %5165 = vmatmul.bf16.gmra.mxu1 %v6352_v40 }
 0x78d   : > { %6767 = vmatpush.bf16.msrb.mxu3 %v10319_v6  ;;  %5232 = vmatpush.bf16.msrb.mxu1 %v6456_v5  ;;  %v6429_v6 = vld [vmem:[#allocation3 + $0x88] sm:$0xf0] }
 0x78e   : > { %v6432_v41 = vor.u32 %v6746_v44, %v6429_v6  ;;  %v11003_v6 = vld [vmem:[#allocation48_spill] sm:$0xff] }
 0x791   : > { %6768 = vmatpush.bf16.msrb.mxu3 %v10358_v27  ;;  %5233 = vmatpush.bf16.msrb.mxu1 %v6448_v10  ;;  %v2685_v27 = vpop.permute.xlu2 %2684 }
 0x792   : > { %v3350_v4 = vadd.f32 %v10986_v30, %v2685_v27 }
 0x794   : > { %v3379_v49 = vadd.f32 %v10989_v60, %v3350_v4  ;;  %v11011_v4 = vld [vmem:[#allocation62_spill] sm:$0xff] }
 0x795   : > { %6769 = vmatpush.bf16.msrb.mxu3 %v10375_v23  ;;  %5234 = vmatpush.bf16.msrb.mxu1 %v6440_v15  ;;  %v10977_v23 = vld [vmem:[#allocation32_spill] sm:$0xff] }
 0x796   : > { %v3408_v39 = vadd.f32 %v10993_v2, %v3379_v49 }
 0x797   : > { %6507 = vmatmul.msk.bf16.vlgmr.msrb.gmra.mxu2 %vm4403_vm0, %v6348_v62  ;;  %v10996_v62 = vld [vmem:[#allocation46_spill] sm:$0xff] }
 0x798   : > { %6506 = vmatmul.msk.bf16.gmra.mxu3 %vm4403_vm0, %v6360_v35  ;;  %v3437_v29 = vadd.f32 %v10997_v28, %v3408_v39 }
 0x799   : > { %6770 = vmatpush.bf16.msrb.mxu3 %v10394_v13  ;;  %5235 = vmatpush.bf16.msrb.mxu1 %v6432_v41  ;;  %v3205_v13 = vadd.f32 %v10977_v23, %v2685_v27  ;;  %v2700_v18 = vpop.permute.xlu2 %2699 }
 0x79a   : > { %v3212_v21 = vadd.f32 %v10990_v36, %v2700_v18  ;;  %v3466_v31 = vadd.f32 %v11001_v3, %v3437_v29  ;;  %v11013_v36 = vld [vmem:[#allocation63_spill] sm:$0xff] }
 0x79b   : > { %v3234_v53 = vadd.f32 %v10978_v52, %v3205_v13  ;;  %v11005_v13 = vld [vmem:[#allocation60_spill] sm:$0xff] }
 0x79c   : > { %5236 = vmatmul.bf16.vlgmr.msrb.gmra.mxu1 %v10412_v61  ;;  %v3241_v9 = vadd.f32 %v10995_v22, %v3212_v21  ;;  %v6150_v23 = vmul.f32 -1.442695, %v3466_v31 }
 0x79d   : > { %6771 = vmatpush.bf16.msrb.mxu3 %v10407_v57  ;;  %v3263_v58 = vadd.f32 %v10979_v14, %v3234_v53  ;;  %v3207_v57 = vadd.f32 %v10980_v7, %v2690_v26 }
 0x79f   : > { %v3292_v61 = vadd.f32 %v10981_v54, %v3263_v58  ;;  %v11007_v58 = vld [vmem:[#allocation57_spill] sm:$0xff] }
 0x7a1   : > { %6772 = vmatpush.bf16.msrb.mxu3 %v10414_v32  ;;  %v3236_v32 = vadd.f32 %v10982_v63, %v3207_v57  ;;  %v3321_v38 = vadd.f32 %v10983_v37, %v3292_v61  ;;  %v11008_v57 = vld [vmem:[#allocation55_spill] sm:$0xff] }
 0x7a3   : > { %v3265_v0 = vadd.f32 %v10984_v25, %v3236_v32  ;;  %v6149_v42 = vmul.f32 -1.442695, %v3321_v38  ;;  %v11009_v32 = vld [vmem:[#allocation45_spill] sm:$0xff]  ;;  %v11010_v38 = vld [vmem:[#allocation59_spill] sm:$0xff] }
 0x7a5   : > { %6773 = vmatpush.bf16.msrb.mxu3 %v10430_v34  ;;  %v3210_v34 = vadd.f32 %v10985_v24, %v2695_v1  ;;  %v3294_v46 = vadd.f32 %v10987_v43, %v3265_v0  ;;  %6945 = vpow2.f32 %v6149_v42  ;;  %v11012_v43 = vld [vmem:[#allocation64_spill] sm:$0xff] }
 0x7a7   : > { %6508 = vmatmul.msk.bf16.gmra.mxu2 %vm4403_vm0, %v6360_v35  ;;  %v3239_v33 = vadd.f32 %v10988_v47, %v3210_v34  ;;  %v3323_v17 = vadd.f32 %v10991_v20, %v3294_v46  ;;  %v11004_v35 = vld [vmem:[#allocation10_spill] sm:$0xff]  ;;  %v11014_v20 = vld [vmem:[#allocation61_spill] sm:$0xff] }
 0x7a8   : > { %5222 = vmatmul.bf16.vlgmr.msrb.gmra.mxu3 %v6352_v40  ;;  %v10999_v40 = vld [vmem:[#allocation9_spill] sm:$0xff]  ;;  %v3355_v41 = vadd.f32 %v11004_v35, %v2695_v1  ;;  %v3357_v1 = vadd.f32 %v11009_v32, %v2700_v18 }
 0x7a9   : > { %v3268_v16 = vadd.f32 %v10992_v12, %v3239_v33  ;;  %v6151_v50 = vmul.f32 -1.442695, %v3323_v17  ;;  %v3270_v48 = vadd.f32 %v10999_v40, %v3241_v9 }
 0x7aa   : > { %v3384_v7 = vadd.f32 %v11007_v58, %v3355_v41  ;;  %v3386_v42 = vadd.f32 %v11011_v4, %v3357_v1 }
 0x7ab   : > { %v3297_v59 = vadd.f32 %v10996_v62, %v3268_v16  ;;  %v6946_v5 = vpop.eup %6945  ;;  %6947 = vpow2.f32 %v6151_v50  ;;  %v3299_v44 = vadd.f32 %v11003_v6, %v3270_v48  ;;  %v10545_v6 = vpop.permute.xlu0 %4918 }
 0x7ac   : > { %5241 = vmatmul.bf16.gmra.mxu1 %v6356_v8  ;;  %v3352_v8 = vadd.f32 %v10994_v55, %v2690_v26  ;;  %v10495_v15 = vadd.f32 1.0, %v6946_v5  ;;  %v11006_v26 = vld [vmem:[#allocation50_spill] sm:$0xff]  ;;  %v3413_v25 = vadd.f32 %v11010_v38, %v3384_v7  ;;  %v3415_v21 = vadd.f32 %v11013_v36, %v3386_v42 }
 0x7ad   : > { %v3326_v10 = vadd.f32 %v11000_v51, %v3297_v59  ;;  %v3328_v14 = vadd.f32 %v11006_v26, %v3299_v44 }
 0x7ae   : > { %v3381_v19 = vadd.f32 %v10998_v11, %v3352_v8  ;;  %6949 = vrcp.f32 %v10495_v15  ;;  %v3442_v46 = vadd.f32 %v11012_v43, %v3413_v25  ;;  %v11015_v8 = vld [vmem:[#allocation66_spill] sm:$0xff]  ;;  %v3576_v40 = vand.u32 2147483648, %v10495_v15  ;;  %v6993_v43 = vld [vmem:[#allocation2 + $0x30] sm:$0xff] }
 0x7af   : > { %v6153_v27 = vmul.f32 -1.442695, %v3326_v10  ;;  %v6155_v37 = vmul.f32 -1.442695, %v3328_v14  ;;  %v3444_v22 = vadd.f32 %v11015_v8, %v3415_v21  ;;  %vm3570_vm12 = vweird.f32 %v10495_v15 }
 0x7b0   : > { %v3410_v56 = vadd.f32 %v11002_v45, %v3381_v19  ;;  %v3471_v17 = vadd.f32 %v11014_v20, %v3442_v46  ;;  %v11016_v19 = vld [vmem:[#allocation65_spill] sm:$0xff]  ;;  %v3574_v10 = vand.u32 2147483647, %v10495_v15  ;;  %v3577_v44 = vor.u32 1.1754944e-38, %v3576_v40 }
 0x7b1   : > { %v6948_v53 = vpop.eup %6947  ;;  %6951 = vpow2.f32 %v6153_v27  ;;  %v3473_v5 = vadd.f32 %v11016_v19, %v3444_v22 }
 0x7b2   : > { %v3439_v52 = vadd.f32 %v11005_v13, %v3410_v56  ;;  %6953 = vpow2.f32 %v6150_v23  ;;  %v10505_v61 = vadd.f32 1.0, %v6948_v53  ;;  %v6154_v9 = vmul.f32 -1.442695, %v3471_v17 }
 0x7b3   : > { %v6156_v56 = vmul.f32 -1.442695, %v3473_v5  ;;  %vm3575_vm8 = vcmp.eq.f32.partialorder %v3574_v10, 8.507059e+37 }
 0x7b4   : > { %v3468_v54 = vadd.f32 %v11008_v57, %v3439_v52  ;;  %v6950_v63 = vpop.eup %6949  ;;  %6955 = vrcp.f32 %v10505_v61  ;;  %v3606_v26 = vand.u32 2147483648, %v10505_v61  ;;  %vm3600_vm0 = vweird.f32 %v10505_v61 }
 0x7b5   : > { %v3566_v34 = vmul.f32 %v6950_v63, %v10495_v15  ;;  %6957 = vpow2.f32 %v6155_v37  ;;  %vm3571_vm4 = vweird.f32 %v6950_v63 }
 0x7b6   : > { %v6152_v0 = vmul.f32 -1.442695, %v3468_v54  ;;  %vm3572_vm13 = vmor %vm3570_vm12, %vm3571_vm4 }
 0x7b7   : > { %v6952_v24 = vpop.eup %6951  ;;  %v3567_v49 = vsub.f32 1.0, %v3566_v34  ;;  %v3607_v34 = vor.u32 1.1754944e-38, %v3606_v26 }
 0x7b8   : > { %v6954_v30 = vpop.eup %6953  ;;  %6959 = vpow2.f32 %v6152_v0  ;;  %v10513_v47 = vadd.f32 1.0, %v6952_v24 }
 0x7b9   : > { %v10515_v33 = vadd.f32 1.0, %v6954_v30  ;;  %v3568_v2 = vmul.f32 %v6950_v63, %v3567_v49 }
 0x7ba   : > { %v10517_v18 = vpop.eup %6955  ;;  %6961 = vrcp.f32 %v10513_v47  ;;  %vm3630_vm2 = vweird.f32 %v10513_v47 }
 0x7bb   : > { %v6958_v16 = vpop.eup %6957  ;;  %6963 = vrcp.f32 %v10515_v33  ;;  %v3596_v39 = vmul.f32 %v10517_v18, %v10505_v61  ;;  %v3569_v28 = vadd.f32 %v6950_v63, %v3568_v2  ;;  %vm3601_vm3 = vweird.f32 %v10517_v18 }
 0x7bc   : > { %v10526_v50 = vadd.f32 1.0, %v6958_v16  ;;  %6965 = vpow2.f32 %v6154_v9  ;;  %vm10565_vm5 = vmor %vm3600_vm0, %vm3601_vm3  ;;  %v3589_v36 = vand.u32 2147483647, %v10515_v33  ;;  %v3591_v21 = vand.u32 2147483648, %v10515_v33 }
 0x7bd   : > { %v3597_v29 = vsub.f32 1.0, %v3596_v39  ;;  %v3573_v3 = vsel %vm3572_vm13, %v6950_v63, %v3569_v28  ;;  %v3604_v63 = vand.u32 2147483647, %v10505_v61  ;;  %v10575_v61 = vpop.permute.xlu1 %4923  ;;  %v3636_v2 = vand.u32 2147483648, %v10513_v47 }
 0x7be   : > { %v6960_v55 = vpop.eup %6959  ;;  %6967 = vrcp.f32 %v10526_v50  ;;  %v3578_v41 = vsel %vm3575_vm8, %v3577_v44, %v3573_v3  ;;  %v3634_v28 = vand.u32 2147483647, %v10513_v47  ;;  %vm3585_vm9 = vweird.f32 %v10515_v33 }
 0x7bf   : > { %v10528_v62 = vadd.f32 1.0, %v6960_v55  ;;  %v3598_v31 = vmul.f32 %v10517_v18, %v3597_v29  ;;  %v5266_v54 = vsub.f32 1.0, %v3578_v41  ;;  %vm3605_vm7 = vcmp.eq.f32.partialorder %v3604_v63, 8.507059e+37 }
 0x7c0   : > { %v10532_v11 = vpop.eup %6961  ;;  %vm10615_vm11 = vcmp.eq.f32.partialorder %v3589_v36, 8.507059e+37  ;;  %vm3635_vm6 = vcmp.eq.f32.partialorder %v3634_v28, 8.507059e+37  ;;  %v3666_v63 = vand.u32 2147483648, %v10526_v50  ;;  %vm3660_vm13 = vweird.f32 %v10526_v50 }
 0x7c1   : > { %v10536_v48 = vpop.eup %6963  ;;  %6969 = vrcp.f32 %v10528_v62  ;;  %v3626_v45 = vmul.f32 %v10532_v11, %v10513_v47  ;;  %v3599_v23 = vadd.f32 %v10517_v18, %v3598_v31  ;;  %v5274_v46 = vmul.f32 %v6993_v43, %v5266_v54 }
 0x7c2   : > { %v3581_v35 = vmul.f32 %v10536_v48, %v10515_v33  ;;  %v6966_v27 = vpop.eup %6965  ;;  %6971 = vpow2.f32 %v6156_v56  ;;  %vm3631_vm10 = vweird.f32 %v10532_v11  ;;  %vm3586_vm14 = vweird.f32 %v10536_v48  ;;  %v10622_v33 = vpop.permute.xlu2 %4928 }
 0x7c3   : > { %v3627_v13 = vsub.f32 1.0, %v3626_v45  ;;  %v10561_v32 = vadd.f32 1.0, %v6966_v27  ;;  %v3603_v25 = vsel %vm10565_vm5, %v10517_v18, %v3599_v23  ;;  %vm10601_vm15 = vmor %vm3630_vm2, %vm3631_vm10  ;;  %v3637_v45 = vor.u32 1.1754944e-38, %v3636_v2 }
 0x7c4   : > { %v10552_v52 = vpop.eup %6967  ;;  %v3582_v14 = vsub.f32 1.0, %v3581_v35  ;;  %v3608_v18 = vsel %vm3605_vm7, %v3607_v34, %v3603_v25  ;;  %vm10611_vm1 = vmor %vm3585_vm9, %vm3586_vm14  ;;  %v3592_v56 = vor.u32 1.1754944e-38, %v3591_v21  ;;  %vm3615_vm3 = vweird.f32 %v10528_v62  ;;  %v6995_v21 = vld [vmem:[#allocation2 + $0x8] sm:$0xff] }
 0x7c5   : > { %v3628_v0 = vmul.f32 %v10532_v11, %v3627_v13  ;;  %v3656_v24 = vmul.f32 %v10552_v52, %v10526_v50  ;;  %6973 = vrcp.f32 %v10561_v32  ;;  %v5268_v9 = vsub.f32 1.0, %v3608_v18 }
 0x7c6   : > { %v3583_v30 = vmul.f32 %v10536_v48, %v3582_v14  ;;  %vm3661_vm4 = vweird.f32 %v10552_v52  ;;  %v3664_v13 = vand.u32 2147483647, %v10526_v50  ;;  %vm3645_vm14 = vweird.f32 %v10561_v32 }
 0x7c7   : > { %v10557_v58 = vpop.eup %6969  ;;  %v3629_v17 = vadd.f32 %v10532_v11, %v3628_v0  ;;  %v3621_v0 = vand.u32 2147483648, %v10528_v62  ;;  %vm10649_vm8 = vmor %vm3660_vm13, %vm3661_vm4 }
 0x7c8   : > { %v3611_v4 = vmul.f32 %v10557_v58, %v10528_v62  ;;  %v6972_v49 = vpop.eup %6971  ;;  %v3584_v39 = vadd.f32 %v10536_v48, %v3583_v30  ;;  %vm3616_vm12 = vweird.f32 %v10557_v58  ;;  %vm3665_vm5 = vcmp.eq.f32.partialorder %v3664_v13, 8.507059e+37  ;;  %v6998_v13 = vld [vmem:[#allocation2 + $0x10] sm:$0xff] }
 0x7c9   : > { %v10597_v29 = vadd.f32 1.0, %v6972_v49  ;;  %vm10660_vm0 = vmor %vm3615_vm3, %vm3616_vm12  ;;  %v3622_v2 = vor.u32 1.1754944e-38, %v3621_v0 }
 0x7ca   : > { %v3612_v55 = vsub.f32 1.0, %v3611_v4 }
 0x7cb   : > { %v10620_v31 = vpop.eup %6973  ;;  %6975 = vrcp.f32 %v10597_v29 }
 0x7cc   : > { %v3613_v44 = vmul.f32 %v10557_v58, %v3612_v55  ;;  %vm3646_vm10 = vweird.f32 %v10620_v31 }
 0x7cd   : > { %vm3647_vm2 = vmor %vm3645_vm14, %vm3646_vm10 }
 0x7f8   : > { %v5180_v60 = vpop.f32.mrf.mxu2 }
 0x7f9   : > { %v5161_v12 = vpop.f32.mrf.mxu1 }
 0x7fa   : > { %v5162_v15 = vadd.f32 %v5161_v12, %v10545_v6  ;;  %v3657_v12 = vsub.f32 1.0, %v3656_v24 }
 0x7fc   : > { %v5181_v7 = vadd.f32 %v5180_v60, %v5162_v15  ;;  %v3658_v3 = vmul.f32 %v10552_v52, %v3657_v12  ;;  %v6994_v15 = vld [vmem:[#allocation2 + $0x18] sm:$0xff] }
 0x7fe   : > { %v3659_v14 = vadd.f32 %v10552_v52, %v3658_v3 }
 0x800   : > { %v10530_v59 = vpop.f32.mrf.mxu2  ;;  %v3663_v50 = vsel %vm10649_vm8, %v10552_v52, %v3659_v14 }
 0x801   : > { %v5163_v51 = vpop.f32.mrf.mxu1 }
 0x802   : > { %v5164_v42 = vadd.f32 %v5163_v51, %v10575_v61  ;;  %v3633_v51 = vsel %vm10601_vm15, %v10532_v11, %v3629_v17  ;;  %v3588_v11 = vsel %vm10611_vm1, %v10536_v48, %v3584_v39  ;;  %v6996_v39 = vld [vmem:[#allocation2] sm:$0xff]  ;;  %vm3675_vm1 = vweird.f32 %v10597_v29 }
 0x803   : > { %v3638_v23 = vsel %vm3635_vm6, %v3637_v45, %v3633_v51  ;;  %v3593_v48 = vsel %vm10615_vm11, %v3592_v56, %v3588_v11 }
 0x804   : > { %v5183_v8 = vadd.f32 %v10530_v59, %v5164_v42  ;;  %v5218_v59 = vpop.f32.mrf.mxu0  ;;  %v5270_v25 = vsub.f32 1.0, %v3638_v23 }
 0x806   : > { %v5278_v17 = vmul.f32 %v6995_v21, %v5270_v25 }
 0x809   : > { %v5166_v57 = vpop.f32.mrf.mxu1 }
 0x80a   : > { %v10554_v53 = vpop.f32.mrf.mxu2  ;;  %v5167_v35 = vadd.f32 %v5166_v57, %v10622_v33  ;;  %v5219_v57 = vadd.f32 %v5218_v59, %v10545_v6  ;;  %v5267_v6 = vsub.f32 1.0, %v3593_v48 }
 0x80b   : > { %v5199_v1 = vpop.f32.mrf.mxu3 }
 0x80c   : > { %v5200_v38 = vadd.f32 %v5199_v1, %v5181_v7  ;;  %v3641_v7 = vmul.f32 %v10620_v31, %v10561_v32  ;;  %v3614_v1 = vadd.f32 %v10557_v58, %v3613_v44  ;;  %v5186_v37 = vadd.f32 %v10554_v53, %v5167_v35  ;;  %v5220_v36 = vpop.f32.mrf.mxu0 }
 0x80d   : > { %v3619_v53 = vand.u32 2147483647, %v10528_v62  ;;  %v5275_v55 = vmul.f32 %v6996_v39, %v5267_v6  ;;  %v5221_v59 = vadd.f32 %v5220_v36, %v10575_v61 }
 0x80e   : > { %v5282_v60 = vmul.f32 %v5200_v38, %v3578_v41  ;;  %v5276_v41 = vmul.f32 %v6994_v15, %v5268_v9  ;;  %v3642_v43 = vsub.f32 1.0, %v3641_v7  ;;  %v3618_v62 = vsel %vm10660_vm0, %v10557_v58, %v3614_v1 }
 0x80f   : > { %vm3620_vm7 = vcmp.eq.f32.partialorder %v3619_v53, 8.507059e+37  ;;  %v3679_v53 = vand.u32 2147483647, %v10597_v29 }
 0x810   : > { %v10584_v20 = vadd.f32 %v5282_v60, %v5274_v46  ;;  %v10664_v46 = vpop.eup %6975  ;;  %v10666_v60 = vpop.permute.xlu0 %4933  ;;  %v3643_v5 = vmul.f32 %v10620_v31, %v3642_v43 }
 0x811   : > { %v5168_v22 = vpop.f32.mrf.mxu1  ;;  %v3671_v58 = vmul.f32 %v10664_v46, %v10597_v29  ;;  %vm3676_vm9 = vweird.f32 %v10664_v46  ;;  %vm3680_vm6 = vcmp.eq.f32.partialorder %v3679_v53, 8.507059e+37 }
 0x812   : > { %v10588_v16 = vpop.f32.mrf.mxu2  ;;  %5298 = vst [vmem:[#allocation2 + $0x30] sm:$0xff] %v10584_v20  ;;  %v5169_v52 = vadd.f32 %v5168_v22, %v10666_v60  ;;  %v3644_v35 = vadd.f32 %v10620_v31, %v3643_v5  ;;  %vm3677_vm11 = vmor %vm3675_vm1, %vm3676_vm9 }
 0x813   : > { %v5201_v19 = vpop.f32.mrf.mxu3  ;;  %v3672_v61 = vsub.f32 1.0, %v3671_v58 }
 0x814   : > { %v5202_v40 = vadd.f32 %v5201_v19, %v5183_v8  ;;  %v3623_v19 = vsel %vm3620_vm7, %v3622_v2, %v3618_v62  ;;  %v7000_v2 = vld [vmem:[#allocation2 + $0x38] sm:$0xff] }
 0x815   : > { %v5269_v56 = vsub.f32 1.0, %v3623_v19 }
 0x816   : > { %v5284_v27 = vmul.f32 %v5202_v40, %v3608_v18  ;;  %v3667_v18 = vor.u32 1.1754944e-38, %v3666_v63  ;;  %v5188_v40 = vadd.f32 %v10588_v16, %v5169_v52  ;;  %v3651_v16 = vand.u32 2147483648, %v10561_v32 }
 0x818   : > { %v10632_v26 = vadd.f32 %v5284_v27, %v5276_v41  ;;  %v3668_v9 = vsel %vm3665_vm5, %v3667_v18, %v3663_v50  ;;  %v6997_v41 = vld [vmem:[#allocation2 + $0x28] sm:$0xff]  ;;  %v3652_v1 = vor.u32 1.1754944e-38, %v3651_v16  ;;  %v6999_v50 = vld [vmem:[#allocation2 + $0x20] sm:$0xff] }
 0x819   : > { %v5237_v38 = vpop.f32.mrf.mxu1  ;;  %v5272_v47 = vsub.f32 1.0, %v3668_v9 }
 0x81a   : > { %v5256_v54 = vpop.f32.mrf.mxu2  ;;  %5300 = vst [vmem:[#allocation2 + $0x18] sm:$0xff] %v10632_v26  ;;  %v5238_v24 = vadd.f32 %v5237_v38, %v5219_v57  ;;  %v3648_v57 = vsel %vm3647_vm2, %v10620_v31, %v3644_v35 }
 0x81b   : > { %v5204_v34 = vpop.f32.mrf.mxu3  ;;  %v5280_v27 = vmul.f32 %v6997_v41, %v5272_v47 }
 0x81c   : > { %v5205_v4 = vadd.f32 %v5204_v34, %v5186_v37  ;;  %v5257_v49 = vadd.f32 %v5256_v54, %v5238_v24  ;;  %v3673_v54 = vmul.f32 %v10664_v46, %v3672_v61  ;;  %v3681_v34 = vand.u32 2147483648, %v10597_v29 }
 0x81e   : > { %v5286_v12 = vmul.f32 %v5205_v4, %v3638_v23  ;;  %v5283_v8 = vmul.f32 %v5257_v49, %v3593_v48  ;;  %v5277_v48 = vmul.f32 %v6998_v13, %v5269_v56  ;;  %v3674_v24 = vadd.f32 %v10664_v46, %v3673_v54 }
 0x820   : > { %v10672_v28 = vadd.f32 %v5286_v12, %v5278_v17  ;;  %v5291_v22 = vadd.f32 %v5283_v8, %v5275_v55  ;;  %v3678_v4 = vsel %vm3677_vm11, %v10664_v46, %v3674_v24 }
 0x821   : > { %v5239_v51 = vpop.f32.mrf.mxu1 }
 0x822   : > { %5302 = vst [vmem:[#allocation2 + $0x8] sm:$0xff] %v10672_v28  ;;  %v5306_v10 = vpack.c.bf16 %v5291_v22, %v10584_v20  ;;  %v5240_v3 = vadd.f32 %v5239_v51, %v5221_v59  ;;  %v5258_v11 = vpop.f32.mrf.mxu2  ;;  %v3649_v20 = vand.u32 2147483647, %v10561_v32 }
 0x823   : > { %5299 = vst [vmem:[#allocation2] sm:$0xff] %v5291_v22  ;;  %v5206_v45 = vpop.f32.mrf.mxu3 }
 0x824   : > { %v5207_v44 = vadd.f32 %v5206_v45, %v5188_v40  ;;  %5310 = vst [vmem:[%s7144_s13] sm:$0xff] %v5306_v10  ;;  %v5259_v15 = vadd.f32 %v5258_v11, %v5240_v3  ;;  %vm3650_vm15 = vcmp.eq.f32.partialorder %v3649_v20, 8.507059e+37 }
 0x825   : > { %v3653_v32 = vsel %vm3650_vm15, %v3652_v1, %v3648_v57 }
 0x826   : > { %v5288_v23 = vmul.f32 %v5207_v44, %v3668_v9  ;;  %v5285_v14 = vmul.f32 %v5259_v15, %v3623_v19  ;;  %v5271_v30 = vsub.f32 1.0, %v3653_v32 }
 0x828   : > { %v5296_v7 = vadd.f32 %v5288_v23, %v5280_v27  ;;  %v5293_v63 = vadd.f32 %v5285_v14, %v5277_v48  ;;  %v5279_v42 = vmul.f32 %v6999_v50, %v5271_v30 }
 0x829   : > { %v5242_v25 = vpop.f32.mrf.mxu1 }
 0x82a   : > { %5304 = vst [vmem:[#allocation2 + $0x28] sm:$0xff] %v5296_v7  ;;  %v5307_v37 = vpack.c.bf16 %v5293_v63, %v10632_v26  ;;  %v5261_v31 = vpop.f32.mrf.mxu2 }
 0x82b   : > { %5301 = vst [vmem:[#allocation2 + $0x10] sm:$0xff] %v5293_v63  ;;  %v5223_v38 = vpop.f32.mrf.mxu3 }
 0x82c   : > { %v5224_v0 = vadd.f32 %v5223_v38, %v10622_v33  ;;  %5311 = vst [vmem:[%s7144_s13 + $0x8] sm:$0xff] %v5307_v37  ;;  %v3682_v33 = vor.u32 1.1754944e-38, %v3681_v34 }
 0x82e   : > { %v5243_v6 = vadd.f32 %v5242_v25, %v5224_v0  ;;  %v3683_v18 = vsel %vm3680_vm6, %v3682_v33, %v3678_v4 }
 0x82f   : > { %v5273_v17 = vsub.f32 1.0, %v3683_v18 }
 0x830   : > { %v5262_v26 = vadd.f32 %v5261_v31, %v5243_v6 }
 0x831   : > { %v5244_v52 = vpop.f32.mrf.mxu1  ;;  %v5281_v39 = vmul.f32 %v7000_v2, %v5273_v17 }
 0x832   : > { %v5287_v43 = vmul.f32 %v5262_v26, %v3653_v32  ;;  %v5263_v12 = vpop.f32.mrf.mxu2 }
 0x833   : > { %v5225_v49 = vpop.f32.mrf.mxu3 }
 0x834   : > { %v5295_v62 = vadd.f32 %v5287_v43, %v5279_v42  ;;  %v5226_v36 = vadd.f32 %v5225_v49, %v10666_v60 }
 0x836   : > { %5303 = vst [vmem:[#allocation2 + $0x20] sm:$0xff] %v5295_v62  ;;  %v5308_v29 = vpack.c.bf16 %v5295_v62, %v10672_v28  ;;  %v5245_v21 = vadd.f32 %v5244_v52, %v5226_v36 }
 0x838   : > { %5312 = vst [vmem:[%s7144_s13 + $0x10] sm:$0xff] %v5308_v29  ;;  %v5264_v46 = vadd.f32 %v5263_v12, %v5245_v21 }
 0x83a   : > { %v5289_v55 = vmul.f32 %v5264_v46, %v3683_v18 }
 0x83c   : > { %v5297_v8 = vadd.f32 %v5289_v55, %v5281_v39 }
 0x83e   : > { %5305 = vst [vmem:[#allocation2 + $0x38] sm:$0xff] %v5297_v8  ;;  %v5309_v9 = vpack.c.bf16 %v5297_v8, %v5296_v7 }
 0x840   : > { %5313 = vst [vmem:[%s7144_s13 + $0x18] sm:$0xff] %v5309_v9 }
 0x841 PF: > { %s11029_s30 = sld [smem:[#allocation6_spill]] }
 0x842   : > { %s11031_s10 = sld [smem:[#allocation5_spill]] }
 0x843   : > { %s11032_s11 = sld [smem:[#allocation7_spill]] }
 0x844   : > { %s11033_s12 = sld [smem:[#allocation8_spill]] }
 0x847   : > { %s19_s13 = sadd.s32 1, %s11029_s30   ;;  %s11030_s30 = sld [smem:[#allocation4_spill]] }
 0x848   : > { %p16_p8 = scmp.ge.s32.totalorder %s19_s13, 8  }
 0x84a   :  { %18 = sbr.rel (!%p16_p8) target bundleno = 3 (0x3), region = 93 }

</bundles_post_ra>
